<compile_context>
chip_gen: v7x
topology: tpu7x:2x2x1
jax: 0.10.0
libtpu: 0.0.40
codegen_flags: <defaults>
</compile_context>

<pallas_src>
import jax
import jax.numpy as jnp
from jax.experimental import pallas as pl
from jax.experimental.pallas import tpu as pltpu


# ----------------------------------------------------------------------------
# In-kernel building blocks
# ----------------------------------------------------------------------------
def _bmm(lhs, rhs):
    """(G, M, K) @ (G, K, N) -> (G, M, N) with f32 accumulation (MXU)."""
    return jax.lax.dot_general(
        lhs, rhs,
        dimension_numbers=(((2,), (1,)), ((0,), (0,))),
        preferred_element_type=jnp.float32)


def _conv3x3_s2(a_pad, w_taps, bias, *, apply_relu):
    """3x3 conv, stride 2, padding 1, on a zero-padded channels-last input.

    a_pad : (Hp, Wp, Cin)  f32, Hp = 2*Ho + 2, Wp = 2*Wo + 2 (borders zero).
    w_taps: (9, Cin, Cout) f32, tap index = di*3 + dj (PyTorch OIHW order).
    bias  : (1, Cout)      f32.
    Returns (Ho, Wo, Cout) f32.
    """
    hp, wp, c_in = a_pad.shape
    c_out = w_taps.shape[-1]
    ho, wo = (hp - 2) // 2, (wp - 2) // 2

    # Column decimation dec[dj][r, v, :] = a_pad[r, 2*v + dj, :], expressed as
    # a row-batched matmul with a constant 0/1 selection matrix so the
    # stride-2 gather runs on the MXU (no strided vector loads needed).
    dec = []
    for dj in range(3):
        v_idx = jax.lax.broadcasted_iota(jnp.int32, (wo, wp), 0)
        w_idx = jax.lax.broadcasted_iota(jnp.int32, (wo, wp), 1)
        sel = jnp.where(w_idx == 2 * v_idx + dj, 1.0, 0.0).astype(jnp.float32)
        sel = jnp.broadcast_to(sel[None], (hp, wo, wp))        # (Hp, Wo, Wp)
        dec.append(_bmm(sel, a_pad))                           # (Hp, Wo, Cin)

    out = jnp.zeros((ho, wo, c_out), jnp.float32)
    for di in range(3):
        for dj in range(3):
            # Row decimation (rows di, di+2, ...): leading-dim slice+reshape.
            tap = dec[dj][di:di + 2 * ho]                      # (2Ho, Wo, Cin)
            tap = tap.reshape(ho, 2, wo, c_in)[:, 0]           # (Ho, Wo, Cin)
            w_tap = jnp.broadcast_to(w_taps[di * 3 + dj][None],
                                     (ho, c_in, c_out))        # (Ho, Cin, Cout)
            out = out + _bmm(tap, w_tap)                       # (Ho, Wo, Cout)
    out = out + bias                                           # (1, Cout) bcast
    if apply_relu:
        out = jnp.maximum(out, 0.0)
    return out


def _encoder_kernel(xp_ref, w1_ref, b1_ref, w2_ref, b2_ref, w3_ref, b3_ref,
                    wl_ref, bl_ref, out_ref, act2_ref, act3_ref):
    """Fused encoder forward for ONE batch element (grid axis = batch)."""
    # Padded VMEM scratches for layer-2 / layer-3 inputs; zeros = conv padding.
    act2_ref[...] = jnp.zeros_like(act2_ref)
    act3_ref[...] = jnp.zeros_like(act3_ref)

    # conv1 + ReLU (network input arrives already zero-padded, NHWC).
    h1 = _conv3x3_s2(xp_ref[0], w1_ref[...], b1_ref[...], apply_relu=True)
    ho1, wo1, _ = h1.shape
    act2_ref[1:1 + ho1, 1:1 + wo1, :] = h1

    # conv2 + ReLU.
    h2 = _conv3x3_s2(act2_ref[...], w2_ref[...], b2_ref[...], apply_relu=True)
    ho2, wo2, _ = h2.shape
    act3_ref[1:1 + ho2, 1:1 + wo2, :] = h2

    # conv3 (no ReLU).
    h3 = _conv3x3_s2(act3_ref[...], w3_ref[...], b3_ref[...], apply_relu=False)
    ho3, wo3, _ = h3.shape

    # Flatten + Linear.  wl_ref is pre-permuted to (H, W, C, latent) so the
    # PyTorch (C, H, W) flatten order is baked into the weight, not the data.
    acc = bl_ref[...]                                          # (1, latent)
    for hh in range(ho3):
        row = h3[hh]                                           # (Wo3, C)
        for wi in range(wo3):
            acc = acc + jnp.dot(row[wi:wi + 1, :], wl_ref[hh, wi],
                                preferred_element_type=jnp.float32)
    out_ref[0] = acc


# ----------------------------------------------------------------------------
# Host-side wrapper
# ----------------------------------------------------------------------------
def prepare_params(params):
    """One-time re-layout of PyTorch-style parameters for the fused kernel."""
    def conv_w(w):                       # (Cout, Cin, 3, 3) -> (9, Cin, Cout)
        co, ci = w.shape[0], w.shape[1]
        return jnp.transpose(w, (2, 3, 1, 0)).reshape(9, ci, co)

    latent, feat = params["wl"].shape
    c3 = params["w3"].shape[0]                       # 4 * c_hid
    hw = int(round((feat // c3) ** 0.5))             # final spatial (4)
    wl = params["wl"].reshape(latent, c3, hw, hw)
    wl = jnp.transpose(wl, (2, 3, 1, 0))             # (H, W, C, latent)
    return {
        "w1": conv_w(params["w1"]), "b1": params["b1"].reshape(1, -1),
        "w2": conv_w(params["w2"]), "b2": params["b2"].reshape(1, -1),
        "w3": conv_w(params["w3"]), "b3": params["b3"].reshape(1, -1),
        "wl": wl, "bl": params["bl"].reshape(1, -1),
    }


@jax.jit
def encoder_forward(x_nchw, prep):
    B, c_in, H, W = x_nchw.shape
    c_hid = prep["w1"].shape[-1]
    latent = prep["bl"].shape[-1]
    ho1, wo1 = H // 2, W // 2
    ho2, wo2 = ho1 // 2, wo1 // 2
    ho3, wo3 = ho2 // 2, wo2 // 2
    hp1, wp1 = H + 2, W + 2

    # The only host-side layout work: NCHW -> zero-padded NHWC (lane = channels).
    xp = jnp.pad(jnp.transpose(x_nchw, (0, 2, 3, 1)),
                 ((0, 0), (1, 1), (1, 1), (0, 0)))

    flops = 2 * B * (
        ho1 * wo1 * 9 * c_in * c_hid
        + ho2 * wo2 * 9 * c_hid * 2 * c_hid
        + ho3 * wo3 * 9 * 2 * c_hid * 4 * c_hid
        + ho3 * wo3 * 4 * c_hid * latent
        + 3 * (hp1 * wo1 * wp1 * c_in
               + (ho1 + 2) * wo2 * (wo1 + 2) * c_hid
               + (ho2 + 2) * wo3 * (wo2 + 2) * 2 * c_hid))
    bytes_accessed = 4 * (xp.size + B * latent
                          + sum(prep[k].size for k in prep))

    out = pl.pallas_call(
        _encoder_kernel,
        out_shape=jax.ShapeDtypeStruct((B, 1, latent), jnp.float32),
        grid=(B,),
        in_specs=[
            pl.BlockSpec((1, hp1, wp1, c_in), lambda b: (b, 0, 0, 0)),
            pl.BlockSpec((9, c_in, c_hid), lambda b: (0, 0, 0)),
            pl.BlockSpec((1, c_hid), lambda b: (0, 0)),
            pl.BlockSpec((9, c_hid, 2 * c_hid), lambda b: (0, 0, 0)),
            pl.BlockSpec((1, 2 * c_hid), lambda b: (0, 0)),
            pl.BlockSpec((9, 2 * c_hid, 4 * c_hid), lambda b: (0, 0, 0)),
            pl.BlockSpec((1, 4 * c_hid), lambda b: (0, 0)),
            pl.BlockSpec((ho3, wo3, 4 * c_hid, latent), lambda b: (0, 0, 0, 0)),
            pl.BlockSpec((1, latent), lambda b: (0, 0)),
        ],
        out_specs=pl.BlockSpec((1, 1, latent), lambda b: (b, 0, 0)),
        scratch_shapes=[
            pltpu.VMEM((ho1 + 2, wo1 + 2, c_hid), jnp.float32),
            pltpu.VMEM((ho2 + 2, wo2 + 2, 2 * c_hid), jnp.float32),
        ],
        compiler_params=pltpu.CompilerParams(
            dimension_semantics=("parallel",),
            vmem_limit_bytes=32 * 1024 * 1024),
        cost_estimate=pl.CostEstimate(flops=flops, transcendentals=0,
                                      bytes_accessed=bytes_accessed),
    )(xp, prep["w1"], prep["b1"], prep["w2"], prep["b2"],
      prep["w3"], prep["b3"], prep["wl"], prep["bl"])
    return out.reshape(B, latent)


# ----------------------------------------------------------------------------
# Pure-JAX reference (for correctness check)
# ----------------------------------------------------------------------------
def _conv_ref(x, w, b):
    y = jax.lax.conv_general_dilated(
        x, w, window_strides=(2, 2), padding=((1, 1), (1, 1)),
        dimension_numbers=("NCHW", "OIHW", "NCHW"))
    return y + b[None, :, None, None]


def encoder_ref(x, params):
    h = jnp.maximum(_conv_ref(x, params["w1"], params["b1"]), 0.0)
    h = jnp.maximum(_conv_ref(h, params["w2"], params["b2"]), 0.0)
    h = _conv_ref(h, params["w3"], params["b3"])
    flat = h.reshape(h.shape[0], -1)
    return flat @ params["wl"].T + params["bl"]


# ----------------------------------------------------------------------------
# Deterministic parameter init (synthetic weights, not a checkpoint)
# ----------------------------------------------------------------------------
def init_params(key, num_input_channels, c_hid, latent_dim):
    ks = jax.random.split(key, 8)

    def w(k, shape, fan_in):
        return jax.random.normal(k, shape, jnp.float32) / jnp.sqrt(fan_in)

    return {
        "w1": w(ks[0], (c_hid, num_input_channels, 3, 3), num_input_channels * 9),
        "b1": w(ks[1], (c_hid,), num_input_channels * 9),
        "w2": w(ks[2], (2 * c_hid, c_hid, 3, 3), c_hid * 9),
        "b2": w(ks[3], (2 * c_hid,), c_hid * 9),
        "w3": w(ks[4], (4 * c_hid, 2 * c_hid, 3, 3), 2 * c_hid * 9),
        "b3": w(ks[5], (4 * c_hid,), 2 * c_hid * 9),
        "wl": w(ks[6], (latent_dim, 4 * c_hid * 4 * 4), 4 * c_hid * 16),
        "bl": w(ks[7], (latent_dim,), 4 * c_hid * 16),
    }


if __name__ == "__main__":
    # Linear expects 4*c_hid*4*4 features -> final spatial 4x4 -> input 32x32.
    B, C_in, HW = 2, 3, 32
    c_hid, latent_dim = 8, 32

    key = jax.random.PRNGKey(0)
    k_x, k_p = jax.random.split(key)
    x = jax.random.normal(k_x, (B, C_in, HW, HW), jnp.float32)
    params = init_params(k_p, C_in, c_hid, latent_dim)
    prep = prepare_params(params)          # one-time weight re-layout

    out = jax.block_until_ready(encoder_forward(x, prep))
    ref = jax.block_until_ready(encoder_ref(x, params))

    assert out.shape == (B, latent_dim), out.shape
    assert jnp.allclose(out, ref, atol=1e-4, rtol=1e-4), \
        f"max abs err {jnp.max(jnp.abs(out - ref))}"
    print("KERNEL_OK")
</pallas_src>

<mosaic_0001>
module attributes {stable_mosaic.version = 11 : i64} {
  func.func @_encoder_kernel(%arg0: i32, %arg1: memref<1x34x34x3xf32, #tpu.memory_space<vmem>>, %arg2: memref<9x3x8xf32, #tpu.memory_space<vmem>>, %arg3: memref<1x8xf32, #tpu.memory_space<vmem>>, %arg4: memref<9x8x16xf32, #tpu.memory_space<vmem>>, %arg5: memref<1x16xf32, #tpu.memory_space<vmem>>, %arg6: memref<9x16x32xf32, #tpu.memory_space<vmem>>, %arg7: memref<1x32xf32, #tpu.memory_space<vmem>>, %arg8: memref<4x4x32x32xf32, #tpu.memory_space<vmem>>, %arg9: memref<1x32xf32, #tpu.memory_space<vmem>>, %arg10: memref<1x1x32xf32, #tpu.memory_space<vmem>>, %arg11: memref<18x18x8xf32, #tpu.memory_space<vmem>>, %arg12: memref<10x10x16xf32, #tpu.memory_space<vmem>>) attributes {dimension_semantics = [#tpu.dimension_semantics<parallel>], iteration_bounds = array<i64: 2>, scalar_prefetch = 0 : i64, scratch_operands = 2 : i64, tpu.core_type = #tpu.core_type<tc>, window_params = [{transform_indices = @transform_0, window_bounds = array<i64: 1, 34, 34, 3>}, {pipeline_mode = #tpu.pipeline_mode<synchronous>, transform_indices = @transform_1, window_bounds = array<i64: 9, 3, 8>}, {pipeline_mode = #tpu.pipeline_mode<synchronous>, transform_indices = @transform_2, window_bounds = array<i64: 1, 8>}, {pipeline_mode = #tpu.pipeline_mode<synchronous>, transform_indices = @transform_3, window_bounds = array<i64: 9, 8, 16>}, {pipeline_mode = #tpu.pipeline_mode<synchronous>, transform_indices = @transform_4, window_bounds = array<i64: 1, 16>}, {pipeline_mode = #tpu.pipeline_mode<synchronous>, transform_indices = @transform_5, window_bounds = array<i64: 9, 16, 32>}, {pipeline_mode = #tpu.pipeline_mode<synchronous>, transform_indices = @transform_6, window_bounds = array<i64: 1, 32>}, {pipeline_mode = #tpu.pipeline_mode<synchronous>, transform_indices = @transform_7, window_bounds = array<i64: 4, 4, 32, 32>}, {pipeline_mode = #tpu.pipeline_mode<synchronous>, transform_indices = @transform_8, window_bounds = array<i64: 1, 32>}, {transform_indices = @transform_9, window_bounds = array<i64: 1, 1, 32>}]} {
    %cst = arith.constant 0.000000e+00 : f32
    %0 = vector.broadcast %cst : f32 to vector<18x18x8xf32>
    %c0 = arith.constant 0 : index
    %c0_0 = arith.constant 0 : index
    %c0_1 = arith.constant 0 : index
    %1 = vector.load %arg11[%c0, %c0_0, %c0_1] : memref<18x18x8xf32, #tpu.memory_space<vmem>>, vector<18x18x8xf32>
    tpu.vector_store %arg11[%c0, %c0_0, %c0_1], %0 {strides = array<i32>} : memref<18x18x8xf32, #tpu.memory_space<vmem>>, vector<18x18x8xf32>,
    %cst_2 = arith.constant 0.000000e+00 : f32
    %2 = vector.broadcast %cst_2 : f32 to vector<10x10x16xf32>
    %c0_3 = arith.constant 0 : index
    %c0_4 = arith.constant 0 : index
    %c0_5 = arith.constant 0 : index
    %3 = vector.load %arg12[%c0_3, %c0_4, %c0_5] : memref<10x10x16xf32, #tpu.memory_space<vmem>>, vector<10x10x16xf32>
    tpu.vector_store %arg12[%c0_3, %c0_4, %c0_5], %2 {strides = array<i32>} : memref<10x10x16xf32, #tpu.memory_space<vmem>>, vector<10x10x16xf32>,
    %c0_6 = arith.constant 0 : index
    %c0_7 = arith.constant 0 : index
    %c0_8 = arith.constant 0 : index
    %c0_9 = arith.constant 0 : index
    %4 = vector.load %arg1[%c0_6, %c0_7, %c0_8, %c0_9] : memref<1x34x34x3xf32, #tpu.memory_space<vmem>>, vector<1x34x34x3xf32>
    %5 = vector.shape_cast %4 : vector<1x34x34x3xf32> to vector<34x34x3xf32>
    %c0_10 = arith.constant 0 : index
    %c0_11 = arith.constant 0 : index
    %c0_12 = arith.constant 0 : index
    %6 = vector.load %arg2[%c0_10, %c0_11, %c0_12] : memref<9x3x8xf32, #tpu.memory_space<vmem>>, vector<9x3x8xf32>
    %c0_13 = arith.constant 0 : index
    %c0_14 = arith.constant 0 : index
    %7 = vector.load %arg3[%c0_13, %c0_14] : memref<1x8xf32, #tpu.memory_space<vmem>>, vector<1x8xf32>
    %8 = tpu.iota {dimensions = array<i32: 0>} : vector<16x34xi32>
    %9 = tpu.iota {dimensions = array<i32: 1>} : vector<16x34xi32>
    %c2_i32 = arith.constant 2 : i32
    %10 = vector.broadcast %c2_i32 : i32 to vector<16x34xi32>
    %11 = arith.muli %10, %8 : vector<16x34xi32>
    %c0_i32 = arith.constant 0 : i32
    %12 = vector.broadcast %c0_i32 : i32 to vector<16x34xi32>
    %13 = arith.addi %11, %12 : vector<16x34xi32>
    %14 = arith.cmpi eq, %9, %13 : vector<16x34xi32>
    %cst_15 = arith.constant 1.000000e+00 : f32
    %cst_16 = arith.constant 0.000000e+00 : f32
    %15 = vector.broadcast %cst_15 : f32 to vector<16x34xf32>
    %16 = vector.broadcast %cst_16 : f32 to vector<16x34xf32>
    %17 = arith.select %14, %15, %16 : vector<16x34xi1>, vector<16x34xf32>
    %18 = vector.shape_cast %17 : vector<16x34xf32> to vector<1x16x34xf32>
    %19 = vector.shape_cast %18 : vector<1x16x34xf32> to vector<1x16x34xf32>
    %20 = vector.broadcast %19 : vector<1x16x34xf32> to vector<34x16x34xf32>
    %cst_17 = arith.constant dense<0.000000e+00> : vector<34x16x3xf32>
    %21 = tpu.matmul %20, %5, %cst_17 {dimension_numbers = #tpu.dot_dimension_numbers<[2], [1], [1], [2], [0, 0, 0, 1, 1, 2], [0], [0]>} : vector<34x16x34xf32>, vector<34x34x3xf32>, vector<34x16x3xf32> -> vector<34x16x3xf32>
    %22 = tpu.iota {dimensions = array<i32: 0>} : vector<16x34xi32>
    %23 = tpu.iota {dimensions = array<i32: 1>} : vector<16x34xi32>
    %c2_i32_18 = arith.constant 2 : i32
    %24 = vector.broadcast %c2_i32_18 : i32 to vector<16x34xi32>
    %25 = arith.muli %24, %22 : vector<16x34xi32>
    %c1_i32 = arith.constant 1 : i32
    %26 = vector.broadcast %c1_i32 : i32 to vector<16x34xi32>
    %27 = arith.addi %25, %26 : vector<16x34xi32>
    %28 = arith.cmpi eq, %23, %27 : vector<16x34xi32>
    %cst_19 = arith.constant 1.000000e+00 : f32
    %cst_20 = arith.constant 0.000000e+00 : f32
    %29 = vector.broadcast %cst_19 : f32 to vector<16x34xf32>
    %30 = vector.broadcast %cst_20 : f32 to vector<16x34xf32>
    %31 = arith.select %28, %29, %30 : vector<16x34xi1>, vector<16x34xf32>
    %32 = vector.shape_cast %31 : vector<16x34xf32> to vector<1x16x34xf32>
    %33 = vector.shape_cast %32 : vector<1x16x34xf32> to vector<1x16x34xf32>
    %34 = vector.broadcast %33 : vector<1x16x34xf32> to vector<34x16x34xf32>
    %cst_21 = arith.constant dense<0.000000e+00> : vector<34x16x3xf32>
    %35 = tpu.matmul %34, %5, %cst_21 {dimension_numbers = #tpu.dot_dimension_numbers<[2], [1], [1], [2], [0, 0, 0, 1, 1, 2], [0], [0]>} : vector<34x16x34xf32>, vector<34x34x3xf32>, vector<34x16x3xf32> -> vector<34x16x3xf32>
    %36 = tpu.iota {dimensions = array<i32: 0>} : vector<16x34xi32>
    %37 = tpu.iota {dimensions = array<i32: 1>} : vector<16x34xi32>
    %c2_i32_22 = arith.constant 2 : i32
    %38 = vector.broadcast %c2_i32_22 : i32 to vector<16x34xi32>
    %39 = arith.muli %38, %36 : vector<16x34xi32>
    %c2_i32_23 = arith.constant 2 : i32
    %40 = vector.broadcast %c2_i32_23 : i32 to vector<16x34xi32>
    %41 = arith.addi %39, %40 : vector<16x34xi32>
    %42 = arith.cmpi eq, %37, %41 : vector<16x34xi32>
    %cst_24 = arith.constant 1.000000e+00 : f32
    %cst_25 = arith.constant 0.000000e+00 : f32
    %43 = vector.broadcast %cst_24 : f32 to vector<16x34xf32>
    %44 = vector.broadcast %cst_25 : f32 to vector<16x34xf32>
    %45 = arith.select %42, %43, %44 : vector<16x34xi1>, vector<16x34xf32>
    %46 = vector.shape_cast %45 : vector<16x34xf32> to vector<1x16x34xf32>
    %47 = vector.shape_cast %46 : vector<1x16x34xf32> to vector<1x16x34xf32>
    %48 = vector.broadcast %47 : vector<1x16x34xf32> to vector<34x16x34xf32>
    %cst_26 = arith.constant dense<0.000000e+00> : vector<34x16x3xf32>
    %49 = tpu.matmul %48, %5, %cst_26 {dimension_numbers = #tpu.dot_dimension_numbers<[2], [1], [1], [2], [0, 0, 0, 1, 1, 2], [0], [0]>} : vector<34x16x34xf32>, vector<34x34x3xf32>, vector<34x16x3xf32> -> vector<34x16x3xf32>
    %cst_27 = arith.constant 0.000000e+00 : f32
    %50 = vector.broadcast %cst_27 : f32 to vector<16x16x8xf32>
    %51 = vector.extract_strided_slice %21 {offsets = [0, 0, 0], sizes = [32, 16, 3], strides = [1, 1, 1]} : vector<34x16x3xf32> to vector<32x16x3xf32>
    %52 = vector.shape_cast %51 : vector<32x16x3xf32> to vector<16x2x16x3xf32>
    %53 = vector.extract_strided_slice %52 {offsets = [0, 0, 0, 0], sizes = [16, 1, 16, 3], strides = [1, 1, 1, 1]} : vector<16x2x16x3xf32> to vector<16x1x16x3xf32>
    %54 = vector.shape_cast %53 : vector<16x1x16x3xf32> to vector<16x16x3xf32>
    %55 = vector.extract_strided_slice %6 {offsets = [0, 0, 0], sizes = [1, 3, 8], strides = [1, 1, 1]} : vector<9x3x8xf32> to vector<1x3x8xf32>
    %56 = vector.shape_cast %55 : vector<1x3x8xf32> to vector<3x8xf32>
    %57 = vector.shape_cast %56 : vector<3x8xf32> to vector<1x3x8xf32>
    %58 = vector.shape_cast %57 : vector<1x3x8xf32> to vector<1x3x8xf32>
    %59 = vector.broadcast %58 : vector<1x3x8xf32> to vector<16x3x8xf32>
    %cst_28 = arith.constant dense<0.000000e+00> : vector<16x16x8xf32>
    %60 = tpu.matmul %54, %59, %cst_28 {dimension_numbers = #tpu.dot_dimension_numbers<[2], [1], [1], [2], [0, 0, 0, 1, 1, 2], [0], [0]>} : vector<16x16x3xf32>, vector<16x3x8xf32>, vector<16x16x8xf32> -> vector<16x16x8xf32>
    %61 = arith.addf %50, %60 : vector<16x16x8xf32>
    %62 = vector.extract_strided_slice %35 {offsets = [0, 0, 0], sizes = [32, 16, 3], strides = [1, 1, 1]} : vector<34x16x3xf32> to vector<32x16x3xf32>
    %63 = vector.shape_cast %62 : vector<32x16x3xf32> to vector<16x2x16x3xf32>
    %64 = vector.extract_strided_slice %63 {offsets = [0, 0, 0, 0], sizes = [16, 1, 16, 3], strides = [1, 1, 1, 1]} : vector<16x2x16x3xf32> to vector<16x1x16x3xf32>
    %65 = vector.shape_cast %64 : vector<16x1x16x3xf32> to vector<16x16x3xf32>
    %66 = vector.extract_strided_slice %6 {offsets = [1, 0, 0], sizes = [1, 3, 8], strides = [1, 1, 1]} : vector<9x3x8xf32> to vector<1x3x8xf32>
    %67 = vector.shape_cast %66 : vector<1x3x8xf32> to vector<3x8xf32>
    %68 = vector.shape_cast %67 : vector<3x8xf32> to vector<1x3x8xf32>
    %69 = vector.shape_cast %68 : vector<1x3x8xf32> to vector<1x3x8xf32>
    %70 = vector.broadcast %69 : vector<1x3x8xf32> to vector<16x3x8xf32>
    %cst_29 = arith.constant dense<0.000000e+00> : vector<16x16x8xf32>
    %71 = tpu.matmul %65, %70, %cst_29 {dimension_numbers = #tpu.dot_dimension_numbers<[2], [1], [1], [2], [0, 0, 0, 1, 1, 2], [0], [0]>} : vector<16x16x3xf32>, vector<16x3x8xf32>, vector<16x16x8xf32> -> vector<16x16x8xf32>
    %72 = arith.addf %61, %71 : vector<16x16x8xf32>
    %73 = vector.extract_strided_slice %49 {offsets = [0, 0, 0], sizes = [32, 16, 3], strides = [1, 1, 1]} : vector<34x16x3xf32> to vector<32x16x3xf32>
    %74 = vector.shape_cast %73 : vector<32x16x3xf32> to vector<16x2x16x3xf32>
    %75 = vector.extract_strided_slice %74 {offsets = [0, 0, 0, 0], sizes = [16, 1, 16, 3], strides = [1, 1, 1, 1]} : vector<16x2x16x3xf32> to vector<16x1x16x3xf32>
    %76 = vector.shape_cast %75 : vector<16x1x16x3xf32> to vector<16x16x3xf32>
    %77 = vector.extract_strided_slice %6 {offsets = [2, 0, 0], sizes = [1, 3, 8], strides = [1, 1, 1]} : vector<9x3x8xf32> to vector<1x3x8xf32>
    %78 = vector.shape_cast %77 : vector<1x3x8xf32> to vector<3x8xf32>
    %79 = vector.shape_cast %78 : vector<3x8xf32> to vector<1x3x8xf32>
    %80 = vector.shape_cast %79 : vector<1x3x8xf32> to vector<1x3x8xf32>
    %81 = vector.broadcast %80 : vector<1x3x8xf32> to vector<16x3x8xf32>
    %cst_30 = arith.constant dense<0.000000e+00> : vector<16x16x8xf32>
    %82 = tpu.matmul %76, %81, %cst_30 {dimension_numbers = #tpu.dot_dimension_numbers<[2], [1], [1], [2], [0, 0, 0, 1, 1, 2], [0], [0]>} : vector<16x16x3xf32>, vector<16x3x8xf32>, vector<16x16x8xf32> -> vector<16x16x8xf32>
    %83 = arith.addf %72, %82 : vector<16x16x8xf32>
    %84 = vector.extract_strided_slice %21 {offsets = [1, 0, 0], sizes = [32, 16, 3], strides = [1, 1, 1]} : vector<34x16x3xf32> to vector<32x16x3xf32>
    %85 = vector.shape_cast %84 : vector<32x16x3xf32> to vector<16x2x16x3xf32>
    %86 = vector.extract_strided_slice %85 {offsets = [0, 0, 0, 0], sizes = [16, 1, 16, 3], strides = [1, 1, 1, 1]} : vector<16x2x16x3xf32> to vector<16x1x16x3xf32>
    %87 = vector.shape_cast %86 : vector<16x1x16x3xf32> to vector<16x16x3xf32>
    %88 = vector.extract_strided_slice %6 {offsets = [3, 0, 0], sizes = [1, 3, 8], strides = [1, 1, 1]} : vector<9x3x8xf32> to vector<1x3x8xf32>
    %89 = vector.shape_cast %88 : vector<1x3x8xf32> to vector<3x8xf32>
    %90 = vector.shape_cast %89 : vector<3x8xf32> to vector<1x3x8xf32>
    %91 = vector.shape_cast %90 : vector<1x3x8xf32> to vector<1x3x8xf32>
    %92 = vector.broadcast %91 : vector<1x3x8xf32> to vector<16x3x8xf32>
    %cst_31 = arith.constant dense<0.000000e+00> : vector<16x16x8xf32>
    %93 = tpu.matmul %87, %92, %cst_31 {dimension_numbers = #tpu.dot_dimension_numbers<[2], [1], [1], [2], [0, 0, 0, 1, 1, 2], [0], [0]>} : vector<16x16x3xf32>, vector<16x3x8xf32>, vector<16x16x8xf32> -> vector<16x16x8xf32>
    %94 = arith.addf %83, %93 : vector<16x16x8xf32>
    %95 = vector.extract_strided_slice %35 {offsets = [1, 0, 0], sizes = [32, 16, 3], strides = [1, 1, 1]} : vector<34x16x3xf32> to vector<32x16x3xf32>
    %96 = vector.shape_cast %95 : vector<32x16x3xf32> to vector<16x2x16x3xf32>
    %97 = vector.extract_strided_slice %96 {offsets = [0, 0, 0, 0], sizes = [16, 1, 16, 3], strides = [1, 1, 1, 1]} : vector<16x2x16x3xf32> to vector<16x1x16x3xf32>
    %98 = vector.shape_cast %97 : vector<16x1x16x3xf32> to vector<16x16x3xf32>
    %99 = vector.extract_strided_slice %6 {offsets = [4, 0, 0], sizes = [1, 3, 8], strides = [1, 1, 1]} : vector<9x3x8xf32> to vector<1x3x8xf32>
    %100 = vector.shape_cast %99 : vector<1x3x8xf32> to vector<3x8xf32>
    %101 = vector.shape_cast %100 : vector<3x8xf32> to vector<1x3x8xf32>
    %102 = vector.shape_cast %101 : vector<1x3x8xf32> to vector<1x3x8xf32>
    %103 = vector.broadcast %102 : vector<1x3x8xf32> to vector<16x3x8xf32>
    %cst_32 = arith.constant dense<0.000000e+00> : vector<16x16x8xf32>
    %104 = tpu.matmul %98, %103, %cst_32 {dimension_numbers = #tpu.dot_dimension_numbers<[2], [1], [1], [2], [0, 0, 0, 1, 1, 2], [0], [0]>} : vector<16x16x3xf32>, vector<16x3x8xf32>, vector<16x16x8xf32> -> vector<16x16x8xf32>
    %105 = arith.addf %94, %104 : vector<16x16x8xf32>
    %106 = vector.extract_strided_slice %49 {offsets = [1, 0, 0], sizes = [32, 16, 3], strides = [1, 1, 1]} : vector<34x16x3xf32> to vector<32x16x3xf32>
    %107 = vector.shape_cast %106 : vector<32x16x3xf32> to vector<16x2x16x3xf32>
    %108 = vector.extract_strided_slice %107 {offsets = [0, 0, 0, 0], sizes = [16, 1, 16, 3], strides = [1, 1, 1, 1]} : vector<16x2x16x3xf32> to vector<16x1x16x3xf32>
    %109 = vector.shape_cast %108 : vector<16x1x16x3xf32> to vector<16x16x3xf32>
    %110 = vector.extract_strided_slice %6 {offsets = [5, 0, 0], sizes = [1, 3, 8], strides = [1, 1, 1]} : vector<9x3x8xf32> to vector<1x3x8xf32>
    %111 = vector.shape_cast %110 : vector<1x3x8xf32> to vector<3x8xf32>
    %112 = vector.shape_cast %111 : vector<3x8xf32> to vector<1x3x8xf32>
    %113 = vector.shape_cast %112 : vector<1x3x8xf32> to vector<1x3x8xf32>
    %114 = vector.broadcast %113 : vector<1x3x8xf32> to vector<16x3x8xf32>
    %cst_33 = arith.constant dense<0.000000e+00> : vector<16x16x8xf32>
    %115 = tpu.matmul %109, %114, %cst_33 {dimension_numbers = #tpu.dot_dimension_numbers<[2], [1], [1], [2], [0, 0, 0, 1, 1, 2], [0], [0]>} : vector<16x16x3xf32>, vector<16x3x8xf32>, vector<16x16x8xf32> -> vector<16x16x8xf32>
    %116 = arith.addf %105, %115 : vector<16x16x8xf32>
    %117 = vector.extract_strided_slice %21 {offsets = [2, 0, 0], sizes = [32, 16, 3], strides = [1, 1, 1]} : vector<34x16x3xf32> to vector<32x16x3xf32>
    %118 = vector.shape_cast %117 : vector<32x16x3xf32> to vector<16x2x16x3xf32>
    %119 = vector.extract_strided_slice %118 {offsets = [0, 0, 0, 0], sizes = [16, 1, 16, 3], strides = [1, 1, 1, 1]} : vector<16x2x16x3xf32> to vector<16x1x16x3xf32>
    %120 = vector.shape_cast %119 : vector<16x1x16x3xf32> to vector<16x16x3xf32>
    %121 = vector.extract_strided_slice %6 {offsets = [6, 0, 0], sizes = [1, 3, 8], strides = [1, 1, 1]} : vector<9x3x8xf32> to vector<1x3x8xf32>
    %122 = vector.shape_cast %121 : vector<1x3x8xf32> to vector<3x8xf32>
    %123 = vector.shape_cast %122 : vector<3x8xf32> to vector<1x3x8xf32>
    %124 = vector.shape_cast %123 : vector<1x3x8xf32> to vector<1x3x8xf32>
    %125 = vector.broadcast %124 : vector<1x3x8xf32> to vector<16x3x8xf32>
    %cst_34 = arith.constant dense<0.000000e+00> : vector<16x16x8xf32>
    %126 = tpu.matmul %120, %125, %cst_34 {dimension_numbers = #tpu.dot_dimension_numbers<[2], [1], [1], [2], [0, 0, 0, 1, 1, 2], [0], [0]>} : vector<16x16x3xf32>, vector<16x3x8xf32>, vector<16x16x8xf32> -> vector<16x16x8xf32>
    %127 = arith.addf %116, %126 : vector<16x16x8xf32>
    %128 = vector.extract_strided_slice %35 {offsets = [2, 0, 0], sizes = [32, 16, 3], strides = [1, 1, 1]} : vector<34x16x3xf32> to vector<32x16x3xf32>
    %129 = vector.shape_cast %128 : vector<32x16x3xf32> to vector<16x2x16x3xf32>
    %130 = vector.extract_strided_slice %129 {offsets = [0, 0, 0, 0], sizes = [16, 1, 16, 3], strides = [1, 1, 1, 1]} : vector<16x2x16x3xf32> to vector<16x1x16x3xf32>
    %131 = vector.shape_cast %130 : vector<16x1x16x3xf32> to vector<16x16x3xf32>
    %132 = vector.extract_strided_slice %6 {offsets = [7, 0, 0], sizes = [1, 3, 8], strides = [1, 1, 1]} : vector<9x3x8xf32> to vector<1x3x8xf32>
    %133 = vector.shape_cast %132 : vector<1x3x8xf32> to vector<3x8xf32>
    %134 = vector.shape_cast %133 : vector<3x8xf32> to vector<1x3x8xf32>
    %135 = vector.shape_cast %134 : vector<1x3x8xf32> to vector<1x3x8xf32>
    %136 = vector.broadcast %135 : vector<1x3x8xf32> to vector<16x3x8xf32>
    %cst_35 = arith.constant dense<0.000000e+00> : vector<16x16x8xf32>
    %137 = tpu.matmul %131, %136, %cst_35 {dimension_numbers = #tpu.dot_dimension_numbers<[2], [1], [1], [2], [0, 0, 0, 1, 1, 2], [0], [0]>} : vector<16x16x3xf32>, vector<16x3x8xf32>, vector<16x16x8xf32> -> vector<16x16x8xf32>
    %138 = arith.addf %127, %137 : vector<16x16x8xf32>
    %139 = vector.extract_strided_slice %49 {offsets = [2, 0, 0], sizes = [32, 16, 3], strides = [1, 1, 1]} : vector<34x16x3xf32> to vector<32x16x3xf32>
    %140 = vector.shape_cast %139 : vector<32x16x3xf32> to vector<16x2x16x3xf32>
    %141 = vector.extract_strided_slice %140 {offsets = [0, 0, 0, 0], sizes = [16, 1, 16, 3], strides = [1, 1, 1, 1]} : vector<16x2x16x3xf32> to vector<16x1x16x3xf32>
    %142 = vector.shape_cast %141 : vector<16x1x16x3xf32> to vector<16x16x3xf32>
    %143 = vector.extract_strided_slice %6 {offsets = [8, 0, 0], sizes = [1, 3, 8], strides = [1, 1, 1]} : vector<9x3x8xf32> to vector<1x3x8xf32>
    %144 = vector.shape_cast %143 : vector<1x3x8xf32> to vector<3x8xf32>
    %145 = vector.shape_cast %144 : vector<3x8xf32> to vector<1x3x8xf32>
    %146 = vector.shape_cast %145 : vector<1x3x8xf32> to vector<1x3x8xf32>
    %147 = vector.broadcast %146 : vector<1x3x8xf32> to vector<16x3x8xf32>
    %cst_36 = arith.constant dense<0.000000e+00> : vector<16x16x8xf32>
    %148 = tpu.matmul %142, %147, %cst_36 {dimension_numbers = #tpu.dot_dimension_numbers<[2], [1], [1], [2], [0, 0, 0, 1, 1, 2], [0], [0]>} : vector<16x16x3xf32>, vector<16x3x8xf32>, vector<16x16x8xf32> -> vector<16x16x8xf32>
    %149 = arith.addf %138, %148 : vector<16x16x8xf32>
    %150 = vector.shape_cast %7 : vector<1x8xf32> to vector<1x1x8xf32>
    %151 = vector.broadcast %150 : vector<1x1x8xf32> to vector<16x16x8xf32>
    %152 = arith.addf %149, %151 : vector<16x16x8xf32>
    %cst_37 = arith.constant 0.000000e+00 : f32
    %153 = vector.broadcast %cst_37 : f32 to vector<16x16x8xf32>
    %154 = arith.maximumf %152, %153 : vector<16x16x8xf32>
    %c1 = arith.constant 1 : index
    %c1_38 = arith.constant 1 : index
    %c0_39 = arith.constant 0 : index
    %155 = vector.load %arg11[%c1, %c1_38, %c0_39] : memref<18x18x8xf32, #tpu.memory_space<vmem>>, vector<16x16x8xf32>
    tpu.vector_store %arg11[%c1, %c1_38, %c0_39], %154 {strides = array<i32>} : memref<18x18x8xf32, #tpu.memory_space<vmem>>, vector<16x16x8xf32>,
    %c0_40 = arith.constant 0 : index
    %c0_41 = arith.constant 0 : index
    %c0_42 = arith.constant 0 : index
    %156 = vector.load %arg11[%c0_40, %c0_41, %c0_42] : memref<18x18x8xf32, #tpu.memory_space<vmem>>, vector<18x18x8xf32>
    %c0_43 = arith.constant 0 : index
    %c0_44 = arith.constant 0 : index
    %c0_45 = arith.constant 0 : index
    %157 = vector.load %arg4[%c0_43, %c0_44, %c0_45] : memref<9x8x16xf32, #tpu.memory_space<vmem>>, vector<9x8x16xf32>
    %c0_46 = arith.constant 0 : index
    %c0_47 = arith.constant 0 : index
    %158 = vector.load %arg5[%c0_46, %c0_47] : memref<1x16xf32, #tpu.memory_space<vmem>>, vector<1x16xf32>
    %159 = tpu.iota {dimensions = array<i32: 0>} : vector<8x18xi32>
    %160 = tpu.iota {dimensions = array<i32: 1>} : vector<8x18xi32>
    %c2_i32_48 = arith.constant 2 : i32
    %161 = vector.broadcast %c2_i32_48 : i32 to vector<8x18xi32>
    %162 = arith.muli %161, %159 : vector<8x18xi32>
    %c0_i32_49 = arith.constant 0 : i32
    %163 = vector.broadcast %c0_i32_49 : i32 to vector<8x18xi32>
    %164 = arith.addi %162, %163 : vector<8x18xi32>
    %165 = arith.cmpi eq, %160, %164 : vector<8x18xi32>
    %cst_50 = arith.constant 1.000000e+00 : f32
    %cst_51 = arith.constant 0.000000e+00 : f32
    %166 = vector.broadcast %cst_50 : f32 to vector<8x18xf32>
    %167 = vector.broadcast %cst_51 : f32 to vector<8x18xf32>
    %168 = arith.select %165, %166, %167 : vector<8x18xi1>, vector<8x18xf32>
    %169 = vector.shape_cast %168 : vector<8x18xf32> to vector<1x8x18xf32>
    %170 = vector.shape_cast %169 : vector<1x8x18xf32> to vector<1x8x18xf32>
    %171 = vector.broadcast %170 : vector<1x8x18xf32> to vector<18x8x18xf32>
    %cst_52 = arith.constant dense<0.000000e+00> : vector<18x8x8xf32>
    %172 = tpu.matmul %171, %156, %cst_52 {dimension_numbers = #tpu.dot_dimension_numbers<[2], [1], [1], [2], [0, 0, 0, 1, 1, 2], [0], [0]>} : vector<18x8x18xf32>, vector<18x18x8xf32>, vector<18x8x8xf32> -> vector<18x8x8xf32>
    %173 = tpu.iota {dimensions = array<i32: 0>} : vector<8x18xi32>
    %174 = tpu.iota {dimensions = array<i32: 1>} : vector<8x18xi32>
    %c2_i32_53 = arith.constant 2 : i32
    %175 = vector.broadcast %c2_i32_53 : i32 to vector<8x18xi32>
    %176 = arith.muli %175, %173 : vector<8x18xi32>
    %c1_i32_54 = arith.constant 1 : i32
    %177 = vector.broadcast %c1_i32_54 : i32 to vector<8x18xi32>
    %178 = arith.addi %176, %177 : vector<8x18xi32>
    %179 = arith.cmpi eq, %174, %178 : vector<8x18xi32>
    %cst_55 = arith.constant 1.000000e+00 : f32
    %cst_56 = arith.constant 0.000000e+00 : f32
    %180 = vector.broadcast %cst_55 : f32 to vector<8x18xf32>
    %181 = vector.broadcast %cst_56 : f32 to vector<8x18xf32>
    %182 = arith.select %179, %180, %181 : vector<8x18xi1>, vector<8x18xf32>
    %183 = vector.shape_cast %182 : vector<8x18xf32> to vector<1x8x18xf32>
    %184 = vector.shape_cast %183 : vector<1x8x18xf32> to vector<1x8x18xf32>
    %185 = vector.broadcast %184 : vector<1x8x18xf32> to vector<18x8x18xf32>
    %cst_57 = arith.constant dense<0.000000e+00> : vector<18x8x8xf32>
    %186 = tpu.matmul %185, %156, %cst_57 {dimension_numbers = #tpu.dot_dimension_numbers<[2], [1], [1], [2], [0, 0, 0, 1, 1, 2], [0], [0]>} : vector<18x8x18xf32>, vector<18x18x8xf32>, vector<18x8x8xf32> -> vector<18x8x8xf32>
    %187 = tpu.iota {dimensions = array<i32: 0>} : vector<8x18xi32>
    %188 = tpu.iota {dimensions = array<i32: 1>} : vector<8x18xi32>
    %c2_i32_58 = arith.constant 2 : i32
    %189 = vector.broadcast %c2_i32_58 : i32 to vector<8x18xi32>
    %190 = arith.muli %189, %187 : vector<8x18xi32>
    %c2_i32_59 = arith.constant 2 : i32
    %191 = vector.broadcast %c2_i32_59 : i32 to vector<8x18xi32>
    %192 = arith.addi %190, %191 : vector<8x18xi32>
    %193 = arith.cmpi eq, %188, %192 : vector<8x18xi32>
    %cst_60 = arith.constant 1.000000e+00 : f32
    %cst_61 = arith.constant 0.000000e+00 : f32
    %194 = vector.broadcast %cst_60 : f32 to vector<8x18xf32>
    %195 = vector.broadcast %cst_61 : f32 to vector<8x18xf32>
    %196 = arith.select %193, %194, %195 : vector<8x18xi1>, vector<8x18xf32>
    %197 = vector.shape_cast %196 : vector<8x18xf32> to vector<1x8x18xf32>
    %198 = vector.shape_cast %197 : vector<1x8x18xf32> to vector<1x8x18xf32>
    %199 = vector.broadcast %198 : vector<1x8x18xf32> to vector<18x8x18xf32>
    %cst_62 = arith.constant dense<0.000000e+00> : vector<18x8x8xf32>
    %200 = tpu.matmul %199, %156, %cst_62 {dimension_numbers = #tpu.dot_dimension_numbers<[2], [1], [1], [2], [0, 0, 0, 1, 1, 2], [0], [0]>} : vector<18x8x18xf32>, vector<18x18x8xf32>, vector<18x8x8xf32> -> vector<18x8x8xf32>
    %cst_63 = arith.constant 0.000000e+00 : f32
    %201 = vector.broadcast %cst_63 : f32 to vector<8x8x16xf32>
    %202 = vector.extract_strided_slice %172 {offsets = [0, 0, 0], sizes = [16, 8, 8], strides = [1, 1, 1]} : vector<18x8x8xf32> to vector<16x8x8xf32>
    %203 = vector.shape_cast %202 : vector<16x8x8xf32> to vector<8x2x8x8xf32>
    %204 = vector.extract_strided_slice %203 {offsets = [0, 0, 0, 0], sizes = [8, 1, 8, 8], strides = [1, 1, 1, 1]} : vector<8x2x8x8xf32> to vector<8x1x8x8xf32>
    %205 = vector.shape_cast %204 : vector<8x1x8x8xf32> to vector<8x8x8xf32>
    %206 = vector.extract_strided_slice %157 {offsets = [0, 0, 0], sizes = [1, 8, 16], strides = [1, 1, 1]} : vector<9x8x16xf32> to vector<1x8x16xf32>
    %207 = vector.shape_cast %206 : vector<1x8x16xf32> to vector<8x16xf32>
    %208 = vector.shape_cast %207 : vector<8x16xf32> to vector<1x8x16xf32>
    %209 = vector.shape_cast %208 : vector<1x8x16xf32> to vector<1x8x16xf32>
    %210 = vector.broadcast %209 : vector<1x8x16xf32> to vector<8x8x16xf32>
    %cst_64 = arith.constant dense<0.000000e+00> : vector<8x8x16xf32>
    %211 = tpu.matmul %205, %210, %cst_64 {dimension_numbers = #tpu.dot_dimension_numbers<[2], [1], [1], [2], [0, 0, 0, 1, 1, 2], [0], [0]>} : vector<8x8x8xf32>, vector<8x8x16xf32>, vector<8x8x16xf32> -> vector<8x8x16xf32>
    %212 = arith.addf %201, %211 : vector<8x8x16xf32>
    %213 = vector.extract_strided_slice %186 {offsets = [0, 0, 0], sizes = [16, 8, 8], strides = [1, 1, 1]} : vector<18x8x8xf32> to vector<16x8x8xf32>
    %214 = vector.shape_cast %213 : vector<16x8x8xf32> to vector<8x2x8x8xf32>
    %215 = vector.extract_strided_slice %214 {offsets = [0, 0, 0, 0], sizes = [8, 1, 8, 8], strides = [1, 1, 1, 1]} : vector<8x2x8x8xf32> to vector<8x1x8x8xf32>
    %216 = vector.shape_cast %215 : vector<8x1x8x8xf32> to vector<8x8x8xf32>
    %217 = vector.extract_strided_slice %157 {offsets = [1, 0, 0], sizes = [1, 8, 16], strides = [1, 1, 1]} : vector<9x8x16xf32> to vector<1x8x16xf32>
    %218 = vector.shape_cast %217 : vector<1x8x16xf32> to vector<8x16xf32>
    %219 = vector.shape_cast %218 : vector<8x16xf32> to vector<1x8x16xf32>
    %220 = vector.shape_cast %219 : vector<1x8x16xf32> to vector<1x8x16xf32>
    %221 = vector.broadcast %220 : vector<1x8x16xf32> to vector<8x8x16xf32>
    %cst_65 = arith.constant dense<0.000000e+00> : vector<8x8x16xf32>
    %222 = tpu.matmul %216, %221, %cst_65 {dimension_numbers = #tpu.dot_dimension_numbers<[2], [1], [1], [2], [0, 0, 0, 1, 1, 2], [0], [0]>} : vector<8x8x8xf32>, vector<8x8x16xf32>, vector<8x8x16xf32> -> vector<8x8x16xf32>
    %223 = arith.addf %212, %222 : vector<8x8x16xf32>
    %224 = vector.extract_strided_slice %200 {offsets = [0, 0, 0], sizes = [16, 8, 8], strides = [1, 1, 1]} : vector<18x8x8xf32> to vector<16x8x8xf32>
    %225 = vector.shape_cast %224 : vector<16x8x8xf32> to vector<8x2x8x8xf32>
    %226 = vector.extract_strided_slice %225 {offsets = [0, 0, 0, 0], sizes = [8, 1, 8, 8], strides = [1, 1, 1, 1]} : vector<8x2x8x8xf32> to vector<8x1x8x8xf32>
    %227 = vector.shape_cast %226 : vector<8x1x8x8xf32> to vector<8x8x8xf32>
    %228 = vector.extract_strided_slice %157 {offsets = [2, 0, 0], sizes = [1, 8, 16], strides = [1, 1, 1]} : vector<9x8x16xf32> to vector<1x8x16xf32>
    %229 = vector.shape_cast %228 : vector<1x8x16xf32> to vector<8x16xf32>
    %230 = vector.shape_cast %229 : vector<8x16xf32> to vector<1x8x16xf32>
    %231 = vector.shape_cast %230 : vector<1x8x16xf32> to vector<1x8x16xf32>
    %232 = vector.broadcast %231 : vector<1x8x16xf32> to vector<8x8x16xf32>
    %cst_66 = arith.constant dense<0.000000e+00> : vector<8x8x16xf32>
    %233 = tpu.matmul %227, %232, %cst_66 {dimension_numbers = #tpu.dot_dimension_numbers<[2], [1], [1], [2], [0, 0, 0, 1, 1, 2], [0], [0]>} : vector<8x8x8xf32>, vector<8x8x16xf32>, vector<8x8x16xf32> -> vector<8x8x16xf32>
    %234 = arith.addf %223, %233 : vector<8x8x16xf32>
    %235 = vector.extract_strided_slice %172 {offsets = [1, 0, 0], sizes = [16, 8, 8], strides = [1, 1, 1]} : vector<18x8x8xf32> to vector<16x8x8xf32>
    %236 = vector.shape_cast %235 : vector<16x8x8xf32> to vector<8x2x8x8xf32>
    %237 = vector.extract_strided_slice %236 {offsets = [0, 0, 0, 0], sizes = [8, 1, 8, 8], strides = [1, 1, 1, 1]} : vector<8x2x8x8xf32> to vector<8x1x8x8xf32>
    %238 = vector.shape_cast %237 : vector<8x1x8x8xf32> to vector<8x8x8xf32>
    %239 = vector.extract_strided_slice %157 {offsets = [3, 0, 0], sizes = [1, 8, 16], strides = [1, 1, 1]} : vector<9x8x16xf32> to vector<1x8x16xf32>
    %240 = vector.shape_cast %239 : vector<1x8x16xf32> to vector<8x16xf32>
    %241 = vector.shape_cast %240 : vector<8x16xf32> to vector<1x8x16xf32>
    %242 = vector.shape_cast %241 : vector<1x8x16xf32> to vector<1x8x16xf32>
    %243 = vector.broadcast %242 : vector<1x8x16xf32> to vector<8x8x16xf32>
    %cst_67 = arith.constant dense<0.000000e+00> : vector<8x8x16xf32>
    %244 = tpu.matmul %238, %243, %cst_67 {dimension_numbers = #tpu.dot_dimension_numbers<[2], [1], [1], [2], [0, 0, 0, 1, 1, 2], [0], [0]>} : vector<8x8x8xf32>, vector<8x8x16xf32>, vector<8x8x16xf32> -> vector<8x8x16xf32>
    %245 = arith.addf %234, %244 : vector<8x8x16xf32>
    %246 = vector.extract_strided_slice %186 {offsets = [1, 0, 0], sizes = [16, 8, 8], strides = [1, 1, 1]} : vector<18x8x8xf32> to vector<16x8x8xf32>
    %247 = vector.shape_cast %246 : vector<16x8x8xf32> to vector<8x2x8x8xf32>
    %248 = vector.extract_strided_slice %247 {offsets = [0, 0, 0, 0], sizes = [8, 1, 8, 8], strides = [1, 1, 1, 1]} : vector<8x2x8x8xf32> to vector<8x1x8x8xf32>
    %249 = vector.shape_cast %248 : vector<8x1x8x8xf32> to vector<8x8x8xf32>
    %250 = vector.extract_strided_slice %157 {offsets = [4, 0, 0], sizes = [1, 8, 16], strides = [1, 1, 1]} : vector<9x8x16xf32> to vector<1x8x16xf32>
    %251 = vector.shape_cast %250 : vector<1x8x16xf32> to vector<8x16xf32>
    %252 = vector.shape_cast %251 : vector<8x16xf32> to vector<1x8x16xf32>
    %253 = vector.shape_cast %252 : vector<1x8x16xf32> to vector<1x8x16xf32>
    %254 = vector.broadcast %253 : vector<1x8x16xf32> to vector<8x8x16xf32>
    %cst_68 = arith.constant dense<0.000000e+00> : vector<8x8x16xf32>
    %255 = tpu.matmul %249, %254, %cst_68 {dimension_numbers = #tpu.dot_dimension_numbers<[2], [1], [1], [2], [0, 0, 0, 1, 1, 2], [0], [0]>} : vector<8x8x8xf32>, vector<8x8x16xf32>, vector<8x8x16xf32> -> vector<8x8x16xf32>
    %256 = arith.addf %245, %255 : vector<8x8x16xf32>
    %257 = vector.extract_strided_slice %200 {offsets = [1, 0, 0], sizes = [16, 8, 8], strides = [1, 1, 1]} : vector<18x8x8xf32> to vector<16x8x8xf32>
    %258 = vector.shape_cast %257 : vector<16x8x8xf32> to vector<8x2x8x8xf32>
    %259 = vector.extract_strided_slice %258 {offsets = [0, 0, 0, 0], sizes = [8, 1, 8, 8], strides = [1, 1, 1, 1]} : vector<8x2x8x8xf32> to vector<8x1x8x8xf32>
    %260 = vector.shape_cast %259 : vector<8x1x8x8xf32> to vector<8x8x8xf32>
    %261 = vector.extract_strided_slice %157 {offsets = [5, 0, 0], sizes = [1, 8, 16], strides = [1, 1, 1]} : vector<9x8x16xf32> to vector<1x8x16xf32>
    %262 = vector.shape_cast %261 : vector<1x8x16xf32> to vector<8x16xf32>
    %263 = vector.shape_cast %262 : vector<8x16xf32> to vector<1x8x16xf32>
    %264 = vector.shape_cast %263 : vector<1x8x16xf32> to vector<1x8x16xf32>
    %265 = vector.broadcast %264 : vector<1x8x16xf32> to vector<8x8x16xf32>
    %cst_69 = arith.constant dense<0.000000e+00> : vector<8x8x16xf32>
    %266 = tpu.matmul %260, %265, %cst_69 {dimension_numbers = #tpu.dot_dimension_numbers<[2], [1], [1], [2], [0, 0, 0, 1, 1, 2], [0], [0]>} : vector<8x8x8xf32>, vector<8x8x16xf32>, vector<8x8x16xf32> -> vector<8x8x16xf32>
    %267 = arith.addf %256, %266 : vector<8x8x16xf32>
    %268 = vector.extract_strided_slice %172 {offsets = [2, 0, 0], sizes = [16, 8, 8], strides = [1, 1, 1]} : vector<18x8x8xf32> to vector<16x8x8xf32>
    %269 = vector.shape_cast %268 : vector<16x8x8xf32> to vector<8x2x8x8xf32>
    %270 = vector.extract_strided_slice %269 {offsets = [0, 0, 0, 0], sizes = [8, 1, 8, 8], strides = [1, 1, 1, 1]} : vector<8x2x8x8xf32> to vector<8x1x8x8xf32>
    %271 = vector.shape_cast %270 : vector<8x1x8x8xf32> to vector<8x8x8xf32>
    %272 = vector.extract_strided_slice %157 {offsets = [6, 0, 0], sizes = [1, 8, 16], strides = [1, 1, 1]} : vector<9x8x16xf32> to vector<1x8x16xf32>
    %273 = vector.shape_cast %272 : vector<1x8x16xf32> to vector<8x16xf32>
    %274 = vector.shape_cast %273 : vector<8x16xf32> to vector<1x8x16xf32>
    %275 = vector.shape_cast %274 : vector<1x8x16xf32> to vector<1x8x16xf32>
    %276 = vector.broadcast %275 : vector<1x8x16xf32> to vector<8x8x16xf32>
    %cst_70 = arith.constant dense<0.000000e+00> : vector<8x8x16xf32>
    %277 = tpu.matmul %271, %276, %cst_70 {dimension_numbers = #tpu.dot_dimension_numbers<[2], [1], [1], [2], [0, 0, 0, 1, 1, 2], [0], [0]>} : vector<8x8x8xf32>, vector<8x8x16xf32>, vector<8x8x16xf32> -> vector<8x8x16xf32>
    %278 = arith.addf %267, %277 : vector<8x8x16xf32>
    %279 = vector.extract_strided_slice %186 {offsets = [2, 0, 0], sizes = [16, 8, 8], strides = [1, 1, 1]} : vector<18x8x8xf32> to vector<16x8x8xf32>
    %280 = vector.shape_cast %279 : vector<16x8x8xf32> to vector<8x2x8x8xf32>
    %281 = vector.extract_strided_slice %280 {offsets = [0, 0, 0, 0], sizes = [8, 1, 8, 8], strides = [1, 1, 1, 1]} : vector<8x2x8x8xf32> to vector<8x1x8x8xf32>
    %282 = vector.shape_cast %281 : vector<8x1x8x8xf32> to vector<8x8x8xf32>
    %283 = vector.extract_strided_slice %157 {offsets = [7, 0, 0], sizes = [1, 8, 16], strides = [1, 1, 1]} : vector<9x8x16xf32> to vector<1x8x16xf32>
    %284 = vector.shape_cast %283 : vector<1x8x16xf32> to vector<8x16xf32>
    %285 = vector.shape_cast %284 : vector<8x16xf32> to vector<1x8x16xf32>
    %286 = vector.shape_cast %285 : vector<1x8x16xf32> to vector<1x8x16xf32>
    %287 = vector.broadcast %286 : vector<1x8x16xf32> to vector<8x8x16xf32>
    %cst_71 = arith.constant dense<0.000000e+00> : vector<8x8x16xf32>
    %288 = tpu.matmul %282, %287, %cst_71 {dimension_numbers = #tpu.dot_dimension_numbers<[2], [1], [1], [2], [0, 0, 0, 1, 1, 2], [0], [0]>} : vector<8x8x8xf32>, vector<8x8x16xf32>, vector<8x8x16xf32> -> vector<8x8x16xf32>
    %289 = arith.addf %278, %288 : vector<8x8x16xf32>
    %290 = vector.extract_strided_slice %200 {offsets = [2, 0, 0], sizes = [16, 8, 8], strides = [1, 1, 1]} : vector<18x8x8xf32> to vector<16x8x8xf32>
    %291 = vector.shape_cast %290 : vector<16x8x8xf32> to vector<8x2x8x8xf32>
    %292 = vector.extract_strided_slice %291 {offsets = [0, 0, 0, 0], sizes = [8, 1, 8, 8], strides = [1, 1, 1, 1]} : vector<8x2x8x8xf32> to vector<8x1x8x8xf32>
    %293 = vector.shape_cast %292 : vector<8x1x8x8xf32> to vector<8x8x8xf32>
    %294 = vector.extract_strided_slice %157 {offsets = [8, 0, 0], sizes = [1, 8, 16], strides = [1, 1, 1]} : vector<9x8x16xf32> to vector<1x8x16xf32>
    %295 = vector.shape_cast %294 : vector<1x8x16xf32> to vector<8x16xf32>
    %296 = vector.shape_cast %295 : vector<8x16xf32> to vector<1x8x16xf32>
    %297 = vector.shape_cast %296 : vector<1x8x16xf32> to vector<1x8x16xf32>
    %298 = vector.broadcast %297 : vector<1x8x16xf32> to vector<8x8x16xf32>
    %cst_72 = arith.constant dense<0.000000e+00> : vector<8x8x16xf32>
    %299 = tpu.matmul %293, %298, %cst_72 {dimension_numbers = #tpu.dot_dimension_numbers<[2], [1], [1], [2], [0, 0, 0, 1, 1, 2], [0], [0]>} : vector<8x8x8xf32>, vector<8x8x16xf32>, vector<8x8x16xf32> -> vector<8x8x16xf32>
    %300 = arith.addf %289, %299 : vector<8x8x16xf32>
    %301 = vector.shape_cast %158 : vector<1x16xf32> to vector<1x1x16xf32>
    %302 = vector.broadcast %301 : vector<1x1x16xf32> to vector<8x8x16xf32>
    %303 = arith.addf %300, %302 : vector<8x8x16xf32>
    %cst_73 = arith.constant 0.000000e+00 : f32
    %304 = vector.broadcast %cst_73 : f32 to vector<8x8x16xf32>
    %305 = arith.maximumf %303, %304 : vector<8x8x16xf32>
    %c1_74 = arith.constant 1 : index
    %c1_75 = arith.constant 1 : index
    %c0_76 = arith.constant 0 : index
    %306 = vector.load %arg12[%c1_74, %c1_75, %c0_76] : memref<10x10x16xf32, #tpu.memory_space<vmem>>, vector<8x8x16xf32>
    tpu.vector_store %arg12[%c1_74, %c1_75, %c0_76], %305 {strides = array<i32>} : memref<10x10x16xf32, #tpu.memory_space<vmem>>, vector<8x8x16xf32>,
    %c0_77 = arith.constant 0 : index
    %c0_78 = arith.constant 0 : index
    %c0_79 = arith.constant 0 : index
    %307 = vector.load %arg12[%c0_77, %c0_78, %c0_79] : memref<10x10x16xf32, #tpu.memory_space<vmem>>, vector<10x10x16xf32>
    %c0_80 = arith.constant 0 : index
    %c0_81 = arith.constant 0 : index
    %c0_82 = arith.constant 0 : index
    %308 = vector.load %arg6[%c0_80, %c0_81, %c0_82] : memref<9x16x32xf32, #tpu.memory_space<vmem>>, vector<9x16x32xf32>
    %c0_83 = arith.constant 0 : index
    %c0_84 = arith.constant 0 : index
    %309 = vector.load %arg7[%c0_83, %c0_84] : memref<1x32xf32, #tpu.memory_space<vmem>>, vector<1x32xf32>
    %310 = tpu.iota {dimensions = array<i32: 0>} : vector<4x10xi32>
    %311 = tpu.iota {dimensions = array<i32: 1>} : vector<4x10xi32>
    %c2_i32_85 = arith.constant 2 : i32
    %312 = vector.broadcast %c2_i32_85 : i32 to vector<4x10xi32>
    %313 = arith.muli %312, %310 : vector<4x10xi32>
    %c0_i32_86 = arith.constant 0 : i32
    %314 = vector.broadcast %c0_i32_86 : i32 to vector<4x10xi32>
    %315 = arith.addi %313, %314 : vector<4x10xi32>
    %316 = arith.cmpi eq, %311, %315 : vector<4x10xi32>
    %cst_87 = arith.constant 1.000000e+00 : f32
    %cst_88 = arith.constant 0.000000e+00 : f32
    %317 = vector.broadcast %cst_87 : f32 to vector<4x10xf32>
    %318 = vector.broadcast %cst_88 : f32 to vector<4x10xf32>
    %319 = arith.select %316, %317, %318 : vector<4x10xi1>, vector<4x10xf32>
    %320 = vector.shape_cast %319 : vector<4x10xf32> to vector<1x4x10xf32>
    %321 = vector.shape_cast %320 : vector<1x4x10xf32> to vector<1x4x10xf32>
    %322 = vector.broadcast %321 : vector<1x4x10xf32> to vector<10x4x10xf32>
    %cst_89 = arith.constant dense<0.000000e+00> : vector<10x4x16xf32>
    %323 = tpu.matmul %322, %307, %cst_89 {dimension_numbers = #tpu.dot_dimension_numbers<[2], [1], [1], [2], [0, 0, 0, 1, 1, 2], [0], [0]>} : vector<10x4x10xf32>, vector<10x10x16xf32>, vector<10x4x16xf32> -> vector<10x4x16xf32>
    %324 = tpu.iota {dimensions = array<i32: 0>} : vector<4x10xi32>
    %325 = tpu.iota {dimensions = array<i32: 1>} : vector<4x10xi32>
    %c2_i32_90 = arith.constant 2 : i32
    %326 = vector.broadcast %c2_i32_90 : i32 to vector<4x10xi32>
    %327 = arith.muli %326, %324 : vector<4x10xi32>
    %c1_i32_91 = arith.constant 1 : i32
    %328 = vector.broadcast %c1_i32_91 : i32 to vector<4x10xi32>
    %329 = arith.addi %327, %328 : vector<4x10xi32>
    %330 = arith.cmpi eq, %325, %329 : vector<4x10xi32>
    %cst_92 = arith.constant 1.000000e+00 : f32
    %cst_93 = arith.constant 0.000000e+00 : f32
    %331 = vector.broadcast %cst_92 : f32 to vector<4x10xf32>
    %332 = vector.broadcast %cst_93 : f32 to vector<4x10xf32>
    %333 = arith.select %330, %331, %332 : vector<4x10xi1>, vector<4x10xf32>
    %334 = vector.shape_cast %333 : vector<4x10xf32> to vector<1x4x10xf32>
    %335 = vector.shape_cast %334 : vector<1x4x10xf32> to vector<1x4x10xf32>
    %336 = vector.broadcast %335 : vector<1x4x10xf32> to vector<10x4x10xf32>
    %cst_94 = arith.constant dense<0.000000e+00> : vector<10x4x16xf32>
    %337 = tpu.matmul %336, %307, %cst_94 {dimension_numbers = #tpu.dot_dimension_numbers<[2], [1], [1], [2], [0, 0, 0, 1, 1, 2], [0], [0]>} : vector<10x4x10xf32>, vector<10x10x16xf32>, vector<10x4x16xf32> -> vector<10x4x16xf32>
    %338 = tpu.iota {dimensions = array<i32: 0>} : vector<4x10xi32>
    %339 = tpu.iota {dimensions = array<i32: 1>} : vector<4x10xi32>
    %c2_i32_95 = arith.constant 2 : i32
    %340 = vector.broadcast %c2_i32_95 : i32 to vector<4x10xi32>
    %341 = arith.muli %340, %338 : vector<4x10xi32>
    %c2_i32_96 = arith.constant 2 : i32
    %342 = vector.broadcast %c2_i32_96 : i32 to vector<4x10xi32>
    %343 = arith.addi %341, %342 : vector<4x10xi32>
    %344 = arith.cmpi eq, %339, %343 : vector<4x10xi32>
    %cst_97 = arith.constant 1.000000e+00 : f32
    %cst_98 = arith.constant 0.000000e+00 : f32
    %345 = vector.broadcast %cst_97 : f32 to vector<4x10xf32>
    %346 = vector.broadcast %cst_98 : f32 to vector<4x10xf32>
    %347 = arith.select %344, %345, %346 : vector<4x10xi1>, vector<4x10xf32>
    %348 = vector.shape_cast %347 : vector<4x10xf32> to vector<1x4x10xf32>
    %349 = vector.shape_cast %348 : vector<1x4x10xf32> to vector<1x4x10xf32>
    %350 = vector.broadcast %349 : vector<1x4x10xf32> to vector<10x4x10xf32>
    %cst_99 = arith.constant dense<0.000000e+00> : vector<10x4x16xf32>
    %351 = tpu.matmul %350, %307, %cst_99 {dimension_numbers = #tpu.dot_dimension_numbers<[2], [1], [1], [2], [0, 0, 0, 1, 1, 2], [0], [0]>} : vector<10x4x10xf32>, vector<10x10x16xf32>, vector<10x4x16xf32> -> vector<10x4x16xf32>
    %cst_100 = arith.constant 0.000000e+00 : f32
    %352 = vector.broadcast %cst_100 : f32 to vector<4x4x32xf32>
    %353 = vector.extract_strided_slice %323 {offsets = [0, 0, 0], sizes = [8, 4, 16], strides = [1, 1, 1]} : vector<10x4x16xf32> to vector<8x4x16xf32>
    %354 = vector.shape_cast %353 : vector<8x4x16xf32> to vector<4x2x4x16xf32>
    %355 = vector.extract_strided_slice %354 {offsets = [0, 0, 0, 0], sizes = [4, 1, 4, 16], strides = [1, 1, 1, 1]} : vector<4x2x4x16xf32> to vector<4x1x4x16xf32>
    %356 = vector.shape_cast %355 : vector<4x1x4x16xf32> to vector<4x4x16xf32>
    %357 = vector.extract_strided_slice %308 {offsets = [0, 0, 0], sizes = [1, 16, 32], strides = [1, 1, 1]} : vector<9x16x32xf32> to vector<1x16x32xf32>
    %358 = vector.shape_cast %357 : vector<1x16x32xf32> to vector<16x32xf32>
    %359 = vector.shape_cast %358 : vector<16x32xf32> to vector<1x16x32xf32>
    %360 = vector.shape_cast %359 : vector<1x16x32xf32> to vector<1x16x32xf32>
    %361 = vector.broadcast %360 : vector<1x16x32xf32> to vector<4x16x32xf32>
    %cst_101 = arith.constant dense<0.000000e+00> : vector<4x4x32xf32>
    %362 = tpu.matmul %356, %361, %cst_101 {dimension_numbers = #tpu.dot_dimension_numbers<[2], [1], [1], [2], [0, 0, 0, 1, 1, 2], [0], [0]>} : vector<4x4x16xf32>, vector<4x16x32xf32>, vector<4x4x32xf32> -> vector<4x4x32xf32>
    %363 = arith.addf %352, %362 : vector<4x4x32xf32>
    %364 = vector.extract_strided_slice %337 {offsets = [0, 0, 0], sizes = [8, 4, 16], strides = [1, 1, 1]} : vector<10x4x16xf32> to vector<8x4x16xf32>
    %365 = vector.shape_cast %364 : vector<8x4x16xf32> to vector<4x2x4x16xf32>
    %366 = vector.extract_strided_slice %365 {offsets = [0, 0, 0, 0], sizes = [4, 1, 4, 16], strides = [1, 1, 1, 1]} : vector<4x2x4x16xf32> to vector<4x1x4x16xf32>
    %367 = vector.shape_cast %366 : vector<4x1x4x16xf32> to vector<4x4x16xf32>
    %368 = vector.extract_strided_slice %308 {offsets = [1, 0, 0], sizes = [1, 16, 32], strides = [1, 1, 1]} : vector<9x16x32xf32> to vector<1x16x32xf32>
    %369 = vector.shape_cast %368 : vector<1x16x32xf32> to vector<16x32xf32>
    %370 = vector.shape_cast %369 : vector<16x32xf32> to vector<1x16x32xf32>
    %371 = vector.shape_cast %370 : vector<1x16x32xf32> to vector<1x16x32xf32>
    %372 = vector.broadcast %371 : vector<1x16x32xf32> to vector<4x16x32xf32>
    %cst_102 = arith.constant dense<0.000000e+00> : vector<4x4x32xf32>
    %373 = tpu.matmul %367, %372, %cst_102 {dimension_numbers = #tpu.dot_dimension_numbers<[2], [1], [1], [2], [0, 0, 0, 1, 1, 2], [0], [0]>} : vector<4x4x16xf32>, vector<4x16x32xf32>, vector<4x4x32xf32> -> vector<4x4x32xf32>
    %374 = arith.addf %363, %373 : vector<4x4x32xf32>
    %375 = vector.extract_strided_slice %351 {offsets = [0, 0, 0], sizes = [8, 4, 16], strides = [1, 1, 1]} : vector<10x4x16xf32> to vector<8x4x16xf32>
    %376 = vector.shape_cast %375 : vector<8x4x16xf32> to vector<4x2x4x16xf32>
    %377 = vector.extract_strided_slice %376 {offsets = [0, 0, 0, 0], sizes = [4, 1, 4, 16], strides = [1, 1, 1, 1]} : vector<4x2x4x16xf32> to vector<4x1x4x16xf32>
    %378 = vector.shape_cast %377 : vector<4x1x4x16xf32> to vector<4x4x16xf32>
    %379 = vector.extract_strided_slice %308 {offsets = [2, 0, 0], sizes = [1, 16, 32], strides = [1, 1, 1]} : vector<9x16x32xf32> to vector<1x16x32xf32>
    %380 = vector.shape_cast %379 : vector<1x16x32xf32> to vector<16x32xf32>
    %381 = vector.shape_cast %380 : vector<16x32xf32> to vector<1x16x32xf32>
    %382 = vector.shape_cast %381 : vector<1x16x32xf32> to vector<1x16x32xf32>
    %383 = vector.broadcast %382 : vector<1x16x32xf32> to vector<4x16x32xf32>
    %cst_103 = arith.constant dense<0.000000e+00> : vector<4x4x32xf32>
    %384 = tpu.matmul %378, %383, %cst_103 {dimension_numbers = #tpu.dot_dimension_numbers<[2], [1], [1], [2], [0, 0, 0, 1, 1, 2], [0], [0]>} : vector<4x4x16xf32>, vector<4x16x32xf32>, vector<4x4x32xf32> -> vector<4x4x32xf32>
    %385 = arith.addf %374, %384 : vector<4x4x32xf32>
    %386 = vector.extract_strided_slice %323 {offsets = [1, 0, 0], sizes = [8, 4, 16], strides = [1, 1, 1]} : vector<10x4x16xf32> to vector<8x4x16xf32>
    %387 = vector.shape_cast %386 : vector<8x4x16xf32> to vector<4x2x4x16xf32>
    %388 = vector.extract_strided_slice %387 {offsets = [0, 0, 0, 0], sizes = [4, 1, 4, 16], strides = [1, 1, 1, 1]} : vector<4x2x4x16xf32> to vector<4x1x4x16xf32>
    %389 = vector.shape_cast %388 : vector<4x1x4x16xf32> to vector<4x4x16xf32>
    %390 = vector.extract_strided_slice %308 {offsets = [3, 0, 0], sizes = [1, 16, 32], strides = [1, 1, 1]} : vector<9x16x32xf32> to vector<1x16x32xf32>
    %391 = vector.shape_cast %390 : vector<1x16x32xf32> to vector<16x32xf32>
    %392 = vector.shape_cast %391 : vector<16x32xf32> to vector<1x16x32xf32>
    %393 = vector.shape_cast %392 : vector<1x16x32xf32> to vector<1x16x32xf32>
    %394 = vector.broadcast %393 : vector<1x16x32xf32> to vector<4x16x32xf32>
    %cst_104 = arith.constant dense<0.000000e+00> : vector<4x4x32xf32>
    %395 = tpu.matmul %389, %394, %cst_104 {dimension_numbers = #tpu.dot_dimension_numbers<[2], [1], [1], [2], [0, 0, 0, 1, 1, 2], [0], [0]>} : vector<4x4x16xf32>, vector<4x16x32xf32>, vector<4x4x32xf32> -> vector<4x4x32xf32>
    %396 = arith.addf %385, %395 : vector<4x4x32xf32>
    %397 = vector.extract_strided_slice %337 {offsets = [1, 0, 0], sizes = [8, 4, 16], strides = [1, 1, 1]} : vector<10x4x16xf32> to vector<8x4x16xf32>
    %398 = vector.shape_cast %397 : vector<8x4x16xf32> to vector<4x2x4x16xf32>
    %399 = vector.extract_strided_slice %398 {offsets = [0, 0, 0, 0], sizes = [4, 1, 4, 16], strides = [1, 1, 1, 1]} : vector<4x2x4x16xf32> to vector<4x1x4x16xf32>
    %400 = vector.shape_cast %399 : vector<4x1x4x16xf32> to vector<4x4x16xf32>
    %401 = vector.extract_strided_slice %308 {offsets = [4, 0, 0], sizes = [1, 16, 32], strides = [1, 1, 1]} : vector<9x16x32xf32> to vector<1x16x32xf32>
    %402 = vector.shape_cast %401 : vector<1x16x32xf32> to vector<16x32xf32>
    %403 = vector.shape_cast %402 : vector<16x32xf32> to vector<1x16x32xf32>
    %404 = vector.shape_cast %403 : vector<1x16x32xf32> to vector<1x16x32xf32>
    %405 = vector.broadcast %404 : vector<1x16x32xf32> to vector<4x16x32xf32>
    %cst_105 = arith.constant dense<0.000000e+00> : vector<4x4x32xf32>
    %406 = tpu.matmul %400, %405, %cst_105 {dimension_numbers = #tpu.dot_dimension_numbers<[2], [1], [1], [2], [0, 0, 0, 1, 1, 2], [0], [0]>} : vector<4x4x16xf32>, vector<4x16x32xf32>, vector<4x4x32xf32> -> vector<4x4x32xf32>
    %407 = arith.addf %396, %406 : vector<4x4x32xf32>
    %408 = vector.extract_strided_slice %351 {offsets = [1, 0, 0], sizes = [8, 4, 16], strides = [1, 1, 1]} : vector<10x4x16xf32> to vector<8x4x16xf32>
    %409 = vector.shape_cast %408 : vector<8x4x16xf32> to vector<4x2x4x16xf32>
    %410 = vector.extract_strided_slice %409 {offsets = [0, 0, 0, 0], sizes = [4, 1, 4, 16], strides = [1, 1, 1, 1]} : vector<4x2x4x16xf32> to vector<4x1x4x16xf32>
    %411 = vector.shape_cast %410 : vector<4x1x4x16xf32> to vector<4x4x16xf32>
    %412 = vector.extract_strided_slice %308 {offsets = [5, 0, 0], sizes = [1, 16, 32], strides = [1, 1, 1]} : vector<9x16x32xf32> to vector<1x16x32xf32>
    %413 = vector.shape_cast %412 : vector<1x16x32xf32> to vector<16x32xf32>
    %414 = vector.shape_cast %413 : vector<16x32xf32> to vector<1x16x32xf32>
    %415 = vector.shape_cast %414 : vector<1x16x32xf32> to vector<1x16x32xf32>
    %416 = vector.broadcast %415 : vector<1x16x32xf32> to vector<4x16x32xf32>
    %cst_106 = arith.constant dense<0.000000e+00> : vector<4x4x32xf32>
    %417 = tpu.matmul %411, %416, %cst_106 {dimension_numbers = #tpu.dot_dimension_numbers<[2], [1], [1], [2], [0, 0, 0, 1, 1, 2], [0], [0]>} : vector<4x4x16xf32>, vector<4x16x32xf32>, vector<4x4x32xf32> -> vector<4x4x32xf32>
    %418 = arith.addf %407, %417 : vector<4x4x32xf32>
    %419 = vector.extract_strided_slice %323 {offsets = [2, 0, 0], sizes = [8, 4, 16], strides = [1, 1, 1]} : vector<10x4x16xf32> to vector<8x4x16xf32>
    %420 = vector.shape_cast %419 : vector<8x4x16xf32> to vector<4x2x4x16xf32>
    %421 = vector.extract_strided_slice %420 {offsets = [0, 0, 0, 0], sizes = [4, 1, 4, 16], strides = [1, 1, 1, 1]} : vector<4x2x4x16xf32> to vector<4x1x4x16xf32>
    %422 = vector.shape_cast %421 : vector<4x1x4x16xf32> to vector<4x4x16xf32>
    %423 = vector.extract_strided_slice %308 {offsets = [6, 0, 0], sizes = [1, 16, 32], strides = [1, 1, 1]} : vector<9x16x32xf32> to vector<1x16x32xf32>
    %424 = vector.shape_cast %423 : vector<1x16x32xf32> to vector<16x32xf32>
    %425 = vector.shape_cast %424 : vector<16x32xf32> to vector<1x16x32xf32>
    %426 = vector.shape_cast %425 : vector<1x16x32xf32> to vector<1x16x32xf32>
    %427 = vector.broadcast %426 : vector<1x16x32xf32> to vector<4x16x32xf32>
    %cst_107 = arith.constant dense<0.000000e+00> : vector<4x4x32xf32>
    %428 = tpu.matmul %422, %427, %cst_107 {dimension_numbers = #tpu.dot_dimension_numbers<[2], [1], [1], [2], [0, 0, 0, 1, 1, 2], [0], [0]>} : vector<4x4x16xf32>, vector<4x16x32xf32>, vector<4x4x32xf32> -> vector<4x4x32xf32>
    %429 = arith.addf %418, %428 : vector<4x4x32xf32>
    %430 = vector.extract_strided_slice %337 {offsets = [2, 0, 0], sizes = [8, 4, 16], strides = [1, 1, 1]} : vector<10x4x16xf32> to vector<8x4x16xf32>
    %431 = vector.shape_cast %430 : vector<8x4x16xf32> to vector<4x2x4x16xf32>
    %432 = vector.extract_strided_slice %431 {offsets = [0, 0, 0, 0], sizes = [4, 1, 4, 16], strides = [1, 1, 1, 1]} : vector<4x2x4x16xf32> to vector<4x1x4x16xf32>
    %433 = vector.shape_cast %432 : vector<4x1x4x16xf32> to vector<4x4x16xf32>
    %434 = vector.extract_strided_slice %308 {offsets = [7, 0, 0], sizes = [1, 16, 32], strides = [1, 1, 1]} : vector<9x16x32xf32> to vector<1x16x32xf32>
    %435 = vector.shape_cast %434 : vector<1x16x32xf32> to vector<16x32xf32>
    %436 = vector.shape_cast %435 : vector<16x32xf32> to vector<1x16x32xf32>
    %437 = vector.shape_cast %436 : vector<1x16x32xf32> to vector<1x16x32xf32>
    %438 = vector.broadcast %437 : vector<1x16x32xf32> to vector<4x16x32xf32>
    %cst_108 = arith.constant dense<0.000000e+00> : vector<4x4x32xf32>
    %439 = tpu.matmul %433, %438, %cst_108 {dimension_numbers = #tpu.dot_dimension_numbers<[2], [1], [1], [2], [0, 0, 0, 1, 1, 2], [0], [0]>} : vector<4x4x16xf32>, vector<4x16x32xf32>, vector<4x4x32xf32> -> vector<4x4x32xf32>
    %440 = arith.addf %429, %439 : vector<4x4x32xf32>
    %441 = vector.extract_strided_slice %351 {offsets = [2, 0, 0], sizes = [8, 4, 16], strides = [1, 1, 1]} : vector<10x4x16xf32> to vector<8x4x16xf32>
    %442 = vector.shape_cast %441 : vector<8x4x16xf32> to vector<4x2x4x16xf32>
    %443 = vector.extract_strided_slice %442 {offsets = [0, 0, 0, 0], sizes = [4, 1, 4, 16], strides = [1, 1, 1, 1]} : vector<4x2x4x16xf32> to vector<4x1x4x16xf32>
    %444 = vector.shape_cast %443 : vector<4x1x4x16xf32> to vector<4x4x16xf32>
    %445 = vector.extract_strided_slice %308 {offsets = [8, 0, 0], sizes = [1, 16, 32], strides = [1, 1, 1]} : vector<9x16x32xf32> to vector<1x16x32xf32>
    %446 = vector.shape_cast %445 : vector<1x16x32xf32> to vector<16x32xf32>
    %447 = vector.shape_cast %446 : vector<16x32xf32> to vector<1x16x32xf32>
    %448 = vector.shape_cast %447 : vector<1x16x32xf32> to vector<1x16x32xf32>
    %449 = vector.broadcast %448 : vector<1x16x32xf32> to vector<4x16x32xf32>
    %cst_109 = arith.constant dense<0.000000e+00> : vector<4x4x32xf32>
    %450 = tpu.matmul %444, %449, %cst_109 {dimension_numbers = #tpu.dot_dimension_numbers<[2], [1], [1], [2], [0, 0, 0, 1, 1, 2], [0], [0]>} : vector<4x4x16xf32>, vector<4x16x32xf32>, vector<4x4x32xf32> -> vector<4x4x32xf32>
    %451 = arith.addf %440, %450 : vector<4x4x32xf32>
    %452 = vector.shape_cast %309 : vector<1x32xf32> to vector<1x1x32xf32>
    %453 = vector.broadcast %452 : vector<1x1x32xf32> to vector<4x4x32xf32>
    %454 = arith.addf %451, %453 : vector<4x4x32xf32>
    %c0_110 = arith.constant 0 : index
    %c0_111 = arith.constant 0 : index
    %455 = vector.load %arg9[%c0_110, %c0_111] : memref<1x32xf32, #tpu.memory_space<vmem>>, vector<1x32xf32>
    %456 = vector.extract_strided_slice %454 {offsets = [0, 0, 0], sizes = [1, 4, 32], strides = [1, 1, 1]} : vector<4x4x32xf32> to vector<1x4x32xf32>
    %457 = vector.shape_cast %456 : vector<1x4x32xf32> to vector<4x32xf32>
    %458 = vector.extract_strided_slice %457 {offsets = [0, 0], sizes = [1, 32], strides = [1, 1]} : vector<4x32xf32> to vector<1x32xf32>
    %c0_112 = arith.constant 0 : index
    %c0_113 = arith.constant 0 : index
    %c0_114 = arith.constant 0 : index
    %c0_115 = arith.constant 0 : index
    %459 = vector.load %arg8[%c0_112, %c0_113, %c0_114, %c0_115] : memref<4x4x32x32xf32, #tpu.memory_space<vmem>>, vector<1x1x32x32xf32>
    %460 = vector.shape_cast %459 : vector<1x1x32x32xf32> to vector<32x32xf32>
    %cst_116 = arith.constant dense<0.000000e+00> : vector<1x32xf32>
    %461 = tpu.matmul %458, %460, %cst_116 {dimension_numbers = #tpu.dot_dimension_numbers<[1], [0], [0], [1], [0, 0, 1, 1], [], []>} : vector<1x32xf32>, vector<32x32xf32>, vector<1x32xf32> -> vector<1x32xf32>
    %462 = arith.addf %455, %461 : vector<1x32xf32>
    %463 = vector.extract_strided_slice %457 {offsets = [1, 0], sizes = [1, 32], strides = [1, 1]} : vector<4x32xf32> to vector<1x32xf32>
    %c0_117 = arith.constant 0 : index
    %c1_118 = arith.constant 1 : index
    %c0_119 = arith.constant 0 : index
    %c0_120 = arith.constant 0 : index
    %464 = vector.load %arg8[%c0_117, %c1_118, %c0_119, %c0_120] : memref<4x4x32x32xf32, #tpu.memory_space<vmem>>, vector<1x1x32x32xf32>
    %465 = vector.shape_cast %464 : vector<1x1x32x32xf32> to vector<32x32xf32>
    %cst_121 = arith.constant dense<0.000000e+00> : vector<1x32xf32>
    %466 = tpu.matmul %463, %465, %cst_121 {dimension_numbers = #tpu.dot_dimension_numbers<[1], [0], [0], [1], [0, 0, 1, 1], [], []>} : vector<1x32xf32>, vector<32x32xf32>, vector<1x32xf32> -> vector<1x32xf32>
    %467 = arith.addf %462, %466 : vector<1x32xf32>
    %468 = vector.extract_strided_slice %457 {offsets = [2, 0], sizes = [1, 32], strides = [1, 1]} : vector<4x32xf32> to vector<1x32xf32>
    %c0_122 = arith.constant 0 : index
    %c2 = arith.constant 2 : index
    %c0_123 = arith.constant 0 : index
    %c0_124 = arith.constant 0 : index
    %469 = vector.load %arg8[%c0_122, %c2, %c0_123, %c0_124] : memref<4x4x32x32xf32, #tpu.memory_space<vmem>>, vector<1x1x32x32xf32>
    %470 = vector.shape_cast %469 : vector<1x1x32x32xf32> to vector<32x32xf32>
    %cst_125 = arith.constant dense<0.000000e+00> : vector<1x32xf32>
    %471 = tpu.matmul %468, %470, %cst_125 {dimension_numbers = #tpu.dot_dimension_numbers<[1], [0], [0], [1], [0, 0, 1, 1], [], []>} : vector<1x32xf32>, vector<32x32xf32>, vector<1x32xf32> -> vector<1x32xf32>
    %472 = arith.addf %467, %471 : vector<1x32xf32>
    %473 = vector.extract_strided_slice %457 {offsets = [3, 0], sizes = [1, 32], strides = [1, 1]} : vector<4x32xf32> to vector<1x32xf32>
    %c0_126 = arith.constant 0 : index
    %c3 = arith.constant 3 : index
    %c0_127 = arith.constant 0 : index
    %c0_128 = arith.constant 0 : index
    %474 = vector.load %arg8[%c0_126, %c3, %c0_127, %c0_128] : memref<4x4x32x32xf32, #tpu.memory_space<vmem>>, vector<1x1x32x32xf32>
    %475 = vector.shape_cast %474 : vector<1x1x32x32xf32> to vector<32x32xf32>
    %cst_129 = arith.constant dense<0.000000e+00> : vector<1x32xf32>
    %476 = tpu.matmul %473, %475, %cst_129 {dimension_numbers = #tpu.dot_dimension_numbers<[1], [0], [0], [1], [0, 0, 1, 1], [], []>} : vector<1x32xf32>, vector<32x32xf32>, vector<1x32xf32> -> vector<1x32xf32>
    %477 = arith.addf %472, %476 : vector<1x32xf32>
    %478 = vector.extract_strided_slice %454 {offsets = [1, 0, 0], sizes = [1, 4, 32], strides = [1, 1, 1]} : vector<4x4x32xf32> to vector<1x4x32xf32>
    %479 = vector.shape_cast %478 : vector<1x4x32xf32> to vector<4x32xf32>
    %480 = vector.extract_strided_slice %479 {offsets = [0, 0], sizes = [1, 32], strides = [1, 1]} : vector<4x32xf32> to vector<1x32xf32>
    %c1_130 = arith.constant 1 : index
    %c0_131 = arith.constant 0 : index
    %c0_132 = arith.constant 0 : index
    %c0_133 = arith.constant 0 : index
    %481 = vector.load %arg8[%c1_130, %c0_131, %c0_132, %c0_133] : memref<4x4x32x32xf32, #tpu.memory_space<vmem>>, vector<1x1x32x32xf32>
    %482 = vector.shape_cast %481 : vector<1x1x32x32xf32> to vector<32x32xf32>
    %cst_134 = arith.constant dense<0.000000e+00> : vector<1x32xf32>
    %483 = tpu.matmul %480, %482, %cst_134 {dimension_numbers = #tpu.dot_dimension_numbers<[1], [0], [0], [1], [0, 0, 1, 1], [], []>} : vector<1x32xf32>, vector<32x32xf32>, vector<1x32xf32> -> vector<1x32xf32>
    %484 = arith.addf %477, %483 : vector<1x32xf32>
    %485 = vector.extract_strided_slice %479 {offsets = [1, 0], sizes = [1, 32], strides = [1, 1]} : vector<4x32xf32> to vector<1x32xf32>
    %c1_135 = arith.constant 1 : index
    %c1_136 = arith.constant 1 : index
    %c0_137 = arith.constant 0 : index
    %c0_138 = arith.constant 0 : index
    %486 = vector.load %arg8[%c1_135, %c1_136, %c0_137, %c0_138] : memref<4x4x32x32xf32, #tpu.memory_space<vmem>>, vector<1x1x32x32xf32>
    %487 = vector.shape_cast %486 : vector<1x1x32x32xf32> to vector<32x32xf32>
    %cst_139 = arith.constant dense<0.000000e+00> : vector<1x32xf32>
    %488 = tpu.matmul %485, %487, %cst_139 {dimension_numbers = #tpu.dot_dimension_numbers<[1], [0], [0], [1], [0, 0, 1, 1], [], []>} : vector<1x32xf32>, vector<32x32xf32>, vector<1x32xf32> -> vector<1x32xf32>
    %489 = arith.addf %484, %488 : vector<1x32xf32>
    %490 = vector.extract_strided_slice %479 {offsets = [2, 0], sizes = [1, 32], strides = [1, 1]} : vector<4x32xf32> to vector<1x32xf32>
    %c1_140 = arith.constant 1 : index
    %c2_141 = arith.constant 2 : index
    %c0_142 = arith.constant 0 : index
    %c0_143 = arith.constant 0 : index
    %491 = vector.load %arg8[%c1_140, %c2_141, %c0_142, %c0_143] : memref<4x4x32x32xf32, #tpu.memory_space<vmem>>, vector<1x1x32x32xf32>
    %492 = vector.shape_cast %491 : vector<1x1x32x32xf32> to vector<32x32xf32>
    %cst_144 = arith.constant dense<0.000000e+00> : vector<1x32xf32>
    %493 = tpu.matmul %490, %492, %cst_144 {dimension_numbers = #tpu.dot_dimension_numbers<[1], [0], [0], [1], [0, 0, 1, 1], [], []>} : vector<1x32xf32>, vector<32x32xf32>, vector<1x32xf32> -> vector<1x32xf32>
    %494 = arith.addf %489, %493 : vector<1x32xf32>
    %495 = vector.extract_strided_slice %479 {offsets = [3, 0], sizes = [1, 32], strides = [1, 1]} : vector<4x32xf32> to vector<1x32xf32>
    %c1_145 = arith.constant 1 : index
    %c3_146 = arith.constant 3 : index
    %c0_147 = arith.constant 0 : index
    %c0_148 = arith.constant 0 : index
    %496 = vector.load %arg8[%c1_145, %c3_146, %c0_147, %c0_148] : memref<4x4x32x32xf32, #tpu.memory_space<vmem>>, vector<1x1x32x32xf32>
    %497 = vector.shape_cast %496 : vector<1x1x32x32xf32> to vector<32x32xf32>
    %cst_149 = arith.constant dense<0.000000e+00> : vector<1x32xf32>
    %498 = tpu.matmul %495, %497, %cst_149 {dimension_numbers = #tpu.dot_dimension_numbers<[1], [0], [0], [1], [0, 0, 1, 1], [], []>} : vector<1x32xf32>, vector<32x32xf32>, vector<1x32xf32> -> vector<1x32xf32>
    %499 = arith.addf %494, %498 : vector<1x32xf32>
    %500 = vector.extract_strided_slice %454 {offsets = [2, 0, 0], sizes = [1, 4, 32], strides = [1, 1, 1]} : vector<4x4x32xf32> to vector<1x4x32xf32>
    %501 = vector.shape_cast %500 : vector<1x4x32xf32> to vector<4x32xf32>
    %502 = vector.extract_strided_slice %501 {offsets = [0, 0], sizes = [1, 32], strides = [1, 1]} : vector<4x32xf32> to vector<1x32xf32>
    %c2_150 = arith.constant 2 : index
    %c0_151 = arith.constant 0 : index
    %c0_152 = arith.constant 0 : index
    %c0_153 = arith.constant 0 : index
    %503 = vector.load %arg8[%c2_150, %c0_151, %c0_152, %c0_153] : memref<4x4x32x32xf32, #tpu.memory_space<vmem>>, vector<1x1x32x32xf32>
    %504 = vector.shape_cast %503 : vector<1x1x32x32xf32> to vector<32x32xf32>
    %cst_154 = arith.constant dense<0.000000e+00> : vector<1x32xf32>
    %505 = tpu.matmul %502, %504, %cst_154 {dimension_numbers = #tpu.dot_dimension_numbers<[1], [0], [0], [1], [0, 0, 1, 1], [], []>} : vector<1x32xf32>, vector<32x32xf32>, vector<1x32xf32> -> vector<1x32xf32>
    %506 = arith.addf %499, %505 : vector<1x32xf32>
    %507 = vector.extract_strided_slice %501 {offsets = [1, 0], sizes = [1, 32], strides = [1, 1]} : vector<4x32xf32> to vector<1x32xf32>
    %c2_155 = arith.constant 2 : index
    %c1_156 = arith.constant 1 : index
    %c0_157 = arith.constant 0 : index
    %c0_158 = arith.constant 0 : index
    %508 = vector.load %arg8[%c2_155, %c1_156, %c0_157, %c0_158] : memref<4x4x32x32xf32, #tpu.memory_space<vmem>>, vector<1x1x32x32xf32>
    %509 = vector.shape_cast %508 : vector<1x1x32x32xf32> to vector<32x32xf32>
    %cst_159 = arith.constant dense<0.000000e+00> : vector<1x32xf32>
    %510 = tpu.matmul %507, %509, %cst_159 {dimension_numbers = #tpu.dot_dimension_numbers<[1], [0], [0], [1], [0, 0, 1, 1], [], []>} : vector<1x32xf32>, vector<32x32xf32>, vector<1x32xf32> -> vector<1x32xf32>
    %511 = arith.addf %506, %510 : vector<1x32xf32>
    %512 = vector.extract_strided_slice %501 {offsets = [2, 0], sizes = [1, 32], strides = [1, 1]} : vector<4x32xf32> to vector<1x32xf32>
    %c2_160 = arith.constant 2 : index
    %c2_161 = arith.constant 2 : index
    %c0_162 = arith.constant 0 : index
    %c0_163 = arith.constant 0 : index
    %513 = vector.load %arg8[%c2_160, %c2_161, %c0_162, %c0_163] : memref<4x4x32x32xf32, #tpu.memory_space<vmem>>, vector<1x1x32x32xf32>
    %514 = vector.shape_cast %513 : vector<1x1x32x32xf32> to vector<32x32xf32>
    %cst_164 = arith.constant dense<0.000000e+00> : vector<1x32xf32>
    %515 = tpu.matmul %512, %514, %cst_164 {dimension_numbers = #tpu.dot_dimension_numbers<[1], [0], [0], [1], [0, 0, 1, 1], [], []>} : vector<1x32xf32>, vector<32x32xf32>, vector<1x32xf32> -> vector<1x32xf32>
    %516 = arith.addf %511, %515 : vector<1x32xf32>
    %517 = vector.extract_strided_slice %501 {offsets = [3, 0], sizes = [1, 32], strides = [1, 1]} : vector<4x32xf32> to vector<1x32xf32>
    %c2_165 = arith.constant 2 : index
    %c3_166 = arith.constant 3 : index
    %c0_167 = arith.constant 0 : index
    %c0_168 = arith.constant 0 : index
    %518 = vector.load %arg8[%c2_165, %c3_166, %c0_167, %c0_168] : memref<4x4x32x32xf32, #tpu.memory_space<vmem>>, vector<1x1x32x32xf32>
    %519 = vector.shape_cast %518 : vector<1x1x32x32xf32> to vector<32x32xf32>
    %cst_169 = arith.constant dense<0.000000e+00> : vector<1x32xf32>
    %520 = tpu.matmul %517, %519, %cst_169 {dimension_numbers = #tpu.dot_dimension_numbers<[1], [0], [0], [1], [0, 0, 1, 1], [], []>} : vector<1x32xf32>, vector<32x32xf32>, vector<1x32xf32> -> vector<1x32xf32>
    %521 = arith.addf %516, %520 : vector<1x32xf32>
    %522 = vector.extract_strided_slice %454 {offsets = [3, 0, 0], sizes = [1, 4, 32], strides = [1, 1, 1]} : vector<4x4x32xf32> to vector<1x4x32xf32>
    %523 = vector.shape_cast %522 : vector<1x4x32xf32> to vector<4x32xf32>
    %524 = vector.extract_strided_slice %523 {offsets = [0, 0], sizes = [1, 32], strides = [1, 1]} : vector<4x32xf32> to vector<1x32xf32>
    %c3_170 = arith.constant 3 : index
    %c0_171 = arith.constant 0 : index
    %c0_172 = arith.constant 0 : index
    %c0_173 = arith.constant 0 : index
    %525 = vector.load %arg8[%c3_170, %c0_171, %c0_172, %c0_173] : memref<4x4x32x32xf32, #tpu.memory_space<vmem>>, vector<1x1x32x32xf32>
    %526 = vector.shape_cast %525 : vector<1x1x32x32xf32> to vector<32x32xf32>
    %cst_174 = arith.constant dense<0.000000e+00> : vector<1x32xf32>
    %527 = tpu.matmul %524, %526, %cst_174 {dimension_numbers = #tpu.dot_dimension_numbers<[1], [0], [0], [1], [0, 0, 1, 1], [], []>} : vector<1x32xf32>, vector<32x32xf32>, vector<1x32xf32> -> vector<1x32xf32>
    %528 = arith.addf %521, %527 : vector<1x32xf32>
    %529 = vector.extract_strided_slice %523 {offsets = [1, 0], sizes = [1, 32], strides = [1, 1]} : vector<4x32xf32> to vector<1x32xf32>
    %c3_175 = arith.constant 3 : index
    %c1_176 = arith.constant 1 : index
    %c0_177 = arith.constant 0 : index
    %c0_178 = arith.constant 0 : index
    %530 = vector.load %arg8[%c3_175, %c1_176, %c0_177, %c0_178] : memref<4x4x32x32xf32, #tpu.memory_space<vmem>>, vector<1x1x32x32xf32>
    %531 = vector.shape_cast %530 : vector<1x1x32x32xf32> to vector<32x32xf32>
    %cst_179 = arith.constant dense<0.000000e+00> : vector<1x32xf32>
    %532 = tpu.matmul %529, %531, %cst_179 {dimension_numbers = #tpu.dot_dimension_numbers<[1], [0], [0], [1], [0, 0, 1, 1], [], []>} : vector<1x32xf32>, vector<32x32xf32>, vector<1x32xf32> -> vector<1x32xf32>
    %533 = arith.addf %528, %532 : vector<1x32xf32>
    %534 = vector.extract_strided_slice %523 {offsets = [2, 0], sizes = [1, 32], strides = [1, 1]} : vector<4x32xf32> to vector<1x32xf32>
    %c3_180 = arith.constant 3 : index
    %c2_181 = arith.constant 2 : index
    %c0_182 = arith.constant 0 : index
    %c0_183 = arith.constant 0 : index
    %535 = vector.load %arg8[%c3_180, %c2_181, %c0_182, %c0_183] : memref<4x4x32x32xf32, #tpu.memory_space<vmem>>, vector<1x1x32x32xf32>
    %536 = vector.shape_cast %535 : vector<1x1x32x32xf32> to vector<32x32xf32>
    %cst_184 = arith.constant dense<0.000000e+00> : vector<1x32xf32>
    %537 = tpu.matmul %534, %536, %cst_184 {dimension_numbers = #tpu.dot_dimension_numbers<[1], [0], [0], [1], [0, 0, 1, 1], [], []>} : vector<1x32xf32>, vector<32x32xf32>, vector<1x32xf32> -> vector<1x32xf32>
    %538 = arith.addf %533, %537 : vector<1x32xf32>
    %539 = vector.extract_strided_slice %523 {offsets = [3, 0], sizes = [1, 32], strides = [1, 1]} : vector<4x32xf32> to vector<1x32xf32>
    %c3_185 = arith.constant 3 : index
    %c3_186 = arith.constant 3 : index
    %c0_187 = arith.constant 0 : index
    %c0_188 = arith.constant 0 : index
    %540 = vector.load %arg8[%c3_185, %c3_186, %c0_187, %c0_188] : memref<4x4x32x32xf32, #tpu.memory_space<vmem>>, vector<1x1x32x32xf32>
    %541 = vector.shape_cast %540 : vector<1x1x32x32xf32> to vector<32x32xf32>
    %cst_189 = arith.constant dense<0.000000e+00> : vector<1x32xf32>
    %542 = tpu.matmul %539, %541, %cst_189 {dimension_numbers = #tpu.dot_dimension_numbers<[1], [0], [0], [1], [0, 0, 1, 1], [], []>} : vector<1x32xf32>, vector<32x32xf32>, vector<1x32xf32> -> vector<1x32xf32>
    %543 = arith.addf %538, %542 : vector<1x32xf32>
    %c0_190 = arith.constant 0 : index
    %c0_191 = arith.constant 0 : index
    %c0_192 = arith.constant 0 : index
    %544 = vector.load %arg10[%c0_190, %c0_191, %c0_192] : memref<1x1x32xf32, #tpu.memory_space<vmem>>, vector<1x1x32xf32>
    %545 = vector.shape_cast %544 : vector<1x1x32xf32> to vector<1x32xf32>
    %546 = vector.shape_cast %543 : vector<1x32xf32> to vector<1x1x32xf32>
    tpu.vector_store %arg10[%c0_190, %c0_191, %c0_192], %546 {strides = array<i32>} : memref<1x1x32xf32, #tpu.memory_space<vmem>>, vector<1x1x32xf32>,
    return
  }
  func.func @transform_0(%arg0: i32) -> (i32, i32, i32, i32) {
    %c0_i32 = arith.constant 0 : i32
    %c0_i32_0 = arith.constant 0 : i32
    %c0_i32_1 = arith.constant 0 : i32
    %c0_i32_2 = arith.constant 0 : i32
    return %arg0, %c0_i32, %c0_i32_0, %c0_i32_1 : i32, i32, i32, i32
  }
  func.func @transform_1(%arg0: i32) -> (i32, i32, i32) {
    %c0_i32 = arith.constant 0 : i32
    %c0_i32_0 = arith.constant 0 : i32
    %c0_i32_1 = arith.constant 0 : i32
    %c0_i32_2 = arith.constant 0 : i32
    return %c0_i32, %c0_i32_0, %c0_i32_1 : i32, i32, i32
  }
  func.func @transform_2(%arg0: i32) -> (i32, i32) {
    %c0_i32 = arith.constant 0 : i32
    %c0_i32_0 = arith.constant 0 : i32
    %c0_i32_1 = arith.constant 0 : i32
    return %c0_i32, %c0_i32_0 : i32, i32
  }
  func.func @transform_3(%arg0: i32) -> (i32, i32, i32) {
    %c0_i32 = arith.constant 0 : i32
    %c0_i32_0 = arith.constant 0 : i32
    %c0_i32_1 = arith.constant 0 : i32
    %c0_i32_2 = arith.constant 0 : i32
    return %c0_i32, %c0_i32_0, %c0_i32_1 : i32, i32, i32
  }
  func.func @transform_4(%arg0: i32) -> (i32, i32) {
    %c0_i32 = arith.constant 0 : i32
    %c0_i32_0 = arith.constant 0 : i32
    %c0_i32_1 = arith.constant 0 : i32
    return %c0_i32, %c0_i32_0 : i32, i32
  }
  func.func @transform_5(%arg0: i32) -> (i32, i32, i32) {
    %c0_i32 = arith.constant 0 : i32
    %c0_i32_0 = arith.constant 0 : i32
    %c0_i32_1 = arith.constant 0 : i32
    %c0_i32_2 = arith.constant 0 : i32
    return %c0_i32, %c0_i32_0, %c0_i32_1 : i32, i32, i32
  }
  func.func @transform_6(%arg0: i32) -> (i32, i32) {
    %c0_i32 = arith.constant 0 : i32
    %c0_i32_0 = arith.constant 0 : i32
    %c0_i32_1 = arith.constant 0 : i32
    return %c0_i32, %c0_i32_0 : i32, i32
  }
  func.func @transform_7(%arg0: i32) -> (i32, i32, i32, i32) {
    %c0_i32 = arith.constant 0 : i32
    %c0_i32_0 = arith.constant 0 : i32
    %c0_i32_1 = arith.constant 0 : i32
    %c0_i32_2 = arith.constant 0 : i32
    %c0_i32_3 = arith.constant 0 : i32
    return %c0_i32, %c0_i32_0, %c0_i32_1, %c0_i32_2 : i32, i32, i32, i32
  }
  func.func @transform_8(%arg0: i32) -> (i32, i32) {
    %c0_i32 = arith.constant 0 : i32
    %c0_i32_0 = arith.constant 0 : i32
    %c0_i32_1 = arith.constant 0 : i32
    return %c0_i32, %c0_i32_0 : i32, i32
  }
  func.func @transform_9(%arg0: i32) -> (i32, i32, i32) {
    %c0_i32 = arith.constant 0 : i32
    %c0_i32_0 = arith.constant 0 : i32
    %c0_i32_1 = arith.constant 0 : i32
    return %arg0, %c0_i32, %c0_i32_0 : i32, i32, i32
  }
}

</mosaic_0001>

<bundles_post_ra>
// kernel: encoder_forward.1
= control target key start
LH: loop header
LB: loop body
LE: loop exit
PB: predicated region body
PF: predicated region fallthrough
CT: control target
= control target key end

     0   :  { %14 = vsyncpa [#allocation5], 0  ;;  %s48099_s0 = inlined_call_operand.vmem [shape: f32[2,34,34,3], index: 0, kind: input, shape index: {}]   ;;  %s48100_s1 = inlined_call_operand.vmem [shape: f32[9,3,8], index: 1, kind: input, shape index: {}]   ;;  %s48101_s2 = inlined_call_operand.vmem [shape: f32[1,8], index: 2, kind: input, shape index: {}]   ;;  %s48102_s3 = inlined_call_operand.vmem [shape: f32[9,8,16], index: 3, kind: input, shape index: {}]   ;;  %s48103_s4 = inlined_call_operand.vmem [shape: f32[1,16], index: 4, kind: input, shape index: {}]   ;;  %s48104_s5 = inlined_call_operand.vmem [shape: f32[9,16,32], index: 5, kind: input, shape index: {}]   ;;  %s48105_s6 = inlined_call_operand.vmem [shape: f32[1,32], index: 6, kind: input, shape index: {}]   ;;  %s48106_s7 = inlined_call_operand.vmem [shape: f32[4,4,32,32], index: 7, kind: input, shape index: {}]   ;;  %s48107_s8 = inlined_call_operand.vmem [shape: f32[1,32], index: 8, kind: input, shape index: {}]   ;;  %s48108_s9 = inlined_call_operand.hbm [shape: f32[2,1,32], index: 9, kind: output, shape index: {}]  }
   0x1   :  { %16 = vsyncpa [#allocation5 + $0x1], 0  ;;  %s42808_s30 = smov 0   ;;  %s42810_s10 = smov 0  }
   0x2   :  { %s42812_s11 = smov 0   ;;  %s42814_s12 = smov 0  }
   0x3 LB: > { %s42829_s13 = sadd.s32 4294967295, %s42751_s12   ;;  %s34804_s14 = sadd.s32 4294967294, %s42751_s12   ;;  %s42751_s12 = sphi %s42814_s12, %s48528_s12   ;;  %s42747_s11 = sphi %s42812_s11, %s48527_s11   ;;  %s42743_s10 = sphi %s42810_s10, %s48526_s10   ;;  %s42739_s30 = sphi %s42808_s30, %s48525_s30  }
   0x4   : > { %s42833_s15 = sadd.s32 1, %s42751_s12   ;;  %s223_s16 = sadd.s32 1, %s42747_s11 }
   0x5   : > { %s220_s17 = ssub.s32 %s42751_s12, %s42833_s15  ;;  %p233_p0 = scmp.ne.s32.totalorder %s42747_s11, %s42743_s10 }
   0x6   : > { %p221_p1 = scmp.eq.s32.totalorder %s220_s17, 0  ;;  %p234_p2 = scmp.eq.s32.totalorder %s42829_s13, 1 }
   0x7   : > { %p239_p3 = scmp.ne.s32.totalorder %s42743_s10, %s42739_s30  ;;  %p240_p4 = scmp.eq.s32.totalorder %s34804_s14, 1 }
   0x8   : > { %s42844_s18 = scalar_select %p221_p1, %s42747_s11, %s223_s16  }
   0x9   : > { %p42846_p5 = por %p234_p2, %p233_p0  ;;  %p42850_p6 = por %p240_p4, %p239_p3 }
   0xa   : > { %p34807_p7 = scmp.ge.s32.totalorder %s42751_s12, 1  ;;  %p290_p8 = scmp.lt.s32.totalorder %s42751_s12, 3 }
   0xc   : > { %p291_p9 = pnand %p34807_p7, %p290_p8 }
   0xe   : > { %294 = sbr.rel (%p291_p9) target bundleno = 2664 (0xa68), region = 56 }
  0x15   : > { %p325_p10 = scmp.lt.s32.totalorder %s42829_s13, 1  ;;  %v583_v0 = vlaneseq  ;;  %vm594_vm0 = vcmask 277504   ;;  %v48109_v8 = vmov 0.0   ;;  %vm601_vm2 = vcmask 1041408   ;;  %s323_s28 = sand.u32 1, %s42743_s10  }
  0x16   : > { %vm8157_vm8 = vcmask 1042432   ;;  %vm8150_vm9 = vcmask 23552   ;;  %vm330_vm10 = vcmask 64512   ;;  %vm333_vm11 = vcmask 58368   ;;  %s35881_s16 = sshll.u32 %s42829_s13, 4  ;;  %s324_s17 = scalar_lea.vmem [#allocation4], %s323_s28 }
  0x17   : > { %s326_s21 = scalar_select %p325_p10, %s42829_s13, 1  ;;  %v584_v1 = vshrl.u32 %v583_v0, 7  ;;  %v42858_v2 = vand.u32 127, %v583_v0  ;;  %vm42755_vm12 = vmmov 0   ;;  %vm19961_vm13 = vcmask 146432  }
  0x18   : > { %vm386_vm14 = vcmask 130048   ;;  %vm388_vm15 = vcmask 123904   ;;  %s48057_s24 = scalar_lea.hbm %s48108_s9, %s35881_s16  ;;  %s42757_s13 = smov [#allocation4]  }
  0x19   : > { %s42613_s22 = smul.u32 1360, %s326_s21  ;;  %v42860_v3 = vmul.u32 2, %v584_v1  ;;  %v585_v4 = vadd.s32 8, %v584_v1  ;;  %s34749_s21 = sshll.u32 %s324_s17, 4  ;;  %s48059_s21 = int_to_ptr.vmem [resolvable:$true] %s34749_s21 }
  0x1a   : > { %s42689_s26 = scalar_lea.vmem %s48059_s21, 16  ;;  %s42693_s27 = sshll.u32 %s42757_s13, 4  ;;  %s42694_s27 = int_to_ptr.vmem [resolvable:$false] %s42693_s27 }
  0x1b   : > { %s42865_s25 = scalar_lea.vmem %s48099_s0, %s42613_s22  ;;  %vm590_vm1 = vcmp.eq.s32.totalorder %v42858_v2, %v42860_v3  ;;  %v42889_v16 = vmul.u32 2, %v585_v4  ;;  %p42690_p11 = scmp.ne.s32.totalorder %s48059_s21, %s42689_s26 }
  0x1c   : > { %v408_v5 = vld [vmem:[%s42865_s25] sm:$0xff]  ;;  %v409_v6 = vld [vmem:[%s42865_s25 + $0x8] sm:$0xff]  ;;  %v410_v7 = vld [vmem:[%s42865_s25 + $0x10] sm:$0xff]  ;;  %v42873_v9 = vsel %vm590_vm1, 1.0, %v48109_v8  ;;  %s42695_s29 = scalar_lea.vmem %s42694_s27, 32  ;;  %p42696_p0 = scmp.lt.s32.totalorder %s48059_s21, %s42694_s27 }
  0x1d   : > { %48228 = vst [vmem:[#allocation7_spill] sm:$0xff] %v42873_v9  ;;  %v42875_v10 = vpack.c.bf16 %v409_v6, %v408_v5  ;;  %v411_v11 = vld [vmem:[%s42865_s25 + $0x18] sm:$0xff]  ;;  %v468_v12 = vld [vmem:[%s42865_s25 + $0x1e0] sm:$0xff]  ;;  %v469_v13 = vld [vmem:[%s42865_s25 + $0x1e8] sm:$0xff]  ;;  %37636 = vmatprep.mubr.msk.f32.mxu1 %vm594_vm0, %v42873_v9  ;;  %37792 = vmatprep.mubr.msk.f32.mxu0 %vm594_vm0, %v42873_v9  ;;  %vm591_vm3 = vcmp.eq.s32.totalorder %v42858_v2, %v42889_v16  ;;  %p42691_p12 = pnand %p42690_p11, %p42846_p5  ;;  %p42697_p1 = scmp.lt.s32.totalorder %s42695_s29, %s42689_s26 }
  0x1e   : > { %v42884_v14 = vpack.c.bf16 %v411_v11, %v410_v7  ;;  %v42886_v15 = vpack.c.bf16 %v469_v13, %v468_v12  ;;  %v470_v17 = vld [vmem:[%s42865_s25 + $0x1f0] sm:$0xff]  ;;  %v471_v18 = vld [vmem:[%s42865_s25 + $0x1f8] sm:$0xff]  ;;  %v412_v20 = vld [vmem:[%s42865_s25 + $0x20] sm:$0x3]  ;;  %v42916_v29 = vsel %vm591_vm3, 1.0, %v48109_v8  ;;  %vm28906_vm3 = vcmask 80896  }
  0x1f   : > { %41070 = vmatprep.subr.bf16.mxu1 %v42875_v10  ;;  %v42895_v19 = vpack.c.bf16 %v471_v18, %v470_v17  ;;  %v413_v21 = vld [vmem:[%s42865_s25 + $0x28] sm:$0xff]  ;;  %v414_v22 = vld [vmem:[%s42865_s25 + $0x30] sm:$0xff]  ;;  %v415_v23 = vld [vmem:[%s42865_s25 + $0x38] sm:$0xff]  ;;  %p42692_p13 = pneg %p42691_p12  ;;  %p42698_p2 = por %p42697_p1, %p42696_p0 }
  0x20   : > { %41072 = vmatpush3.bf16.msra.mxu1 %v42875_v10  ;;  %41166 = vmatprep.subr.bf16.mxu0 %v42886_v15  ;;  %v472_v24 = vld [vmem:[%s42865_s25 + $0x200] sm:$0x3]  ;;  %v478_v26 = vld [vmem:[%s42865_s25 + $0x230] sm:$0xff]  ;;  %v479_v27 = vld [vmem:[%s42865_s25 + $0x238] sm:$0xff]  ;;  %v42912_v28 = vpack.c.bf16 %v414_v22, %v413_v21 }
  0x21   : > { %41074 = vmatprep.subr.bf16.mxu1 %v42884_v14  ;;  %41168 = vmatpush3.bf16.msra.mxu0 %v42886_v15  ;;  %v416_v25 = vld [vmem:[%s42865_s25 + $0x40] sm:$0xff]  ;;  %v42921_v31 = vpack.c.bf16 %v479_v27, %v478_v26  ;;  %v481_v33 = vld [vmem:[%s42865_s25 + $0x248] sm:$0xff]  ;;  %v418_v36 = vld [vmem:[%s42865_s25 + $0x50] sm:$0xff]  ;;  %p42699_p3 = pnand %p42698_p2, %p42692_p13 }
  0x22   : > { %41170 = vmatprep.subr.bf16.mxu0 %v42895_v19  ;;  %48229 = vst [vmem:[#allocation8_spill] sm:$0xff] %v42912_v28  ;;  %v42919_v30 = vpack.c.bf16 %v416_v25, %v415_v23  ;;  %v480_v32 = vld [vmem:[%s42865_s25 + $0x240] sm:$0xff]  ;;  %v42938_v35 = vld [vmem:[%s42865_s25 + $0x48] sm:$0x3]  ;;  %v419_v37 = vld [vmem:[%s42865_s25 + $0x58] sm:$0xff] }
  0x23   : > { %v42931_v34 = vpack.c.bf16 %v481_v33, %v480_v32  ;;  %v420_v38 = vld [vmem:[%s42865_s25 + $0x60] sm:$0xff]  ;;  %v421_v39 = vld [vmem:[%s42865_s25 + $0x68] sm:$0xff]  ;;  %v42953_v40 = vpack.c.bf16 %v419_v37, %v418_v36  ;;  %v482_v41 = vld [vmem:[%s42865_s25 + $0x250] sm:$0x3] }
  0x24   : > { %41076 = vmatpush3.bf16.msra.mxu1 %v42884_v14  ;;  %48230 = vst [vmem:[#allocation9_spill] sm:$0xff] %v42919_v30  ;;  %v488_v42 = vld [vmem:[%s42865_s25 + $0x280] sm:$0xff]  ;;  %v489_v43 = vld [vmem:[%s42865_s25 + $0x288] sm:$0xff]  ;;  %v42959_v44 = vpack.c.bf16 %v421_v39, %v420_v38  ;;  %v490_v45 = vld [vmem:[%s42865_s25 + $0x290] sm:$0xff] }
  0x25   : > { %37634 = vmatprep.subr.msk.mxu1 %vm601_vm2, %v412_v20  ;;  %41172 = vmatpush3.bf16.msra.mxu0 %v42895_v19  ;;  %v491_v46 = vld [vmem:[%s42865_s25 + $0x298] sm:$0xff]  ;;  %v42966_v47 = vpack.c.bf16 %v489_v43, %v488_v42  ;;  %v422_v49 = vld [vmem:[%s42865_s25 + $0x70] sm:$0x3]  ;;  %v424_v51 = vld [vmem:[%s42865_s25 + $0x80] sm:$0xff] }
  0x26   : > { %37790 = vmatprep.subr.msk.mxu0 %vm601_vm2, %v472_v24  ;;  %v42974_v48 = vpack.c.bf16 %v491_v46, %v490_v45  ;;  %v423_v50 = vld [vmem:[%s42865_s25 + $0x78] sm:$0xff]  ;;  %v425_v52 = vld [vmem:[%s42865_s25 + $0x88] sm:$0xff]  ;;  %v426_v53 = vld [vmem:[%s42865_s25 + $0x90] sm:$0xff] }
  0x27   : > { %v42992_v54 = vpack.c.bf16 %v424_v51, %v423_v50  ;;  %v492_v55 = vld [vmem:[%s42865_s25 + $0x2a0] sm:$0x3]  ;;  %v498_v56 = vld [vmem:[%s42865_s25 + $0x2d0] sm:$0xff]  ;;  %v499_v57 = vld [vmem:[%s42865_s25 + $0x2d8] sm:$0xff]  ;;  %v42998_v58 = vpack.c.bf16 %v426_v53, %v425_v52 }
  0x28   : > { %37635 = vmatpush3.msk.msra.mxu1 %vm601_vm2, %v412_v20  ;;  %v500_v59 = vld [vmem:[%s42865_s25 + $0x2e0] sm:$0xff]  ;;  %v501_v60 = vld [vmem:[%s42865_s25 + $0x2e8] sm:$0xff]  ;;  %v43004_v61 = vpack.c.bf16 %v499_v57, %v498_v56  ;;  %v43020_v63 = vld [vmem:[%s42865_s25 + $0x98] sm:$0x3] }
  0x29   : > { %37637 = vmatmul.mubr.msk.f32.vlgmr.msra.gmra.mrb[0].mxu1 %vm594_vm0, %v42916_v29  ;;  %41078 = vmatprep.subr.bf16.mxu1 %v42912_v28  ;;  %48231 = vst [vmem:[#allocation10_spill] sm:$0xff] %v42992_v54  ;;  %48232 = vst [vmem:[#allocation11_spill] sm:$0xff] %v42998_v58  ;;  %v43012_v62 = vpack.c.bf16 %v501_v60, %v500_v59  ;;  %v428_v0 = vld [vmem:[%s42865_s25 + $0xa0] sm:$0xff]  ;;  %v429_v1 = vld [vmem:[%s42865_s25 + $0xa8] sm:$0xff] }
  0x2a   : > { %41080 = vmatpush3.bf16.msra.mxu1 %v42912_v28  ;;  %37791 = vmatpush3.msk.msra.mxu0 %vm601_vm2, %v472_v24  ;;  %v430_v4 = vld [vmem:[%s42865_s25 + $0xb0] sm:$0xff]  ;;  %v431_v5 = vld [vmem:[%s42865_s25 + $0xb8] sm:$0xff]  ;;  %v43033_v6 = vpack.c.bf16 %v429_v1, %v428_v0  ;;  %v508_v11 = vld [vmem:[%s42865_s25 + $0x320] sm:$0xff] }
  0x2b   : > { %41082 = vmatprep.subr.bf16.mxu1 %v42919_v30  ;;  %41182 = vmatprep.subr.bf16.mxu0 %v42921_v31  ;;  %v502_v7 = vld [vmem:[%s42865_s25 + $0x2f0] sm:$0x3]  ;;  %v509_v12 = vld [vmem:[%s42865_s25 + $0x328] sm:$0xff]  ;;  %v43039_v13 = vpack.c.bf16 %v431_v5, %v430_v4  ;;  %v511_v18 = vld [vmem:[%s42865_s25 + $0x338] sm:$0xff] }
  0x2c   : > { %37793 = vmatmul.mubr.msk.f32.vlgmr.msra.gmra.mrb[0].mxu0 %vm594_vm0, %v42916_v29  ;;  %37649 = vmatprep.mubr.msk.f32.mxu1 %vm594_vm0, %v42873_v9  ;;  %v510_v17 = vld [vmem:[%s42865_s25 + $0x330] sm:$0xff]  ;;  %v43046_v20 = vpack.c.bf16 %v509_v12, %v508_v11  ;;  %v43062_v22 = vld [vmem:[%s42865_s25 + $0xc0] sm:$0x3]  ;;  %v433_v23 = vld [vmem:[%s42865_s25 + $0xc8] sm:$0xff] }
  0x2d   : > { %41184 = vmatpush3.bf16.msra.mxu0 %v42921_v31  ;;  %37818 = vmatprep.mubr.msk.f32.mxu0 %vm594_vm0, %v42873_v9  ;;  %v43054_v21 = vpack.c.bf16 %v511_v18, %v510_v17  ;;  %v434_v24 = vld [vmem:[%s42865_s25 + $0xd0] sm:$0xff]  ;;  %v435_v25 = vld [vmem:[%s42865_s25 + $0xd8] sm:$0xff]  ;;  %v436_v26 = vld [vmem:[%s42865_s25 + $0xe0] sm:$0xff] }
  0x2e   : > { %41084 = vmatpush3.bf16.msra.mxu1 %v42919_v30  ;;  %41186 = vmatprep.subr.bf16.mxu0 %v42931_v34  ;;  %v43075_v27 = vpack.c.bf16 %v434_v24, %v433_v23  ;;  %v512_v32 = vld [vmem:[%s42865_s25 + $0x340] sm:$0x3]  ;;  %v518_v33 = vld [vmem:[%s42865_s25 + $0x370] sm:$0xff]  ;;  %v519_v36 = vld [vmem:[%s42865_s25 + $0x378] sm:$0xff]  ;;  %v43081_v37 = vpack.c.bf16 %v436_v26, %v435_v25 }
  0x2f   : > { %37647 = vmatprep.subr.msk.mxu1 %vm601_vm2, %v42938_v35  ;;  %v520_v38 = vld [vmem:[%s42865_s25 + $0x380] sm:$0xff]  ;;  %v521_v39 = vld [vmem:[%s42865_s25 + $0x388] sm:$0xff]  ;;  %v438_v45 = vld [vmem:[%s42865_s25 + $0xf0] sm:$0xff] }
  0x30   : > { %48233 = vst [vmem:[#allocation12_spill] sm:$0xff] %v43075_v27  ;;  %48234 = vst [vmem:[#allocation13_spill] sm:$0xff] %v43081_v37  ;;  %v43096_v42 = vpack.c.bf16 %v521_v39, %v520_v38  ;;  %v43104_v43 = vld [vmem:[%s42865_s25 + $0xe8] sm:$0x3]  ;;  %v439_v46 = vld [vmem:[%s42865_s25 + $0xf8] sm:$0xff] }
  0x31   : > { %41188 = vmatpush3.bf16.msra.mxu0 %v42931_v34  ;;  %v441_v50 = vld [vmem:[%s42865_s25 + $0x108] sm:$0xff]  ;;  %v43117_v51 = vpack.c.bf16 %v439_v46, %v438_v45  ;;  %v522_v52 = vld [vmem:[%s42865_s25 + $0x390] sm:$0x3]  ;;  %v528_v53 = vld [vmem:[%s42865_s25 + $0x3c0] sm:$0xff] }
  0x32   : > { %37648 = vmatpush3.msk.msra.mxu1 %vm601_vm2, %v42938_v35  ;;  %37816 = vmatprep.subr.msk.mxu0 %vm601_vm2, %v482_v41  ;;  %v530_v57 = vld [vmem:[%s42865_s25 + $0x3d0] sm:$0xff]  ;;  %v531_v59 = vld [vmem:[%s42865_s25 + $0x3d8] sm:$0xff]  ;;  %v444_v5 = vld [vmem:[%s42865_s25 + $0x120] sm:$0xff] }
  0x33   : > { %37650 = vmatmul.mubr.msk.f32.vlgmr.msra.gmra.mrb[2].mxu1 %vm594_vm0, %v42916_v29  ;;  %41086 = vmatprep.subr.bf16.mxu1 %v42953_v40  ;;  %v43138_v0 = vpack.c.bf16 %v531_v59, %v530_v57  ;;  %v43146_v1 = vld [vmem:[%s42865_s25 + $0x110] sm:$0x3]  ;;  %v443_v4 = vld [vmem:[%s42865_s25 + $0x118] sm:$0xff]  ;;  %v532_v17 = vld [vmem:[%s42865_s25 + $0x3e0] sm:$0x3] }
  0x34   : > { %41088 = vmatpush3.bf16.msra.mxu1 %v42953_v40  ;;  %37662 = vmatprep.mubr.msk.f32.mxu1 %vm594_vm0, %v42873_v9  ;;  %v446_v11 = vld [vmem:[%s42865_s25 + $0x130] sm:$0xff]  ;;  %v43159_v12 = vpack.c.bf16 %v444_v5, %v443_v4  ;;  %v539_v23 = vld [vmem:[%s42865_s25 + $0x418] sm:$0xff]  ;;  %v540_v25 = vld [vmem:[%s42865_s25 + $0x420] sm:$0xff] }
  0x35   : > { %41090 = vmatprep.subr.bf16.mxu1 %v42959_v44  ;;  %37817 = vmatpush3.msk.msra.mxu0 %vm601_vm2, %v482_v41  ;;  %v43088_v41 = vpack.c.bf16 %v519_v36, %v518_v33  ;;  %v538_v18 = vld [vmem:[%s42865_s25 + $0x410] sm:$0xff]  ;;  %v541_v26 = vld [vmem:[%s42865_s25 + $0x428] sm:$0xff]  ;;  %v43188_v36 = vld [vmem:[%s42865_s25 + $0x138] sm:$0x3] }
  0x36   : > { %41198 = vmatprep.subr.bf16.mxu0 %v42966_v47  ;;  %37819 = vmatmul.mubr.msk.f32.vlgmr.msra.gmra.mrb[2].mxu0 %vm594_vm0, %v42916_v29  ;;  %48235 = vst [vmem:[#allocation14_spill] sm:$0xff] %v43159_v12  ;;  %v43180_v33 = vpack.c.bf16 %v541_v26, %v540_v25  ;;  %v448_v38 = vld [vmem:[%s42865_s25 + $0x140] sm:$0xff]  ;;  %v449_v39 = vld [vmem:[%s42865_s25 + $0x148] sm:$0xff]  ;;  %v450_v45 = vld [vmem:[%s42865_s25 + $0x150] sm:$0xff] }
  0x37   : > { %41200 = vmatpush3.bf16.msra.mxu0 %v42966_v47  ;;  %37844 = vmatprep.mubr.msk.f32.mxu0 %vm594_vm0, %v42873_v9  ;;  %v451_v46 = vld [vmem:[%s42865_s25 + $0x158] sm:$0xff]  ;;  %v550_v57 = vld [vmem:[%s42865_s25 + $0x470] sm:$0xff]  ;;  %v552_v26 = vld [vmem:[%s42865_s25 + $0x480] sm:$0x3] }
  0x38   : > { %41092 = vmatpush3.bf16.msra.mxu1 %v42959_v44  ;;  %41202 = vmatprep.subr.bf16.mxu0 %v42974_v48  ;;  %v551_v59 = vld [vmem:[%s42865_s25 + $0x478] sm:$0xff] }
  0x39   : > { %37660 = vmatprep.subr.msk.mxu1 %vm601_vm2, %v422_v49  ;;  %v43222_v5 = vpack.c.bf16 %v551_v59, %v550_v57  ;;  %v43272_v57 = vld [vmem:[%s42865_s25 + $0x188] sm:$0x3]  ;;  %v458_v59 = vld [vmem:[%s42865_s25 + $0x190] sm:$0xff]  ;;  %v571_v8 = vld [vmem:[%s42865_s25 + $0x518] sm:$0xff] }
  0x3b   : > { %41204 = vmatpush3.bf16.msra.mxu0 %v42974_v48  ;;  %48238 = vst [vmem:[#allocation17_spill] sm:$0xff] %v43222_v5 }
  0x3c   : > { %37661 = vmatpush3.msk.msra.mxu1 %vm601_vm2, %v422_v49  ;;  %37842 = vmatprep.subr.msk.mxu0 %vm601_vm2, %v492_v55  ;;  %v440_v49 = vld [vmem:[%s42865_s25 + $0x100] sm:$0xff] }
  0x3d   : > { %37663 = vmatmul.mubr.msk.f32.vlgmr.msra.gmra.mrb[4].mxu1 %vm594_vm0, %v42916_v29  ;;  %41094 = vmatprep.subr.bf16.mxu1 %v42992_v54  ;;  %v43123_v56 = vpack.c.bf16 %v441_v50, %v440_v49  ;;  %v43201_v49 = vpack.c.bf16 %v449_v39, %v448_v38  ;;  %v542_v50 = vld [vmem:[%s42865_s25 + $0x430] sm:$0x3]  ;;  %v559_v39 = vld [vmem:[%s42865_s25 + $0x4b8] sm:$0xff] }
  0x3e   : > { %41096 = vmatpush3.bf16.msra.mxu1 %v42992_v54  ;;  %37675 = vmatprep.mubr.msk.f32.mxu1 %vm594_vm0, %v42873_v9  ;;  %v558_v38 = vld [vmem:[%s42865_s25 + $0x4b0] sm:$0xff] }
  0x3f   : > { %41098 = vmatprep.subr.bf16.mxu1 %v42998_v58  ;;  %37843 = vmatpush3.msk.msra.mxu0 %vm601_vm2, %v492_v55  ;;  %v529_v55 = vld [vmem:[%s42865_s25 + $0x3c8] sm:$0xff] }
  0x40   : > { %41214 = vmatprep.subr.bf16.mxu0 %v43004_v61  ;;  %37845 = vmatmul.mubr.msk.f32.vlgmr.msra.gmra.mrb[4].mxu0 %vm594_vm0, %v42916_v29  ;;  %v43130_v60 = vpack.c.bf16 %v529_v55, %v528_v53  ;;  %v549_v53 = vld [vmem:[%s42865_s25 + $0x468] sm:$0xff]  ;;  %v43207_v55 = vpack.c.bf16 %v451_v46, %v450_v45  ;;  %v560_v46 = vld [vmem:[%s42865_s25 + $0x4c0] sm:$0xff] }
  0x41   : > { %41216 = vmatpush3.bf16.msra.mxu0 %v43004_v61  ;;  %37870 = vmatprep.mubr.msk.f32.mxu0 %vm594_vm0, %v42873_v9 }
  0x42   : > { %41100 = vmatpush3.bf16.msra.mxu1 %v42998_v58  ;;  %41218 = vmatprep.subr.bf16.mxu0 %v43012_v62 }
  0x43   : > { %37673 = vmatprep.subr.msk.mxu1 %vm601_vm2, %v43020_v63 }
  0x45   : > { %41220 = vmatpush3.bf16.msra.mxu0 %v43012_v62 }
  0x46   : > { %37674 = vmatpush3.msk.msra.mxu1 %vm601_vm2, %v43020_v63  ;;  %37868 = vmatprep.subr.msk.mxu0 %vm601_vm2, %v502_v7 }
  0x47   : > { %37676 = vmatmul.mubr.msk.f32.vlgmr.msra.gmra.mrb[6].mxu1 %vm594_vm0, %v42916_v29  ;;  %41102 = vmatprep.subr.bf16.mxu1 %v43033_v6 }
  0x48   : > { %41104 = vmatpush3.bf16.msra.mxu1 %v43033_v6  ;;  %37688 = vmatprep.mubr.msk.f32.mxu1 %vm594_vm0, %v42873_v9 }
  0x49   : > { %41106 = vmatprep.subr.bf16.mxu1 %v43039_v13  ;;  %37869 = vmatpush3.msk.msra.mxu0 %vm601_vm2, %v502_v7  ;;  %v445_v7 = vld [vmem:[%s42865_s25 + $0x128] sm:$0xff] }
  0x4a   : > { %41230 = vmatprep.subr.bf16.mxu0 %v43046_v20  ;;  %37871 = vmatmul.mubr.msk.f32.vlgmr.msra.gmra.mrb[6].mxu0 %vm594_vm0, %v42916_v29  ;;  %v43165_v24 = vpack.c.bf16 %v446_v11, %v445_v7  ;;  %v43230_v7 = vld [vmem:[%s42865_s25 + $0x160] sm:$0x3]  ;;  %v453_v11 = vld [vmem:[%s42865_s25 + $0x168] sm:$0xff] }
  0x4b   : > { %41232 = vmatpush3.bf16.msra.mxu0 %v43046_v20  ;;  %37896 = vmatprep.mubr.msk.f32.mxu0 %vm594_vm0, %v42873_v9 }
  0x4c   : > { %41108 = vmatpush3.bf16.msra.mxu1 %v43039_v13  ;;  %41234 = vmatprep.subr.bf16.mxu0 %v43054_v21  ;;  %48236 = vst [vmem:[#allocation15_spill] sm:$0xff] %v43165_v24 }
  0x4d   : > { %37686 = vmatprep.subr.msk.mxu1 %vm601_vm2, %v43062_v22 }
  0x4f   : > { %41236 = vmatpush3.bf16.msra.mxu0 %v43054_v21 }
  0x50   : > { %37687 = vmatpush3.msk.msra.mxu1 %vm601_vm2, %v43062_v22  ;;  %37894 = vmatprep.subr.msk.mxu0 %vm601_vm2, %v512_v32 }
  0x51   : > { %37689 = vmatmul.mubr.msk.f32.vlgmr.msra.gmra.mrb[8].mxu1 %vm594_vm0, %v42916_v29  ;;  %41110 = vmatprep.subr.bf16.mxu1 %v43075_v27 }
  0x52   : > { %41112 = vmatpush3.bf16.msra.mxu1 %v43075_v27  ;;  %37701 = vmatprep.mubr.msk.f32.mxu1 %vm594_vm0, %v42873_v9 }
  0x53   : > { %41114 = vmatprep.subr.bf16.mxu1 %v43081_v37  ;;  %37895 = vmatpush3.msk.msra.mxu0 %vm601_vm2, %v512_v32  ;;  %v43172_v32 = vpack.c.bf16 %v539_v23, %v538_v18  ;;  %v455_v18 = vld [vmem:[%s42865_s25 + $0x178] sm:$0xff]  ;;  %v456_v23 = vld [vmem:[%s42865_s25 + $0x180] sm:$0xff] }
  0x54   : > { %41246 = vmatprep.subr.bf16.mxu0 %v43088_v41  ;;  %37897 = vmatmul.mubr.msk.f32.vlgmr.msra.gmra.mrb[8].mxu0 %vm594_vm0, %v42916_v29  ;;  %v43249_v45 = vpack.c.bf16 %v456_v23, %v455_v18  ;;  %v461_v18 = vld [vmem:[%s42865_s25 + $0x1a8] sm:$0xff] }
  0x55   : > { %41248 = vmatpush3.bf16.msra.mxu0 %v43088_v41  ;;  %37922 = vmatprep.mubr.msk.f32.mxu0 %vm594_vm0, %v42873_v9 }
  0x56   : > { %41116 = vmatpush3.bf16.msra.mxu1 %v43081_v37  ;;  %41250 = vmatprep.subr.bf16.mxu0 %v43096_v42  ;;  %48240 = vst [vmem:[#allocation19_spill] sm:$0xff] %v43249_v45 }
  0x57   : > { %37699 = vmatprep.subr.msk.mxu1 %vm601_vm2, %v43104_v43 }
  0x59   : > { %41252 = vmatpush3.bf16.msra.mxu0 %v43096_v42 }
  0x5a   : > { %37700 = vmatpush3.msk.msra.mxu1 %vm601_vm2, %v43104_v43  ;;  %37920 = vmatprep.subr.msk.mxu0 %vm601_vm2, %v522_v52 }
  0x5b   : > { %37702 = vmatmul.mubr.msk.f32.vlgmr.msra.gmra.mrb[10].mxu1 %vm594_vm0, %v42916_v29  ;;  %41118 = vmatprep.subr.bf16.mxu1 %v43117_v51 }
  0x5c   : > { %41120 = vmatpush3.bf16.msra.mxu1 %v43117_v51  ;;  %37714 = vmatprep.mubr.msk.f32.mxu1 %vm594_vm0, %v42873_v9 }
  0x5d   : > { %41122 = vmatprep.subr.bf16.mxu1 %v43123_v56  ;;  %37921 = vmatpush3.msk.msra.mxu0 %vm601_vm2, %v522_v52  ;;  %v548_v52 = vld [vmem:[%s42865_s25 + $0x460] sm:$0xff] }
  0x5e   : > { %41262 = vmatprep.subr.bf16.mxu0 %v43130_v60  ;;  %37923 = vmatmul.mubr.msk.f32.vlgmr.msra.gmra.mrb[10].mxu0 %vm594_vm0, %v42916_v29  ;;  %v43214_v4 = vpack.c.bf16 %v549_v53, %v548_v52  ;;  %v43256_v52 = vpack.c.bf16 %v559_v39, %v558_v38  ;;  %v568_v38 = vld [vmem:[%s42865_s25 + $0x500] sm:$0xff]  ;;  %v569_v39 = vld [vmem:[%s42865_s25 + $0x508] sm:$0xff] }
  0x5f   : > { %41264 = vmatpush3.bf16.msra.mxu0 %v43130_v60  ;;  %37948 = vmatprep.mubr.msk.f32.mxu0 %vm594_vm0, %v42873_v9 }
  0x60   : > { %41124 = vmatpush3.bf16.msra.mxu1 %v43123_v56  ;;  %41266 = vmatprep.subr.bf16.mxu0 %v43138_v0  ;;  %48237 = vst [vmem:[#allocation16_spill] sm:$0xff] %v43214_v4  ;;  %48241 = vst [vmem:[#allocation20_spill] sm:$0xff] %v43256_v52 }
  0x61   : > { %37712 = vmatprep.subr.msk.mxu1 %vm601_vm2, %v43146_v1 }
  0x63   : > { %41268 = vmatpush3.bf16.msra.mxu0 %v43138_v0 }
  0x64   : > { %37713 = vmatpush3.msk.msra.mxu1 %vm601_vm2, %v43146_v1  ;;  %37946 = vmatprep.subr.msk.mxu0 %vm601_vm2, %v532_v17 }
  0x65   : > { %37715 = vmatmul.mubr.msk.f32.vlgmr.msra.gmra.mrb[12].mxu1 %vm594_vm0, %v42916_v29  ;;  %41126 = vmatprep.subr.bf16.mxu1 %v43159_v12 }
  0x66   : > { %41128 = vmatpush3.bf16.msra.mxu1 %v43159_v12  ;;  %37727 = vmatprep.mubr.msk.f32.mxu1 %vm594_vm0, %v42873_v9 }
  0x67   : > { %41130 = vmatprep.subr.bf16.mxu1 %v43165_v24  ;;  %37947 = vmatpush3.msk.msra.mxu0 %vm601_vm2, %v532_v17  ;;  %v454_v17 = vld [vmem:[%s42865_s25 + $0x170] sm:$0xff] }
  0x68   : > { %41278 = vmatprep.subr.bf16.mxu0 %v43172_v32  ;;  %37949 = vmatmul.mubr.msk.f32.vlgmr.msra.gmra.mrb[12].mxu0 %vm594_vm0, %v42916_v29  ;;  %v43243_v25 = vpack.c.bf16 %v454_v17, %v453_v11  ;;  %v459_v11 = vld [vmem:[%s42865_s25 + $0x198] sm:$0xff]  ;;  %v460_v17 = vld [vmem:[%s42865_s25 + $0x1a0] sm:$0xff] }
  0x69   : > { %41280 = vmatpush3.bf16.msra.mxu0 %v43172_v32  ;;  %37974 = vmatprep.mubr.msk.f32.mxu0 %vm594_vm0, %v42873_v9  ;;  %v43285_v23 = vpack.c.bf16 %v459_v11, %v458_v59  ;;  %v43314_v11 = vld [vmem:[%s42865_s25 + $0x1b0] sm:$0x3] }
  0x6a   : > { %41132 = vmatpush3.bf16.msra.mxu1 %v43165_v24  ;;  %41282 = vmatprep.subr.bf16.mxu0 %v43180_v33  ;;  %48239 = vst [vmem:[#allocation18_spill] sm:$0xff] %v43243_v25 }
  0x6b   : > { %37725 = vmatprep.subr.msk.mxu1 %vm601_vm2, %v43188_v36 }
  0x6d   : > { %41284 = vmatpush3.bf16.msra.mxu0 %v43180_v33 }
  0x6e   : > { %37726 = vmatpush3.msk.msra.mxu1 %vm601_vm2, %v43188_v36  ;;  %37972 = vmatprep.subr.msk.mxu0 %vm601_vm2, %v542_v50 }
  0x6f   : > { %37728 = vmatmul.mubr.msk.f32.vlgmr.msra.gmra.mrb[14].mxu1 %vm594_vm0, %v42916_v29  ;;  %41134 = vmatprep.subr.bf16.mxu1 %v43201_v49 }
  0x70   : > { %41136 = vmatpush3.bf16.msra.mxu1 %v43201_v49  ;;  %37740 = vmatprep.mubr.msk.f32.mxu1 %vm594_vm0, %v42873_v9 }
  0x71   : > { %41138 = vmatprep.subr.bf16.mxu1 %v43207_v55  ;;  %37973 = vmatpush3.msk.msra.mxu0 %vm601_vm2, %v542_v50  ;;  %v561_v50 = vld [vmem:[%s42865_s25 + $0x4c8] sm:$0xff] }
  0x72   : > { %41294 = vmatprep.subr.bf16.mxu0 %v43214_v4  ;;  %37975 = vmatmul.mubr.msk.f32.vlgmr.msra.gmra.mrb[14].mxu0 %vm594_vm0, %v42916_v29  ;;  %v43264_v53 = vpack.c.bf16 %v561_v50, %v560_v46  ;;  %v43291_v46 = vpack.c.bf16 %v461_v18, %v460_v17  ;;  %v570_v50 = vld [vmem:[%s42865_s25 + $0x510] sm:$0xff]  ;;  %v463_v17 = vld [vmem:[%s42865_s25 + $0x1b8] sm:$0xff]  ;;  %v464_v18 = vld [vmem:[%s42865_s25 + $0x1c0] sm:$0xff] }
  0x73   : > { %41296 = vmatpush3.bf16.msra.mxu0 %v43214_v4  ;;  %38000 = vmatprep.mubr.msk.f32.mxu0 %vm594_vm0, %v42873_v9  ;;  %v43306_v59 = vpack.c.bf16 %v571_v8, %v570_v50  ;;  %v3176_v8 = vadd.s32 1, %v42860_v3  ;;  %v572_v50 = vld [vmem:[%s42865_s25 + $0x520] sm:$0x3] }
  0x74   : > { %41140 = vmatpush3.bf16.msra.mxu1 %v43207_v55  ;;  %41298 = vmatprep.subr.bf16.mxu0 %v43222_v5  ;;  %48242 = vst [vmem:[#allocation21_spill] sm:$0xff] %v43264_v53 }
  0x75   : > { %37738 = vmatprep.subr.msk.mxu1 %vm601_vm2, %v43230_v7  ;;  %48244 = vst [vmem:[#allocation23_spill] sm:$0xff] %v43306_v59  ;;  %vm3178_vm4 = vcmp.eq.s32.totalorder %v42858_v2, %v3176_v8  ;;  %v43353_v8 = vld [vmem:[%s42865_s25 + $0x1d8] sm:$0x3] }
  0x77   : > { %41300 = vmatpush3.bf16.msra.mxu0 %v43222_v5 }
  0x78   : > { %37739 = vmatpush3.msk.msra.mxu1 %vm601_vm2, %v43230_v7  ;;  %37998 = vmatprep.subr.msk.mxu0 %vm601_vm2, %v552_v26 }
  0x79   : > { %37741 = vmatmul.mubr.msk.f32.vlgmr.msra.gmra.mrb[16].mxu1 %vm594_vm0, %v42916_v29  ;;  %41142 = vmatprep.subr.bf16.mxu1 %v43243_v25 }
  0x7a   : > { %41144 = vmatpush3.bf16.msra.mxu1 %v43243_v25  ;;  %37753 = vmatprep.mubr.msk.f32.mxu1 %vm594_vm0, %v42873_v9 }
  0x7b   : > { %41146 = vmatprep.subr.bf16.mxu1 %v43249_v45  ;;  %37999 = vmatpush3.msk.msra.mxu0 %vm601_vm2, %v552_v26  ;;  %v562_v26 = vld [vmem:[%s42865_s25 + $0x4d0] sm:$0x3] }
  0x7c   : > { %41310 = vmatprep.subr.bf16.mxu0 %v43256_v52  ;;  %38001 = vmatmul.mubr.msk.f32.vlgmr.msra.gmra.mrb[16].mxu0 %vm594_vm0, %v42916_v29 }
  0x7d   : > { %41312 = vmatpush3.bf16.msra.mxu0 %v43256_v52  ;;  %38026 = vmatprep.mubr.msk.f32.mxu0 %vm594_vm0, %v42873_v9  ;;  %v43298_v52 = vpack.c.bf16 %v569_v39, %v568_v38  ;;  %v466_v38 = vld [vmem:[%s42865_s25 + $0x1d0] sm:$0xff]  ;;  %v43328_v39 = vpack.c.bf16 %v464_v18, %v463_v17  ;;  %v48247_v17 = vmov 0.0  }
  0x7e   : > { %41148 = vmatpush3.bf16.msra.mxu1 %v43249_v45  ;;  %41314 = vmatprep.subr.bf16.mxu0 %v43264_v53  ;;  %v43345_v18 = vsel %vm3178_vm4, 1.0, %v48247_v17  ;;  %vm34734_vm4 = vcmask 253952  }
  0x7f   : > { %37751 = vmatprep.subr.msk.mxu1 %vm601_vm2, %v43272_v57  ;;  %48243 = vst [vmem:[#allocation22_spill] sm:$0xff] %v43298_v52  ;;  %48245 = vst [vmem:[#allocation24_spill] sm:$0xff] %v43328_v39 }
  0x80   : > { %48248 = vst [vmem:[#allocation26_spill] sm:$0xff] %v43345_v18 }
  0x81   : > { %41316 = vmatpush3.bf16.msra.mxu0 %v43264_v53  ;;  %v476_v53 = vld [vmem:[%s42865_s25 + $0x220] sm:$0xff] }
  0x82   : > { %37752 = vmatpush3.msk.msra.mxu1 %vm601_vm2, %v43272_v57  ;;  %38024 = vmatprep.subr.msk.mxu0 %vm601_vm2, %v562_v26 }
  0x83   : > { %37754 = vmatmul.mubr.msk.f32.vlgmr.msra.gmra.mrb[18].mxu1 %vm594_vm0, %v42916_v29  ;;  %41150 = vmatprep.subr.bf16.mxu1 %v43285_v23 }
  0x84   : > { %41152 = vmatpush3.bf16.msra.mxu1 %v43285_v23  ;;  %37766 = vmatprep.mubr.msk.f32.mxu1 %vm594_vm0, %v42873_v9 }
  0x85   : > { %41154 = vmatprep.subr.bf16.mxu1 %v43291_v46  ;;  %38025 = vmatpush3.msk.msra.mxu0 %vm601_vm2, %v562_v26  ;;  %v465_v26 = vld [vmem:[%s42865_s25 + $0x1c8] sm:$0xff] }
  0x86   : > { %41326 = vmatprep.subr.bf16.mxu0 %v43298_v52  ;;  %38027 = vmatmul.mubr.msk.f32.vlgmr.msra.gmra.mrb[18].mxu0 %vm594_vm0, %v42916_v29 }
  0x87   : > { %41328 = vmatpush3.bf16.msra.mxu0 %v43298_v52  ;;  %38052 = vmatprep.mubr.msk.f32.mxu0 %vm594_vm0, %v42873_v9  ;;  %v43332_v52 = vpack.c.bf16 %v466_v38, %v465_v26  ;;  %v473_v26 = vld [vmem:[%s42865_s25 + $0x208] sm:$0xff]  ;;  %v474_v38 = vld [vmem:[%s42865_s25 + $0x210] sm:$0xff] }
  0x88   : > { %41156 = vmatpush3.bf16.msra.mxu1 %v43291_v46  ;;  %41330 = vmatprep.subr.bf16.mxu0 %v43306_v59  ;;  %v43367_v5 = vpack.c.bf16 %v474_v38, %v473_v26  ;;  %v483_v26 = vld [vmem:[%s42865_s25 + $0x258] sm:$0xff]  ;;  %v484_v38 = vld [vmem:[%s42865_s25 + $0x260] sm:$0xff] }
  0x89   : > { %37764 = vmatprep.subr.msk.mxu1 %vm601_vm2, %v43314_v11  ;;  %48246 = vst [vmem:[#allocation25_spill] sm:$0xff] %v43332_v52 }
  0x8a   : > { %48249 = vst [vmem:[#allocation27_spill] sm:$0xff] %v43367_v5 }
  0x8b   : > { %41332 = vmatpush3.bf16.msra.mxu0 %v43306_v59  ;;  %v3177_v59 = vadd.s32 1, %v42889_v16 }
  0x8c   : > { %37765 = vmatpush3.msk.msra.mxu1 %vm601_vm2, %v43314_v11  ;;  %38050 = vmatprep.subr.msk.mxu0 %vm601_vm2, %v572_v50 }
  0x8d   : > { %37767 = vmatmul.mubr.msk.f32.vlgmr.msra.gmra.mrb[20].mxu1 %vm594_vm0, %v42916_v29  ;;  %41158 = vmatprep.subr.bf16.mxu1 %v43328_v39  ;;  %vm3179_vm5 = vcmp.eq.s32.totalorder %v42858_v2, %v3177_v59 }
  0x8e   : > { %41160 = vmatpush3.bf16.msra.mxu1 %v43328_v39  ;;  %37779 = vmatprep.mubr.msk.f32.mxu1 %vm594_vm0, %v42873_v9  ;;  %v43381_v59 = vsel %vm3179_vm5, 1.0, %v48247_v17 }
  0x8f   : > { %41162 = vmatprep.subr.bf16.mxu1 %v43332_v52  ;;  %38051 = vmatpush3.msk.msra.mxu0 %vm601_vm2, %v572_v50  ;;  %v475_v50 = vld [vmem:[%s42865_s25 + $0x218] sm:$0xff] }
  0x90   : > { %41342 = vmatprep.subr.bf16.mxu0 %v42912_v28  ;;  %38053 = vmatmul.mubr.msk.f32.vlgmr.msra.gmra.mrb[20].mxu0 %vm594_vm0, %v42916_v29 }
  0x91   : > { %41344 = vmatpush3.bf16.msra.mxu0 %v42912_v28  ;;  %38078 = vmatprep.mubr.msk.f32.mxu0 %vm594_vm0, %v43345_v18  ;;  %v43371_v28 = vpack.c.bf16 %v476_v53, %v475_v50  ;;  %v43393_v53 = vld [vmem:[%s42865_s25 + $0x228] sm:$0x3] }
  0x92   : > { %41164 = vmatpush3.bf16.msra.mxu1 %v43332_v52  ;;  %41346 = vmatprep.subr.bf16.mxu0 %v42919_v30  ;;  %v485_v50 = vld [vmem:[%s42865_s25 + $0x268] sm:$0xff] }
  0x93   : > { %37777 = vmatprep.subr.msk.mxu1 %vm601_vm2, %v43353_v8  ;;  %48250 = vst [vmem:[#allocation28_spill] sm:$0xff] %v43371_v28 }
  0x95   : > { %41348 = vmatpush3.bf16.msra.mxu0 %v42919_v30  ;;  %v43406_v30 = vpack.c.bf16 %v484_v38, %v483_v26  ;;  %v43428_v26 = vld [vmem:[%s42865_s25 + $0x278] sm:$0x3]  ;;  %v493_v38 = vld [vmem:[%s42865_s25 + $0x2a8] sm:$0xff] }
  0x96   : > { %37778 = vmatpush3.msk.msra.mxu1 %vm601_vm2, %v43353_v8  ;;  %38076 = vmatprep.subr.msk.mxu0 %vm601_vm2, %v42938_v35 }
  0x97   : > { %37780 = vmatmul.mubr.msk.f32.vlgmr.msra.gmra.mrb[22].mxu1 %vm594_vm0, %v42916_v29  ;;  %41174 = vmatprep.subr.bf16.mxu1 %v43367_v5  ;;  %48251 = vst [vmem:[#allocation29_spill] sm:$0xff] %v43406_v30 }
  0x98   : > { %41176 = vmatpush3.bf16.msra.mxu1 %v43367_v5  ;;  %37805 = vmatprep.mubr.msk.f32.mxu1 %vm594_vm0, %v42873_v9 }
  0x99   : > { %41178 = vmatprep.subr.bf16.mxu1 %v43371_v28  ;;  %38077 = vmatpush3.msk.msra.mxu0 %vm601_vm2, %v42938_v35  ;;  %v486_v35 = vld [vmem:[%s42865_s25 + $0x270] sm:$0xff] }
  0x9a   : > { %41358 = vmatprep.subr.bf16.mxu0 %v42992_v54  ;;  %38079 = vmatmul.mubr.msk.f32.vlgmr.msra.gmra.mrb[22].mxu0 %vm594_vm0, %v43381_v59 }
  0x9b   : > { %41360 = vmatpush3.bf16.msra.mxu0 %v42992_v54  ;;  %38104 = vmatprep.mubr.msk.f32.mxu0 %vm594_vm0, %v43345_v18  ;;  %v43409_v54 = vpack.c.bf16 %v486_v35, %v485_v50  ;;  %v494_v50 = vld [vmem:[%s42865_s25 + $0x2b0] sm:$0xff]  ;;  %v495_v35 = vld [vmem:[%s42865_s25 + $0x2b8] sm:$0xff] }
  0x9c   : > { %41180 = vmatpush3.bf16.msra.mxu1 %v43371_v28  ;;  %41362 = vmatprep.subr.bf16.mxu0 %v42998_v58 }
  0x9d   : > { %37803 = vmatprep.subr.msk.mxu1 %vm601_vm2, %v43393_v53  ;;  %48252 = vst [vmem:[#allocation30_spill] sm:$0xff] %v43409_v54 }
  0x9f   : > { %41364 = vmatpush3.bf16.msra.mxu0 %v42998_v58  ;;  %v43441_v58 = vpack.c.bf16 %v494_v50, %v493_v38  ;;  %v43463_v38 = vld [vmem:[%s42865_s25 + $0x2c8] sm:$0x3]  ;;  %v503_v50 = vld [vmem:[%s42865_s25 + $0x2f8] sm:$0xff] }
  0xa0   : > { %37804 = vmatpush3.msk.msra.mxu1 %vm601_vm2, %v43393_v53  ;;  %38102 = vmatprep.subr.msk.mxu0 %vm601_vm2, %v43020_v63 }
  0xa1   : > { %37806 = vmatmul.mubr.msk.f32.vlgmr.msra.gmra.mrb[24].mxu1 %vm594_vm0, %v42916_v29  ;;  %41190 = vmatprep.subr.bf16.mxu1 %v43406_v30  ;;  %48253 = vst [vmem:[#allocation31_spill] sm:$0xff] %v43441_v58 }
  0xa2   : > { %41192 = vmatpush3.bf16.msra.mxu1 %v43406_v30  ;;  %37831 = vmatprep.mubr.msk.f32.mxu1 %vm594_vm0, %v42873_v9 }
  0xa3   : > { %41194 = vmatprep.subr.bf16.mxu1 %v43409_v54  ;;  %38103 = vmatpush3.msk.msra.mxu0 %vm601_vm2, %v43020_v63  ;;  %v496_v63 = vld [vmem:[%s42865_s25 + $0x2c0] sm:$0xff] }
  0xa4   : > { %41374 = vmatprep.subr.bf16.mxu0 %v43075_v27  ;;  %38105 = vmatmul.mubr.msk.f32.vlgmr.msra.gmra.mrb[24].mxu0 %vm594_vm0, %v43381_v59 }
  0xa5   : > { %41376 = vmatpush3.bf16.msra.mxu0 %v43075_v27  ;;  %38130 = vmatprep.mubr.msk.f32.mxu0 %vm594_vm0, %v43345_v18  ;;  %v43444_v27 = vpack.c.bf16 %v496_v63, %v495_v35  ;;  %v504_v35 = vld [vmem:[%s42865_s25 + $0x300] sm:$0xff]  ;;  %v505_v63 = vld [vmem:[%s42865_s25 + $0x308] sm:$0xff] }
  0xa6   : > { %41196 = vmatpush3.bf16.msra.mxu1 %v43409_v54  ;;  %41378 = vmatprep.subr.bf16.mxu0 %v43081_v37 }
  0xa7   : > { %37829 = vmatprep.subr.msk.mxu1 %vm601_vm2, %v43428_v26  ;;  %48254 = vst [vmem:[#allocation32_spill] sm:$0xff] %v43444_v27 }
  0xa9   : > { %41380 = vmatpush3.bf16.msra.mxu0 %v43081_v37  ;;  %v43476_v37 = vpack.c.bf16 %v504_v35, %v503_v50  ;;  %v43498_v50 = vld [vmem:[%s42865_s25 + $0x318] sm:$0x3]  ;;  %v513_v35 = vld [vmem:[%s42865_s25 + $0x348] sm:$0xff] }
  0xaa   : > { %37830 = vmatpush3.msk.msra.mxu1 %vm601_vm2, %v43428_v26  ;;  %38128 = vmatprep.subr.msk.mxu0 %vm601_vm2, %v43104_v43 }
  0xab   : > { %37832 = vmatmul.mubr.msk.f32.vlgmr.msra.gmra.mrb[26].mxu1 %vm594_vm0, %v42916_v29  ;;  %41206 = vmatprep.subr.bf16.mxu1 %v43441_v58 }
  0xac   : > { %41208 = vmatpush3.bf16.msra.mxu1 %v43441_v58  ;;  %37857 = vmatprep.mubr.msk.f32.mxu1 %vm594_vm0, %v42873_v9 }
  0xad   : > { %41210 = vmatprep.subr.bf16.mxu1 %v43444_v27  ;;  %38129 = vmatpush3.msk.msra.mxu0 %vm601_vm2, %v43104_v43  ;;  %v506_v43 = vld [vmem:[%s42865_s25 + $0x310] sm:$0xff] }
  0xae   : > { %41390 = vmatprep.subr.bf16.mxu0 %v43159_v12  ;;  %38131 = vmatmul.mubr.msk.f32.vlgmr.msra.gmra.mrb[26].mxu0 %vm594_vm0, %v43381_v59 }
  0xaf   : > { %41392 = vmatpush3.bf16.msra.mxu0 %v43159_v12  ;;  %38156 = vmatprep.mubr.msk.f32.mxu0 %vm594_vm0, %v43345_v18  ;;  %v43479_v12 = vpack.c.bf16 %v506_v43, %v505_v63  ;;  %v514_v63 = vld [vmem:[%s42865_s25 + $0x350] sm:$0xff]  ;;  %v515_v43 = vld [vmem:[%s42865_s25 + $0x358] sm:$0xff] }
  0xb0   : > { %41212 = vmatpush3.bf16.msra.mxu1 %v43444_v27  ;;  %41394 = vmatprep.subr.bf16.mxu0 %v43165_v24 }
  0xb1   : > { %37855 = vmatprep.subr.msk.mxu1 %vm601_vm2, %v43463_v38 }
  0xb3   : > { %41396 = vmatpush3.bf16.msra.mxu0 %v43165_v24  ;;  %v43511_v24 = vpack.c.bf16 %v514_v63, %v513_v35  ;;  %v43533_v35 = vld [vmem:[%s42865_s25 + $0x368] sm:$0x3]  ;;  %v523_v63 = vld [vmem:[%s42865_s25 + $0x398] sm:$0xff] }
  0xb4   : > { %37856 = vmatpush3.msk.msra.mxu1 %vm601_vm2, %v43463_v38  ;;  %38154 = vmatprep.subr.msk.mxu0 %vm601_vm2, %v43188_v36 }
  0xb5   : > { %37858 = vmatmul.mubr.msk.f32.vlgmr.msra.gmra.mrb[28].mxu1 %vm594_vm0, %v42916_v29  ;;  %41222 = vmatprep.subr.bf16.mxu1 %v43476_v37 }
  0xb6   : > { %41224 = vmatpush3.bf16.msra.mxu1 %v43476_v37  ;;  %37883 = vmatprep.mubr.msk.f32.mxu1 %vm594_vm0, %v42873_v9 }
  0xb7   : > { %41226 = vmatprep.subr.bf16.mxu1 %v43479_v12  ;;  %38155 = vmatpush3.msk.msra.mxu0 %vm601_vm2, %v43188_v36  ;;  %v516_v36 = vld [vmem:[%s42865_s25 + $0x360] sm:$0xff] }
  0xb8   : > { %41406 = vmatprep.subr.bf16.mxu0 %v43243_v25  ;;  %38157 = vmatmul.mubr.msk.f32.vlgmr.msra.gmra.mrb[28].mxu0 %vm594_vm0, %v43381_v59 }
  0xb9   : > { %41408 = vmatpush3.bf16.msra.mxu0 %v43243_v25  ;;  %38182 = vmatprep.mubr.msk.f32.mxu0 %vm594_vm0, %v43345_v18  ;;  %v43514_v25 = vpack.c.bf16 %v516_v36, %v515_v43  ;;  %v524_v43 = vld [vmem:[%s42865_s25 + $0x3a0] sm:$0xff]  ;;  %v525_v36 = vld [vmem:[%s42865_s25 + $0x3a8] sm:$0xff] }
  0xba   : > { %41228 = vmatpush3.bf16.msra.mxu1 %v43479_v12  ;;  %41410 = vmatprep.subr.bf16.mxu0 %v43249_v45 }
  0xbb   : > { %37881 = vmatprep.subr.msk.mxu1 %vm601_vm2, %v43498_v50 }
  0xbd   : > { %41412 = vmatpush3.bf16.msra.mxu0 %v43249_v45  ;;  %v43546_v45 = vpack.c.bf16 %v524_v43, %v523_v63  ;;  %v43568_v63 = vld [vmem:[%s42865_s25 + $0x3b8] sm:$0x3]  ;;  %v533_v43 = vld [vmem:[%s42865_s25 + $0x3e8] sm:$0xff] }
  0xbe   : > { %37882 = vmatpush3.msk.msra.mxu1 %vm601_vm2, %v43498_v50  ;;  %38180 = vmatprep.subr.msk.mxu0 %vm601_vm2, %v43272_v57 }
  0xbf   : > { %37884 = vmatmul.mubr.msk.f32.vlgmr.msra.gmra.mrb[30].mxu1 %vm594_vm0, %v42916_v29  ;;  %41238 = vmatprep.subr.bf16.mxu1 %v43511_v24 }
  0xc0   : > { %41240 = vmatpush3.bf16.msra.mxu1 %v43511_v24  ;;  %37909 = vmatprep.mubr.msk.f32.mxu1 %vm594_vm0, %v42873_v9 }
  0xc1   : > { %41242 = vmatprep.subr.bf16.mxu1 %v43514_v25  ;;  %38181 = vmatpush3.msk.msra.mxu0 %vm601_vm2, %v43272_v57  ;;  %v526_v57 = vld [vmem:[%s42865_s25 + $0x3b0] sm:$0xff] }
  0xc2   : > { %41422 = vmatprep.subr.bf16.mxu0 %v43328_v39  ;;  %38183 = vmatmul.mubr.msk.f32.vlgmr.msra.gmra.mrb[30].mxu0 %vm594_vm0, %v43381_v59 }
  0xc3   : > { %41424 = vmatpush3.bf16.msra.mxu0 %v43328_v39  ;;  %38208 = vmatprep.mubr.msk.f32.mxu0 %vm594_vm0, %v43345_v18  ;;  %v43549_v39 = vpack.c.bf16 %v526_v57, %v525_v36  ;;  %v534_v36 = vld [vmem:[%s42865_s25 + $0x3f0] sm:$0xff]  ;;  %v535_v57 = vld [vmem:[%s42865_s25 + $0x3f8] sm:$0xff] }
  0xc4   : > { %41244 = vmatpush3.bf16.msra.mxu1 %v43514_v25  ;;  %41426 = vmatprep.subr.bf16.mxu0 %v43332_v52 }
  0xc5   : > { %37907 = vmatprep.subr.msk.mxu1 %vm601_vm2, %v43533_v35 }
  0xc7   : > { %41428 = vmatpush3.bf16.msra.mxu0 %v43332_v52  ;;  %v43581_v52 = vpack.c.bf16 %v534_v36, %v533_v43  ;;  %v43603_v43 = vld [vmem:[%s42865_s25 + $0x408] sm:$0x3]  ;;  %v543_v36 = vld [vmem:[%s42865_s25 + $0x438] sm:$0xff] }
  0xc8   : > { %37908 = vmatpush3.msk.msra.mxu1 %vm601_vm2, %v43533_v35  ;;  %38206 = vmatprep.subr.msk.mxu0 %vm601_vm2, %v43353_v8 }
  0xc9   : > { %37910 = vmatmul.mubr.msk.f32.vlgmr.msra.gmra.mrb[32].mxu1 %vm594_vm0, %v42916_v29  ;;  %41254 = vmatprep.subr.bf16.mxu1 %v43546_v45 }
  0xca   : > { %41256 = vmatpush3.bf16.msra.mxu1 %v43546_v45  ;;  %37935 = vmatprep.mubr.msk.f32.mxu1 %vm594_vm0, %v42873_v9 }
  0xcb   : > { %41258 = vmatprep.subr.bf16.mxu1 %v43549_v39  ;;  %38207 = vmatpush3.msk.msra.mxu0 %vm601_vm2, %v43353_v8  ;;  %v536_v8 = vld [vmem:[%s42865_s25 + $0x400] sm:$0xff] }
  0xcc   : > { %41438 = vmatprep.subr.bf16.mxu0 %v43367_v5  ;;  %38209 = vmatmul.mubr.msk.f32.vlgmr.msra.gmra.mrb[32].mxu0 %vm594_vm0, %v43381_v59 }
  0xcd   : > { %41440 = vmatpush3.bf16.msra.mxu0 %v43367_v5  ;;  %38234 = vmatprep.mubr.msk.f32.mxu0 %vm594_vm0, %v43345_v18  ;;  %v43584_v5 = vpack.c.bf16 %v536_v8, %v535_v57  ;;  %v544_v57 = vld [vmem:[%s42865_s25 + $0x440] sm:$0xff]  ;;  %v545_v8 = vld [vmem:[%s42865_s25 + $0x448] sm:$0xff] }
  0xce   : > { %41260 = vmatpush3.bf16.msra.mxu1 %v43549_v39  ;;  %41442 = vmatprep.subr.bf16.mxu0 %v43371_v28 }
  0xcf   : > { %37933 = vmatprep.subr.msk.mxu1 %vm601_vm2, %v43568_v63 }
  0xd1   : > { %41444 = vmatpush3.bf16.msra.mxu0 %v43371_v28  ;;  %v43616_v28 = vpack.c.bf16 %v544_v57, %v543_v36  ;;  %v43638_v36 = vld [vmem:[%s42865_s25 + $0x458] sm:$0x3]  ;;  %v553_v57 = vld [vmem:[%s42865_s25 + $0x488] sm:$0xff] }
  0xd2   : > { %37934 = vmatpush3.msk.msra.mxu1 %vm601_vm2, %v43568_v63  ;;  %38232 = vmatprep.subr.msk.mxu0 %vm601_vm2, %v43393_v53 }
  0xd3   : > { %37936 = vmatmul.mubr.msk.f32.vlgmr.msra.gmra.mrb[34].mxu1 %vm594_vm0, %v42916_v29  ;;  %41270 = vmatprep.subr.bf16.mxu1 %v43581_v52 }
  0xd4   : > { %41272 = vmatpush3.bf16.msra.mxu1 %v43581_v52  ;;  %37961 = vmatprep.mubr.msk.f32.mxu1 %vm594_vm0, %v42873_v9 }
  0xd5   : > { %41274 = vmatprep.subr.bf16.mxu1 %v43584_v5  ;;  %38233 = vmatpush3.msk.msra.mxu0 %vm601_vm2, %v43393_v53  ;;  %v546_v53 = vld [vmem:[%s42865_s25 + $0x450] sm:$0xff] }
  0xd6   : > { %41454 = vmatprep.subr.bf16.mxu0 %v43406_v30  ;;  %38235 = vmatmul.mubr.msk.f32.vlgmr.msra.gmra.mrb[34].mxu0 %vm594_vm0, %v43381_v59 }
  0xd7   : > { %41456 = vmatpush3.bf16.msra.mxu0 %v43406_v30  ;;  %38260 = vmatprep.mubr.msk.f32.mxu0 %vm594_vm0, %v43345_v18  ;;  %v43619_v30 = vpack.c.bf16 %v546_v53, %v545_v8  ;;  %v554_v8 = vld [vmem:[%s42865_s25 + $0x490] sm:$0xff]  ;;  %v555_v53 = vld [vmem:[%s42865_s25 + $0x498] sm:$0xff] }
  0xd8   : > { %41276 = vmatpush3.bf16.msra.mxu1 %v43584_v5  ;;  %41458 = vmatprep.subr.bf16.mxu0 %v43409_v54 }
  0xd9   : > { %37959 = vmatprep.subr.msk.mxu1 %vm601_vm2, %v43603_v43 }
  0xdb   : > { %41460 = vmatpush3.bf16.msra.mxu0 %v43409_v54  ;;  %v43651_v54 = vpack.c.bf16 %v554_v8, %v553_v57  ;;  %v43673_v57 = vld [vmem:[%s42865_s25 + $0x4a8] sm:$0x3]  ;;  %v563_v8 = vld [vmem:[%s42865_s25 + $0x4d8] sm:$0xff] }
  0xdc   : > { %37960 = vmatpush3.msk.msra.mxu1 %vm601_vm2, %v43603_v43  ;;  %38258 = vmatprep.subr.msk.mxu0 %vm601_vm2, %v43428_v26 }
  0xdd   : > { %37962 = vmatmul.mubr.msk.f32.vlgmr.msra.gmra.mrb[36].mxu1 %vm594_vm0, %v42916_v29  ;;  %41286 = vmatprep.subr.bf16.mxu1 %v43616_v28 }
  0xde   : > { %41288 = vmatpush3.bf16.msra.mxu1 %v43616_v28  ;;  %37987 = vmatprep.mubr.msk.f32.mxu1 %vm594_vm0, %v42873_v9 }
  0xdf   : > { %41290 = vmatprep.subr.bf16.mxu1 %v43619_v30  ;;  %38259 = vmatpush3.msk.msra.mxu0 %vm601_vm2, %v43428_v26  ;;  %v556_v26 = vld [vmem:[%s42865_s25 + $0x4a0] sm:$0xff] }
  0xe0   : > { %41470 = vmatprep.subr.bf16.mxu0 %v43441_v58  ;;  %38261 = vmatmul.mubr.msk.f32.vlgmr.msra.gmra.mrb[36].mxu0 %vm594_vm0, %v43381_v59 }
  0xe1   : > { %41472 = vmatpush3.bf16.msra.mxu0 %v43441_v58  ;;  %38286 = vmatprep.mubr.msk.f32.mxu0 %vm594_vm0, %v43345_v18  ;;  %v43654_v58 = vpack.c.bf16 %v556_v26, %v555_v53  ;;  %v564_v53 = vld [vmem:[%s42865_s25 + $0x4e0] sm:$0xff]  ;;  %v565_v26 = vld [vmem:[%s42865_s25 + $0x4e8] sm:$0xff] }
  0xe2   : > { %41292 = vmatpush3.bf16.msra.mxu1 %v43619_v30  ;;  %41474 = vmatprep.subr.bf16.mxu0 %v43444_v27 }
  0xe3   : > { %37985 = vmatprep.subr.msk.mxu1 %vm601_vm2, %v43638_v36 }
  0xe5   : > { %41476 = vmatpush3.bf16.msra.mxu0 %v43444_v27  ;;  %v43686_v27 = vpack.c.bf16 %v564_v53, %v563_v8  ;;  %v43708_v8 = vld [vmem:[%s42865_s25 + $0x4f8] sm:$0x3] }
  0xe6   : > { %37986 = vmatpush3.msk.msra.mxu1 %vm601_vm2, %v43638_v36  ;;  %38284 = vmatprep.subr.msk.mxu0 %vm601_vm2, %v43463_v38 }
  0xe7   : > { %37988 = vmatmul.mubr.msk.f32.vlgmr.msra.gmra.mrb[38].mxu1 %vm594_vm0, %v42916_v29  ;;  %41302 = vmatprep.subr.bf16.mxu1 %v43651_v54 }
  0xe8   : > { %41304 = vmatpush3.bf16.msra.mxu1 %v43651_v54  ;;  %38013 = vmatprep.mubr.msk.f32.mxu1 %vm594_vm0, %v42873_v9 }
  0xe9   : > { %41306 = vmatprep.subr.bf16.mxu1 %v43654_v58  ;;  %38285 = vmatpush3.msk.msra.mxu0 %vm601_vm2, %v43463_v38  ;;  %v566_v38 = vld [vmem:[%s42865_s25 + $0x4f0] sm:$0xff] }
  0xea   : > { %41486 = vmatprep.subr.bf16.mxu0 %v43476_v37  ;;  %38287 = vmatmul.mubr.msk.f32.vlgmr.msra.gmra.mrb[38].mxu0 %vm594_vm0, %v43381_v59  ;;  %v43689_v4 = vpack.c.bf16 %v566_v38, %v565_v26  ;;  %v43748_v38 = vld [vmem:[%s42865_s25 + $0x20] sm:$0x3] }
  0xeb   : > { %41488 = vmatpush3.bf16.msra.mxu0 %v43476_v37  ;;  %38312 = vmatprep.mubr.msk.f32.mxu0 %vm594_vm0, %v43345_v18 }
  0xec   : > { %41308 = vmatpush3.bf16.msra.mxu1 %v43654_v58  ;;  %41490 = vmatprep.subr.bf16.mxu0 %v43479_v12 }
  0xed   : > { %38011 = vmatprep.subr.msk.mxu1 %vm601_vm2, %v43673_v57 }
  0xef   : > { %41492 = vmatpush3.bf16.msra.mxu0 %v43479_v12 }
  0xf0   : > { %38012 = vmatpush3.msk.msra.mxu1 %vm601_vm2, %v43673_v57  ;;  %38310 = vmatprep.subr.msk.mxu0 %vm601_vm2, %v43498_v50 }
  0xf1   : > { %38014 = vmatmul.mubr.msk.f32.vlgmr.msra.gmra.mrb[40].mxu1 %vm594_vm0, %v42916_v29  ;;  %41318 = vmatprep.subr.bf16.mxu1 %v43686_v27 }
  0xf2   : > { %41320 = vmatpush3.bf16.msra.mxu1 %v43686_v27  ;;  %38039 = vmatprep.mubr.msk.f32.mxu1 %vm594_vm0, %v42873_v9 }
  0xf3   : > { %41322 = vmatprep.subr.bf16.mxu1 %v43689_v4  ;;  %38311 = vmatpush3.msk.msra.mxu0 %vm601_vm2, %v43498_v50 }
  0xf4   : > { %41502 = vmatprep.subr.bf16.mxu0 %v43511_v24  ;;  %38313 = vmatmul.mubr.msk.f32.vlgmr.msra.gmra.mrb[40].mxu0 %vm594_vm0, %v43381_v59 }
  0xf5   : > { %41504 = vmatpush3.bf16.msra.mxu0 %v43511_v24  ;;  %38338 = vmatprep.mubr.msk.f32.mxu0 %vm594_vm0, %v43345_v18 }
  0xf6   : > { %41324 = vmatpush3.bf16.msra.mxu1 %v43689_v4  ;;  %41506 = vmatprep.subr.bf16.mxu0 %v43514_v25 }
  0xf7   : > { %38037 = vmatprep.subr.msk.mxu1 %vm601_vm2, %v43708_v8 }
  0xf9   : > { %41508 = vmatpush3.bf16.msra.mxu0 %v43514_v25 }
  0xfa   : > { %38038 = vmatpush3.msk.msra.mxu1 %vm601_vm2, %v43708_v8  ;;  %38336 = vmatprep.subr.msk.mxu0 %vm601_vm2, %v43533_v35 }
  0xfb   : > { %38040 = vmatmul.mubr.msk.f32.vlgmr.msra.gmra.mrb[42].mxu1 %vm594_vm0, %v42916_v29  ;;  %41334 = vmatprep.subr.bf16.mxu1 %v42875_v10 }
  0xfc   : > { %v43725_v50 = vpop.f32.mrb[0].mxu1  ;;  %41336 = vmatpush3.bf16.msra.mxu1 %v42875_v10  ;;  %38065 = vmatprep.mubr.msk.f32.mxu1 %vm594_vm0, %v43345_v18 }
  0xfd   : > { %v43730_v53 = vpop.f32.mrb[1].mxu1  ;;  %41338 = vmatprep.subr.bf16.mxu1 %v42884_v14  ;;  %38337 = vmatpush3.msk.msra.mxu0 %vm601_vm2, %v43533_v35 }
  0xfe   : > { %41518 = vmatprep.subr.bf16.mxu0 %v43546_v45  ;;  %38339 = vmatmul.mubr.msk.f32.vlgmr.msra.gmra.mrb[42].mxu0 %vm594_vm0, %v43381_v59 }
  0xff   : > { %41520 = vmatpush3.bf16.msra.mxu0 %v43546_v45  ;;  %38364 = vmatprep.mubr.msk.f32.mxu0 %vm594_vm0, %v43345_v18  ;;  %v43741_v29 = vpop.f32.mrb[0].mxu0 }
 0x100   : > { %48255 = vst [vmem:[#allocation33_spill] sm:$0xff] %v43741_v29  ;;  %41340 = vmatpush3.bf16.msra.mxu1 %v42884_v14  ;;  %41522 = vmatprep.subr.bf16.mxu0 %v43549_v39  ;;  %v43745_v26 = vpop.f32.mrb[1].mxu0  ;;  %v43783_v29 = vld [vmem:[%s42865_s25 + $0x70] sm:$0x3] }
 0x101   : > { %48256 = vst [vmem:[#allocation34_spill] sm:$0xff] %v43745_v26  ;;  %38063 = vmatprep.subr.msk.mxu1 %vm601_vm2, %v43748_v38 }
 0x103   : > { %41524 = vmatpush3.bf16.msra.mxu0 %v43549_v39 }
 0x104   : > { %38064 = vmatpush3.msk.msra.mxu1 %vm601_vm2, %v43748_v38  ;;  %38362 = vmatprep.subr.msk.mxu0 %vm601_vm2, %v43568_v63 }
 0x105   : > { %38066 = vmatmul.mubr.msk.f32.vlgmr.msra.gmra.mrb[44].mxu1 %vm594_vm0, %v43381_v59  ;;  %41350 = vmatprep.subr.bf16.mxu1 %v42953_v40 }
 0x106   : > { %v43760_v35 = vpop.f32.mrb[2].mxu1  ;;  %41352 = vmatpush3.bf16.msra.mxu1 %v42953_v40  ;;  %38091 = vmatprep.mubr.msk.f32.mxu1 %vm594_vm0, %v43345_v18 }
 0x107   : > { %48257 = vst [vmem:[#allocation35_spill] sm:$0xff] %v43760_v35  ;;  %v43765_v9 = vpop.f32.mrb[3].mxu1  ;;  %41354 = vmatprep.subr.bf16.mxu1 %v42959_v44  ;;  %38363 = vmatpush3.msk.msra.mxu0 %vm601_vm2, %v43568_v63 }
 0x108   : > { %48258 = vst [vmem:[#allocation36_spill] sm:$0xff] %v43765_v9  ;;  %41534 = vmatprep.subr.bf16.mxu0 %v43581_v52  ;;  %38365 = vmatmul.mubr.msk.f32.vlgmr.msra.gmra.mrb[44].mxu0 %vm594_vm0, %v43381_v59 }
 0x109   : > { %41536 = vmatpush3.bf16.msra.mxu0 %v43581_v52  ;;  %38390 = vmatprep.mubr.msk.f32.mxu0 %vm594_vm0, %v43345_v18  ;;  %v43776_v35 = vpop.f32.mrb[2].mxu0 }
 0x10a   : > { %48259 = vst [vmem:[#allocation37_spill] sm:$0xff] %v43776_v35  ;;  %41356 = vmatpush3.bf16.msra.mxu1 %v42959_v44  ;;  %41538 = vmatprep.subr.bf16.mxu0 %v43584_v5  ;;  %v43780_v9 = vpop.f32.mrb[3].mxu0 }
 0x10b   : > { %48260 = vst [vmem:[#allocation38_spill] sm:$0xff] %v43780_v9  ;;  %38089 = vmatprep.subr.msk.mxu1 %vm601_vm2, %v43783_v29 }
 0x10d   : > { %41540 = vmatpush3.bf16.msra.mxu0 %v43584_v5 }
 0x10e   : > { %38090 = vmatpush3.msk.msra.mxu1 %vm601_vm2, %v43783_v29  ;;  %38388 = vmatprep.subr.msk.mxu0 %vm601_vm2, %v43603_v43 }
 0x10f   : > { %38092 = vmatmul.mubr.msk.f32.vlgmr.msra.gmra.mrb[46].mxu1 %vm594_vm0, %v43381_v59  ;;  %41366 = vmatprep.subr.bf16.mxu1 %v43033_v6 }
 0x110   : > { %v43795_v63 = vpop.f32.mrb[4].mxu1  ;;  %41368 = vmatpush3.bf16.msra.mxu1 %v43033_v6  ;;  %38117 = vmatprep.mubr.msk.f32.mxu1 %vm594_vm0, %v43345_v18 }
 0x111   : > { %v43800_v26 = vpop.f32.mrb[5].mxu1  ;;  %41370 = vmatprep.subr.bf16.mxu1 %v43039_v13  ;;  %38389 = vmatpush3.msk.msra.mxu0 %vm601_vm2, %v43603_v43 }
 0x112   : > { %41550 = vmatprep.subr.bf16.mxu0 %v43616_v28  ;;  %38391 = vmatmul.mubr.msk.f32.vlgmr.msra.gmra.mrb[46].mxu0 %vm594_vm0, %v43381_v59 }
 0x113   : > { %41552 = vmatpush3.bf16.msra.mxu0 %v43616_v28  ;;  %38416 = vmatprep.mubr.msk.f32.mxu0 %vm594_vm0, %v43345_v18  ;;  %v43811_v35 = vpop.f32.mrb[4].mxu0 }
 0x114   : > { %48261 = vst [vmem:[#allocation39_spill] sm:$0xff] %v43811_v35  ;;  %41372 = vmatpush3.bf16.msra.mxu1 %v43039_v13  ;;  %41554 = vmatprep.subr.bf16.mxu0 %v43619_v30  ;;  %v43815_v9 = vpop.f32.mrb[5].mxu0 }
 0x115   : > { %48262 = vst [vmem:[#allocation40_spill] sm:$0xff] %v43815_v9  ;;  %38115 = vmatprep.subr.msk.mxu1 %vm601_vm2, %v43062_v22 }
 0x117   : > { %41556 = vmatpush3.bf16.msra.mxu0 %v43619_v30 }
 0x118   : > { %38116 = vmatpush3.msk.msra.mxu1 %vm601_vm2, %v43062_v22  ;;  %38414 = vmatprep.subr.msk.mxu0 %vm601_vm2, %v43638_v36 }
 0x119   : > { %38118 = vmatmul.mubr.msk.f32.vlgmr.msra.gmra.mrb[48].mxu1 %vm594_vm0, %v43381_v59  ;;  %41382 = vmatprep.subr.bf16.mxu1 %v43117_v51 }
 0x11a   : > { %v43827_v43 = vpop.f32.mrb[6].mxu1  ;;  %41384 = vmatpush3.bf16.msra.mxu1 %v43117_v51  ;;  %38143 = vmatprep.mubr.msk.f32.mxu1 %vm594_vm0, %v43345_v18 }
 0x11b   : > { %48263 = vst [vmem:[#allocation41_spill] sm:$0xff] %v43827_v43  ;;  %v43832_v35 = vpop.f32.mrb[7].mxu1  ;;  %41386 = vmatprep.subr.bf16.mxu1 %v43123_v56  ;;  %38415 = vmatpush3.msk.msra.mxu0 %vm601_vm2, %v43638_v36 }
 0x11c   : > { %48264 = vst [vmem:[#allocation42_spill] sm:$0xff] %v43832_v35  ;;  %41566 = vmatprep.subr.bf16.mxu0 %v43651_v54  ;;  %38417 = vmatmul.mubr.msk.f32.vlgmr.msra.gmra.mrb[48].mxu0 %vm594_vm0, %v43381_v59 }
 0x11d   : > { %41568 = vmatpush3.bf16.msra.mxu0 %v43651_v54  ;;  %38442 = vmatprep.mubr.msk.f32.mxu0 %vm594_vm0, %v43345_v18  ;;  %v43843_v22 = vpop.f32.mrb[6].mxu0 }
 0x11e   : > { %48265 = vst [vmem:[#allocation43_spill] sm:$0xff] %v43843_v22  ;;  %41388 = vmatpush3.bf16.msra.mxu1 %v43123_v56  ;;  %41570 = vmatprep.subr.bf16.mxu0 %v43654_v58  ;;  %v43847_v43 = vpop.f32.mrb[7].mxu0 }
 0x11f   : > { %48266 = vst [vmem:[#allocation44_spill] sm:$0xff] %v43847_v43  ;;  %38141 = vmatprep.subr.msk.mxu1 %vm601_vm2, %v43146_v1 }
 0x121   : > { %41572 = vmatpush3.bf16.msra.mxu0 %v43654_v58 }
 0x122   : > { %38142 = vmatpush3.msk.msra.mxu1 %vm601_vm2, %v43146_v1  ;;  %38440 = vmatprep.subr.msk.mxu0 %vm601_vm2, %v43673_v57  ;;  %v5663_v1 = vadd.s32 2, %v42860_v3 }
 0x123   : > { %38144 = vmatmul.mubr.msk.f32.vlgmr.msra.gmra.mrb[50].mxu1 %vm594_vm0, %v43381_v59  ;;  %41398 = vmatprep.subr.bf16.mxu1 %v43201_v49 }
 0x124   : > { %v43859_v36 = vpop.f32.mrb[8].mxu1  ;;  %41400 = vmatpush3.bf16.msra.mxu1 %v43201_v49  ;;  %38169 = vmatprep.mubr.msk.f32.mxu1 %vm594_vm0, %v43345_v18  ;;  %vm5665_vm6 = vcmp.eq.s32.totalorder %v42858_v2, %v5663_v1 }
 0x125   : > { %v43864_v35 = vpop.f32.mrb[9].mxu1  ;;  %41402 = vmatprep.subr.bf16.mxu1 %v43207_v55  ;;  %38441 = vmatpush3.msk.msra.mxu0 %vm601_vm2, %v43673_v57  ;;  %v43899_v57 = vsel %vm5665_vm6, 1.0, %v48247_v17 }
 0x126   : > { %41582 = vmatprep.subr.bf16.mxu0 %v43686_v27  ;;  %38443 = vmatmul.mubr.msk.f32.vlgmr.msra.gmra.mrb[50].mxu0 %vm594_vm0, %v43381_v59  ;;  %48268 = vst [vmem:[#allocation46_spill] sm:$0xff] %v43899_v57 }
 0x127   : > { %41584 = vmatpush3.bf16.msra.mxu0 %v43686_v27  ;;  %38468 = vmatprep.mubr.msk.f32.mxu0 %vm594_vm0, %v43345_v18  ;;  %v43876_v9 = vpop.f32.mrb[8].mxu0 }
 0x128   : > { %41404 = vmatpush3.bf16.msra.mxu1 %v43207_v55  ;;  %41586 = vmatprep.subr.bf16.mxu0 %v43689_v4  ;;  %v43880_v22 = vpop.f32.mrb[9].mxu0 }
 0x129   : > { %38167 = vmatprep.subr.msk.mxu1 %vm601_vm2, %v43230_v7 }
 0x12b   : > { %41588 = vmatpush3.bf16.msra.mxu0 %v43689_v4 }
 0x12c   : > { %38168 = vmatpush3.msk.msra.mxu1 %vm601_vm2, %v43230_v7  ;;  %38466 = vmatprep.subr.msk.mxu0 %vm601_vm2, %v43708_v8  ;;  %v5664_v7 = vadd.s32 2, %v42889_v16 }
 0x12d   : > { %38170 = vmatmul.mubr.msk.f32.vlgmr.msra.gmra.mrb[52].mxu1 %vm594_vm0, %v43381_v59  ;;  %41414 = vmatprep.subr.bf16.mxu1 %v43285_v23 }
 0x12e   : > { %v43893_v3 = vpop.f32.mrb[10].mxu1  ;;  %41416 = vmatpush3.bf16.msra.mxu1 %v43285_v23  ;;  %38195 = vmatprep.mubr.msk.f32.mxu1 %vm594_vm0, %v43345_v18  ;;  %vm5666_vm7 = vcmp.eq.s32.totalorder %v42858_v2, %v5664_v7  ;;  %v43956_v7 = vld [vmem:[%s42865_s25 + $0x200] sm:$0x3] }
 0x12f   : > { %48267 = vst [vmem:[#allocation45_spill] sm:$0xff] %v43893_v3  ;;  %v43901_v1 = vpop.f32.mrb[11].mxu1  ;;  %41418 = vmatprep.subr.bf16.mxu1 %v43291_v46  ;;  %38467 = vmatpush3.msk.msra.mxu0 %vm601_vm2, %v43708_v8 }
 0x130   : > { %48269 = vst [vmem:[#allocation47_spill] sm:$0xff] %v43901_v1  ;;  %41598 = vmatprep.subr.bf16.mxu0 %v42875_v10  ;;  %38469 = vmatmul.mubr.msk.f32.vlgmr.msra.gmra.mrb[52].mxu0 %vm594_vm0, %v43381_v59 }
 0x131   : > { %41600 = vmatpush3.bf16.msra.mxu0 %v42875_v10  ;;  %38494 = vmatprep.mubr.msk.f32.mxu0 %vm594_vm0, %v43899_v57  ;;  %v43913_v3 = vpop.f32.mrb[10].mxu0  ;;  %v43931_v10 = vsel %vm5666_vm7, 1.0, %v48247_v17 }
 0x132   : > { %48270 = vst [vmem:[#allocation48_spill] sm:$0xff] %v43913_v3  ;;  %41420 = vmatpush3.bf16.msra.mxu1 %v43291_v46  ;;  %41602 = vmatprep.subr.bf16.mxu0 %v42884_v14  ;;  %v43917_v1 = vpop.f32.mrb[11].mxu0 }
 0x133   : > { %48271 = vst [vmem:[#allocation49_spill] sm:$0xff] %v43917_v1  ;;  %38193 = vmatprep.subr.msk.mxu1 %vm601_vm2, %v43314_v11 }
 0x135   : > { %41604 = vmatpush3.bf16.msra.mxu0 %v42884_v14 }
 0x136   : > { %38194 = vmatpush3.msk.msra.mxu1 %vm601_vm2, %v43314_v11  ;;  %38492 = vmatprep.subr.msk.mxu0 %vm601_vm2, %v43748_v38 }
 0x137   : > { %38196 = vmatmul.mubr.msk.f32.vlgmr.msra.gmra.mrb[54].mxu1 %vm594_vm0, %v43381_v59  ;;  %41430 = vmatprep.subr.bf16.mxu1 %v42886_v15 }
 0x138   : > { %v43933_v16 = vpop.f32.mrb[12].mxu1  ;;  %41432 = vmatpush3.bf16.msra.mxu1 %v42886_v15  ;;  %38221 = vmatprep.mubr.msk.f32.mxu1 %vm594_vm0, %v43345_v18 }
 0x139   : > { %v43938_v2 = vpop.f32.mrb[13].mxu1  ;;  %41434 = vmatprep.subr.bf16.mxu1 %v42895_v19  ;;  %38493 = vmatpush3.msk.msra.mxu0 %vm601_vm2, %v43748_v38 }
 0x13a   : > { %41614 = vmatprep.subr.bf16.mxu0 %v42953_v40  ;;  %38495 = vmatmul.mubr.msk.f32.vlgmr.msra.gmra.mrb[54].mxu0 %vm594_vm0, %v43931_v10 }
 0x13b   : > { %41616 = vmatpush3.bf16.msra.mxu0 %v42953_v40  ;;  %38520 = vmatprep.mubr.msk.f32.mxu0 %vm594_vm0, %v43899_v57  ;;  %v43949_v14 = vpop.f32.mrb[12].mxu0 }
 0x13c   : > { %48272 = vst [vmem:[#allocation50_spill] sm:$0xff] %v43949_v14  ;;  %41436 = vmatpush3.bf16.msra.mxu1 %v42895_v19  ;;  %41618 = vmatprep.subr.bf16.mxu0 %v42959_v44  ;;  %v43953_v8 = vpop.f32.mrb[13].mxu0 }
 0x13d   : > { %48273 = vst [vmem:[#allocation51_spill] sm:$0xff] %v43953_v8  ;;  %38219 = vmatprep.subr.msk.mxu1 %vm601_vm2, %v43956_v7  ;;  %v44025_v8 = vld [vmem:[%s42865_s25 + $0x2a0] sm:$0x3] }
 0x13f   : > { %41620 = vmatpush3.bf16.msra.mxu0 %v42959_v44 }
 0x140   : > { %38220 = vmatpush3.msk.msra.mxu1 %vm601_vm2, %v43956_v7  ;;  %38518 = vmatprep.subr.msk.mxu0 %vm601_vm2, %v43783_v29 }
 0x141   : > { %38222 = vmatmul.mubr.msk.f32.vlgmr.msra.gmra.mrb[56].mxu1 %vm594_vm0, %v43381_v59  ;;  %41446 = vmatprep.subr.bf16.mxu1 %v42921_v31 }
 0x142   : > { %v43968_v40 = vpop.f32.mrb[14].mxu1  ;;  %41448 = vmatpush3.bf16.msra.mxu1 %v42921_v31  ;;  %38247 = vmatprep.mubr.msk.f32.mxu1 %vm594_vm0, %v43345_v18 }
 0x143   : > { %48274 = vst [vmem:[#allocation52_spill] sm:$0xff] %v43968_v40  ;;  %v43973_v44 = vpop.f32.mrb[15].mxu1  ;;  %41450 = vmatprep.subr.bf16.mxu1 %v42931_v34  ;;  %38519 = vmatpush3.msk.msra.mxu0 %vm601_vm2, %v43783_v29  ;;  %v43991_v40 = vld [vmem:[%s42865_s25 + $0x250] sm:$0x3] }
 0x144   : > { %48275 = vst [vmem:[#allocation53_spill] sm:$0xff] %v43973_v44  ;;  %41630 = vmatprep.subr.bf16.mxu0 %v43033_v6  ;;  %38521 = vmatmul.mubr.msk.f32.vlgmr.msra.gmra.mrb[56].mxu0 %vm594_vm0, %v43931_v10 }
 0x145   : > { %41632 = vmatpush3.bf16.msra.mxu0 %v43033_v6  ;;  %38546 = vmatprep.mubr.msk.f32.mxu0 %vm594_vm0, %v43899_v57  ;;  %v43984_v38 = vpop.f32.mrb[14].mxu0  ;;  %v42661_v6 = vld [vmem:[%s42865_s25 + $0xc0] sm:$0x3] }
 0x146   : > { %48276 = vst [vmem:[#allocation54_spill] sm:$0xff] %v43984_v38  ;;  %41452 = vmatpush3.bf16.msra.mxu1 %v42931_v34  ;;  %41634 = vmatprep.subr.bf16.mxu0 %v43039_v13  ;;  %v43988_v17 = vpop.f32.mrb[15].mxu0 }
 0x147   : > { %48277 = vst [vmem:[#allocation55_spill] sm:$0xff] %v43988_v17  ;;  %38245 = vmatprep.subr.msk.mxu1 %vm601_vm2, %v43991_v40 }
 0x149   : > { %41636 = vmatpush3.bf16.msra.mxu0 %v43039_v13 }
 0x14a   : > { %38246 = vmatpush3.msk.msra.mxu1 %vm601_vm2, %v43991_v40  ;;  %38544 = vmatprep.subr.msk.mxu0 %vm601_vm2, %v42661_v6 }
 0x14b   : > { %38248 = vmatmul.mubr.msk.f32.vlgmr.msra.gmra.mrb[58].mxu1 %vm594_vm0, %v43381_v59  ;;  %41462 = vmatprep.subr.bf16.mxu1 %v42966_v47 }
 0x14c   : > { %v44003_v29 = vpop.f32.mrb[16].mxu1  ;;  %41464 = vmatpush3.bf16.msra.mxu1 %v42966_v47  ;;  %38273 = vmatprep.mubr.msk.f32.mxu1 %vm594_vm0, %v43345_v18 }
 0x14d   : > { %v44008_v13 = vpop.f32.mrb[17].mxu1  ;;  %41466 = vmatprep.subr.bf16.mxu1 %v42974_v48  ;;  %38545 = vmatpush3.msk.msra.mxu0 %vm601_vm2, %v42661_v6 }
 0x14e   : > { %41646 = vmatprep.subr.bf16.mxu0 %v43117_v51  ;;  %38547 = vmatmul.mubr.msk.f32.vlgmr.msra.gmra.mrb[58].mxu0 %vm594_vm0, %v43931_v10 }
 0x14f   : > { %41648 = vmatpush3.bf16.msra.mxu0 %v43117_v51  ;;  %38572 = vmatprep.mubr.msk.f32.mxu0 %vm594_vm0, %v43899_v57  ;;  %v44018_v44 = vpop.f32.mrb[16].mxu0  ;;  %v42663_v51 = vld [vmem:[%s42865_s25 + $0x110] sm:$0x3] }
 0x150   : > { %48278 = vst [vmem:[#allocation56_spill] sm:$0xff] %v44018_v44  ;;  %41468 = vmatpush3.bf16.msra.mxu1 %v42974_v48  ;;  %41650 = vmatprep.subr.bf16.mxu0 %v43123_v56  ;;  %v44022_v14 = vpop.f32.mrb[17].mxu0  ;;  %v44059_v44 = vld [vmem:[%s42865_s25 + $0x2f0] sm:$0x3] }
 0x151   : > { %48279 = vst [vmem:[#allocation57_spill] sm:$0xff] %v44022_v14  ;;  %38271 = vmatprep.subr.msk.mxu1 %vm601_vm2, %v44025_v8 }
 0x153   : > { %41652 = vmatpush3.bf16.msra.mxu0 %v43123_v56 }
 0x154   : > { %38272 = vmatpush3.msk.msra.mxu1 %vm601_vm2, %v44025_v8  ;;  %38570 = vmatprep.subr.msk.mxu0 %vm601_vm2, %v42663_v51 }
 0x155   : > { %38274 = vmatmul.mubr.msk.f32.vlgmr.msra.gmra.mrb[60].mxu1 %vm594_vm0, %v43381_v59  ;;  %41478 = vmatprep.subr.bf16.mxu1 %v43004_v61 }
 0x156   : > { %v44037_v6 = vpop.f32.mrb[18].mxu1  ;;  %41480 = vmatpush3.bf16.msra.mxu1 %v43004_v61  ;;  %38299 = vmatprep.mubr.msk.f32.mxu1 %vm594_vm0, %v43345_v18 }
 0x157   : > { %48280 = vst [vmem:[#allocation58_spill] sm:$0xff] %v44037_v6  ;;  %v44042_v56 = vpop.f32.mrb[19].mxu1  ;;  %41482 = vmatprep.subr.bf16.mxu1 %v43012_v62  ;;  %38571 = vmatpush3.msk.msra.mxu0 %vm601_vm2, %v42663_v51 }
 0x158   : > { %48281 = vst [vmem:[#allocation59_spill] sm:$0xff] %v44042_v56  ;;  %41662 = vmatprep.subr.bf16.mxu0 %v43201_v49  ;;  %38573 = vmatmul.mubr.msk.f32.vlgmr.msra.gmra.mrb[60].mxu0 %vm594_vm0, %v43931_v10 }
 0x159   : > { %41664 = vmatpush3.bf16.msra.mxu0 %v43201_v49  ;;  %38598 = vmatprep.mubr.msk.f32.mxu0 %vm594_vm0, %v43899_v57  ;;  %v44052_v6 = vpop.f32.mrb[18].mxu0  ;;  %v42665_v49 = vld [vmem:[%s42865_s25 + $0x160] sm:$0x3] }
 0x15a   : > { %48282 = vst [vmem:[#allocation60_spill] sm:$0xff] %v44052_v6  ;;  %41484 = vmatpush3.bf16.msra.mxu1 %v43012_v62  ;;  %41666 = vmatprep.subr.bf16.mxu0 %v43207_v55  ;;  %v44056_v56 = vpop.f32.mrb[19].mxu0 }
 0x15b   : > { %48283 = vst [vmem:[#allocation61_spill] sm:$0xff] %v44056_v56  ;;  %38297 = vmatprep.subr.msk.mxu1 %vm601_vm2, %v44059_v44  ;;  %v44093_v56 = vld [vmem:[%s42865_s25 + $0x340] sm:$0x3] }
 0x15d   : > { %41668 = vmatpush3.bf16.msra.mxu0 %v43207_v55 }
 0x15e   : > { %38298 = vmatpush3.msk.msra.mxu1 %vm601_vm2, %v44059_v44  ;;  %38596 = vmatprep.subr.msk.mxu0 %vm601_vm2, %v42665_v49 }
 0x15f   : > { %38300 = vmatmul.mubr.msk.f32.vlgmr.msra.gmra.mrb[62].mxu1 %vm594_vm0, %v43381_v59  ;;  %41494 = vmatprep.subr.bf16.mxu1 %v43046_v20 }
 0x160   : > { %v44071_v51 = vpop.f32.mrb[20].mxu1  ;;  %41496 = vmatpush3.bf16.msra.mxu1 %v43046_v20  ;;  %38325 = vmatprep.mubr.msk.f32.mxu1 %vm594_vm0, %v43345_v18 }
 0x161   : > { %v44076_v55 = vpop.f32.mrb[21].mxu1  ;;  %41498 = vmatprep.subr.bf16.mxu1 %v43054_v21  ;;  %38597 = vmatpush3.msk.msra.mxu0 %vm601_vm2, %v42665_v49 }
 0x162   : > { %41678 = vmatprep.subr.bf16.mxu0 %v43285_v23  ;;  %38599 = vmatmul.mubr.msk.f32.vlgmr.msra.gmra.mrb[62].mxu0 %vm594_vm0, %v43931_v10 }
 0x163   : > { %41680 = vmatpush3.bf16.msra.mxu0 %v43285_v23  ;;  %38624 = vmatprep.mubr.msk.f32.mxu0 %vm594_vm0, %v43899_v57  ;;  %v44086_v14 = vpop.f32.mrb[20].mxu0 }
 0x164   : > { %48284 = vst [vmem:[#allocation62_spill] sm:$0xff] %v44086_v14  ;;  %41500 = vmatpush3.bf16.msra.mxu1 %v43054_v21  ;;  %41682 = vmatprep.subr.bf16.mxu0 %v43291_v46  ;;  %v44090_v6 = vpop.f32.mrb[21].mxu0 }
 0x165   : > { %48285 = vst [vmem:[#allocation63_spill] sm:$0xff] %v44090_v6  ;;  %38323 = vmatprep.subr.msk.mxu1 %vm601_vm2, %v44093_v56  ;;  %v44128_v6 = vld [vmem:[%s42865_s25 + $0x390] sm:$0x3] }
 0x167   : > { %41684 = vmatpush3.bf16.msra.mxu0 %v43291_v46 }
 0x168   : > { %38324 = vmatpush3.msk.msra.mxu1 %vm601_vm2, %v44093_v56  ;;  %38622 = vmatprep.subr.msk.mxu0 %vm601_vm2, %v43314_v11 }
 0x169   : > { %38326 = vmatmul.mubr.msk.f32.vlgmr.msra.gmra.mrb[64].mxu1 %vm594_vm0, %v43381_v59  ;;  %41510 = vmatprep.subr.bf16.mxu1 %v43088_v41 }
 0x16a   : > { %v44105_v23 = vpop.f32.mrb[22].mxu1  ;;  %41512 = vmatpush3.bf16.msra.mxu1 %v43088_v41  ;;  %38351 = vmatprep.mubr.msk.f32.mxu1 %vm594_vm0, %v43345_v18 }
 0x16b   : > { %v44110_v46 = vpop.f32.mrb[23].mxu1  ;;  %41514 = vmatprep.subr.bf16.mxu1 %v43096_v42  ;;  %38623 = vmatpush3.msk.msra.mxu0 %vm601_vm2, %v43314_v11 }
 0x16c   : > { %41694 = vmatprep.subr.bf16.mxu0 %v42886_v15  ;;  %38625 = vmatmul.mubr.msk.f32.vlgmr.msra.gmra.mrb[64].mxu0 %vm594_vm0, %v43931_v10 }
 0x16d   : > { %41696 = vmatpush3.bf16.msra.mxu0 %v42886_v15  ;;  %38650 = vmatprep.mubr.msk.f32.mxu0 %vm594_vm0, %v43899_v57  ;;  %v44121_v49 = vpop.f32.mrb[22].mxu0 }
 0x16e   : > { %48286 = vst [vmem:[#allocation64_spill] sm:$0xff] %v44121_v49  ;;  %41516 = vmatpush3.bf16.msra.mxu1 %v43096_v42  ;;  %41698 = vmatprep.subr.bf16.mxu0 %v42895_v19  ;;  %v44125_v14 = vpop.f32.mrb[23].mxu0 }
 0x16f   : > { %48287 = vst [vmem:[#allocation65_spill] sm:$0xff] %v44125_v14  ;;  %38349 = vmatprep.subr.msk.mxu1 %vm601_vm2, %v44128_v6  ;;  %v44163_v14 = vld [vmem:[%s42865_s25 + $0x3e0] sm:$0x3] }
 0x171   : > { %41700 = vmatpush3.bf16.msra.mxu0 %v42895_v19 }
 0x172   : > { %38350 = vmatpush3.msk.msra.mxu1 %vm601_vm2, %v44128_v6  ;;  %38648 = vmatprep.subr.msk.mxu0 %vm601_vm2, %v43956_v7 }
 0x173   : > { %38352 = vmatmul.mubr.msk.f32.vlgmr.msra.gmra.mrb[66].mxu1 %vm594_vm0, %v43381_v59  ;;  %41526 = vmatprep.subr.bf16.mxu1 %v43130_v60 }
 0x174   : > { %v44140_v15 = vpop.f32.mrb[24].mxu1  ;;  %41528 = vmatpush3.bf16.msra.mxu1 %v43130_v60  ;;  %38377 = vmatprep.mubr.msk.f32.mxu1 %vm594_vm0, %v43345_v18 }
 0x175   : > { %48288 = vst [vmem:[#allocation66_spill] sm:$0xff] %v44140_v15  ;;  %v44145_v19 = vpop.f32.mrb[25].mxu1  ;;  %41530 = vmatprep.subr.bf16.mxu1 %v43138_v0  ;;  %38649 = vmatpush3.msk.msra.mxu0 %vm601_vm2, %v43956_v7 }
 0x176   : > { %48289 = vst [vmem:[#allocation67_spill] sm:$0xff] %v44145_v19  ;;  %41710 = vmatprep.subr.bf16.mxu0 %v42921_v31  ;;  %38651 = vmatmul.mubr.msk.f32.vlgmr.msra.gmra.mrb[66].mxu0 %vm594_vm0, %v43931_v10  ;;  %v44268_v19 = vld [vmem:[%s42865_s25 + $0x4d0] sm:$0x3] }
 0x177   : > { %41712 = vmatpush3.bf16.msra.mxu0 %v42921_v31  ;;  %38676 = vmatprep.mubr.msk.f32.mxu0 %vm594_vm0, %v43899_v57  ;;  %v44156_v11 = vpop.f32.mrb[24].mxu0 }
 0x178   : > { %48290 = vst [vmem:[#allocation68_spill] sm:$0xff] %v44156_v11  ;;  %41532 = vmatpush3.bf16.msra.mxu1 %v43138_v0  ;;  %41714 = vmatprep.subr.bf16.mxu0 %v42931_v34  ;;  %v44160_v49 = vpop.f32.mrb[25].mxu0 }
 0x179   : > { %48291 = vst [vmem:[#allocation69_spill] sm:$0xff] %v44160_v49  ;;  %38375 = vmatprep.subr.msk.mxu1 %vm601_vm2, %v44163_v14  ;;  %v44198_v49 = vld [vmem:[%s42865_s25 + $0x430] sm:$0x3] }
 0x17b   : > { %41716 = vmatpush3.bf16.msra.mxu0 %v42931_v34 }
 0x17c   : > { %38376 = vmatpush3.msk.msra.mxu1 %vm601_vm2, %v44163_v14  ;;  %38674 = vmatprep.subr.msk.mxu0 %vm601_vm2, %v43991_v40 }
 0x17d   : > { %38378 = vmatmul.mubr.msk.f32.vlgmr.msra.gmra.mrb[68].mxu1 %vm594_vm0, %v43381_v59  ;;  %41542 = vmatprep.subr.bf16.mxu1 %v43172_v32 }
 0x17e   : > { %v44175_v31 = vpop.f32.mrb[26].mxu1  ;;  %41544 = vmatpush3.bf16.msra.mxu1 %v43172_v32  ;;  %38403 = vmatprep.mubr.msk.f32.mxu1 %vm594_vm0, %v43345_v18 }
 0x17f   : > { %v44180_v34 = vpop.f32.mrb[27].mxu1  ;;  %41546 = vmatprep.subr.bf16.mxu1 %v43180_v33  ;;  %38675 = vmatpush3.msk.msra.mxu0 %vm601_vm2, %v43991_v40 }
 0x180   : > { %41726 = vmatprep.subr.bf16.mxu0 %v42966_v47  ;;  %38677 = vmatmul.mubr.msk.f32.vlgmr.msra.gmra.mrb[68].mxu0 %vm594_vm0, %v43931_v10 }
 0x181   : > { %41728 = vmatpush3.bf16.msra.mxu0 %v42966_v47  ;;  %38702 = vmatprep.mubr.msk.f32.mxu0 %vm594_vm0, %v43899_v57  ;;  %v44191_v7 = vpop.f32.mrb[26].mxu0  ;;  %v48294_v47 = vld [vmem:[#allocation16_spill] sm:$0xff] }
 0x182   : > { %48292 = vst [vmem:[#allocation70_spill] sm:$0xff] %v44191_v7  ;;  %41548 = vmatpush3.bf16.msra.mxu1 %v43180_v33  ;;  %41730 = vmatprep.subr.bf16.mxu0 %v42974_v48  ;;  %v44195_v11 = vpop.f32.mrb[27].mxu0  ;;  %v48297_v7 = vld [vmem:[#allocation17_spill] sm:$0xff] }
 0x183   : > { %48293 = vst [vmem:[#allocation71_spill] sm:$0xff] %v44195_v11  ;;  %38401 = vmatprep.subr.msk.mxu1 %vm601_vm2, %v44198_v49 }
 0x185   : > { %41732 = vmatpush3.bf16.msra.mxu0 %v42974_v48 }
 0x186   : > { %38402 = vmatpush3.msk.msra.mxu1 %vm601_vm2, %v44198_v49  ;;  %38700 = vmatprep.subr.msk.mxu0 %vm601_vm2, %v44025_v8 }
 0x187   : > { %38404 = vmatmul.mubr.msk.f32.vlgmr.msra.gmra.mrb[70].mxu1 %vm594_vm0, %v43381_v59  ;;  %41558 = vmatprep.subr.bf16.mxu1 %v48294_v47 }
 0x188   : > { %v44210_v40 = vpop.f32.mrb[28].mxu1  ;;  %41560 = vmatpush3.bf16.msra.mxu1 %v48294_v47  ;;  %38429 = vmatprep.mubr.msk.f32.mxu1 %vm594_vm0, %v43345_v18 }
 0x189   : > { %48295 = vst [vmem:[#allocation16_spill] sm:$0xff] %v44210_v40  ;;  %v44215_v48 = vpop.f32.mrb[29].mxu1  ;;  %41562 = vmatprep.subr.bf16.mxu1 %v48297_v7  ;;  %38701 = vmatpush3.msk.msra.mxu0 %vm601_vm2, %v44025_v8 }
 0x18a   : > { %48296 = vst [vmem:[#allocation72_spill] sm:$0xff] %v44215_v48  ;;  %41742 = vmatprep.subr.bf16.mxu0 %v43004_v61  ;;  %38703 = vmatmul.mubr.msk.f32.vlgmr.msra.gmra.mrb[70].mxu0 %vm594_vm0, %v43931_v10  ;;  %v44233_v48 = vld [vmem:[%s42865_s25 + $0x480] sm:$0x3] }
 0x18b   : > { %41744 = vmatpush3.bf16.msra.mxu0 %v43004_v61  ;;  %38728 = vmatprep.mubr.msk.f32.mxu0 %vm594_vm0, %v43899_v57  ;;  %v44226_v11 = vpop.f32.mrb[28].mxu0  ;;  %v48300_v61 = vld [vmem:[#allocation20_spill] sm:$0xff] }
 0x18c   : > { %48298 = vst [vmem:[#allocation17_spill] sm:$0xff] %v44226_v11  ;;  %41564 = vmatpush3.bf16.msra.mxu1 %v48297_v7  ;;  %41746 = vmatprep.subr.bf16.mxu0 %v43012_v62  ;;  %v44230_v40 = vpop.f32.mrb[29].mxu0  ;;  %v48301_v11 = vld [vmem:[#allocation21_spill] sm:$0xff] }
 0x18d   : > { %48299 = vst [vmem:[#allocation73_spill] sm:$0xff] %v44230_v40  ;;  %38427 = vmatprep.subr.msk.mxu1 %vm601_vm2, %v44233_v48 }
 0x18f   : > { %41748 = vmatpush3.bf16.msra.mxu0 %v43012_v62 }
 0x190   : > { %38428 = vmatpush3.msk.msra.mxu1 %vm601_vm2, %v44233_v48  ;;  %38726 = vmatprep.subr.msk.mxu0 %vm601_vm2, %v44059_v44 }
 0x191   : > { %38430 = vmatmul.mubr.msk.f32.vlgmr.msra.gmra.mrb[72].mxu1 %vm594_vm0, %v43381_v59  ;;  %41574 = vmatprep.subr.bf16.mxu1 %v48300_v61 }
 0x192   : > { %v44245_v8 = vpop.f32.mrb[30].mxu1  ;;  %41576 = vmatpush3.bf16.msra.mxu1 %v48300_v61  ;;  %38455 = vmatprep.mubr.msk.f32.mxu1 %vm594_vm0, %v43345_v18 }
 0x193   : > { %v44250_v62 = vpop.f32.mrb[31].mxu1  ;;  %41578 = vmatprep.subr.bf16.mxu1 %v48301_v11  ;;  %38727 = vmatpush3.msk.msra.mxu0 %vm601_vm2, %v44059_v44 }
 0x194   : > { %41758 = vmatprep.subr.bf16.mxu0 %v43046_v20  ;;  %38729 = vmatmul.mubr.msk.f32.vlgmr.msra.gmra.mrb[72].mxu0 %vm594_vm0, %v43931_v10 }
 0x195   : > { %41760 = vmatpush3.bf16.msra.mxu0 %v43046_v20  ;;  %38754 = vmatprep.mubr.msk.f32.mxu0 %vm594_vm0, %v43899_v57  ;;  %v44261_v15 = vpop.f32.mrb[30].mxu0  ;;  %v48304_v20 = vld [vmem:[#allocation22_spill] sm:$0xff] }
 0x196   : > { %48302 = vst [vmem:[#allocation20_spill] sm:$0xff] %v44261_v15  ;;  %41580 = vmatpush3.bf16.msra.mxu1 %v48301_v11  ;;  %41762 = vmatprep.subr.bf16.mxu0 %v43054_v21  ;;  %v44265_v40 = vpop.f32.mrb[31].mxu0  ;;  %v48307_v15 = vld [vmem:[#allocation23_spill] sm:$0xff] }
 0x197   : > { %48303 = vst [vmem:[#allocation21_spill] sm:$0xff] %v44265_v40  ;;  %38453 = vmatprep.subr.msk.mxu1 %vm601_vm2, %v44268_v19 }
 0x199   : > { %41764 = vmatpush3.bf16.msra.mxu0 %v43054_v21 }
 0x19a   : > { %38454 = vmatpush3.msk.msra.mxu1 %vm601_vm2, %v44268_v19  ;;  %38752 = vmatprep.subr.msk.mxu0 %vm601_vm2, %v44093_v56 }
 0x19b   : > { %38456 = vmatmul.mubr.msk.f32.vlgmr.msra.gmra.mrb[74].mxu1 %vm594_vm0, %v43381_v59  ;;  %41590 = vmatprep.subr.bf16.mxu1 %v48304_v20 }
 0x19c   : > { %v44280_v44 = vpop.f32.mrb[32].mxu1  ;;  %41592 = vmatpush3.bf16.msra.mxu1 %v48304_v20  ;;  %38481 = vmatprep.mubr.msk.f32.mxu1 %vm594_vm0, %v43345_v18 }
 0x19d   : > { %48305 = vst [vmem:[#allocation22_spill] sm:$0xff] %v44280_v44  ;;  %v44285_v21 = vpop.f32.mrb[33].mxu1  ;;  %41594 = vmatprep.subr.bf16.mxu1 %v48307_v15  ;;  %38753 = vmatpush3.msk.msra.mxu0 %vm601_vm2, %v44093_v56  ;;  %v44303_v44 = vld [vmem:[%s42865_s25 + $0x520] sm:$0x3] }
 0x19e   : > { %48306 = vst [vmem:[#allocation74_spill] sm:$0xff] %v44285_v21  ;;  %41774 = vmatprep.subr.bf16.mxu0 %v43088_v41  ;;  %38755 = vmatmul.mubr.msk.f32.vlgmr.msra.gmra.mrb[74].mxu0 %vm594_vm0, %v43931_v10  ;;  %v48311_v21 = vld [vmem:[#allocation9_spill] sm:$0xff] }
 0x19f   : > { %41776 = vmatpush3.bf16.msra.mxu0 %v43088_v41  ;;  %38780 = vmatprep.mubr.msk.f32.mxu0 %vm594_vm0, %v43899_v57  ;;  %v44296_v40 = vpop.f32.mrb[32].mxu0  ;;  %v48310_v41 = vld [vmem:[#allocation8_spill] sm:$0xff] }
 0x1a0   : > { %48308 = vst [vmem:[#allocation23_spill] sm:$0xff] %v44296_v40  ;;  %41596 = vmatpush3.bf16.msra.mxu1 %v48307_v15  ;;  %41778 = vmatprep.subr.bf16.mxu0 %v43096_v42  ;;  %v44300_v18 = vpop.f32.mrb[33].mxu0  ;;  %v42673_v40 = vld [vmem:[%s42865_s25 + $0x48] sm:$0x3] }
 0x1a1   : > { %48309 = vst [vmem:[#allocation75_spill] sm:$0xff] %v44300_v18  ;;  %38479 = vmatprep.subr.msk.mxu1 %vm601_vm2, %v44303_v44  ;;  %v42687_v18 = vld [vmem:[%s42865_s25 + $0x4a8] sm:$0x3] }
 0x1a3   : > { %41780 = vmatpush3.bf16.msra.mxu0 %v43096_v42 }
 0x1a4   : > { %38480 = vmatpush3.msk.msra.mxu1 %vm601_vm2, %v44303_v44  ;;  %38778 = vmatprep.subr.msk.mxu0 %vm601_vm2, %v44128_v6 }
 0x1a5   : > { %38482 = vmatmul.mubr.msk.f32.vlgmr.msra.gmra.mrb[76].mxu1 %vm594_vm0, %v43381_v59  ;;  %41606 = vmatprep.subr.bf16.mxu1 %v48310_v41 }
 0x1a6   : > { %v44315_v56 = vpop.f32.mrb[34].mxu1  ;;  %41608 = vmatpush3.bf16.msra.mxu1 %v48310_v41  ;;  %38507 = vmatprep.mubr.msk.f32.mxu1 %vm594_vm0, %v43899_v57 }
 0x1a7   : > { %v44320_v42 = vpop.f32.mrb[35].mxu1  ;;  %41610 = vmatprep.subr.bf16.mxu1 %v48311_v21  ;;  %38779 = vmatpush3.msk.msra.mxu0 %vm601_vm2, %v44128_v6 }
 0x1a8   : > { %41790 = vmatprep.subr.bf16.mxu0 %v43130_v60  ;;  %38781 = vmatmul.mubr.msk.f32.vlgmr.msra.gmra.mrb[76].mxu0 %vm594_vm0, %v43931_v10 }
 0x1a9   : > { %41792 = vmatpush3.bf16.msra.mxu0 %v43130_v60  ;;  %38806 = vmatprep.mubr.msk.f32.mxu0 %vm594_vm0, %v43899_v57  ;;  %v44331_v59 = vpop.f32.mrb[34].mxu0  ;;  %v48314_v60 = vld [vmem:[#allocation10_spill] sm:$0xff] }
 0x1aa   : > { %48312 = vst [vmem:[#allocation8_spill] sm:$0xff] %v44331_v59  ;;  %41612 = vmatpush3.bf16.msra.mxu1 %v48311_v21  ;;  %41794 = vmatprep.subr.bf16.mxu0 %v43138_v0  ;;  %v44335_v41 = vpop.f32.mrb[35].mxu0  ;;  %v42674_v59 = vld [vmem:[%s42865_s25 + $0x98] sm:$0x3] }
 0x1ab   : > { %48313 = vst [vmem:[#allocation9_spill] sm:$0xff] %v44335_v41  ;;  %38505 = vmatprep.subr.msk.mxu1 %vm601_vm2, %v42673_v40  ;;  %v42675_v41 = vld [vmem:[%s42865_s25 + $0xe8] sm:$0x3] }
 0x1ad   : > { %41796 = vmatpush3.bf16.msra.mxu0 %v43138_v0  ;;  %v48317_v0 = vld [vmem:[#allocation11_spill] sm:$0xff] }
 0x1ae   : > { %38506 = vmatpush3.msk.msra.mxu1 %vm601_vm2, %v42673_v40  ;;  %38804 = vmatprep.subr.msk.mxu0 %vm601_vm2, %v44163_v14 }
 0x1af   : > { %38508 = vmatmul.mubr.msk.f32.vlgmr.msra.gmra.mrb[78].mxu1 %vm594_vm0, %v43931_v10  ;;  %41622 = vmatprep.subr.bf16.mxu1 %v48314_v60 }
 0x1b0   : > { %v44346_v6 = vpop.f32.mrb[36].mxu1  ;;  %41624 = vmatpush3.bf16.msra.mxu1 %v48314_v60  ;;  %38533 = vmatprep.mubr.msk.f32.mxu1 %vm594_vm0, %v43899_v57 }
 0x1b1   : > { %48315 = vst [vmem:[#allocation10_spill] sm:$0xff] %v44346_v6  ;;  %v44351_v21 = vpop.f32.mrb[37].mxu1  ;;  %41626 = vmatprep.subr.bf16.mxu1 %v48317_v0  ;;  %38805 = vmatpush3.msk.msra.mxu0 %vm601_vm2, %v44163_v14  ;;  %v42680_v6 = vld [vmem:[%s42865_s25 + $0x278] sm:$0x3] }
 0x1b2   : > { %48316 = vst [vmem:[#allocation76_spill] sm:$0xff] %v44351_v21  ;;  %41806 = vmatprep.subr.bf16.mxu0 %v43172_v32  ;;  %38807 = vmatmul.mubr.msk.f32.vlgmr.msra.gmra.mrb[78].mxu0 %vm594_vm0, %v43931_v10  ;;  %v42681_v21 = vld [vmem:[%s42865_s25 + $0x2c8] sm:$0x3] }
 0x1b3   : > { %41808 = vmatpush3.bf16.msra.mxu0 %v43172_v32  ;;  %38832 = vmatprep.mubr.msk.f32.mxu0 %vm594_vm0, %v43899_v57  ;;  %v44362_v40 = vpop.f32.mrb[36].mxu0  ;;  %v48320_v32 = vld [vmem:[#allocation12_spill] sm:$0xff] }
 0x1b4   : > { %48318 = vst [vmem:[#allocation11_spill] sm:$0xff] %v44362_v40  ;;  %41628 = vmatpush3.bf16.msra.mxu1 %v48317_v0  ;;  %41810 = vmatprep.subr.bf16.mxu0 %v43180_v33  ;;  %v44366_v60 = vpop.f32.mrb[37].mxu0  ;;  %v42685_v40 = vld [vmem:[%s42865_s25 + $0x408] sm:$0x3] }
 0x1b5   : > { %48319 = vst [vmem:[#allocation77_spill] sm:$0xff] %v44366_v60  ;;  %38531 = vmatprep.subr.msk.mxu1 %vm601_vm2, %v42674_v59  ;;  %v42686_v60 = vld [vmem:[%s42865_s25 + $0x458] sm:$0x3] }
 0x1b7   : > { %41812 = vmatpush3.bf16.msra.mxu0 %v43180_v33  ;;  %v48321_v33 = vld [vmem:[#allocation13_spill] sm:$0xff] }
 0x1b8   : > { %38532 = vmatpush3.msk.msra.mxu1 %vm601_vm2, %v42674_v59  ;;  %38830 = vmatprep.subr.msk.mxu0 %vm601_vm2, %v44198_v49 }
 0x1b9   : > { %38534 = vmatmul.mubr.msk.f32.vlgmr.msra.gmra.mrb[80].mxu1 %vm594_vm0, %v43931_v10  ;;  %41638 = vmatprep.subr.bf16.mxu1 %v48320_v32 }
 0x1ba   : > { %v44377_v14 = vpop.f32.mrb[38].mxu1  ;;  %41640 = vmatpush3.bf16.msra.mxu1 %v48320_v32  ;;  %38559 = vmatprep.mubr.msk.f32.mxu1 %vm594_vm0, %v43899_v57 }
 0x1bb   : > { %v44382_v0 = vpop.f32.mrb[39].mxu1  ;;  %41642 = vmatprep.subr.bf16.mxu1 %v48321_v33  ;;  %38831 = vmatpush3.msk.msra.mxu0 %vm601_vm2, %v44198_v49  ;;  %v48324_v49 = vld [vmem:[#allocation14_spill] sm:$0xff] }
 0x1bc   : > { %41822 = vmatprep.subr.bf16.mxu0 %v48294_v47  ;;  %38833 = vmatmul.mubr.msk.f32.vlgmr.msra.gmra.mrb[80].mxu0 %vm594_vm0, %v43931_v10 }
 0x1bd   : > { %41824 = vmatpush3.bf16.msra.mxu0 %v48294_v47  ;;  %38858 = vmatprep.mubr.msk.f32.mxu0 %vm594_vm0, %v43899_v57  ;;  %v44393_v59 = vpop.f32.mrb[38].mxu0 }
 0x1be   : > { %48322 = vst [vmem:[#allocation12_spill] sm:$0xff] %v44393_v59  ;;  %41644 = vmatpush3.bf16.msra.mxu1 %v48321_v33  ;;  %41826 = vmatprep.subr.bf16.mxu0 %v48297_v7  ;;  %v44397_v32 = vpop.f32.mrb[39].mxu0  ;;  %v42676_v59 = vld [vmem:[%s42865_s25 + $0x138] sm:$0x3] }
 0x1bf   : > { %48323 = vst [vmem:[#allocation13_spill] sm:$0xff] %v44397_v32  ;;  %38557 = vmatprep.subr.msk.mxu1 %vm601_vm2, %v42675_v41  ;;  %v42677_v32 = vld [vmem:[%s42865_s25 + $0x188] sm:$0x3] }
 0x1c1   : > { %41828 = vmatpush3.bf16.msra.mxu0 %v48297_v7  ;;  %v48327_v7 = vld [vmem:[#allocation15_spill] sm:$0xff] }
 0x1c2   : > { %38558 = vmatpush3.msk.msra.mxu1 %vm601_vm2, %v42675_v41  ;;  %38856 = vmatprep.subr.msk.mxu0 %vm601_vm2, %v44233_v48 }
 0x1c3   : > { %38560 = vmatmul.mubr.msk.f32.vlgmr.msra.gmra.mrb[82].mxu1 %vm594_vm0, %v43931_v10  ;;  %41654 = vmatprep.subr.bf16.mxu1 %v48324_v49 }
 0x1c4   : > { %v44408_v47 = vpop.f32.mrb[40].mxu1  ;;  %41656 = vmatpush3.bf16.msra.mxu1 %v48324_v49  ;;  %38585 = vmatprep.mubr.msk.f32.mxu1 %vm594_vm0, %v43899_v57 }
 0x1c5   : > { %48325 = vst [vmem:[#allocation14_spill] sm:$0xff] %v44408_v47  ;;  %v44413_v33 = vpop.f32.mrb[41].mxu1  ;;  %41658 = vmatprep.subr.bf16.mxu1 %v48327_v7  ;;  %38857 = vmatpush3.msk.msra.mxu0 %vm601_vm2, %v44233_v48  ;;  %v48330_v48 = vld [vmem:[#allocation18_spill] sm:$0xff]  ;;  %v48342_v47 = vld [vmem:[#allocation28_spill] sm:$0xff] }
 0x1c6   : > { %48326 = vst [vmem:[#allocation78_spill] sm:$0xff] %v44413_v33  ;;  %41838 = vmatprep.subr.bf16.mxu0 %v48300_v61  ;;  %38859 = vmatmul.mubr.msk.f32.vlgmr.msra.gmra.mrb[82].mxu0 %vm594_vm0, %v43931_v10  ;;  %v42679_v33 = vld [vmem:[%s42865_s25 + $0x228] sm:$0x3] }
 0x1c7   : > { %41840 = vmatpush3.bf16.msra.mxu0 %v48300_v61  ;;  %38884 = vmatprep.mubr.msk.f32.mxu0 %vm594_vm0, %v43899_v57  ;;  %v44424_v41 = vpop.f32.mrb[40].mxu0 }
 0x1c8   : > { %48328 = vst [vmem:[#allocation15_spill] sm:$0xff] %v44424_v41  ;;  %41660 = vmatpush3.bf16.msra.mxu1 %v48327_v7  ;;  %41842 = vmatprep.subr.bf16.mxu0 %v48301_v11  ;;  %v44428_v49 = vpop.f32.mrb[41].mxu0 }
 0x1c9   : > { %48329 = vst [vmem:[#allocation79_spill] sm:$0xff] %v44428_v49  ;;  %38583 = vmatprep.subr.msk.mxu1 %vm601_vm2, %v42676_v59 }
 0x1cb   : > { %41844 = vmatpush3.bf16.msra.mxu0 %v48301_v11  ;;  %v48332_v11 = vld [vmem:[#allocation19_spill] sm:$0xff] }
 0x1cc   : > { %38584 = vmatpush3.msk.msra.mxu1 %vm601_vm2, %v42676_v59  ;;  %38882 = vmatprep.subr.msk.mxu0 %vm601_vm2, %v44268_v19 }
 0x1cd   : > { %38586 = vmatmul.mubr.msk.f32.vlgmr.msra.gmra.mrb[84].mxu1 %vm594_vm0, %v43931_v10  ;;  %41670 = vmatprep.subr.bf16.mxu1 %v48330_v48 }
 0x1ce   : > { %v44439_v61 = vpop.f32.mrb[42].mxu1  ;;  %41672 = vmatpush3.bf16.msra.mxu1 %v48330_v48  ;;  %38611 = vmatprep.mubr.msk.f32.mxu1 %vm594_vm0, %v43899_v57 }
 0x1cf   : > { %48331 = vst [vmem:[#allocation18_spill] sm:$0xff] %v44439_v61  ;;  %v44444_v7 = vpop.f32.mrb[43].mxu1  ;;  %41674 = vmatprep.subr.bf16.mxu1 %v48332_v11  ;;  %38883 = vmatpush3.msk.msra.mxu0 %vm601_vm2, %v44268_v19  ;;  %v48335_v19 = vld [vmem:[#allocation24_spill] sm:$0xff]  ;;  %v42688_v61 = vld [vmem:[%s42865_s25 + $0x4f8] sm:$0x3] }
 0x1d0   : > { %38885 = vmatmul.mubr.msk.f32.vlgmr.msra.gmra.mrb[84].mxu0 %vm594_vm0, %v43931_v10  ;;  %41854 = vmatprep.subr.bf16.mxu0 %v48304_v20 }
 0x1d1   : > { %v44452_v59 = vpop.f32.mrb[42].mxu0  ;;  %41856 = vmatpush3.bf16.msra.mxu0 %v48304_v20  ;;  %38910 = vmatprep.mubr.msk.f32.mxu0 %vm594_vm0, %v43899_v57  ;;  %v44473_v20 = vld [vmem:[%s48100_s1 + $0x4] sm:$0x7] }
 0x1d2   : > { %48333 = vst [vmem:[#allocation19_spill] sm:$0xff] %v44452_v59  ;;  %41676 = vmatpush3.bf16.msra.mxu1 %v48332_v11  ;;  %v44458_v48 = vpop.f32.mrb[43].mxu0  ;;  %41858 = vmatprep.subr.bf16.mxu0 %v48307_v15 }
 0x1d3   : > { %48334 = vst [vmem:[#allocation80_spill] sm:$0xff] %v44458_v48  ;;  %38609 = vmatprep.subr.msk.mxu1 %vm601_vm2, %v42677_v32  ;;  %v48339_v48 = vld [vmem:[#allocation27_spill] sm:$0xff] }
 0x1d5   : > { %41860 = vmatpush3.bf16.msra.mxu0 %v48307_v15 }
 0x1d6   : > { %38610 = vmatpush3.msk.msra.mxu1 %vm601_vm2, %v42677_v32  ;;  %38908 = vmatprep.subr.msk.mxu0 %vm601_vm2, %v44303_v44  ;;  %v48336_v32 = vld [vmem:[#allocation25_spill] sm:$0xff] }
 0x1d7   : > { %38612 = vmatmul.mubr.msk.f32.vlgmr.msra.gmra.mrb[86].mxu1 %vm594_vm0, %v43931_v10  ;;  %41686 = vmatprep.subr.bf16.mxu1 %v48335_v19 }
 0x1d8   : > { %v44475_v11 = vpop.f32.mrb[44].mxu1  ;;  %41688 = vmatpush3.bf16.msra.mxu1 %v48335_v19  ;;  %38637 = vmatprep.mubr.msk.f32.mxu1 %vm594_vm0, %v43899_v57 }
 0x1d9   : > { %v44480_v15 = vpop.f32.mrb[45].mxu1  ;;  %41690 = vmatprep.subr.bf16.mxu1 %v48336_v32  ;;  %38909 = vmatpush3.msk.msra.mxu0 %vm601_vm2, %v44303_v44  ;;  %v42678_v44 = vld [vmem:[%s42865_s25 + $0x1d8] sm:$0x3] }
 0x1da   : > { %38911 = vmatmul.mubr.msk.f32.vlgmr.msra.gmra.mrb[86].mxu0 %vm594_vm0, %v43931_v10  ;;  %38938 = vmatprep.subr.msk.mxu0 %vm8157_vm8, %v44473_v20 }
 0x1db   : > { %v44489_v59 = vpop.f32.mrb[44].mxu0  ;;  %38939 = vmatpush3.msk.msra.mxu0 %vm8157_vm8, %v44473_v20 }
 0x1dc   : > { %48337 = vst [vmem:[#allocation24_spill] sm:$0xff] %v44489_v59  ;;  %41692 = vmatpush3.bf16.msra.mxu1 %v48336_v32  ;;  %v44494_v19 = vpop.f32.mrb[45].mxu0  ;;  %38948 = vmatprep.subr.msk.mxu0 %vm8157_vm8, %v44473_v20 }
 0x1dd   : > { %48338 = vst [vmem:[#allocation25_spill] sm:$0xff] %v44494_v19  ;;  %38635 = vmatprep.subr.msk.mxu1 %vm601_vm2, %v42678_v44 }
 0x1e0   : > { %38636 = vmatpush3.msk.msra.mxu1 %vm601_vm2, %v42678_v44 }
 0x1e1   : > { %38638 = vmatmul.mubr.msk.f32.vlgmr.msra.gmra.mrb[88].mxu1 %vm594_vm0, %v43931_v10  ;;  %41702 = vmatprep.subr.bf16.mxu1 %v48339_v48 }
 0x1e2   : > { %v44504_v59 = vpop.f32.mrb[46].mxu1  ;;  %41704 = vmatpush3.bf16.msra.mxu1 %v48339_v48  ;;  %38663 = vmatprep.mubr.msk.f32.mxu1 %vm594_vm0, %v43899_v57  ;;  %v48345_v48 = vld [vmem:[#allocation29_spill] sm:$0xff] }
 0x1e3   : > { %48340 = vst [vmem:[#allocation27_spill] sm:$0xff] %v44504_v59  ;;  %v44509_v32 = vpop.f32.mrb[47].mxu1  ;;  %41706 = vmatprep.subr.bf16.mxu1 %v48342_v47 }
 0x1e4   : > { %48341 = vst [vmem:[#allocation81_spill] sm:$0xff] %v44509_v32 }
 0x1e5   : > { %v44512_v19 = vpop.f32.mrb[46].mxu0 }
 0x1e6   : > { %48343 = vst [vmem:[#allocation28_spill] sm:$0xff] %v44512_v19  ;;  %41708 = vmatpush3.bf16.msra.mxu1 %v48342_v47  ;;  %v44515_v44 = vpop.f32.mrb[47].mxu0  ;;  %v48348_v19 = vld [vmem:[#allocation30_spill] sm:$0xff] }
 0x1e7   : > { %48344 = vst [vmem:[#allocation82_spill] sm:$0xff] %v44515_v44  ;;  %38661 = vmatprep.subr.msk.mxu1 %vm601_vm2, %v42679_v33 }
 0x1ea   : > { %38662 = vmatpush3.msk.msra.mxu1 %vm601_vm2, %v42679_v33 }
 0x1eb   : > { %38664 = vmatmul.mubr.msk.f32.vlgmr.msra.gmra.mrb[90].mxu1 %vm594_vm0, %v43931_v10  ;;  %41718 = vmatprep.subr.bf16.mxu1 %v48345_v48 }
 0x1ec   : > { %v44523_v41 = vpop.f32.mrb[48].mxu1  ;;  %41720 = vmatpush3.bf16.msra.mxu1 %v48345_v48  ;;  %38689 = vmatprep.mubr.msk.f32.mxu1 %vm594_vm0, %v43899_v57  ;;  %v48351_v48 = vld [vmem:[#allocation31_spill] sm:$0xff] }
 0x1ed   : > { %48346 = vst [vmem:[#allocation29_spill] sm:$0xff] %v44523_v41  ;;  %v44528_v47 = vpop.f32.mrb[49].mxu1  ;;  %41722 = vmatprep.subr.bf16.mxu1 %v48348_v19 }
 0x1ee   : > { %48347 = vst [vmem:[#allocation83_spill] sm:$0xff] %v44528_v47 }
 0x1ef   : > { %v44531_v44 = vpop.f32.mrb[48].mxu0 }
 0x1f0   : > { %48349 = vst [vmem:[#allocation30_spill] sm:$0xff] %v44531_v44  ;;  %41724 = vmatpush3.bf16.msra.mxu1 %v48348_v19  ;;  %v44534_v33 = vpop.f32.mrb[49].mxu0  ;;  %v48354_v44 = vld [vmem:[#allocation32_spill] sm:$0xff] }
 0x1f1   : > { %48350 = vst [vmem:[#allocation84_spill] sm:$0xff] %v44534_v33  ;;  %38687 = vmatprep.subr.msk.mxu1 %vm601_vm2, %v42680_v6 }
 0x1f4   : > { %38688 = vmatpush3.msk.msra.mxu1 %vm601_vm2, %v42680_v6 }
 0x1f5   : > { %38690 = vmatmul.mubr.msk.f32.vlgmr.msra.gmra.mrb[92].mxu1 %vm594_vm0, %v43931_v10  ;;  %41734 = vmatprep.subr.bf16.mxu1 %v48351_v48 }
 0x1f6   : > { %v44542_v49 = vpop.f32.mrb[50].mxu1  ;;  %41736 = vmatpush3.bf16.msra.mxu1 %v48351_v48  ;;  %38715 = vmatprep.mubr.msk.f32.mxu1 %vm594_vm0, %v43899_v57 }
 0x1f7   : > { %48352 = vst [vmem:[#allocation31_spill] sm:$0xff] %v44542_v49  ;;  %v44547_v19 = vpop.f32.mrb[51].mxu1  ;;  %41738 = vmatprep.subr.bf16.mxu1 %v48354_v44 }
 0x1f8   : > { %48353 = vst [vmem:[#allocation85_spill] sm:$0xff] %v44547_v19 }
 0x1f9   : > { %v44550_v33 = vpop.f32.mrb[50].mxu0 }
 0x1fa   : > { %48355 = vst [vmem:[#allocation32_spill] sm:$0xff] %v44550_v33  ;;  %41740 = vmatpush3.bf16.msra.mxu1 %v48354_v44  ;;  %v44553_v6 = vpop.f32.mrb[51].mxu0 }
 0x1fb   : > { %48356 = vst [vmem:[#allocation86_spill] sm:$0xff] %v44553_v6  ;;  %38713 = vmatprep.subr.msk.mxu1 %vm601_vm2, %v42681_v21  ;;  %v42682_v6 = vld [vmem:[%s42865_s25 + $0x318] sm:$0x3] }
 0x1fe   : > { %38714 = vmatpush3.msk.msra.mxu1 %vm601_vm2, %v42681_v21 }
 0x1ff   : > { %38716 = vmatmul.mubr.msk.f32.vlgmr.msra.gmra.mrb[94].mxu1 %vm594_vm0, %v43931_v10  ;;  %41750 = vmatprep.subr.bf16.mxu1 %v43476_v37 }
 0x200   : > { %v44561_v48 = vpop.f32.mrb[52].mxu1  ;;  %41752 = vmatpush3.bf16.msra.mxu1 %v43476_v37  ;;  %38741 = vmatprep.mubr.msk.f32.mxu1 %vm594_vm0, %v43899_v57 }
 0x201   : > { %48357 = vst [vmem:[#allocation87_spill] sm:$0xff] %v44561_v48  ;;  %v44566_v44 = vpop.f32.mrb[53].mxu1  ;;  %41754 = vmatprep.subr.bf16.mxu1 %v43479_v12 }
 0x202   : > { %48358 = vst [vmem:[#allocation88_spill] sm:$0xff] %v44566_v44 }
 0x203   : > { %v44569_v33 = vpop.f32.mrb[52].mxu0 }
 0x204   : > { %48359 = vst [vmem:[#allocation89_spill] sm:$0xff] %v44569_v33  ;;  %41756 = vmatpush3.bf16.msra.mxu1 %v43479_v12  ;;  %v44572_v21 = vpop.f32.mrb[53].mxu0  ;;  %v42683_v33 = vld [vmem:[%s42865_s25 + $0x368] sm:$0x3] }
 0x205   : > { %48360 = vst [vmem:[#allocation90_spill] sm:$0xff] %v44572_v21  ;;  %38739 = vmatprep.subr.msk.mxu1 %vm601_vm2, %v42682_v6  ;;  %v42684_v21 = vld [vmem:[%s42865_s25 + $0x3b8] sm:$0x3]  ;;  %s34737_s25 = scalar_lea.sflag [#allocation5], %s323_s28 }
 0x208   : > { %38740 = vmatpush3.msk.msra.mxu1 %vm601_vm2, %v42682_v6 }
 0x209   : > { %38742 = vmatmul.mubr.msk.f32.vlgmr.msra.gmra.mrb[96].mxu1 %vm594_vm0, %v43931_v10  ;;  %41766 = vmatprep.subr.bf16.mxu1 %v43511_v24 }
 0x20a   : > { %v44580_v37 = vpop.f32.mrb[54].mxu1  ;;  %41768 = vmatpush3.bf16.msra.mxu1 %v43511_v24  ;;  %38767 = vmatprep.mubr.msk.f32.mxu1 %vm594_vm0, %v43899_v57 }
 0x20b   : > { %48361 = vst [vmem:[#allocation91_spill] sm:$0xff] %v44580_v37  ;;  %v44585_v12 = vpop.f32.mrb[55].mxu1  ;;  %41770 = vmatprep.subr.bf16.mxu1 %v43514_v25 }
 0x20c   : > { %48362 = vst [vmem:[#allocation92_spill] sm:$0xff] %v44585_v12  ;;  %38940 = vmatprep.mubr.msk.f32.mxu0 %vm8150_vm9, %v44585_v12 }
 0x20d   : > { %38941 = vmatmul.mubr.msk.f32.vlgmr.msra.gmra.mrb[88].mxu0 %vm8150_vm9, %v44580_v37  ;;  %v44592_v6 = vpop.f32.mrb[54].mxu0 }
 0x20e   : > { %41772 = vmatpush3.bf16.msra.mxu1 %v43514_v25  ;;  %38949 = vmatpush3.msk.msra.mxu0 %vm8157_vm8, %v44473_v20  ;;  %v44597_v24 = vpop.f32.mrb[55].mxu0 }
 0x20f   : > { %38765 = vmatprep.subr.msk.mxu1 %vm601_vm2, %v42683_v33  ;;  %38958 = vmatprep.subr.msk.mxu0 %vm8157_vm8, %v44473_v20 }
 0x212   : > { %38766 = vmatpush3.msk.msra.mxu1 %vm601_vm2, %v42683_v33 }
 0x213   : > { %38768 = vmatmul.mubr.msk.f32.vlgmr.msra.gmra.mrb[98].mxu1 %vm594_vm0, %v43931_v10  ;;  %41782 = vmatprep.subr.bf16.mxu1 %v43546_v45 }
 0x214   : > { %v44607_v25 = vpop.f32.mrb[56].mxu1  ;;  %41784 = vmatpush3.bf16.msra.mxu1 %v43546_v45  ;;  %38793 = vmatprep.mubr.msk.f32.mxu1 %vm594_vm0, %v43899_v57 }
 0x215   : > { %48363 = vst [vmem:[#allocation93_spill] sm:$0xff] %v44607_v25  ;;  %v44612_v37 = vpop.f32.mrb[57].mxu1  ;;  %41786 = vmatprep.subr.bf16.mxu1 %v43549_v39 }
 0x216   : > { %48364 = vst [vmem:[#allocation94_spill] sm:$0xff] %v44612_v37 }
 0x217   : > { %v44615_v12 = vpop.f32.mrb[56].mxu0 }
 0x218   : > { %41788 = vmatpush3.bf16.msra.mxu1 %v43549_v39  ;;  %v44618_v33 = vpop.f32.mrb[57].mxu0 }
 0x219   : > { %38791 = vmatprep.subr.msk.mxu1 %vm601_vm2, %v42684_v21 }
 0x21c   : > { %38792 = vmatpush3.msk.msra.mxu1 %vm601_vm2, %v42684_v21 }
 0x21d   : > { %38794 = vmatmul.mubr.msk.f32.vlgmr.msra.gmra.mrb[100].mxu1 %vm594_vm0, %v43931_v10  ;;  %41798 = vmatprep.subr.bf16.mxu1 %v43581_v52 }
 0x21e   : > { %v44626_v45 = vpop.f32.mrb[58].mxu1  ;;  %41800 = vmatpush3.bf16.msra.mxu1 %v43581_v52  ;;  %38819 = vmatprep.mubr.msk.f32.mxu1 %vm594_vm0, %v43899_v57 }
 0x21f   : > { %48365 = vst [vmem:[#allocation95_spill] sm:$0xff] %v44626_v45  ;;  %v44631_v39 = vpop.f32.mrb[59].mxu1  ;;  %41802 = vmatprep.subr.bf16.mxu1 %v43584_v5 }
 0x220   : > { %48366 = vst [vmem:[#allocation96_spill] sm:$0xff] %v44631_v39  ;;  %38950 = vmatprep.mubr.msk.f32.mxu0 %vm8150_vm9, %v44631_v39 }
 0x221   : > { %38951 = vmatmul.mubr.msk.f32.vlgmr.msra.gmra.mrb[90].mxu0 %vm8150_vm9, %v44626_v45  ;;  %v44638_v21 = vpop.f32.mrb[58].mxu0 }
 0x222   : > { %41804 = vmatpush3.bf16.msra.mxu1 %v43584_v5  ;;  %38959 = vmatpush3.msk.msra.mxu0 %vm8157_vm8, %v44473_v20  ;;  %v44643_v52 = vpop.f32.mrb[59].mxu0 }
 0x223   : > { %38817 = vmatprep.subr.msk.mxu1 %vm601_vm2, %v42685_v40  ;;  %38968 = vmatprep.subr.msk.mxu0 %vm8157_vm8, %v44473_v20 }
 0x226   : > { %38818 = vmatpush3.msk.msra.mxu1 %vm601_vm2, %v42685_v40 }
 0x227   : > { %38820 = vmatmul.mubr.msk.f32.vlgmr.msra.gmra.mrb[102].mxu1 %vm594_vm0, %v43931_v10  ;;  %41814 = vmatprep.subr.bf16.mxu1 %v43616_v28 }
 0x228   : > { %v44653_v5 = vpop.f32.mrb[60].mxu1  ;;  %41816 = vmatpush3.bf16.msra.mxu1 %v43616_v28  ;;  %38845 = vmatprep.mubr.msk.f32.mxu1 %vm594_vm0, %v43899_v57 }
 0x229   : > { %48367 = vst [vmem:[#allocation97_spill] sm:$0xff] %v44653_v5  ;;  %v44658_v45 = vpop.f32.mrb[61].mxu1  ;;  %41818 = vmatprep.subr.bf16.mxu1 %v43619_v30 }
 0x22a   : > { %48368 = vst [vmem:[#allocation98_spill] sm:$0xff] %v44658_v45 }
 0x22b   : > { %v44661_v39 = vpop.f32.mrb[60].mxu0 }
 0x22c   : > { %48369 = vst [vmem:[#allocation99_spill] sm:$0xff] %v44661_v39  ;;  %41820 = vmatpush3.bf16.msra.mxu1 %v43619_v30  ;;  %v44664_v40 = vpop.f32.mrb[61].mxu0 }
 0x22d   : > { %38843 = vmatprep.subr.msk.mxu1 %vm601_vm2, %v42686_v60 }
 0x230   : > { %38844 = vmatpush3.msk.msra.mxu1 %vm601_vm2, %v42686_v60 }
 0x231   : > { %38846 = vmatmul.mubr.msk.f32.vlgmr.msra.gmra.mrb[104].mxu1 %vm594_vm0, %v43931_v10  ;;  %41830 = vmatprep.subr.bf16.mxu1 %v43651_v54 }
 0x232   : > { %v44672_v28 = vpop.f32.mrb[62].mxu1  ;;  %41832 = vmatpush3.bf16.msra.mxu1 %v43651_v54  ;;  %38871 = vmatprep.mubr.msk.f32.mxu1 %vm594_vm0, %v43899_v57 }
 0x233   : > { %48370 = vst [vmem:[#allocation100_spill] sm:$0xff] %v44672_v28  ;;  %v44677_v30 = vpop.f32.mrb[63].mxu1  ;;  %41834 = vmatprep.subr.bf16.mxu1 %v43654_v58 }
 0x234   : > { %48371 = vst [vmem:[#allocation101_spill] sm:$0xff] %v44677_v30  ;;  %38960 = vmatprep.mubr.msk.f32.mxu0 %vm8150_vm9, %v44677_v30 }
 0x235   : > { %38961 = vmatmul.mubr.msk.f32.vlgmr.msra.gmra.mrb[92].mxu0 %vm8150_vm9, %v44672_v28  ;;  %v44684_v60 = vpop.f32.mrb[62].mxu0 }
 0x236   : > { %41836 = vmatpush3.bf16.msra.mxu1 %v43654_v58  ;;  %38969 = vmatpush3.msk.msra.mxu0 %vm8157_vm8, %v44473_v20  ;;  %v44689_v54 = vpop.f32.mrb[63].mxu0 }
 0x237   : > { %38869 = vmatprep.subr.msk.mxu1 %vm601_vm2, %v42687_v18  ;;  %38978 = vmatprep.subr.msk.mxu0 %vm8157_vm8, %v44473_v20 }
 0x23a   : > { %38870 = vmatpush3.msk.msra.mxu1 %vm601_vm2, %v42687_v18 }
 0x23b   : > { %38872 = vmatmul.mubr.msk.f32.vlgmr.msra.gmra.mrb[106].mxu1 %vm594_vm0, %v43931_v10  ;;  %41846 = vmatprep.subr.bf16.mxu1 %v43686_v27 }
 0x23c   : > { %v44699_v58 = vpop.f32.mrb[64].mxu1  ;;  %41848 = vmatpush3.bf16.msra.mxu1 %v43686_v27  ;;  %38897 = vmatprep.mubr.msk.f32.mxu1 %vm594_vm0, %v43899_v57 }
 0x23d   : > { %48372 = vst [vmem:[#allocation102_spill] sm:$0xff] %v44699_v58  ;;  %v44704_v28 = vpop.f32.mrb[65].mxu1  ;;  %41850 = vmatprep.subr.bf16.mxu1 %v43689_v4 }
 0x23e   : > { %48373 = vst [vmem:[#allocation103_spill] sm:$0xff] %v44704_v28 }
 0x23f   : > { %v44707_v30 = vpop.f32.mrb[64].mxu0 }
 0x240   : > { %48374 = vst [vmem:[#allocation104_spill] sm:$0xff] %v44707_v30  ;;  %41852 = vmatpush3.bf16.msra.mxu1 %v43689_v4  ;;  %v44710_v18 = vpop.f32.mrb[65].mxu0 }
 0x241   : > { %38895 = vmatprep.subr.msk.mxu1 %vm601_vm2, %v42688_v61 }
 0x244   : > { %38896 = vmatpush3.msk.msra.mxu1 %vm601_vm2, %v42688_v61 }
 0x245   : > { %38898 = vmatmul.mubr.msk.f32.vlgmr.msra.gmra.mrb[108].mxu1 %vm594_vm0, %v43931_v10  ;;  %38913 = vmatprep.subr.msk.mxu1 %vm8157_vm8, %v44473_v20  ;;  %vm42756_vm0 = vmmov 1  }
 0x246   : > { %v44719_v27 = vpop.f32.mrb[66].mxu1  ;;  %38914 = vmatpush3.msk.msra.mxu1 %vm8157_vm8, %v44473_v20  ;;  %38915 = vmatprep.mubr.msk.f32.mxu1 %vm8150_vm9, %v44480_v15  ;;  %vm47234_vm1 = vmpackc.low %vm601_vm2, %vm42756_vm0 }
 0x247   : > { %48375 = vst [vmem:[#allocation105_spill] sm:$0xff] %v44719_v27  ;;  %v44725_v4 = vpop.f32.mrb[67].mxu1  ;;  %38918 = vmatprep.subr.msk.mxu1 %vm8157_vm8, %v44473_v20 }
 0x248   : > { %48376 = vst [vmem:[#allocation106_spill] sm:$0xff] %v44725_v4  ;;  %38970 = vmatprep.mubr.msk.f32.mxu0 %vm8150_vm9, %v44725_v4 }
 0x249   : > { %38916 = vmatmul.mubr.msk.f32.vlgmr.msra.gmra.mrb[110].mxu1 %vm8150_vm9, %v44475_v11  ;;  %38971 = vmatmul.mubr.msk.f32.vlgmr.msra.gmra.mrb[94].mxu0 %vm8150_vm9, %v44719_v27  ;;  %v44735_v10 = vpop.f32.mrb[66].mxu0 }
 0x24a   : > { %38919 = vmatpush3.msk.msra.mxu1 %vm8157_vm8, %v44473_v20  ;;  %38920 = vmatprep.mubr.msk.f32.mxu1 %vm8150_vm9, %v44509_v32  ;;  %v44741_v61 = vpop.f32.mrb[67].mxu0 }
 0x24b   : > { %38923 = vmatprep.subr.msk.mxu1 %vm8157_vm8, %v44473_v20  ;;  %38979 = vmatpush3.msk.msra.mxu0 %vm8157_vm8, %v44473_v20 }
 0x24c   : > { %38988 = vmatprep.subr.msk.mxu0 %vm8157_vm8, %v44473_v20 }
 0x24d   : > { %38921 = vmatmul.mubr.msk.f32.vlgmr.msra.gmra.mrb[112].mxu1 %vm8150_vm9, %v44504_v59 }
 0x24e   : > { %38924 = vmatpush3.msk.msra.mxu1 %vm8157_vm8, %v44473_v20  ;;  %38925 = vmatprep.mubr.msk.f32.mxu1 %vm8150_vm9, %v44528_v47 }
 0x24f   : > { %38928 = vmatprep.subr.msk.mxu1 %vm8157_vm8, %v44473_v20 }
 0x250   : > { %v44757_v11 = vpop.f32.mrb[68].mxu1 }
 0x251   : > { %48377 = vst [vmem:[#allocation107_spill] sm:$0xff] %v44757_v11  ;;  %v44759_v15 = vpop.f32.mrb[69].mxu1  ;;  %38926 = vmatmul.mubr.msk.f32.vlgmr.msra.gmra.mrb[114].mxu1 %vm8150_vm9, %v44523_v41 }
 0x252   : > { %48378 = vst [vmem:[#allocation108_spill] sm:$0xff] %v44759_v15  ;;  %38929 = vmatpush3.msk.msra.mxu1 %vm8157_vm8, %v44473_v20  ;;  %38930 = vmatprep.mubr.msk.f32.mxu1 %vm8150_vm9, %v44547_v19 }
 0x253   : > { %38933 = vmatprep.subr.msk.mxu1 %vm8157_vm8, %v44473_v20  ;;  %v44769_v57 = vpop.f32.mrb[68].mxu0 }
 0x254   : > { %48379 = vst [vmem:[#allocation109_spill] sm:$0xff] %v44769_v57  ;;  %v44771_v27 = vpop.f32.mrb[69].mxu0 }
 0x255   : > { %48380 = vst [vmem:[#allocation110_spill] sm:$0xff] %v44771_v27  ;;  %38931 = vmatmul.mubr.msk.f32.vlgmr.msra.gmra.mrb[116].mxu1 %vm8150_vm9, %v44542_v49 }
 0x256   : > { %38934 = vmatpush3.msk.msra.mxu1 %vm8157_vm8, %v44473_v20  ;;  %38935 = vmatprep.mubr.msk.f32.mxu1 %vm8150_vm9, %v44566_v44 }
 0x257   : > { %38943 = vmatprep.subr.msk.mxu1 %vm8157_vm8, %v44473_v20 }
 0x259   : > { %38936 = vmatmul.mubr.msk.f32.vlgmr.msra.gmra.mrb[118].mxu1 %vm8150_vm9, %v44561_v48 }
 0x25a   : > { %v44783_v4 = vpop.f32.mrb[70].mxu1  ;;  %38944 = vmatpush3.msk.msra.mxu1 %vm8157_vm8, %v44473_v20  ;;  %38945 = vmatprep.mubr.msk.f32.mxu1 %vm8150_vm9, %v44612_v37  ;;  %v48399_v37 = vld [vmem:[#allocation39_spill] sm:$0xff] }
 0x25b   : > { %48381 = vst [vmem:[#allocation111_spill] sm:$0xff] %v44783_v4  ;;  %v44789_v49 = vpop.f32.mrb[71].mxu1  ;;  %38953 = vmatprep.subr.msk.mxu1 %vm8157_vm8, %v44473_v20 }
 0x25c   : > { %48382 = vst [vmem:[#allocation112_spill] sm:$0xff] %v44789_v49  ;;  %38980 = vmatprep.mubr.msk.f32.mxu0 %vm8150_vm9, %v44789_v49  ;;  %v44812_v49 = vld [vmem:[%s48100_s1] sm:$0x7] }
 0x25d   : > { %38946 = vmatmul.mubr.msk.f32.vlgmr.msra.gmra.mrb[120].mxu1 %vm8150_vm9, %v44607_v25  ;;  %38981 = vmatmul.mubr.msk.f32.vlgmr.msra.gmra.mrb[96].mxu0 %vm8150_vm9, %v44783_v4  ;;  %v44799_v19 = vpop.f32.mrb[70].mxu0 }
 0x25e   : > { %38954 = vmatpush3.msk.msra.mxu1 %vm8157_vm8, %v44473_v20  ;;  %38955 = vmatprep.mubr.msk.f32.mxu1 %vm8150_vm9, %v44658_v45  ;;  %v44805_v41 = vpop.f32.mrb[71].mxu0  ;;  %v48398_v45 = vld [vmem:[#allocation40_spill] sm:$0xff] }
 0x25f   : > { %38963 = vmatprep.subr.msk.mxu1 %vm8157_vm8, %v44473_v20  ;;  %38989 = vmatpush3.msk.msra.mxu0 %vm8157_vm8, %v44473_v20 }
 0x260   : > { %39008 = vmatprep.subr.msk.mxu0 %vm8157_vm8, %v44812_v49 }
 0x261   : > { %38956 = vmatmul.mubr.msk.f32.vlgmr.msra.gmra.mrb[122].mxu1 %vm8150_vm9, %v44653_v5 }
 0x262   : > { %38964 = vmatpush3.msk.msra.mxu1 %vm8157_vm8, %v44473_v20  ;;  %38965 = vmatprep.mubr.msk.f32.mxu1 %vm8150_vm9, %v44704_v28  ;;  %v48397_v28 = vld [vmem:[#allocation43_spill] sm:$0xff] }
 0x263   : > { %38973 = vmatprep.subr.msk.mxu1 %vm8157_vm8, %v44473_v20 }
 0x264   : > { %v44826_v4 = vpop.f32.mrb[72].mxu1 }
 0x265   : > { %48383 = vst [vmem:[#allocation113_spill] sm:$0xff] %v44826_v4  ;;  %v44828_v47 = vpop.f32.mrb[73].mxu1  ;;  %38966 = vmatmul.mubr.msk.f32.vlgmr.msra.gmra.mrb[124].mxu1 %vm8150_vm9, %v44699_v58  ;;  %v48396_v58 = vld [vmem:[#allocation33_spill] sm:$0xff] }
 0x266   : > { %48384 = vst [vmem:[#allocation114_spill] sm:$0xff] %v44828_v47  ;;  %38974 = vmatpush3.msk.msra.mxu1 %vm8157_vm8, %v44473_v20  ;;  %38975 = vmatprep.mubr.msk.f32.mxu1 %vm8150_vm9, %v44759_v15 }
 0x267   : > { %38983 = vmatprep.subr.msk.mxu1 %vm8157_vm8, %v44473_v20  ;;  %v44838_v59 = vpop.f32.mrb[72].mxu0 }
 0x268   : > { %48385 = vst [vmem:[#allocation115_spill] sm:$0xff] %v44838_v59  ;;  %v44840_v32 = vpop.f32.mrb[73].mxu0 }
 0x269   : > { %48386 = vst [vmem:[#allocation116_spill] sm:$0xff] %v44840_v32  ;;  %38976 = vmatmul.mubr.msk.f32.vlgmr.msra.gmra.mrb[126].mxu1 %vm8150_vm9, %v44757_v11 }
 0x26a   : > { %38984 = vmatpush3.msk.msra.mxu1 %vm8157_vm8, %v44473_v20  ;;  %38985 = vmatprep.mubr.msk.f32.mxu1 %vm8150_vm9, %v44828_v47  ;;  %v48395_v47 = vld [vmem:[#allocation34_spill] sm:$0xff] }
 0x26b   : > { %38993 = vmatprep.subr.msk.mxu1 %vm8157_vm8, %v44812_v49 }
 0x26d   : > { %38986 = vmatmul.mubr.msk.f32.vlgmr.msra.gmra.mrb[128].mxu1 %vm8150_vm9, %v44826_v4  ;;  %v48394_v4 = vld [vmem:[#allocation37_spill] sm:$0xff] }
 0x26e   : > { %v44852_v15 = vpop.f32.mrb[74].mxu1  ;;  %38994 = vmatpush3.msk.msra.mxu1 %vm8157_vm8, %v44812_v49  ;;  %38995 = vmatprep.mubr.msk.f32.mxu1 %vm8150_vm9, %v43730_v53 }
 0x26f   : > { %48387 = vst [vmem:[#allocation117_spill] sm:$0xff] %v44852_v15  ;;  %v44858_v11 = vpop.f32.mrb[75].mxu1  ;;  %38998 = vmatprep.subr.msk.mxu1 %vm8157_vm8, %v44812_v49 }
 0x270   : > { %48388 = vst [vmem:[#allocation118_spill] sm:$0xff] %v44858_v11  ;;  %38990 = vmatprep.mubr.msk.f32.mxu0 %vm8150_vm9, %v44858_v11  ;;  %v48391_v11 = vld [vmem:[#allocation38_spill] sm:$0xff] }
 0x271   : > { %38991 = vmatmul.mubr.msk.f32.vlgmr.msra.gmra.mrb[98].mxu0 %vm8150_vm9, %v44852_v15  ;;  %38996 = vmatmul.mubr.msk.f32.vlgmr.msra.gmra.mrb[110].mxu1 %vm8150_vm9, %v43725_v50  ;;  %v44868_v20 = vpop.f32.mrb[74].mxu0 }
 0x272   : > { %38999 = vmatpush3.msk.msra.mxu1 %vm8157_vm8, %v44812_v49  ;;  %39000 = vmatprep.mubr.msk.f32.mxu1 %vm8150_vm9, %v43800_v26  ;;  %v44874_v53 = vpop.f32.mrb[75].mxu0 }
 0x273   : > { %39010 = vmatprep.mubr.msk.f32.mxu0 %vm8150_vm9, %v43938_v2  ;;  %39009 = vmatpush3.msk.msra.mxu0 %vm8157_vm8, %v44812_v49 }
 0x274   : > { %39003 = vmatprep.subr.msk.mxu1 %vm8157_vm8, %v44812_v49  ;;  %39018 = vmatprep.subr.msk.mxu0 %vm8157_vm8, %v44812_v49 }
 0x275   : > { %39001 = vmatmul.mubr.msk.f32.vlgmr.msra.gmra.mrb[112].mxu1 %vm8150_vm9, %v43795_v63  ;;  %39011 = vmatmul.mubr.msk.f32.vlgmr.msra.gmra.mrb[100].mxu0 %vm8150_vm9, %v43933_v16 }
 0x276   : > { %39004 = vmatpush3.msk.msra.mxu1 %vm8157_vm8, %v44812_v49  ;;  %39005 = vmatprep.mubr.msk.f32.mxu1 %vm8150_vm9, %v43864_v35 }
 0x277   : > { %39020 = vmatprep.mubr.msk.f32.mxu0 %vm8150_vm9, %v44076_v55  ;;  %39019 = vmatpush3.msk.msra.mxu0 %vm8157_vm8, %v44812_v49 }
 0x278   : > { %v44896_v50 = vpop.f32.mrb[76].mxu1  ;;  %39013 = vmatprep.subr.msk.mxu1 %vm8157_vm8, %v44812_v49  ;;  %39028 = vmatprep.subr.msk.mxu0 %vm8157_vm8, %v44812_v49 }
 0x279   : > { %48389 = vst [vmem:[#allocation119_spill] sm:$0xff] %v44896_v50  ;;  %v44902_v15 = vpop.f32.mrb[77].mxu1  ;;  %39006 = vmatmul.mubr.msk.f32.vlgmr.msra.gmra.mrb[114].mxu1 %vm8150_vm9, %v43859_v36  ;;  %39021 = vmatmul.mubr.msk.f32.vlgmr.msra.gmra.mrb[88].mxu0 %vm8150_vm9, %v44071_v51 }
 0x27a   : > { %48390 = vst [vmem:[#allocation120_spill] sm:$0xff] %v44902_v15  ;;  %39014 = vmatpush3.msk.msra.mxu1 %vm8157_vm8, %v44812_v49  ;;  %39015 = vmatprep.mubr.msk.f32.mxu1 %vm8150_vm9, %v44008_v13 }
 0x27b   : > { %39030 = vmatprep.mubr.msk.f32.mxu0 %vm8150_vm9, %v48391_v11  ;;  %39029 = vmatpush3.msk.msra.mxu0 %vm8157_vm8, %v44812_v49  ;;  %v44916_v50 = vpop.f32.mrb[76].mxu0 }
 0x27c   : > { %48392 = vst [vmem:[#allocation121_spill] sm:$0xff] %v44916_v50  ;;  %39023 = vmatprep.subr.msk.mxu1 %vm8157_vm8, %v44812_v49  ;;  %39038 = vmatprep.subr.msk.mxu0 %vm8157_vm8, %v44812_v49  ;;  %v44922_v15 = vpop.f32.mrb[77].mxu0 }
 0x27d   : > { %48393 = vst [vmem:[#allocation122_spill] sm:$0xff] %v44922_v15  ;;  %39016 = vmatmul.mubr.msk.f32.vlgmr.msra.gmra.mrb[118].mxu1 %vm8150_vm9, %v44003_v29  ;;  %39031 = vmatmul.mubr.msk.f32.vlgmr.msra.gmra.mrb[90].mxu0 %vm8150_vm9, %v48394_v4  ;;  %v48403_v4 = vld [vmem:[#allocation60_spill] sm:$0xff] }
 0x27e   : > { %39024 = vmatpush3.msk.msra.mxu1 %vm8157_vm8, %v44812_v49  ;;  %39025 = vmatprep.mubr.msk.f32.mxu1 %vm8150_vm9, %v48395_v47 }
 0x27f   : > { %39040 = vmatprep.mubr.msk.f32.mxu0 %vm8150_vm9, %v43847_v43  ;;  %39039 = vmatpush3.msk.msra.mxu0 %vm8157_vm8, %v44812_v49  ;;  %v48402_v43 = vld [vmem:[#allocation50_spill] sm:$0xff] }
 0x280   : > { %39033 = vmatprep.subr.msk.mxu1 %vm8157_vm8, %v44812_v49  ;;  %39048 = vmatprep.subr.msk.mxu0 %vm8157_vm8, %v44812_v49 }
 0x281   : > { %39026 = vmatmul.mubr.msk.f32.vlgmr.msra.gmra.mrb[120].mxu1 %vm8150_vm9, %v48396_v58  ;;  %39041 = vmatmul.mubr.msk.f32.vlgmr.msra.gmra.mrb[92].mxu0 %vm8150_vm9, %v48397_v28  ;;  %v48401_v28 = vld [vmem:[#allocation61_spill] sm:$0xff] }
 0x282   : > { %v44944_v5 = vpop.f32.mrb[78].mxu1  ;;  %39034 = vmatpush3.msk.msra.mxu1 %vm8157_vm8, %v44812_v49  ;;  %39035 = vmatprep.mubr.msk.f32.mxu1 %vm8150_vm9, %v48398_v45 }
 0x283   : > { %39050 = vmatprep.mubr.msk.f32.mxu0 %vm8150_vm9, %v43917_v1  ;;  %v44952_v25 = vpop.f32.mrb[79].mxu1  ;;  %39049 = vmatpush3.msk.msra.mxu0 %vm8157_vm8, %v44812_v49 }
 0x284   : > { %39043 = vmatprep.subr.msk.mxu1 %vm8157_vm8, %v44812_v49  ;;  %39058 = vmatprep.subr.msk.mxu0 %vm8157_vm8, %v44812_v49 }
 0x285   : > { %39036 = vmatmul.mubr.msk.f32.vlgmr.msra.gmra.mrb[122].mxu1 %vm8150_vm9, %v48399_v37  ;;  %39051 = vmatmul.mubr.msk.f32.vlgmr.msra.gmra.mrb[94].mxu0 %vm8150_vm9, %v43913_v3  ;;  %v44964_v48 = vpop.f32.mrb[78].mxu0  ;;  %v44987_v3 = vld [vmem:[%s48100_s1 + $0x8] sm:$0x7] }
 0x286   : > { %39044 = vmatpush3.msk.msra.mxu1 %vm8157_vm8, %v44812_v49  ;;  %39045 = vmatprep.mubr.msk.f32.mxu1 %vm8150_vm9, %v43880_v22  ;;  %v44970_v1 = vpop.f32.mrb[79].mxu0 }
 0x287   : > { %39060 = vmatprep.mubr.msk.f32.mxu0 %vm8150_vm9, %v43988_v17  ;;  %39059 = vmatpush3.msk.msra.mxu0 %vm8157_vm8, %v44812_v49  ;;  %v48400_v17 = vld [vmem:[#allocation51_spill] sm:$0xff] }
 0x288   : > { %39053 = vmatprep.subr.msk.mxu1 %vm8157_vm8, %v44812_v49  ;;  %39068 = vmatprep.subr.msk.mxu0 %vm8157_vm8, %v44812_v49 }
 0x289   : > { %39046 = vmatmul.mubr.msk.f32.vlgmr.msra.gmra.mrb[124].mxu1 %vm8150_vm9, %v43876_v9  ;;  %39061 = vmatmul.mubr.msk.f32.vlgmr.msra.gmra.mrb[96].mxu0 %vm8150_vm9, %v43984_v38 }
 0x28a   : > { %39054 = vmatpush3.msk.msra.mxu1 %vm8157_vm8, %v44812_v49  ;;  %39055 = vmatprep.mubr.msk.f32.mxu1 %vm8150_vm9, %v48400_v17 }
 0x28b   : > { %39070 = vmatprep.mubr.msk.f32.mxu0 %vm8150_vm9, %v48401_v28  ;;  %39069 = vmatpush3.msk.msra.mxu0 %vm8157_vm8, %v44812_v49  ;;  %v48404_v28 = vld [vmem:[#allocation57_spill] sm:$0xff] }
 0x28c   : > { %v44997_v44 = vpop.f32.mrb[80].mxu1  ;;  %39063 = vmatprep.subr.msk.mxu1 %vm8157_vm8, %v44812_v49  ;;  %39088 = vmatprep.subr.msk.mxu0 %vm8157_vm8, %v44987_v3 }
 0x28d   : > { %v45003_v38 = vpop.f32.mrb[81].mxu1  ;;  %39056 = vmatmul.mubr.msk.f32.vlgmr.msra.gmra.mrb[126].mxu1 %vm8150_vm9, %v48402_v43  ;;  %39071 = vmatmul.mubr.msk.f32.vlgmr.msra.gmra.mrb[98].mxu0 %vm8150_vm9, %v48403_v4 }
 0x28e   : > { %39064 = vmatpush3.msk.msra.mxu1 %vm8157_vm8, %v44812_v49  ;;  %39065 = vmatprep.mubr.msk.f32.mxu1 %vm8150_vm9, %v48404_v28  ;;  %v48407_v49 = vld [vmem:[#allocation56_spill] sm:$0xff] }
 0x28f   : > { %39090 = vmatprep.mubr.msk.f32.mxu0 %vm8150_vm9, %v44664_v40  ;;  %39089 = vmatpush3.msk.msra.mxu0 %vm8157_vm8, %v44987_v3  ;;  %v45017_v11 = vpop.f32.mrb[80].mxu0 }
 0x290   : > { %48405 = vst [vmem:[#allocation34_spill] sm:$0xff] %v45017_v11  ;;  %39073 = vmatprep.subr.msk.mxu1 %vm8157_vm8, %v44987_v3  ;;  %39098 = vmatprep.subr.msk.mxu0 %vm8157_vm8, %v44987_v3  ;;  %v45023_v4 = vpop.f32.mrb[81].mxu0 }
 0x291   : > { %48406 = vst [vmem:[#allocation33_spill] sm:$0xff] %v45023_v4  ;;  %39066 = vmatmul.mubr.msk.f32.vlgmr.msra.gmra.mrb[128].mxu1 %vm8150_vm9, %v48407_v49  ;;  %39091 = vmatmul.mubr.msk.f32.vlgmr.msra.gmra.mrb[100].mxu0 %vm8150_vm9, %v44661_v39 }
 0x292   : > { %39074 = vmatpush3.msk.msra.mxu1 %vm8157_vm8, %v44987_v3  ;;  %39075 = vmatprep.mubr.msk.f32.mxu1 %vm8150_vm9, %v44597_v24 }
 0x293   : > { %39100 = vmatprep.mubr.msk.f32.mxu0 %vm8150_vm9, %v44710_v18  ;;  %39099 = vmatpush3.msk.msra.mxu0 %vm8157_vm8, %v44987_v3 }
 0x294   : > { %39078 = vmatprep.subr.msk.mxu1 %vm8157_vm8, %v44987_v3  ;;  %39108 = vmatprep.subr.msk.mxu0 %vm8157_vm8, %v44987_v3 }
 0x295   : > { %39076 = vmatmul.mubr.msk.f32.vlgmr.msra.gmra.mrb[110].mxu1 %vm8150_vm9, %v44592_v6  ;;  %39101 = vmatmul.mubr.msk.f32.vlgmr.msra.gmra.mrb[88].mxu0 %vm8150_vm9, %v44707_v30  ;;  %v48446_v30 = vld [vmem:[#allocation90_spill] sm:$0xff] }
 0x296   : > { %v45045_v39 = vpop.f32.mrb[82].mxu1  ;;  %39079 = vmatpush3.msk.msra.mxu1 %vm8157_vm8, %v44987_v3  ;;  %39080 = vmatprep.mubr.msk.f32.mxu1 %vm8150_vm9, %v44618_v33 }
 0x297   : > { %39110 = vmatprep.mubr.msk.f32.mxu0 %vm8150_vm9, %v44771_v27  ;;  %v45053_v24 = vpop.f32.mrb[83].mxu1  ;;  %39109 = vmatpush3.msk.msra.mxu0 %vm8157_vm8, %v44987_v3 }
 0x298   : > { %39083 = vmatprep.subr.msk.mxu1 %vm8157_vm8, %v44987_v3  ;;  %39118 = vmatprep.subr.msk.mxu0 %vm8157_vm8, %v44987_v3 }
 0x299   : > { %39081 = vmatmul.mubr.msk.f32.vlgmr.msra.gmra.mrb[112].mxu1 %vm8150_vm9, %v44615_v12  ;;  %39111 = vmatmul.mubr.msk.f32.vlgmr.msra.gmra.mrb[90].mxu0 %vm8150_vm9, %v44769_v57  ;;  %v45065_v6 = vpop.f32.mrb[82].mxu0 }
 0x29a   : > { %39084 = vmatpush3.msk.msra.mxu1 %vm8157_vm8, %v44987_v3  ;;  %39085 = vmatprep.mubr.msk.f32.mxu1 %vm8150_vm9, %v44643_v52  ;;  %v45071_v27 = vpop.f32.mrb[83].mxu0 }
 0x29b   : > { %39120 = vmatprep.mubr.msk.f32.mxu0 %vm8150_vm9, %v44840_v32  ;;  %39119 = vmatpush3.msk.msra.mxu0 %vm8157_vm8, %v44987_v3 }
 0x29c   : > { %39093 = vmatprep.subr.msk.mxu1 %vm8157_vm8, %v44987_v3  ;;  %39128 = vmatprep.subr.msk.mxu0 %vm8157_vm8, %v44987_v3 }
 0x29d   : > { %39086 = vmatmul.mubr.msk.f32.vlgmr.msra.gmra.mrb[114].mxu1 %vm8150_vm9, %v44638_v21  ;;  %39121 = vmatmul.mubr.msk.f32.vlgmr.msra.gmra.mrb[92].mxu0 %vm8150_vm9, %v44838_v59 }
 0x29e   : > { %39094 = vmatpush3.msk.msra.mxu1 %vm8157_vm8, %v44987_v3  ;;  %39095 = vmatprep.mubr.msk.f32.mxu1 %vm8150_vm9, %v44689_v54 }
 0x29f   : > { %39130 = vmatprep.mubr.msk.f32.mxu0 %vm8150_vm9, %v44922_v15  ;;  %39129 = vmatpush3.msk.msra.mxu0 %vm8157_vm8, %v44987_v3 }
 0x2a0   : > { %v45093_v32 = vpop.f32.mrb[84].mxu1  ;;  %39103 = vmatprep.subr.msk.mxu1 %vm8157_vm8, %v44987_v3  ;;  %39138 = vmatprep.subr.msk.mxu0 %vm8157_vm8, %v44987_v3 }
 0x2a1   : > { %v45099_v59 = vpop.f32.mrb[85].mxu1  ;;  %39096 = vmatmul.mubr.msk.f32.vlgmr.msra.gmra.mrb[118].mxu1 %vm8150_vm9, %v44684_v60  ;;  %39131 = vmatmul.mubr.msk.f32.vlgmr.msra.gmra.mrb[94].mxu0 %vm8150_vm9, %v44916_v50 }
 0x2a2   : > { %39104 = vmatpush3.msk.msra.mxu1 %vm8157_vm8, %v44987_v3  ;;  %39105 = vmatprep.mubr.msk.f32.mxu1 %vm8150_vm9, %v44741_v61 }
 0x2a3   : > { %39139 = vmatpush3.msk.msra.mxu0 %vm8157_vm8, %v44987_v3  ;;  %39140 = vmatprep.mubr.msk.f32.mxu0 %vm8150_vm9, %v45023_v4  ;;  %v45113_v15 = vpop.f32.mrb[84].mxu0  ;;  %v45128_v4 = vld [vmem:[%s48100_s1 + $0xc] sm:$0x7] }
 0x2a4   : > { %48408 = vst [vmem:[#allocation40_spill] sm:$0xff] %v45113_v15  ;;  %39113 = vmatprep.subr.msk.mxu1 %vm8157_vm8, %v44987_v3  ;;  %v45117_v57 = vpop.f32.mrb[85].mxu0  ;;  %39148 = vmatprep.subr.msk.mxu0 %vm8157_vm8, %v44987_v3 }
 0x2a5   : > { %48409 = vst [vmem:[#allocation39_spill] sm:$0xff] %v45117_v57  ;;  %39106 = vmatmul.mubr.msk.f32.vlgmr.msra.gmra.mrb[120].mxu1 %vm8150_vm9, %v44735_v10  ;;  %39141 = vmatmul.mubr.msk.f32.vlgmr.msra.gmra.mrb[96].mxu0 %vm8150_vm9, %v45017_v11 }
 0x2a6   : > { %39114 = vmatpush3.msk.msra.mxu1 %vm8157_vm8, %v44987_v3  ;;  %39115 = vmatprep.mubr.msk.f32.mxu1 %vm8150_vm9, %v44805_v41 }
 0x2a7   : > { %39149 = vmatpush3.msk.msra.mxu0 %vm8157_vm8, %v44987_v3  ;;  %39150 = vmatprep.mubr.msk.f32.mxu0 %vm8150_vm9, %v45117_v57  ;;  %v48410_v57 = vld [vmem:[#allocation53_spill] sm:$0xff] }
 0x2a8   : > { %39123 = vmatprep.subr.msk.mxu1 %vm8157_vm8, %v44987_v3  ;;  %39168 = vmatprep.subr.msk.mxu0 %vm8157_vm8, %v45128_v4 }
 0x2a9   : > { %39116 = vmatmul.mubr.msk.f32.vlgmr.msra.gmra.mrb[122].mxu1 %vm8150_vm9, %v44799_v19  ;;  %39151 = vmatmul.mubr.msk.f32.vlgmr.msra.gmra.mrb[98].mxu0 %vm8150_vm9, %v45113_v15  ;;  %v48411_v15 = vld [vmem:[#allocation52_spill] sm:$0xff] }
 0x2aa   : > { %v45146_v11 = vpop.f32.mrb[86].mxu1  ;;  %39124 = vmatpush3.msk.msra.mxu1 %vm8157_vm8, %v44987_v3  ;;  %39125 = vmatprep.mubr.msk.f32.mxu1 %vm8150_vm9, %v44874_v53 }
 0x2ab   : > { %39170 = vmatprep.mubr.msk.f32.mxu0 %vm8150_vm9, %v48410_v57  ;;  %v45154_v50 = vpop.f32.mrb[87].mxu1  ;;  %39169 = vmatpush3.msk.msra.mxu0 %vm8157_vm8, %v45128_v4 }
 0x2ac   : > { %39133 = vmatprep.subr.msk.mxu1 %vm8157_vm8, %v44987_v3  ;;  %39178 = vmatprep.subr.msk.mxu0 %vm8157_vm8, %v45128_v4 }
 0x2ad   : > { %39126 = vmatmul.mubr.msk.f32.vlgmr.msra.gmra.mrb[124].mxu1 %vm8150_vm9, %v44868_v20  ;;  %39171 = vmatmul.mubr.msk.f32.vlgmr.msra.gmra.mrb[100].mxu0 %vm8150_vm9, %v48411_v15  ;;  %v48418_v15 = vld [vmem:[#allocation59_spill] sm:$0xff] }
 0x2ae   : > { %39134 = vmatpush3.msk.msra.mxu1 %vm8157_vm8, %v44987_v3  ;;  %39135 = vmatprep.mubr.msk.f32.mxu1 %vm8150_vm9, %v44970_v1 }
 0x2af   : > { %39180 = vmatprep.mubr.msk.f32.mxu0 %vm8150_vm9, %v44110_v46  ;;  %39179 = vmatpush3.msk.msra.mxu0 %vm8157_vm8, %v45128_v4  ;;  %v48413_v46 = vld [vmem:[#allocation35_spill] sm:$0xff] }
 0x2b0   : > { %39143 = vmatprep.subr.msk.mxu1 %vm8157_vm8, %v44987_v3  ;;  %39188 = vmatprep.subr.msk.mxu0 %vm8157_vm8, %v45128_v4 }
 0x2b1   : > { %39136 = vmatmul.mubr.msk.f32.vlgmr.msra.gmra.mrb[126].mxu1 %vm8150_vm9, %v44964_v48  ;;  %39181 = vmatmul.mubr.msk.f32.vlgmr.msra.gmra.mrb[88].mxu0 %vm8150_vm9, %v44105_v23 }
 0x2b2   : > { %39144 = vmatpush3.msk.msra.mxu1 %vm8157_vm8, %v44987_v3  ;;  %39190 = vmatprep.mubr.msk.f32.mxu0 %vm8150_vm9, %v44180_v34  ;;  %v48412_v3 = vld [vmem:[#allocation36_spill] sm:$0xff]  ;;  %v48415_v34 = vld [vmem:[#allocation41_spill] sm:$0xff] }
 0x2b3   : > { %39145 = vmatprep.mubr.msk.f32.mxu1 %vm8150_vm9, %v45071_v27  ;;  %39189 = vmatpush3.msk.msra.mxu0 %vm8157_vm8, %v45128_v4 }
 0x2b4   : > { %v45190_v57 = vpop.f32.mrb[88].mxu1  ;;  %39153 = vmatprep.subr.msk.mxu1 %vm8157_vm8, %v45128_v4  ;;  %39198 = vmatprep.subr.msk.mxu0 %vm8157_vm8, %v45128_v4 }
 0x2b5   : > { %v45196_v23 = vpop.f32.mrb[89].mxu1  ;;  %39146 = vmatmul.mubr.msk.f32.vlgmr.msra.gmra.mrb[128].mxu1 %vm8150_vm9, %v45065_v6  ;;  %39191 = vmatmul.mubr.msk.f32.vlgmr.msra.gmra.mrb[90].mxu0 %vm8150_vm9, %v44175_v31  ;;  %v48414_v31 = vld [vmem:[#allocation42_spill] sm:$0xff] }
 0x2b6   : > { %39154 = vmatpush3.msk.msra.mxu1 %vm8157_vm8, %v45128_v4  ;;  %39155 = vmatprep.mubr.msk.f32.mxu1 %vm8150_vm9, %v48412_v3  ;;  %v48420_v3 = vld [vmem:[#allocation18_spill] sm:$0xff] }
 0x2b7   : > { %39200 = vmatprep.mubr.msk.f32.mxu0 %vm8150_vm9, %v44250_v62  ;;  %39199 = vmatpush3.msk.msra.mxu0 %vm8157_vm8, %v45128_v4  ;;  %v48416_v62 = vld [vmem:[#allocation47_spill] sm:$0xff] }
 0x2b8   : > { %39158 = vmatprep.subr.msk.mxu1 %vm8157_vm8, %v45128_v4  ;;  %39208 = vmatprep.subr.msk.mxu0 %vm8157_vm8, %v45128_v4 }
 0x2b9   : > { %39156 = vmatmul.mubr.msk.f32.vlgmr.msra.gmra.mrb[110].mxu1 %vm8150_vm9, %v48413_v46  ;;  %39201 = vmatmul.mubr.msk.f32.vlgmr.msra.gmra.mrb[92].mxu0 %vm8150_vm9, %v44245_v8  ;;  %v48421_v46 = vld [vmem:[#allocation67_spill] sm:$0xff] }
 0x2ba   : > { %39159 = vmatpush3.msk.msra.mxu1 %vm8157_vm8, %v45128_v4  ;;  %39160 = vmatprep.mubr.msk.f32.mxu1 %vm8150_vm9, %v48414_v31 }
 0x2bb   : > { %39210 = vmatprep.mubr.msk.f32.mxu0 %vm8150_vm9, %v44320_v42  ;;  %39209 = vmatpush3.msk.msra.mxu0 %vm8157_vm8, %v45128_v4 }
 0x2bc   : > { %39163 = vmatprep.subr.msk.mxu1 %vm8157_vm8, %v45128_v4  ;;  %39218 = vmatprep.subr.msk.mxu0 %vm8157_vm8, %v45128_v4 }
 0x2bd   : > { %39161 = vmatmul.mubr.msk.f32.vlgmr.msra.gmra.mrb[112].mxu1 %vm8150_vm9, %v48415_v34  ;;  %39211 = vmatmul.mubr.msk.f32.vlgmr.msra.gmra.mrb[94].mxu0 %vm8150_vm9, %v44315_v56  ;;  %v48417_v56 = vld [vmem:[#allocation45_spill] sm:$0xff] }
 0x2be   : > { %v45234_v8 = vpop.f32.mrb[90].mxu1  ;;  %39164 = vmatpush3.msk.msra.mxu1 %vm8157_vm8, %v45128_v4  ;;  %39165 = vmatprep.mubr.msk.f32.mxu1 %vm8150_vm9, %v48416_v62  ;;  %v48423_v62 = vld [vmem:[#allocation66_spill] sm:$0xff] }
 0x2bf   : > { %39220 = vmatprep.mubr.msk.f32.mxu0 %vm8150_vm9, %v44382_v0  ;;  %v45242_v42 = vpop.f32.mrb[91].mxu1  ;;  %39219 = vmatpush3.msk.msra.mxu0 %vm8157_vm8, %v45128_v4  ;;  %v45257_v0 = vld [vmem:[%s48100_s1 + $0x10] sm:$0x7] }
 0x2c0   : > { %39173 = vmatprep.subr.msk.mxu1 %vm8157_vm8, %v45128_v4  ;;  %39228 = vmatprep.subr.msk.mxu0 %vm8157_vm8, %v45128_v4 }
 0x2c1   : > { %39166 = vmatmul.mubr.msk.f32.vlgmr.msra.gmra.mrb[114].mxu1 %vm8150_vm9, %v48417_v56  ;;  %39221 = vmatmul.mubr.msk.f32.vlgmr.msra.gmra.mrb[96].mxu0 %vm8150_vm9, %v44377_v14  ;;  %v48419_v14 = vld [vmem:[#allocation58_spill] sm:$0xff]  ;;  %v48424_v56 = vld [vmem:[#allocation17_spill] sm:$0xff] }
 0x2c2   : > { %39174 = vmatpush3.msk.msra.mxu1 %vm8157_vm8, %v45128_v4  ;;  %39175 = vmatprep.mubr.msk.f32.mxu1 %vm8150_vm9, %v48418_v15  ;;  %v48425_v15 = vld [vmem:[#allocation72_spill] sm:$0xff] }
 0x2c3   : > { %39230 = vmatprep.mubr.msk.f32.mxu0 %vm8150_vm9, %v44444_v7  ;;  %39229 = vmatpush3.msk.msra.mxu0 %vm8157_vm8, %v45128_v4  ;;  %v48422_v7 = vld [vmem:[#allocation73_spill] sm:$0xff] }
 0x2c4   : > { %39183 = vmatprep.subr.msk.mxu1 %vm8157_vm8, %v45128_v4  ;;  %39248 = vmatprep.subr.msk.mxu0 %vm8157_vm8, %v45257_v0 }
 0x2c5   : > { %39176 = vmatmul.mubr.msk.f32.vlgmr.msra.gmra.mrb[118].mxu1 %vm8150_vm9, %v48419_v14  ;;  %39231 = vmatmul.mubr.msk.f32.vlgmr.msra.gmra.mrb[98].mxu0 %vm8150_vm9, %v48420_v3  ;;  %v48426_v14 = vld [vmem:[#allocation75_spill] sm:$0xff]  ;;  %v48427_v3 = vld [vmem:[#allocation16_spill] sm:$0xff] }
 0x2c6   : > { %39184 = vmatpush3.msk.msra.mxu1 %vm8157_vm8, %v45128_v4  ;;  %39185 = vmatprep.mubr.msk.f32.mxu1 %vm8150_vm9, %v48421_v46  ;;  %v48428_v46 = vld [vmem:[#allocation23_spill] sm:$0xff] }
 0x2c7   : > { %39250 = vmatprep.mubr.msk.f32.mxu0 %vm8150_vm9, %v48422_v7  ;;  %39249 = vmatpush3.msk.msra.mxu0 %vm8157_vm8, %v45257_v0  ;;  %v48429_v7 = vld [vmem:[#allocation74_spill] sm:$0xff] }
 0x2c8   : > { %v45283_v31 = vpop.f32.mrb[92].mxu1  ;;  %39193 = vmatprep.subr.msk.mxu1 %vm8157_vm8, %v45128_v4  ;;  %39258 = vmatprep.subr.msk.mxu0 %vm8157_vm8, %v45257_v0 }
 0x2c9   : > { %v45289_v34 = vpop.f32.mrb[93].mxu1  ;;  %39186 = vmatmul.mubr.msk.f32.vlgmr.msra.gmra.mrb[120].mxu1 %vm8150_vm9, %v48423_v62  ;;  %39251 = vmatmul.mubr.msk.f32.vlgmr.msra.gmra.mrb[100].mxu0 %vm8150_vm9, %v48424_v56  ;;  %v48430_v62 = vld [vmem:[#allocation77_spill] sm:$0xff]  ;;  %v48431_v56 = vld [vmem:[#allocation22_spill] sm:$0xff] }
 0x2ca   : > { %39194 = vmatpush3.msk.msra.mxu1 %vm8157_vm8, %v45128_v4  ;;  %39195 = vmatprep.mubr.msk.f32.mxu1 %vm8150_vm9, %v48425_v15  ;;  %v48432_v15 = vld [vmem:[#allocation11_spill] sm:$0xff] }
 0x2cb   : > { %39260 = vmatprep.mubr.msk.f32.mxu0 %vm8150_vm9, %v48426_v14  ;;  %39259 = vmatpush3.msk.msra.mxu0 %vm8157_vm8, %v45257_v0 }
 0x2cc   : > { %39203 = vmatprep.subr.msk.mxu1 %vm8157_vm8, %v45128_v4  ;;  %39268 = vmatprep.subr.msk.mxu0 %vm8157_vm8, %v45257_v0 }
 0x2cd   : > { %39196 = vmatmul.mubr.msk.f32.vlgmr.msra.gmra.mrb[122].mxu1 %vm8150_vm9, %v48427_v3  ;;  %39261 = vmatmul.mubr.msk.f32.vlgmr.msra.gmra.mrb[88].mxu0 %vm8150_vm9, %v48428_v46  ;;  %v48433_v3 = vld [vmem:[#allocation76_spill] sm:$0xff]  ;;  %v48434_v46 = vld [vmem:[#allocation79_spill] sm:$0xff] }
 0x2ce   : > { %39204 = vmatpush3.msk.msra.mxu1 %vm8157_vm8, %v45128_v4  ;;  %39205 = vmatprep.mubr.msk.f32.mxu1 %vm8150_vm9, %v48429_v7 }
 0x2cf   : > { %39270 = vmatprep.mubr.msk.f32.mxu0 %vm8150_vm9, %v48430_v62  ;;  %39269 = vmatpush3.msk.msra.mxu0 %vm8157_vm8, %v45257_v0  ;;  %v48435_v62 = vld [vmem:[#allocation10_spill] sm:$0xff] }
 0x2d0   : > { %39213 = vmatprep.subr.msk.mxu1 %vm8157_vm8, %v45128_v4  ;;  %39278 = vmatprep.subr.msk.mxu0 %vm8157_vm8, %v45257_v0 }
 0x2d1   : > { %39206 = vmatmul.mubr.msk.f32.vlgmr.msra.gmra.mrb[124].mxu1 %vm8150_vm9, %v48431_v56  ;;  %39271 = vmatmul.mubr.msk.f32.vlgmr.msra.gmra.mrb[90].mxu0 %vm8150_vm9, %v48432_v15  ;;  %v48436_v56 = vld [vmem:[#allocation15_spill] sm:$0xff]  ;;  %v48437_v15 = vld [vmem:[#allocation78_spill] sm:$0xff] }
 0x2d2   : > { %v45327_v14 = vpop.f32.mrb[94].mxu1  ;;  %39214 = vmatpush3.msk.msra.mxu1 %vm8157_vm8, %v45128_v4  ;;  %39215 = vmatprep.mubr.msk.f32.mxu1 %vm8150_vm9, %v48433_v3  ;;  %v48438_v3 = vld [vmem:[#allocation25_spill] sm:$0xff] }
 0x2d3   : > { %39280 = vmatprep.mubr.msk.f32.mxu0 %vm8150_vm9, %v48434_v46  ;;  %v45335_v7 = vpop.f32.mrb[95].mxu1  ;;  %39279 = vmatpush3.msk.msra.mxu0 %vm8157_vm8, %v45257_v0  ;;  %v48439_v46 = vld [vmem:[#allocation14_spill] sm:$0xff] }
 0x2d4   : > { %39223 = vmatprep.subr.msk.mxu1 %vm8157_vm8, %v45128_v4  ;;  %39288 = vmatprep.subr.msk.mxu0 %vm8157_vm8, %v45257_v0 }
 0x2d5   : > { %39216 = vmatmul.mubr.msk.f32.vlgmr.msra.gmra.mrb[126].mxu1 %vm8150_vm9, %v48435_v62  ;;  %39281 = vmatmul.mubr.msk.f32.vlgmr.msra.gmra.mrb[92].mxu0 %vm8150_vm9, %v48436_v56  ;;  %v48440_v62 = vld [vmem:[#allocation24_spill] sm:$0xff] }
 0x2d6   : > { %39224 = vmatpush3.msk.msra.mxu1 %vm8157_vm8, %v45128_v4  ;;  %39225 = vmatprep.mubr.msk.f32.mxu1 %vm8150_vm9, %v48437_v15  ;;  %v48441_v4 = vld [vmem:[#allocation65_spill] sm:$0xff]  ;;  %v48442_v56 = vld [vmem:[#allocation84_spill] sm:$0xff] }
 0x2d7   : > { %39290 = vmatprep.mubr.msk.f32.mxu0 %vm8150_vm9, %v48438_v3  ;;  %39289 = vmatpush3.msk.msra.mxu0 %vm8157_vm8, %v45257_v0 }
 0x2d8   : > { %39233 = vmatprep.subr.msk.mxu1 %vm8157_vm8, %v45257_v0  ;;  %39298 = vmatprep.subr.msk.mxu0 %vm8157_vm8, %v45257_v0 }
 0x2d9   : > { %39226 = vmatmul.mubr.msk.f32.vlgmr.msra.gmra.mrb[128].mxu1 %vm8150_vm9, %v48439_v46  ;;  %39291 = vmatmul.mubr.msk.f32.vlgmr.msra.gmra.mrb[94].mxu0 %vm8150_vm9, %v48440_v62  ;;  %v48443_v46 = vld [vmem:[#allocation64_spill] sm:$0xff]  ;;  %v48444_v62 = vld [vmem:[#allocation30_spill] sm:$0xff] }
 0x2da   : > { %39234 = vmatpush3.msk.msra.mxu1 %vm8157_vm8, %v45257_v0  ;;  %39235 = vmatprep.mubr.msk.f32.mxu1 %vm8150_vm9, %v48441_v4  ;;  %v45382_v4 = vld [vmem:[%s48100_s1 + $0x14] sm:$0x7] }
 0x2db   : > { %39300 = vmatprep.mubr.msk.f32.mxu0 %vm8150_vm9, %v48442_v56  ;;  %39299 = vmatpush3.msk.msra.mxu0 %vm8157_vm8, %v45257_v0  ;;  %v48445_v56 = vld [vmem:[#allocation69_spill] sm:$0xff] }
 0x2dc   : > { %v38743_v15 = vpop.f32.mrb[96].mxu1  ;;  %39238 = vmatprep.subr.msk.mxu1 %vm8157_vm8, %v45257_v0  ;;  %39308 = vmatprep.subr.msk.mxu0 %vm8157_vm8, %v45257_v0 }
 0x2dd   : > { %v7166_v3 = vpop.f32.mrb[97].mxu1  ;;  %39236 = vmatmul.mubr.msk.f32.vlgmr.msra.gmra.mrb[110].mxu1 %vm8150_vm9, %v48443_v46  ;;  %39301 = vmatmul.mubr.msk.f32.vlgmr.msra.gmra.mrb[96].mxu0 %vm8150_vm9, %v48444_v62  ;;  %v48447_v46 = vld [vmem:[#allocation68_spill] sm:$0xff]  ;;  %v48448_v62 = vld [vmem:[#allocation89_spill] sm:$0xff] }
 0x2de   : > { %39239 = vmatpush3.msk.msra.mxu1 %vm8157_vm8, %v45257_v0  ;;  %39240 = vmatprep.mubr.msk.f32.mxu1 %vm8150_vm9, %v48445_v56  ;;  %v48449_v56 = vld [vmem:[#allocation71_spill] sm:$0xff] }
 0x2df   : > { %39310 = vmatprep.mubr.msk.f32.mxu0 %vm8150_vm9, %v48446_v30  ;;  %39309 = vmatpush3.msk.msra.mxu0 %vm8157_vm8, %v45257_v0  ;;  %v48450_v30 = vld [vmem:[#allocation70_spill] sm:$0xff] }
 0x2e0   : > { %39243 = vmatprep.subr.msk.mxu1 %vm8157_vm8, %v45257_v0  ;;  %39328 = vmatprep.subr.msk.mxu0 %vm8157_vm8, %v45382_v4 }
 0x2e1   : > { %39241 = vmatmul.mubr.msk.f32.vlgmr.msra.gmra.mrb[112].mxu1 %vm8150_vm9, %v48447_v46  ;;  %39311 = vmatmul.mubr.msk.f32.vlgmr.msra.gmra.mrb[98].mxu0 %vm8150_vm9, %v48448_v62 }
 0x2e2   : > { %39244 = vmatpush3.msk.msra.mxu1 %vm8157_vm8, %v45257_v0  ;;  %39245 = vmatprep.mubr.msk.f32.mxu1 %vm8150_vm9, %v48449_v56  ;;  %v45448_v56 = vpop.f32.mrb[86].mxu0 }
 0x2e3   : > { %39330 = vmatprep.mubr.msk.f32.mxu0 %vm8150_vm9, %v45099_v59  ;;  %39329 = vmatpush3.msk.msra.mxu0 %vm8157_vm8, %v45382_v4  ;;  %v48451_v59 = vld [vmem:[#allocation21_spill] sm:$0xff] }
 0x2e4   : > { %39253 = vmatprep.subr.msk.mxu1 %vm8157_vm8, %v45257_v0  ;;  %39338 = vmatprep.subr.msk.mxu0 %vm8157_vm8, %v45382_v4 }
 0x2e5   : > { %39246 = vmatmul.mubr.msk.f32.vlgmr.msra.gmra.mrb[114].mxu1 %vm8150_vm9, %v48450_v30  ;;  %39331 = vmatmul.mubr.msk.f32.vlgmr.msra.gmra.mrb[100].mxu0 %vm8150_vm9, %v45093_v32  ;;  %v48452_v32 = vld [vmem:[#allocation20_spill] sm:$0xff]  ;;  %v45454_v30 = vpop.f32.mrb[87].mxu0 }
 0x2e6   : > { %v45416_v46 = vpop.f32.mrb[98].mxu1  ;;  %39254 = vmatpush3.msk.msra.mxu1 %vm8157_vm8, %v45257_v0  ;;  %39255 = vmatprep.mubr.msk.f32.mxu1 %vm8150_vm9, %v48451_v59 }
 0x2e7   : > { %39340 = vmatprep.mubr.msk.f32.mxu0 %vm8150_vm9, %v45196_v23  ;;  %v45424_v62 = vpop.f32.mrb[99].mxu1  ;;  %39339 = vmatpush3.msk.msra.mxu0 %vm8157_vm8, %v45382_v4  ;;  %v48453_v23 = vld [vmem:[#allocation9_spill] sm:$0xff] }
 0x2e8   : > { %39263 = vmatprep.subr.msk.mxu1 %vm8157_vm8, %v45257_v0  ;;  %39348 = vmatprep.subr.msk.mxu0 %vm8157_vm8, %v45382_v4 }
 0x2e9   : > { %39256 = vmatmul.mubr.msk.f32.vlgmr.msra.gmra.mrb[118].mxu1 %vm8150_vm9, %v48452_v32  ;;  %39341 = vmatmul.mubr.msk.f32.vlgmr.msra.gmra.mrb[88].mxu0 %vm8150_vm9, %v45190_v57  ;;  %v48454_v57 = vld [vmem:[#allocation8_spill] sm:$0xff] }
 0x2ea   : > { %39264 = vmatpush3.msk.msra.mxu1 %vm8157_vm8, %v45257_v0  ;;  %39265 = vmatprep.mubr.msk.f32.mxu1 %vm8150_vm9, %v48453_v23  ;;  %v48456_v32 = vld [vmem:[#allocation12_spill] sm:$0xff]  ;;  %v48458_v23 = vld [vmem:[#allocation19_spill] sm:$0xff] }
 0x2eb   : > { %39350 = vmatprep.mubr.msk.f32.mxu0 %vm8150_vm9, %v45289_v34  ;;  %39349 = vmatpush3.msk.msra.mxu0 %vm8157_vm8, %v45382_v4  ;;  %v48455_v34 = vld [vmem:[#allocation13_spill] sm:$0xff] }
 0x2ec   : > { %39273 = vmatprep.subr.msk.mxu1 %vm8157_vm8, %v45257_v0  ;;  %39358 = vmatprep.subr.msk.mxu0 %vm8157_vm8, %v45382_v4 }
 0x2ed   : > { %39266 = vmatmul.mubr.msk.f32.vlgmr.msra.gmra.mrb[120].mxu1 %vm8150_vm9, %v48454_v57  ;;  %39351 = vmatmul.mubr.msk.f32.vlgmr.msra.gmra.mrb[90].mxu0 %vm8150_vm9, %v45283_v31  ;;  %v48460_v57 = vld [vmem:[#allocation28_spill] sm:$0xff] }
 0x2ee   : > { %39274 = vmatpush3.msk.msra.mxu1 %vm8157_vm8, %v45257_v0  ;;  %39275 = vmatprep.mubr.msk.f32.mxu1 %vm8150_vm9, %v48455_v34 }
 0x2ef   : > { %39360 = vmatprep.mubr.msk.f32.mxu0 %vm8150_vm9, %v7166_v3  ;;  %39359 = vmatpush3.msk.msra.mxu0 %vm8157_vm8, %v45382_v4  ;;  %v48457_v3 = vld [vmem:[#allocation80_spill] sm:$0xff] }
 0x2f0   : > { %v38795_v59 = vpop.f32.mrb[100].mxu1  ;;  %39283 = vmatprep.subr.msk.mxu1 %vm8157_vm8, %v45257_v0  ;;  %39368 = vmatprep.subr.msk.mxu0 %vm8157_vm8, %v45382_v4 }
 0x2f1   : > { %v7466_v31 = vpop.f32.mrb[101].mxu1  ;;  %39276 = vmatmul.mubr.msk.f32.vlgmr.msra.gmra.mrb[122].mxu1 %vm8150_vm9, %v48456_v32  ;;  %39361 = vmatmul.mubr.msk.f32.vlgmr.msra.gmra.mrb[92].mxu0 %vm8150_vm9, %v38743_v15  ;;  %v48459_v15 = vld [vmem:[#allocation82_spill] sm:$0xff]  ;;  %v48462_v32 = vld [vmem:[#allocation32_spill] sm:$0xff] }
 0x2f2   : > { %39284 = vmatpush3.msk.msra.mxu1 %vm8157_vm8, %v45257_v0  ;;  %39285 = vmatprep.mubr.msk.f32.mxu1 %vm8150_vm9, %v48457_v3 }
 0x2f3   : > { %39370 = vmatprep.mubr.msk.f32.mxu0 %vm8150_vm9, %v7466_v31  ;;  %39369 = vmatpush3.msk.msra.mxu0 %vm8157_vm8, %v45382_v4 }
 0x2f4   : > { %39293 = vmatprep.subr.msk.mxu1 %vm8157_vm8, %v45257_v0  ;;  %39378 = vmatprep.subr.msk.mxu0 %vm8157_vm8, %v45382_v4 }
 0x2f5   : > { %39286 = vmatmul.mubr.msk.f32.vlgmr.msra.gmra.mrb[124].mxu1 %vm8150_vm9, %v48458_v23  ;;  %39371 = vmatmul.mubr.msk.f32.vlgmr.msra.gmra.mrb[94].mxu0 %vm8150_vm9, %v38795_v59  ;;  %v48461_v59 = vld [vmem:[#allocation86_spill] sm:$0xff]  ;;  %v48490_v23 = vld [vmem:[#allocation29_spill] sm:$0xff] }
 0x2f6   : > { %39294 = vmatpush3.msk.msra.mxu1 %vm8157_vm8, %v45257_v0  ;;  %39295 = vmatprep.mubr.msk.f32.mxu1 %vm8150_vm9, %v48459_v15  ;;  %v48491_v15 = vld [vmem:[#allocation85_spill] sm:$0xff] }
 0x2f7   : > { %39303 = vmatprep.subr.msk.mxu1 %vm8157_vm8, %v45257_v0  ;;  %39379 = vmatpush3.msk.msra.mxu0 %vm8157_vm8, %v45382_v4 }
 0x2f8   : > { %39388 = vmatprep.subr.msk.mxu0 %vm8157_vm8, %v45382_v4 }
 0x2f9   : > { %39296 = vmatmul.mubr.msk.f32.vlgmr.msra.gmra.mrb[126].mxu1 %vm8150_vm9, %v48460_v57  ;;  %v48492_v57 = vld [vmem:[#allocation113_spill] sm:$0xff] }
 0x2fa   : > { %v45496_v34 = vpop.f32.mrb[102].mxu1  ;;  %39304 = vmatpush3.msk.msra.mxu1 %vm8157_vm8, %v45257_v0  ;;  %39305 = vmatprep.mubr.msk.f32.mxu1 %vm8150_vm9, %v48461_v59  ;;  %v48494_v59 = vld [vmem:[#allocation31_spill] sm:$0xff] }
 0x2fb   : > { %v45502_v31 = vpop.f32.mrb[103].mxu1  ;;  %39313 = vmatprep.subr.msk.mxu1 %vm8157_vm8, %v45382_v4 }
 0x2fd   : > { %39306 = vmatmul.mubr.msk.f32.vlgmr.msra.gmra.mrb[128].mxu1 %vm8150_vm9, %v48462_v32  ;;  %v48495_v32 = vld [vmem:[#allocation92_spill] sm:$0xff] }
 0x2fe   : > { %39314 = vmatpush3.msk.msra.mxu1 %vm8157_vm8, %v45382_v4  ;;  %39315 = vmatprep.mubr.msk.f32.mxu1 %vm8150_vm9, %v44952_v25  ;;  %v48463_v25 = vmov 0.0  }
 0x2ff   : > { %39318 = vmatprep.subr.msk.mxu1 %vm8157_vm8, %v45382_v4  ;;  %345 = vst.msk [vmem:[#allocation2 + $0x68] sm:$0xff] %vm330_vm10, %v48463_v25  ;;  %331 = vst.msk [vmem:[#allocation2] sm:$0xff] %vm330_vm10, %v48463_v25 }
 0x300   : > { %346 = vst.msk [vmem:[#allocation2 + $0x70] sm:$0x3] %vm333_vm11, %v48463_v25  ;;  %334 = vst.msk [vmem:[#allocation2 + $0x10] sm:$0x3] %vm333_vm11, %v48463_v25 }
 0x301   : > { %39316 = vmatmul.mubr.msk.f32.vlgmr.msra.gmra.mrb[110].mxu1 %vm8150_vm9, %v44944_v5  ;;  %332 = vst.msk [vmem:[#allocation2 + $0x8] sm:$0xff] %vm330_vm10, %v48463_v25  ;;  %335 = vst.msk [vmem:[#allocation2 + $0x18] sm:$0xff] %vm330_vm10, %v48463_v25 }
 0x302   : > { %39319 = vmatpush3.msk.msra.mxu1 %vm8157_vm8, %v45382_v4  ;;  %39320 = vmatprep.mubr.msk.f32.mxu1 %vm8150_vm9, %v45003_v38  ;;  %v45535_v38 = vld [vmem:[%s48100_s1 + $0x18] sm:$0x7]  ;;  %336 = vst.msk [vmem:[#allocation2 + $0x20] sm:$0xff] %vm330_vm10, %v48463_v25  ;;  %338 = vst.msk [vmem:[#allocation2 + $0x30] sm:$0xff] %vm330_vm10, %v48463_v25 }
 0x303   : > { %39323 = vmatprep.subr.msk.mxu1 %vm8157_vm8, %v45382_v4  ;;  %337 = vst.msk [vmem:[#allocation2 + $0x28] sm:$0x3] %vm333_vm11, %v48463_v25  ;;  %340 = vst.msk [vmem:[#allocation2 + $0x40] sm:$0x3] %vm333_vm11, %v48463_v25 }
 0x304   : > { %v38847_v0 = vpop.f32.mrb[104].mxu1  ;;  %339 = vst.msk [vmem:[#allocation2 + $0x38] sm:$0xff] %vm330_vm10, %v48463_v25  ;;  %341 = vst.msk [vmem:[#allocation2 + $0x48] sm:$0xff] %vm330_vm10, %v48463_v25 }
 0x305   : > { %v7766_v3 = vpop.f32.mrb[105].mxu1  ;;  %39321 = vmatmul.mubr.msk.f32.vlgmr.msra.gmra.mrb[112].mxu1 %vm8150_vm9, %v44997_v44  ;;  %342 = vst.msk [vmem:[#allocation2 + $0x50] sm:$0xff] %vm330_vm10, %v48463_v25  ;;  %344 = vst.msk [vmem:[#allocation2 + $0x60] sm:$0xff] %vm330_vm10, %v48463_v25 }
 0x306   : > { %39324 = vmatpush3.msk.msra.mxu1 %vm8157_vm8, %v45382_v4  ;;  %39325 = vmatprep.mubr.msk.f32.mxu1 %vm8150_vm9, %v45053_v24  ;;  %343 = vst.msk [vmem:[#allocation2 + $0x58] sm:$0x3] %vm333_vm11, %v48463_v25  ;;  %349 = vst.msk [vmem:[#allocation2 + $0x88] sm:$0x3] %vm333_vm11, %v48463_v25  ;;  %v48482_v24 = vld [vmem:[#allocation60_spill] sm:$0xff] }
 0x307   : > { %39380 = vmatprep.mubr.msk.f32.mxu0 %vm8150_vm9, %v7766_v3  ;;  %39333 = vmatprep.subr.msk.mxu1 %vm8157_vm8, %v45382_v4  ;;  %347 = vst.msk [vmem:[#allocation2 + $0x78] sm:$0xff] %vm330_vm10, %v48463_v25  ;;  %348 = vst.msk [vmem:[#allocation2 + $0x80] sm:$0xff] %vm330_vm10, %v48463_v25  ;;  %v48497_v3 = vld [vmem:[#allocation91_spill] sm:$0xff] }
 0x308   : > { %39381 = vmatmul.mubr.msk.f32.vlgmr.msra.gmra.mrb[96].mxu0 %vm8150_vm9, %v38847_v0  ;;  %350 = vst.msk [vmem:[#allocation2 + $0x90] sm:$0xff] %vm330_vm10, %v48463_v25  ;;  %351 = vst.msk [vmem:[#allocation2 + $0x98] sm:$0xff] %vm330_vm10, %v48463_v25  ;;  %v48496_v0 = vld [vmem:[#allocation119_spill] sm:$0xff] }
 0x309   : > { %39326 = vmatmul.mubr.msk.f32.vlgmr.msra.gmra.mrb[114].mxu1 %vm8150_vm9, %v45045_v39  ;;  %39389 = vmatpush3.msk.msra.mxu0 %vm8157_vm8, %v45382_v4  ;;  %352 = vst.msk [vmem:[#allocation2 + $0xa0] sm:$0x3] %vm333_vm11, %v48463_v25  ;;  %355 = vst.msk [vmem:[#allocation2 + $0xb8] sm:$0x3] %vm333_vm11, %v48463_v25 }
 0x30a   : > { %39334 = vmatpush3.msk.msra.mxu1 %vm8157_vm8, %v45382_v4  ;;  %39335 = vmatprep.mubr.msk.f32.mxu1 %vm8150_vm9, %v45154_v50  ;;  %353 = vst.msk [vmem:[#allocation2 + $0xa8] sm:$0xff] %vm330_vm10, %v48463_v25  ;;  %354 = vst.msk [vmem:[#allocation2 + $0xb0] sm:$0xff] %vm330_vm10, %v48463_v25  ;;  %v48480_v50 = vld [vmem:[#allocation97_spill] sm:$0xff] }
 0x30b   : > { %39343 = vmatprep.subr.msk.mxu1 %vm8157_vm8, %v45382_v4  ;;  %39408 = vmatprep.subr.msk.mxu0 %vm8157_vm8, %v45535_v38  ;;  %356 = vst.msk [vmem:[#allocation2 + $0xc0] sm:$0xff] %vm330_vm10, %v48463_v25  ;;  %357 = vst.msk [vmem:[#allocation2 + $0xc8] sm:$0xff] %vm330_vm10, %v48463_v25 }
 0x30c   : > { %358 = vst.msk [vmem:[#allocation2 + $0xd0] sm:$0x3] %vm333_vm11, %v48463_v25  ;;  %361 = vst.msk [vmem:[#allocation2 + $0xe8] sm:$0x3] %vm333_vm11, %v48463_v25 }
 0x30d   : > { %39336 = vmatmul.mubr.msk.f32.vlgmr.msra.gmra.mrb[118].mxu1 %vm8150_vm9, %v45146_v11  ;;  %359 = vst.msk [vmem:[#allocation2 + $0xd8] sm:$0xff] %vm330_vm10, %v48463_v25  ;;  %360 = vst.msk [vmem:[#allocation2 + $0xe0] sm:$0xff] %vm330_vm10, %v48463_v25 }
 0x30e   : > { %v45551_v44 = vpop.f32.mrb[106].mxu1  ;;  %39344 = vmatpush3.msk.msra.mxu1 %vm8157_vm8, %v45382_v4  ;;  %39345 = vmatprep.mubr.msk.f32.mxu1 %vm8150_vm9, %v45242_v42  ;;  %362 = vst.msk [vmem:[#allocation2 + $0xf0] sm:$0xff] %vm330_vm10, %v48463_v25  ;;  %363 = vst.msk [vmem:[#allocation2 + $0xf8] sm:$0xff] %vm330_vm10, %v48463_v25  ;;  %v48484_v42 = vld [vmem:[#allocation102_spill] sm:$0xff] }
 0x30f   : > { %364 = vst.msk [vmem:[#allocation2 + $0x100] sm:$0x3] %vm333_vm11, %v48463_v25  ;;  %367 = vst.msk [vmem:[#allocation2 + $0x118] sm:$0x3] %vm333_vm11, %v48463_v25  ;;  %v7916_v39 = vpop.f32.mrb[107].mxu1  ;;  %39353 = vmatprep.subr.msk.mxu1 %vm8157_vm8, %v45382_v4 }
 0x310   : > { %365 = vst.msk [vmem:[#allocation2 + $0x108] sm:$0xff] %vm330_vm10, %v48463_v25  ;;  %366 = vst.msk [vmem:[#allocation2 + $0x110] sm:$0xff] %vm330_vm10, %v48463_v25 }
 0x311   : > { %368 = vst.msk [vmem:[#allocation2 + $0x120] sm:$0xff] %vm330_vm10, %v48463_v25  ;;  %369 = vst.msk [vmem:[#allocation2 + $0x128] sm:$0xff] %vm330_vm10, %v48463_v25  ;;  %39346 = vmatmul.mubr.msk.f32.vlgmr.msra.gmra.mrb[120].mxu1 %vm8150_vm9, %v45234_v8  ;;  %v48483_v8 = vld [vmem:[#allocation81_spill] sm:$0xff] }
 0x312   : > { %370 = vst.msk [vmem:[#allocation2 + $0x130] sm:$0x3] %vm333_vm11, %v48463_v25  ;;  %373 = vst.msk [vmem:[#allocation2 + $0x148] sm:$0x3] %vm333_vm11, %v48463_v25  ;;  %39354 = vmatpush3.msk.msra.mxu1 %vm8157_vm8, %v45382_v4  ;;  %39355 = vmatprep.mubr.msk.f32.mxu1 %vm8150_vm9, %v45335_v7  ;;  %v48486_v7 = vld [vmem:[#allocation27_spill] sm:$0xff] }
 0x313   : > { %371 = vst.msk [vmem:[#allocation2 + $0x138] sm:$0xff] %vm330_vm10, %v48463_v25  ;;  %372 = vst.msk [vmem:[#allocation2 + $0x140] sm:$0xff] %vm330_vm10, %v48463_v25  ;;  %39363 = vmatprep.subr.msk.mxu1 %vm8157_vm8, %v45382_v4 }
 0x314   : > { %374 = vst.msk [vmem:[#allocation2 + $0x150] sm:$0xff] %vm330_vm10, %v48463_v25  ;;  %375 = vst.msk [vmem:[#allocation2 + $0x158] sm:$0xff] %vm330_vm10, %v48463_v25 }
 0x315   : > { %376 = vst.msk [vmem:[#allocation2 + $0x160] sm:$0x3] %vm333_vm11, %v48463_v25  ;;  %379 = vst.msk [vmem:[#allocation2 + $0x178] sm:$0x3] %vm333_vm11, %v48463_v25  ;;  %39356 = vmatmul.mubr.msk.f32.vlgmr.msra.gmra.mrb[122].mxu1 %vm8150_vm9, %v45327_v14  ;;  %v48485_v14 = vld [vmem:[#allocation108_spill] sm:$0xff] }
 0x316   : > { %377 = vst.msk [vmem:[#allocation2 + $0x168] sm:$0xff] %vm330_vm10, %v48463_v25  ;;  %378 = vst.msk [vmem:[#allocation2 + $0x170] sm:$0xff] %vm330_vm10, %v48463_v25  ;;  %39364 = vmatpush3.msk.msra.mxu1 %vm8157_vm8, %v45382_v4  ;;  %39365 = vmatprep.mubr.msk.f32.mxu1 %vm8150_vm9, %v45424_v62  ;;  %v48489_v62 = vld [vmem:[#allocation114_spill] sm:$0xff] }
 0x317   : > { %380 = vst.msk [vmem:[#allocation2 + $0x180] sm:$0xff] %vm330_vm10, %v48463_v25  ;;  %381 = vst.msk [vmem:[#allocation2 + $0x188] sm:$0xff] %vm330_vm10, %v48463_v25  ;;  %39373 = vmatprep.subr.msk.mxu1 %vm8157_vm8, %v45382_v4 }
 0x318   : > { %382 = vst.msk [vmem:[#allocation2 + $0x190] sm:$0x3] %vm333_vm11, %v48463_v25  ;;  %v38899_v5 = vpop.f32.mrb[108].mxu1 }
 0x319   : > { %v8066_v11 = vpop.f32.mrb[109].mxu1  ;;  %39366 = vmatmul.mubr.msk.f32.vlgmr.msra.gmra.mrb[124].mxu1 %vm8150_vm9, %v45416_v46  ;;  %v48488_v46 = vld [vmem:[#allocation107_spill] sm:$0xff]  ;;  %390 = vst.msk [vmem:[#allocation3 + $0x10] sm:$0xff] %vm386_vm14, %v48463_v25  ;;  %387 = vst.msk [vmem:[#allocation3] sm:$0xff] %vm386_vm14, %v48463_v25 }
 0x31a   : > { %39374 = vmatpush3.msk.msra.mxu1 %vm8157_vm8, %v45382_v4  ;;  %39375 = vmatprep.mubr.msk.f32.mxu1 %vm8150_vm9, %v45502_v31  ;;  %v45910_v31 = vld [vmem:[%s48100_s1 + $0x20] sm:$0x7]  ;;  %391 = vst.msk [vmem:[#allocation3 + $0x18] sm:$0x3] %vm388_vm15, %v48463_v25  ;;  %389 = vst.msk [vmem:[#allocation3 + $0x8] sm:$0x3] %vm388_vm15, %v48463_v25 }
 0x31b   : > { %39390 = vmatprep.mubr.msk.f32.mxu0 %vm8150_vm9, %v8066_v11  ;;  %39383 = vmatprep.subr.msk.mxu1 %vm8157_vm8, %v45382_v4  ;;  %392 = vst.msk [vmem:[#allocation3 + $0x20] sm:$0xff] %vm386_vm14, %v48463_v25  ;;  %394 = vst.msk [vmem:[#allocation3 + $0x30] sm:$0xff] %vm386_vm14, %v48463_v25 }
 0x31c   : > { %39391 = vmatmul.mubr.msk.f32.vlgmr.msra.gmra.mrb[98].mxu0 %vm8150_vm9, %v38899_v5  ;;  %v19901_v5 = vld [vmem:[#allocation2 + $0x8] sm:$0xff]  ;;  %393 = vst.msk [vmem:[#allocation3 + $0x28] sm:$0x3] %vm388_vm15, %v48463_v25  ;;  %395 = vst.msk [vmem:[#allocation3 + $0x38] sm:$0x3] %vm388_vm15, %v48463_v25 }
 0x31d   : > { %39410 = vmatprep.mubr.msk.f32.mxu0 %vm8150_vm9, %v44008_v13  ;;  %39376 = vmatmul.mubr.msk.f32.vlgmr.msra.gmra.mrb[126].mxu1 %vm8150_vm9, %v45496_v34  ;;  %v48472_v13 = vld [vmem:[#allocation87_spill] sm:$0xff]  ;;  %v48493_v34 = vld [vmem:[#allocation120_spill] sm:$0xff]  ;;  %396 = vst.msk [vmem:[#allocation3 + $0x40] sm:$0xff] %vm386_vm14, %v48463_v25  ;;  %398 = vst.msk [vmem:[#allocation3 + $0x50] sm:$0xff] %vm386_vm14, %v48463_v25 }
 0x31e   : > { %39384 = vmatpush3.msk.msra.mxu1 %vm8157_vm8, %v45382_v4  ;;  %39385 = vmatprep.mubr.msk.f32.mxu1 %vm8150_vm9, %v7916_v39  ;;  %v48487_v4 = vld [vmem:[#allocation83_spill] sm:$0xff]  ;;  %v19900_v39 = vld [vmem:[#allocation2] sm:$0xff]  ;;  %397 = vst.msk [vmem:[#allocation3 + $0x48] sm:$0x3] %vm388_vm15, %v48463_v25  ;;  %399 = vst.msk [vmem:[#allocation3 + $0x58] sm:$0x3] %vm388_vm15, %v48463_v25 }
 0x31f   : > { %39409 = vmatpush3.msk.msra.mxu0 %vm8157_vm8, %v45535_v38  ;;  %39393 = vmatprep.subr.msk.mxu1 %vm8157_vm8, %v45535_v38  ;;  %v46090_v11 = vpack.c.bf16 %v19901_v5, %v19900_v39  ;;  %400 = vst.msk [vmem:[#allocation3 + $0x60] sm:$0xff] %vm386_vm14, %v48463_v25  ;;  %402 = vst.msk [vmem:[#allocation3 + $0x70] sm:$0xff] %vm386_vm14, %v48463_v25 }
 0x320   : > { %39411 = vmatmul.mubr.msk.f32.vlgmr.msra.gmra.mrb[100].mxu0 %vm8150_vm9, %v44003_v29  ;;  %39418 = vmatprep.subr.msk.mxu0 %vm8157_vm8, %v45535_v38  ;;  %v48471_v29 = vld [vmem:[#allocation49_spill] sm:$0xff]  ;;  %401 = vst.msk [vmem:[#allocation3 + $0x68] sm:$0x3] %vm388_vm15, %v48463_v25  ;;  %403 = vst.msk [vmem:[#allocation3 + $0x78] sm:$0x3] %vm388_vm15, %v48463_v25 }
 0x321   : > { %39420 = vmatprep.mubr.msk.f32.mxu0 %vm8150_vm9, %v48395_v47  ;;  %39386 = vmatmul.mubr.msk.f32.vlgmr.msra.gmra.mrb[128].mxu1 %vm8150_vm9, %v45551_v44  ;;  %v48475_v47 = vld [vmem:[#allocation55_spill] sm:$0xff]  ;;  %v48500_v44 = vld [vmem:[#allocation101_spill] sm:$0xff]  ;;  %404 = vst.msk [vmem:[#allocation3 + $0x80] sm:$0xff] %vm386_vm14, %v48463_v25 }
 0x322   : > { %39394 = vmatpush3.msk.msra.mxu1 %vm8157_vm8, %v45535_v38  ;;  %39395 = vmatprep.mubr.msk.f32.mxu1 %vm8150_vm9, %v43800_v26  ;;  %405 = vst.msk [vmem:[#allocation3 + $0x88] sm:$0x3] %vm388_vm15, %v48463_v25 }
 0x323   : > { %39419 = vmatpush3.msk.msra.mxu0 %vm8157_vm8, %v45535_v38  ;;  %39398 = vmatprep.subr.msk.mxu1 %vm8157_vm8, %v45535_v38 }
 0x324   : > { %39421 = vmatmul.mubr.msk.f32.vlgmr.msra.gmra.mrb[88].mxu0 %vm8150_vm9, %v48396_v58  ;;  %39428 = vmatprep.subr.msk.mxu0 %vm8157_vm8, %v45535_v38  ;;  %v48479_v58 = vld [vmem:[#allocation61_spill] sm:$0xff] }
 0x325   : > { %39430 = vmatprep.mubr.msk.f32.mxu0 %vm8150_vm9, %v48398_v45  ;;  %39396 = vmatmul.mubr.msk.f32.vlgmr.msra.gmra.mrb[110].mxu1 %vm8150_vm9, %v43795_v63  ;;  %v48477_v45 = vld [vmem:[#allocation98_spill] sm:$0xff] }
 0x326   : > { %39399 = vmatpush3.msk.msra.mxu1 %vm8157_vm8, %v45535_v38  ;;  %39400 = vmatprep.mubr.msk.f32.mxu1 %vm8150_vm9, %v43864_v35  ;;  %v48466_v35 = vld [vmem:[#allocation37_spill] sm:$0xff] }
 0x327   : > { %39429 = vmatpush3.msk.msra.mxu0 %vm8157_vm8, %v45535_v38  ;;  %39403 = vmatprep.subr.msk.mxu1 %vm8157_vm8, %v45535_v38 }
 0x328   : > { %39431 = vmatmul.mubr.msk.f32.vlgmr.msra.gmra.mrb[90].mxu0 %vm8150_vm9, %v48399_v37  ;;  %v45732_v26 = vpop.f32.mrb[116].mxu1  ;;  %39438 = vmatprep.subr.msk.mxu0 %vm8157_vm8, %v45535_v38  ;;  %v48476_v37 = vld [vmem:[#allocation93_spill] sm:$0xff] }
 0x329   : > { %39440 = vmatprep.mubr.msk.f32.mxu0 %vm8150_vm9, %v43880_v22  ;;  %v45738_v63 = vpop.f32.mrb[117].mxu1  ;;  %39401 = vmatmul.mubr.msk.f32.vlgmr.msra.gmra.mrb[112].mxu1 %vm8150_vm9, %v43859_v36  ;;  %v48467_v22 = vld [vmem:[#allocation44_spill] sm:$0xff]  ;;  %v48468_v36 = vld [vmem:[#allocation62_spill] sm:$0xff] }
 0x32a   : > { %39404 = vmatpush3.msk.msra.mxu1 %vm8157_vm8, %v45535_v38  ;;  %39405 = vmatprep.mubr.msk.f32.mxu1 %vm8150_vm9, %v43938_v2  ;;  %v48470_v2 = vld [vmem:[#allocation43_spill] sm:$0xff] }
 0x32b   : > { %39439 = vmatpush3.msk.msra.mxu0 %vm8157_vm8, %v45535_v38  ;;  %39413 = vmatprep.subr.msk.mxu1 %vm8157_vm8, %v45535_v38 }
 0x32c   : > { %39441 = vmatmul.mubr.msk.f32.vlgmr.msra.gmra.mrb[92].mxu0 %vm8150_vm9, %v43876_v9  ;;  %39448 = vmatprep.subr.msk.mxu0 %vm8157_vm8, %v45535_v38  ;;  %v48464_v9 = vld [vmem:[#allocation38_spill] sm:$0xff] }
 0x32d   : > { %39450 = vmatprep.mubr.msk.f32.mxu0 %vm8150_vm9, %v48400_v17  ;;  %39406 = vmatmul.mubr.msk.f32.vlgmr.msra.gmra.mrb[114].mxu1 %vm8150_vm9, %v43933_v16  ;;  %v48465_v17 = vld [vmem:[#allocation63_spill] sm:$0xff]  ;;  %v48469_v16 = vld [vmem:[#allocation88_spill] sm:$0xff] }
 0x32e   : > { %39414 = vmatpush3.msk.msra.mxu1 %vm8157_vm8, %v45535_v38  ;;  %39415 = vmatprep.mubr.msk.f32.mxu1 %vm8150_vm9, %v44076_v55  ;;  %v48474_v55 = vld [vmem:[#allocation48_spill] sm:$0xff] }
 0x32f   : > { %39449 = vmatpush3.msk.msra.mxu0 %vm8157_vm8, %v45535_v38  ;;  %39423 = vmatprep.subr.msk.mxu1 %vm8157_vm8, %v45535_v38 }
 0x330   : > { %39451 = vmatmul.mubr.msk.f32.vlgmr.msra.gmra.mrb[94].mxu0 %vm8150_vm9, %v48402_v43  ;;  %39458 = vmatprep.subr.msk.mxu0 %vm8157_vm8, %v45535_v38  ;;  %v45793_v43 = vld [vmem:[%s48100_s1 + $0x1c] sm:$0x7] }
 0x331   : > { %39460 = vmatprep.mubr.msk.f32.mxu0 %vm8150_vm9, %v48404_v28  ;;  %39416 = vmatmul.mubr.msk.f32.vlgmr.msra.gmra.mrb[118].mxu1 %vm8150_vm9, %v44071_v51  ;;  %v48473_v51 = vld [vmem:[#allocation94_spill] sm:$0xff] }
 0x332   : > { %39424 = vmatpush3.msk.msra.mxu1 %vm8157_vm8, %v45535_v38  ;;  %39425 = vmatprep.mubr.msk.f32.mxu1 %vm8150_vm9, %v48464_v9  ;;  %v48478_v28 = vld [vmem:[#allocation54_spill] sm:$0xff]  ;;  %v42754_v9 = vmov 0.0|0.0  }
 0x333   : > { %39459 = vmatpush3.msk.msra.mxu0 %vm8157_vm8, %v45535_v38  ;;  %39433 = vmatprep.subr.msk.mxu1 %vm8157_vm8, %v45535_v38 }
 0x334   : > { %39461 = vmatmul.mubr.msk.f32.vlgmr.msra.gmra.mrb[96].mxu0 %vm8150_vm9, %v48407_v49  ;;  %39468 = vmatprep.subr.msk.mxu0 %vm8157_vm8, %v45535_v38  ;;  %v48481_v49 = vld [vmem:[#allocation103_spill] sm:$0xff] }
 0x335   : > { %39470 = vmatprep.mubr.msk.f32.mxu0 %vm8150_vm9, %v48465_v17  ;;  %39426 = vmatmul.mubr.msk.f32.vlgmr.msra.gmra.mrb[120].mxu1 %vm8150_vm9, %v48466_v35  ;;  %v46096_v17 = vld [vmem:[#allocation2 + $0x10] sm:$0x3]  ;;  %v48520_v35 = vld [vmem:[#allocation7_spill] sm:$0xff] }
 0x336   : > { %39434 = vmatpush3.msk.msra.mxu1 %vm8157_vm8, %v45535_v38  ;;  %39435 = vmatprep.mubr.msk.f32.mxu1 %vm8150_vm9, %v48467_v22 }
 0x337   : > { %39469 = vmatpush3.msk.msra.mxu0 %vm8157_vm8, %v45535_v38  ;;  %39443 = vmatprep.subr.msk.mxu1 %vm8157_vm8, %v45535_v38 }
 0x338   : > { %39471 = vmatmul.mubr.msk.f32.vlgmr.msra.gmra.mrb[98].mxu0 %vm8150_vm9, %v48468_v36  ;;  %39488 = vmatprep.subr.msk.mxu0 %vm8157_vm8, %v45793_v43 }
 0x339   : > { %39490 = vmatprep.mubr.msk.f32.mxu0 %vm8150_vm9, %v48469_v16  ;;  %39436 = vmatmul.mubr.msk.f32.vlgmr.msra.gmra.mrb[122].mxu1 %vm8150_vm9, %v48470_v2 }
 0x33a   : > { %39444 = vmatpush3.msk.msra.mxu1 %vm8157_vm8, %v45535_v38  ;;  %39445 = vmatprep.mubr.msk.f32.mxu1 %vm8150_vm9, %v48471_v29 }
 0x33b   : > { %39489 = vmatpush3.msk.msra.mxu0 %vm8157_vm8, %v45793_v43  ;;  %39453 = vmatprep.subr.msk.mxu1 %vm8157_vm8, %v45535_v38 }
 0x33c   : > { %39491 = vmatmul.mubr.msk.f32.vlgmr.msra.gmra.mrb[100].mxu0 %vm8150_vm9, %v48472_v13  ;;  %39498 = vmatprep.subr.msk.mxu0 %vm8157_vm8, %v45793_v43 }
 0x33d   : > { %39500 = vmatprep.mubr.msk.f32.mxu0 %vm8150_vm9, %v48473_v51  ;;  %39446 = vmatmul.mubr.msk.f32.vlgmr.msra.gmra.mrb[124].mxu1 %vm8150_vm9, %v48474_v55 }
 0x33e   : > { %39454 = vmatpush3.msk.msra.mxu1 %vm8157_vm8, %v45535_v38  ;;  %39455 = vmatprep.mubr.msk.f32.mxu1 %vm8150_vm9, %v48475_v47 }
 0x33f   : > { %39499 = vmatpush3.msk.msra.mxu0 %vm8157_vm8, %v45793_v43  ;;  %39463 = vmatprep.subr.msk.mxu1 %vm8157_vm8, %v45535_v38 }
 0x340   : > { %39501 = vmatmul.mubr.msk.f32.vlgmr.msra.gmra.mrb[88].mxu0 %vm8150_vm9, %v48476_v37  ;;  %39508 = vmatprep.subr.msk.mxu0 %vm8157_vm8, %v45793_v43 }
 0x341   : > { %39510 = vmatprep.mubr.msk.f32.mxu0 %vm8150_vm9, %v48477_v45  ;;  %39456 = vmatmul.mubr.msk.f32.vlgmr.msra.gmra.mrb[126].mxu1 %vm8150_vm9, %v48478_v28 }
 0x342   : > { %39464 = vmatpush3.msk.msra.mxu1 %vm8157_vm8, %v45535_v38  ;;  %39465 = vmatprep.mubr.msk.f32.mxu1 %vm8150_vm9, %v48479_v58  ;;  %v48498_v38 = vld [vmem:[#allocation96_spill] sm:$0xff] }
 0x343   : > { %39509 = vmatpush3.msk.msra.mxu0 %vm8157_vm8, %v45793_v43  ;;  %39473 = vmatprep.subr.msk.mxu1 %vm8157_vm8, %v45793_v43 }
 0x344   : > { %39511 = vmatmul.mubr.msk.f32.vlgmr.msra.gmra.mrb[90].mxu0 %vm8150_vm9, %v48480_v50  ;;  %39518 = vmatprep.subr.msk.mxu0 %vm8157_vm8, %v45793_v43 }
 0x345   : > { %39520 = vmatprep.mubr.msk.f32.mxu0 %vm8150_vm9, %v48481_v49  ;;  %39466 = vmatmul.mubr.msk.f32.vlgmr.msra.gmra.mrb[128].mxu1 %vm8150_vm9, %v48482_v24 }
 0x346   : > { %39474 = vmatpush3.msk.msra.mxu1 %vm8157_vm8, %v45793_v43  ;;  %39475 = vmatprep.mubr.msk.f32.mxu1 %vm8150_vm9, %v48483_v8 }
 0x347   : > { %39519 = vmatpush3.msk.msra.mxu0 %vm8157_vm8, %v45793_v43  ;;  %39478 = vmatprep.subr.msk.mxu1 %vm8157_vm8, %v45793_v43 }
 0x348   : > { %39521 = vmatmul.mubr.msk.f32.vlgmr.msra.gmra.mrb[92].mxu0 %vm8150_vm9, %v48484_v42  ;;  %39528 = vmatprep.subr.msk.mxu0 %vm8157_vm8, %v45793_v43 }
 0x349   : > { %39530 = vmatprep.mubr.msk.f32.mxu0 %vm8150_vm9, %v48485_v14  ;;  %39476 = vmatmul.mubr.msk.f32.vlgmr.msra.gmra.mrb[110].mxu1 %vm8150_vm9, %v48486_v7 }
 0x34a   : > { %39479 = vmatpush3.msk.msra.mxu1 %vm8157_vm8, %v45793_v43  ;;  %39480 = vmatprep.mubr.msk.f32.mxu1 %vm8150_vm9, %v48487_v4 }
 0x34b   : > { %39529 = vmatpush3.msk.msra.mxu0 %vm8157_vm8, %v45793_v43  ;;  %39483 = vmatprep.subr.msk.mxu1 %vm8157_vm8, %v45793_v43 }
 0x34c   : > { %39531 = vmatmul.mubr.msk.f32.vlgmr.msra.gmra.mrb[94].mxu0 %vm8150_vm9, %v48488_v46  ;;  %39538 = vmatprep.subr.msk.mxu0 %vm8157_vm8, %v45793_v43 }
 0x34d   : > { %39540 = vmatprep.mubr.msk.f32.mxu0 %vm8150_vm9, %v48489_v62  ;;  %39481 = vmatmul.mubr.msk.f32.vlgmr.msra.gmra.mrb[112].mxu1 %vm8150_vm9, %v48490_v23 }
 0x34e   : > { %39484 = vmatpush3.msk.msra.mxu1 %vm8157_vm8, %v45793_v43  ;;  %39485 = vmatprep.mubr.msk.f32.mxu1 %vm8150_vm9, %v48491_v15 }
 0x34f   : > { %39539 = vmatpush3.msk.msra.mxu0 %vm8157_vm8, %v45793_v43  ;;  %39493 = vmatprep.subr.msk.mxu1 %vm8157_vm8, %v45793_v43 }
 0x350   : > { %39541 = vmatmul.mubr.msk.f32.vlgmr.msra.gmra.mrb[96].mxu0 %vm8150_vm9, %v48492_v57  ;;  %39548 = vmatprep.subr.msk.mxu0 %vm8157_vm8, %v45793_v43 }
 0x351   : > { %39550 = vmatprep.mubr.msk.f32.mxu0 %vm8150_vm9, %v48493_v34  ;;  %39486 = vmatmul.mubr.msk.f32.vlgmr.msra.gmra.mrb[114].mxu1 %vm8150_vm9, %v48494_v59 }
 0x352   : > { %39494 = vmatpush3.msk.msra.mxu1 %vm8157_vm8, %v45793_v43  ;;  %39495 = vmatprep.mubr.msk.f32.mxu1 %vm8150_vm9, %v48495_v32 }
 0x353   : > { %39549 = vmatpush3.msk.msra.mxu0 %vm8157_vm8, %v45793_v43  ;;  %39503 = vmatprep.subr.msk.mxu1 %vm8157_vm8, %v45793_v43 }
 0x354   : > { %39551 = vmatmul.mubr.msk.f32.vlgmr.msra.gmra.mrb[98].mxu0 %vm8150_vm9, %v48496_v0  ;;  %39568 = vmatprep.subr.msk.mxu0 %vm8157_vm8, %v45910_v31 }
 0x355   : > { %39570 = vmatprep.mubr.msk.f32.mxu0 %vm8150_vm9, %v44689_v54  ;;  %39496 = vmatmul.mubr.msk.f32.vlgmr.msra.gmra.mrb[118].mxu1 %vm8150_vm9, %v48497_v3  ;;  %v48499_v54 = vld [vmem:[#allocation95_spill] sm:$0xff] }
 0x356   : > { %39504 = vmatpush3.msk.msra.mxu1 %vm8157_vm8, %v45793_v43  ;;  %39505 = vmatprep.mubr.msk.f32.mxu1 %vm8150_vm9, %v48498_v38 }
 0x357   : > { %39569 = vmatpush3.msk.msra.mxu0 %vm8157_vm8, %v45910_v31  ;;  %39513 = vmatprep.subr.msk.mxu1 %vm8157_vm8, %v45793_v43 }
 0x358   : > { %39571 = vmatmul.mubr.msk.f32.vlgmr.msra.gmra.mrb[100].mxu0 %vm8150_vm9, %v44684_v60  ;;  %39578 = vmatprep.subr.msk.mxu0 %vm8157_vm8, %v45910_v31  ;;  %v48501_v60 = vld [vmem:[#allocation100_spill] sm:$0xff] }
 0x359   : > { %39580 = vmatprep.mubr.msk.f32.mxu0 %vm8150_vm9, %v44741_v61  ;;  %39506 = vmatmul.mubr.msk.f32.vlgmr.msra.gmra.mrb[120].mxu1 %vm8150_vm9, %v48499_v54  ;;  %v48502_v61 = vld [vmem:[#allocation106_spill] sm:$0xff] }
 0x35a   : > { %39514 = vmatpush3.msk.msra.mxu1 %vm8157_vm8, %v45793_v43  ;;  %39515 = vmatprep.mubr.msk.f32.mxu1 %vm8150_vm9, %v48500_v44 }
 0x35b   : > { %39579 = vmatpush3.msk.msra.mxu0 %vm8157_vm8, %v45910_v31  ;;  %39523 = vmatprep.subr.msk.mxu1 %vm8157_vm8, %v45793_v43 }
 0x35c   : > { %39581 = vmatmul.mubr.msk.f32.vlgmr.msra.gmra.mrb[88].mxu0 %vm8150_vm9, %v44735_v10  ;;  %39588 = vmatprep.subr.msk.mxu0 %vm8157_vm8, %v45910_v31  ;;  %v48504_v10 = vld [vmem:[#allocation112_spill] sm:$0xff] }
 0x35d   : > { %39590 = vmatprep.mubr.msk.f32.mxu0 %vm8150_vm9, %v44805_v41  ;;  %39516 = vmatmul.mubr.msk.f32.vlgmr.msra.gmra.mrb[122].mxu1 %vm8150_vm9, %v48501_v60  ;;  %v48503_v41 = vld [vmem:[#allocation105_spill] sm:$0xff] }
 0x35e   : > { %39524 = vmatpush3.msk.msra.mxu1 %vm8157_vm8, %v45793_v43  ;;  %39525 = vmatprep.mubr.msk.f32.mxu1 %vm8150_vm9, %v48502_v61 }
 0x35f   : > { %39589 = vmatpush3.msk.msra.mxu0 %vm8157_vm8, %v45910_v31  ;;  %39533 = vmatprep.subr.msk.mxu1 %vm8157_vm8, %v45793_v43 }
 0x360   : > { %39591 = vmatmul.mubr.msk.f32.vlgmr.msra.gmra.mrb[90].mxu0 %vm8150_vm9, %v44799_v19  ;;  %39598 = vmatprep.subr.msk.mxu0 %vm8157_vm8, %v45910_v31  ;;  %v48505_v19 = vld [vmem:[#allocation111_spill] sm:$0xff] }
 0x361   : > { %39600 = vmatprep.mubr.msk.f32.mxu0 %vm8150_vm9, %v44874_v53  ;;  %39526 = vmatmul.mubr.msk.f32.vlgmr.msra.gmra.mrb[124].mxu1 %vm8150_vm9, %v48503_v41  ;;  %v48506_v53 = vld [vmem:[#allocation118_spill] sm:$0xff] }
 0x362   : > { %39534 = vmatpush3.msk.msra.mxu1 %vm8157_vm8, %v45793_v43  ;;  %39535 = vmatprep.mubr.msk.f32.mxu1 %vm8150_vm9, %v48504_v10 }
 0x363   : > { %39599 = vmatpush3.msk.msra.mxu0 %vm8157_vm8, %v45910_v31  ;;  %39543 = vmatprep.subr.msk.mxu1 %vm8157_vm8, %v45793_v43 }
 0x364   : > { %39601 = vmatmul.mubr.msk.f32.vlgmr.msra.gmra.mrb[92].mxu0 %vm8150_vm9, %v44868_v20  ;;  %39608 = vmatprep.subr.msk.mxu0 %vm8157_vm8, %v45910_v31  ;;  %v48516_v20 = vld [vmem:[#allocation33_spill] sm:$0xff] }
 0x365   : > { %39610 = vmatprep.mubr.msk.f32.mxu0 %vm8150_vm9, %v44970_v1  ;;  %39536 = vmatmul.mubr.msk.f32.vlgmr.msra.gmra.mrb[126].mxu1 %vm8150_vm9, %v48505_v19  ;;  %v48507_v1 = vld [vmem:[#allocation117_spill] sm:$0xff] }
 0x366   : > { %39544 = vmatpush3.msk.msra.mxu1 %vm8157_vm8, %v45793_v43  ;;  %39545 = vmatprep.mubr.msk.f32.mxu1 %vm8150_vm9, %v48506_v53  ;;  %v46112_v43 = vld [vmem:[%s48101_s2] ss:$0 sm:$0xff] }
 0x367   : > { %39609 = vmatpush3.msk.msra.mxu0 %vm8157_vm8, %v45910_v31  ;;  %39553 = vmatprep.subr.msk.mxu1 %vm8157_vm8, %v45910_v31 }
 0x368   : > { %39611 = vmatmul.mubr.msk.f32.vlgmr.msra.gmra.mrb[94].mxu0 %vm8150_vm9, %v44964_v48  ;;  %39618 = vmatprep.subr.msk.mxu0 %vm8157_vm8, %v45910_v31  ;;  %v48508_v48 = vld [vmem:[#allocation99_spill] sm:$0xff] }
 0x369   : > { %39620 = vmatprep.mubr.msk.f32.mxu0 %vm8150_vm9, %v45071_v27  ;;  %39546 = vmatmul.mubr.msk.f32.vlgmr.msra.gmra.mrb[128].mxu1 %vm8150_vm9, %v48507_v1  ;;  %v48515_v27 = vld [vmem:[#allocation121_spill] sm:$0xff] }
 0x36a   : > { %39554 = vmatpush3.msk.msra.mxu1 %vm8157_vm8, %v45910_v31  ;;  %39555 = vmatprep.mubr.msk.f32.mxu1 %vm8150_vm9, %v44618_v33  ;;  %v48510_v33 = vld [vmem:[#allocation110_spill] sm:$0xff] }
 0x36b   : > { %39619 = vmatpush3.msk.msra.mxu0 %vm8157_vm8, %v45910_v31  ;;  %39558 = vmatprep.subr.msk.mxu1 %vm8157_vm8, %v45910_v31 }
 0x36c   : > { %39621 = vmatmul.mubr.msk.f32.vlgmr.msra.gmra.mrb[96].mxu0 %vm8150_vm9, %v45065_v6  ;;  %39628 = vmatprep.subr.msk.mxu0 %vm8157_vm8, %v45910_v31  ;;  %v48517_v6 = vld [vmem:[#allocation34_spill] sm:$0xff] }
 0x36d   : > { %39556 = vmatmul.mubr.msk.f32.vlgmr.msra.gmra.mrb[110].mxu1 %vm8150_vm9, %v44615_v12  ;;  %39629 = vmatpush3.msk.msra.mxu0 %vm8157_vm8, %v45910_v31  ;;  %v48509_v12 = vld [vmem:[#allocation104_spill] sm:$0xff] }
 0x36e   : > { %39560 = vmatprep.mubr.msk.f32.mxu1 %vm8150_vm9, %v44643_v52  ;;  %39630 = vmatprep.mubr.msk.f32.mxu0 %vm8150_vm9, %v45454_v30  ;;  %v48512_v52 = vld [vmem:[#allocation116_spill] sm:$0xff] }
 0x36f   : > { %39559 = vmatpush3.msk.msra.mxu1 %vm8157_vm8, %v45910_v31  ;;  %v48519_v30 = vld [vmem:[#allocation40_spill] sm:$0xff]  ;;  %41861 = vmatprep.subr.bf16.mxu0 %v42754_v9 }
 0x370   : > { %39631 = vmatmul.mubr.msk.f32.vlgmr.msra.gmra.mrb[98].mxu0 %vm8150_vm9, %v45448_v56  ;;  %39563 = vmatprep.subr.msk.mxu1 %vm8157_vm8, %v45910_v31  ;;  %v48518_v56 = vld [vmem:[#allocation39_spill] sm:$0xff] }
 0x371   : > { %39561 = vmatmul.mubr.msk.f32.vlgmr.msra.gmra.mrb[112].mxu1 %vm8150_vm9, %v44638_v21  ;;  %v48511_v21 = vld [vmem:[#allocation109_spill] sm:$0xff]  ;;  %41863 = vmatpush3.bf16.msra.mxu0 %v46090_v11 }
 0x372   : > { %39565 = vmatprep.mubr.msk.f32.mxu1 %vm8150_vm9, %v44664_v40  ;;  %39564 = vmatpush3.msk.msra.mxu1 %vm8157_vm8, %v45910_v31  ;;  %v48513_v40 = vld [vmem:[#allocation115_spill] sm:$0xff] }
 0x373   : > { %39573 = vmatprep.subr.msk.mxu1 %vm8157_vm8, %v45910_v31  ;;  %39637 = vmatprep.subr.mxu0 %v48463_v25 }
 0x374   : > { %39639 = vmatprep.mubr.msk.f32.mxu0 %vm42755_vm12, %v48463_v25 }
 0x375   : > { %39566 = vmatmul.mubr.msk.f32.vlgmr.msra.gmra.mrb[114].mxu1 %vm8150_vm9, %v48508_v48  ;;  %39638 = vmatpush3.msk.msra.mxu0 %vm601_vm2, %v46096_v17 }
 0x376   : > { %39575 = vmatprep.mubr.msk.f32.mxu1 %vm8150_vm9, %v44710_v18  ;;  %39574 = vmatpush3.msk.msra.mxu1 %vm8157_vm8, %v45910_v31  ;;  %v48514_v18 = vld [vmem:[#allocation122_spill] sm:$0xff] }
 0x377   : > { %39583 = vmatprep.subr.msk.mxu1 %vm8157_vm8, %v45910_v31  ;;  %39640 = vmatmul.mubr.msk.f32.vlgmr.msra.gmra.mrb[102].mxu0 %vm19961_vm13, %v48520_v35 }
 0x378   : > { %41864 = vmatprep.subr.bf16.mxu0 %v42754_v9  ;;  %39648 = vmatprep.mubr.msk.f32.mxu0 %vm42755_vm12, %v48463_v25 }
 0x379   : > { %39576 = vmatmul.mubr.msk.f32.vlgmr.msra.gmra.mrb[118].mxu1 %vm8150_vm9, %v48509_v12 }
 0x37a   : > { %39585 = vmatprep.mubr.msk.f32.mxu1 %vm8150_vm9, %v48510_v33  ;;  %39584 = vmatpush3.msk.msra.mxu1 %vm8157_vm8, %v45910_v31 }
 0x37b   : > { %39593 = vmatprep.subr.msk.mxu1 %vm8157_vm8, %v45910_v31 }
 0x37d   : > { %39586 = vmatmul.mubr.msk.f32.vlgmr.msra.gmra.mrb[120].mxu1 %vm8150_vm9, %v48511_v21 }
 0x37e   : > { %39595 = vmatprep.mubr.msk.f32.mxu1 %vm8150_vm9, %v48512_v52  ;;  %39594 = vmatpush3.msk.msra.mxu1 %vm8157_vm8, %v45910_v31 }
 0x37f   : > { %39603 = vmatprep.subr.msk.mxu1 %vm8157_vm8, %v45910_v31 }
 0x381   : > { %39596 = vmatmul.mubr.msk.f32.vlgmr.msra.gmra.mrb[122].mxu1 %vm8150_vm9, %v48513_v40 }
 0x382   : > { %39605 = vmatprep.mubr.msk.f32.mxu1 %vm8150_vm9, %v48514_v18  ;;  %39604 = vmatpush3.msk.msra.mxu1 %vm8157_vm8, %v45910_v31 }
 0x383   : > { %39613 = vmatprep.subr.msk.mxu1 %vm8157_vm8, %v45910_v31 }
 0x385   : > { %39606 = vmatmul.mubr.msk.f32.vlgmr.msra.gmra.mrb[124].mxu1 %vm8150_vm9, %v48515_v27 }
 0x386   : > { %39615 = vmatprep.mubr.msk.f32.mxu1 %vm8150_vm9, %v48516_v20  ;;  %39614 = vmatpush3.msk.msra.mxu1 %vm8157_vm8, %v45910_v31 }
 0x387   : > { %39623 = vmatprep.subr.msk.mxu1 %vm8157_vm8, %v45910_v31 }
 0x389   : > { %39616 = vmatmul.mubr.msk.f32.vlgmr.msra.gmra.mrb[126].mxu1 %vm8150_vm9, %v48517_v6 }
 0x38a   : > { %39625 = vmatprep.mubr.msk.f32.mxu1 %vm8150_vm9, %v48518_v56  ;;  %39624 = vmatpush3.msk.msra.mxu1 %vm8157_vm8, %v45910_v31 }
 0x38b   : > { %41894 = vmatprep.subr.bf16.mxu1 %v42754_v9 }
 0x38d   : > { %39626 = vmatmul.mubr.msk.f32.vlgmr.msra.gmra.mrb[128].mxu1 %vm8150_vm9, %v48519_v30 }
 0x38e   : > { %39738 = vmatprep.mubr.msk.f32.mxu1 %vm42755_vm12, %v48463_v25 }
 0x42b   : > { %v39572_v22 = vpop.f32.mrb[100].mxu0 }
 0x42c   : > { %v42326_v36 = vadd.f32 %v39572_v22, %v45732_v26  ;;  %v18850_v16 = vpop.f32.mrb[101].mxu0 }
 0x42d   : > { %v42327_v2 = vadd.f32 %v18850_v16, %v45738_v63 }
 0x42e   : > { %v19810_v29 = vadd.f32 %v42326_v36, %v46112_v43 }
 0x42f   : > { %v19809_v13 = vadd.f32 %v42327_v2, %v46112_v43  ;;  %v39582_v51 = vpop.f32.mrb[88].mxu0 }
 0x430   : > { %v19842_v55 = vmax.f32 %v19810_v29, 0.0  ;;  %v19814_v47 = vadd.f32 %v39582_v51, %v46112_v43  ;;  %v19000_v37 = vpop.f32.mrb[89].mxu0 }
 0x431   : > { %v19841_v45 = vmax.f32 %v19809_v13, 0.0  ;;  %v19813_v28 = vadd.f32 %v46112_v43, %v19000_v37 }
 0x432   : > { %19875 = vst.msk [vmem:[#allocation2 + $0x69] sm:$0xff] %vm330_vm10, %v19842_v55  ;;  %v19846_v58 = vmax.f32 %v19814_v47, 0.0 }
 0x433   : > { %19874 = vst.msk [vmem:[#allocation2 + $0x61] sm:$0xff] %vm330_vm10, %v19841_v45  ;;  %v19845_v26 = vmax.f32 %v19813_v28, 0.0  ;;  %v39592_v50 = vpop.f32.mrb[90].mxu0 }
 0x434   : > { %19879 = vst.msk [vmem:[#allocation2 + $0x99] sm:$0xff] %vm330_vm10, %v19846_v58  ;;  %v19818_v63 = vadd.f32 %v39592_v50, %v46112_v43  ;;  %v19150_v49 = vpop.f32.mrb[91].mxu0 }
 0x435   : > { %19878 = vst.msk [vmem:[#allocation2 + $0x91] sm:$0xff] %vm330_vm10, %v19845_v26  ;;  %v19817_v24 = vadd.f32 %v46112_v43, %v19150_v49 }
 0x436   : > { %v19850_v8 = vmax.f32 %v19818_v63, 0.0 }
 0x437   : > { %v19849_v42 = vmax.f32 %v19817_v24, 0.0  ;;  %v39602_v14 = vpop.f32.mrb[92].mxu0 }
 0x438   : > { %19883 = vst.msk [vmem:[#allocation2 + $0xc9] sm:$0xff] %vm330_vm10, %v19850_v8  ;;  %v19822_v7 = vadd.f32 %v39602_v14, %v46112_v43  ;;  %v19300_v4 = vpop.f32.mrb[93].mxu0 }
 0x439   : > { %19882 = vst.msk [vmem:[#allocation2 + $0xc1] sm:$0xff] %vm330_vm10, %v19849_v42  ;;  %v19821_v46 = vadd.f32 %v46112_v43, %v19300_v4 }
 0x43a   : > { %v19854_v62 = vmax.f32 %v19822_v7, 0.0 }
 0x43b   : > { %v19853_v23 = vmax.f32 %v19821_v46, 0.0  ;;  %v39612_v15 = vpop.f32.mrb[94].mxu0 }
 0x43c   : > { %19887 = vst.msk [vmem:[#allocation2 + $0xf9] sm:$0xff] %vm330_vm10, %v19854_v62  ;;  %v19826_v57 = vadd.f32 %v39612_v15, %v46112_v43  ;;  %v19450_v34 = vpop.f32.mrb[95].mxu0 }
 0x43d   : > { %19886 = vst.msk [vmem:[#allocation2 + $0xf1] sm:$0xff] %vm330_vm10, %v19853_v23  ;;  %v19825_v59 = vadd.f32 %v46112_v43, %v19450_v34 }
 0x43e   : > { %v19858_v31 = vmax.f32 %v19826_v57, 0.0 }
 0x43f   : > { %v19857_v32 = vmax.f32 %v19825_v59, 0.0  ;;  %v39622_v0 = vpop.f32.mrb[96].mxu0 }
 0x440   : > { %19891 = vst.msk [vmem:[#allocation2 + $0x129] sm:$0xff] %vm330_vm10, %v19858_v31  ;;  %v19830_v3 = vadd.f32 %v39622_v0, %v46112_v43  ;;  %v19600_v38 = vpop.f32.mrb[97].mxu0  ;;  %v39557_v54 = vpop.f32.mrb[110].mxu1 }
 0x441   : > { %19890 = vst.msk [vmem:[#allocation2 + $0x121] sm:$0xff] %vm330_vm10, %v19857_v32  ;;  %v19829_v44 = vadd.f32 %v46112_v43, %v19600_v38  ;;  %v19804_v60 = vadd.f32 %v39557_v54, %v46112_v43  ;;  %v18625_v61 = vpop.f32.mrb[111].mxu1 }
 0x442   : > { %v19862_v41 = vmax.f32 %v19830_v3, 0.0  ;;  %v19803_v10 = vadd.f32 %v46112_v43, %v18625_v61 }
 0x443   : > { %v19861_v19 = vmax.f32 %v19829_v44, 0.0  ;;  %v19836_v53 = vmax.f32 %v19804_v60, 0.0  ;;  %v39632_v1 = vpop.f32.mrb[98].mxu0 }
 0x444   : > { %19895 = vst.msk [vmem:[#allocation2 + $0x159] sm:$0xff] %vm330_vm10, %v19862_v41  ;;  %v19835_v48 = vmax.f32 %v19803_v10, 0.0  ;;  %v19834_v12 = vadd.f32 %v39632_v1, %v46112_v43  ;;  %v19756_v33 = vpop.f32.mrb[99].mxu0  ;;  %v39562_v21 = vpop.f32.mrb[112].mxu1  ;;  %v19913_v1 = vld [vmem:[#allocation2 + $0x68] sm:$0xff] }
 0x445   : > { %19894 = vst.msk [vmem:[#allocation2 + $0x151] sm:$0xff] %vm330_vm10, %v19861_v19  ;;  %19869 = vst.msk [vmem:[#allocation2 + $0x21] sm:$0xff] %vm330_vm10, %v19836_v53  ;;  %v19833_v52 = vadd.f32 %v46112_v43, %v19756_v33  ;;  %v19806_v40 = vadd.f32 %v39562_v21, %v46112_v43  ;;  %v18700_v18 = vpop.f32.mrb[113].mxu1  ;;  %v19912_v53 = vld [vmem:[#allocation2 + $0x60] sm:$0xff] }
 0x446   : > { %19868 = vst.msk [vmem:[#allocation2 + $0x19] sm:$0xff] %vm330_vm10, %v19835_v48  ;;  %v19866_v27 = vmax.f32 %v19834_v12, 0.0  ;;  %v19805_v20 = vadd.f32 %v46112_v43, %v18700_v18 }
 0x447   : > { %v19865_v6 = vmax.f32 %v19833_v52, 0.0  ;;  %v19838_v56 = vmax.f32 %v19806_v40, 0.0  ;;  %v46208_v40 = vpack.c.bf16 %v19913_v1, %v19912_v53 }
 0x448   : > { %19899 = vst.msk [vmem:[#allocation2 + $0x189] sm:$0xff] %vm330_vm10, %v19866_v27  ;;  %v19837_v30 = vmax.f32 %v19805_v20, 0.0  ;;  %v39567_v39 = vpop.f32.mrb[114].mxu1 }
 0x449   : > { %19898 = vst.msk [vmem:[#allocation2 + $0x181] sm:$0xff] %vm330_vm10, %v19865_v6  ;;  %19871 = vst.msk [vmem:[#allocation2 + $0x39] sm:$0xff] %vm330_vm10, %v19838_v56  ;;  %v19808_v5 = vadd.f32 %v39567_v39, %v46112_v43  ;;  %v18775_v22 = vpop.f32.mrb[115].mxu1 }
 0x44a   : > { %19870 = vst.msk [vmem:[#allocation2 + $0x31] sm:$0xff] %vm330_vm10, %v19837_v30  ;;  %v19807_v36 = vadd.f32 %v46112_v43, %v18775_v22 }
 0x44b   : > { %v19840_v16 = vmax.f32 %v19808_v5, 0.0  ;;  %v46222_v5 = vld [vmem:[#allocation2 + $0x70] sm:$0x3] }
 0x44c   : > { %v19839_v2 = vmax.f32 %v19807_v36, 0.0  ;;  %v39577_v29 = vpop.f32.mrb[118].mxu1  ;;  %v46166_v14 = vld [vmem:[#allocation2 + $0x28] sm:$0x3]  ;;  %v19942_v53 = vld [vmem:[#allocation2 + $0x150] sm:$0xff]  ;;  %v19943_v1 = vld [vmem:[#allocation2 + $0x158] sm:$0xff] }
 0x44d   : > { %19873 = vst.msk [vmem:[#allocation2 + $0x51] sm:$0xff] %vm330_vm10, %v19840_v16  ;;  %v19812_v13 = vadd.f32 %v39577_v29, %v46112_v43  ;;  %v18925_v51 = vpop.f32.mrb[119].mxu1  ;;  %v19903_v55 = vld [vmem:[#allocation2 + $0x18] sm:$0xff]  ;;  %v19904_v47 = vld [vmem:[#allocation2 + $0x20] sm:$0xff] }
 0x44e   : > { %19872 = vst.msk [vmem:[#allocation2 + $0x49] sm:$0xff] %vm330_vm10, %v19839_v2  ;;  %v19811_v37 = vadd.f32 %v46112_v43, %v18925_v51  ;;  %v46158_v45 = vpack.c.bf16 %v19904_v47, %v19903_v55  ;;  %v19918_v2 = vld [vmem:[#allocation2 + $0x90] sm:$0xff]  ;;  %v19919_v29 = vld [vmem:[#allocation2 + $0x98] sm:$0xff] }
 0x44f   : > { %v19844_v28 = vmax.f32 %v19812_v13, 0.0 }
 0x450   : > { %v19843_v58 = vmax.f32 %v19811_v37, 0.0  ;;  %v39587_v26 = vpop.f32.mrb[120].mxu1  ;;  %41866 = vmatpush3.bf16.msra.mxu0 %v46158_v45  ;;  %v46185_v38 = vld [vmem:[#allocation2 + $0x40] sm:$0x3]  ;;  %v46248_v37 = vpack.c.bf16 %v19919_v29, %v19918_v2 }
 0x451   : > { %19877 = vst.msk [vmem:[#allocation2 + $0x81] sm:$0xff] %vm330_vm10, %v19844_v28  ;;  %v19816_v50 = vadd.f32 %v39587_v26, %v46112_v43  ;;  %v19075_v63 = vpop.f32.mrb[121].mxu1  ;;  %39646 = vmatprep.subr.mxu0 %v48463_v25  ;;  %v19906_v49 = vld [vmem:[#allocation2 + $0x30] sm:$0xff]  ;;  %v19907_v24 = vld [vmem:[#allocation2 + $0x38] sm:$0xff] }
 0x452   : > { %19876 = vst.msk [vmem:[#allocation2 + $0x79] sm:$0xff] %vm330_vm10, %v19843_v58  ;;  %v19815_v8 = vadd.f32 %v46112_v43, %v19075_v63  ;;  %v46170_v46 = vpack.c.bf16 %v19907_v24, %v19906_v49 }
 0x453   : > { %v19848_v42 = vmax.f32 %v19816_v50, 0.0  ;;  %v46264_v50 = vld [vmem:[#allocation2 + $0xa0] sm:$0x3] }
 0x454   : > { %v19847_v7 = vmax.f32 %v19815_v8, 0.0  ;;  %v39597_v4 = vpop.f32.mrb[122].mxu1  ;;  %39647 = vmatpush3.msk.msra.mxu0 %vm601_vm2, %v46166_v14  ;;  %v46204_v33 = vld [vmem:[#allocation2 + $0x58] sm:$0x3] }
 0x455   : > { %19881 = vst.msk [vmem:[#allocation2 + $0xb1] sm:$0xff] %vm330_vm10, %v19848_v42  ;;  %v19820_v62 = vadd.f32 %v39597_v4, %v46112_v43  ;;  %v19225_v23 = vpop.f32.mrb[123].mxu1  ;;  %39649 = vmatmul.mubr.msk.f32.vlgmr.msra.gmra.mrb[104].mxu0 %vm19961_vm13, %v48520_v35  ;;  %41867 = vmatprep.subr.bf16.mxu0 %v42754_v9  ;;  %v19909_v34 = vld [vmem:[#allocation2 + $0x48] sm:$0xff]  ;;  %v19910_v59 = vld [vmem:[#allocation2 + $0x50] sm:$0xff] }
 0x456   : > { %19880 = vst.msk [vmem:[#allocation2 + $0xa9] sm:$0xff] %vm330_vm10, %v19847_v7  ;;  %v19819_v15 = vadd.f32 %v46112_v43, %v19225_v23  ;;  %41869 = vmatpush3.bf16.msra.mxu0 %v46170_v46  ;;  %39657 = vmatprep.mubr.msk.f32.mxu0 %vm42755_vm12, %v48463_v25  ;;  %v46191_v44 = vpack.c.bf16 %v19910_v59, %v19909_v34  ;;  %v19924_v7 = vld [vmem:[#allocation2 + $0xc0] sm:$0xff]  ;;  %v19925_v4 = vld [vmem:[#allocation2 + $0xc8] sm:$0xff]  ;;  %v46312_v59 = vld [vmem:[#allocation2 + $0xd0] sm:$0x3] }
 0x457   : > { %v19852_v57 = vmax.f32 %v19820_v62, 0.0  ;;  %39655 = vmatprep.subr.mxu0 %v48463_v25  ;;  %v46296_v23 = vpack.c.bf16 %v19925_v4, %v19924_v7 }
 0x458   : > { %v19851_v31 = vmax.f32 %v19819_v15, 0.0  ;;  %v39607_v32 = vpop.f32.mrb[124].mxu1  ;;  %v46238_v13 = vld [vmem:[#allocation2 + $0x88] sm:$0x3] }
 0x459   : > { %19885 = vst.msk [vmem:[#allocation2 + $0xe1] sm:$0xff] %vm330_vm10, %v19852_v57  ;;  %v19824_v0 = vadd.f32 %v39607_v32, %v46112_v43  ;;  %v19375_v3 = vpop.f32.mrb[125].mxu1  ;;  %v19915_v56 = vld [vmem:[#allocation2 + $0x78] sm:$0xff]  ;;  %v19916_v30 = vld [vmem:[#allocation2 + $0x80] sm:$0xff]  ;;  %v48521_v32 = vld [vmem:[#allocation26_spill] sm:$0xff] }
 0x45a   : > { %19884 = vst.msk [vmem:[#allocation2 + $0xd9] sm:$0xff] %vm330_vm10, %v19851_v31  ;;  %v19823_v54 = vadd.f32 %v46112_v43, %v19375_v3  ;;  %39656 = vmatpush3.msk.msra.mxu0 %vm601_vm2, %v46185_v38  ;;  %v19931_v3 = vld [vmem:[#allocation2 + $0xf8] sm:$0xff] }
 0x45b   : > { %v19856_v60 = vmax.f32 %v19824_v0, 0.0  ;;  %39658 = vmatmul.mubr.msk.f32.vlgmr.msra.gmra.mrb[106].mxu0 %vm19961_vm13, %v48520_v35  ;;  %41870 = vmatprep.subr.bf16.mxu0 %v42754_v9  ;;  %v19930_v0 = vld [vmem:[#allocation2 + $0xf0] sm:$0xff] }
 0x45c   : > { %v19855_v61 = vmax.f32 %v19823_v54, 0.0  ;;  %v39617_v41 = vpop.f32.mrb[126].mxu1  ;;  %41872 = vmatpush3.bf16.msra.mxu0 %v46191_v44  ;;  %39666 = vmatprep.mubr.msk.f32.mxu0 %vm42755_vm12, %v48463_v25  ;;  %v46288_v62 = vld [vmem:[#allocation2 + $0xb8] sm:$0x3] }
 0x45d   : > { %19889 = vst.msk [vmem:[#allocation2 + $0x111] sm:$0xff] %vm330_vm10, %v19856_v60  ;;  %v19828_v10 = vadd.f32 %v39617_v41, %v46112_v43  ;;  %v19525_v19 = vpop.f32.mrb[127].mxu1  ;;  %39664 = vmatprep.subr.mxu0 %v48463_v25  ;;  %v19921_v58 = vld [vmem:[#allocation2 + $0xa8] sm:$0xff]  ;;  %v19922_v26 = vld [vmem:[#allocation2 + $0xb0] sm:$0xff]  ;;  %v46342_v60 = vpack.c.bf16 %v19931_v3, %v19930_v0 }
 0x45e   : > { %19888 = vst.msk [vmem:[#allocation2 + $0x109] sm:$0xff] %vm330_vm10, %v19855_v61  ;;  %v19827_v48 = vadd.f32 %v46112_v43, %v19525_v19  ;;  %v46270_v24 = vpack.c.bf16 %v19922_v26, %v19921_v58  ;;  %v19936_v61 = vld [vmem:[#allocation2 + $0x120] sm:$0xff]  ;;  %v19937_v41 = vld [vmem:[#allocation2 + $0x128] sm:$0xff] }
 0x45f   : > { %v19860_v12 = vmax.f32 %v19828_v10, 0.0  ;;  %v46356_v10 = vld [vmem:[#allocation2 + $0x100] sm:$0x3]  ;;  %v46364_v19 = vpack.c.bf16 %v19937_v41, %v19936_v61 }
 0x460   : > { %v19859_v21 = vmax.f32 %v19827_v48, 0.0  ;;  %v39627_v52 = vpop.f32.mrb[128].mxu1  ;;  %39665 = vmatpush3.msk.msra.mxu0 %vm601_vm2, %v46204_v33  ;;  %v46334_v54 = vld [vmem:[#allocation2 + $0xe8] sm:$0x3]  ;;  %v46378_v48 = vld [vmem:[#allocation2 + $0x130] sm:$0x3] }
 0x461   : > { %19893 = vst.msk [vmem:[#allocation2 + $0x141] sm:$0xff] %vm330_vm10, %v19860_v12  ;;  %v19832_v18 = vadd.f32 %v39627_v52, %v46112_v43  ;;  %v19675_v27 = vpop.f32.mrb[129].mxu1  ;;  %39667 = vmatmul.mubr.msk.f32.vlgmr.msra.gmra.mrb[108].mxu0 %vm19961_vm13, %v48520_v35  ;;  %41873 = vmatprep.subr.bf16.mxu0 %v42754_v9  ;;  %v19927_v57 = vld [vmem:[#allocation2 + $0xd8] sm:$0xff]  ;;  %v19928_v34 = vld [vmem:[#allocation2 + $0xe0] sm:$0xff]  ;;  %v46386_v12 = vpack.c.bf16 %v19943_v1, %v19942_v53  ;;  %v19949_v52 = vld [vmem:[#allocation2 + $0x188] sm:$0xff] }
 0x462   : > { %19892 = vst.msk [vmem:[#allocation2 + $0x139] sm:$0xff] %vm330_vm10, %v19859_v21  ;;  %v19831_v20 = vadd.f32 %v46112_v43, %v19675_v27  ;;  %41875 = vmatpush3.bf16.msra.mxu0 %v46208_v40  ;;  %39675 = vmatprep.mubr.msk.f32.mxu0 %vm42755_vm12, %v48463_v25  ;;  %v46227_v43 = vpack.c.bf16 %v19916_v30, %v19915_v56  ;;  %v19948_v21 = vld [vmem:[#allocation2 + $0x180] sm:$0xff] }
 0x463   : > { %v19864_v6 = vmax.f32 %v19832_v18, 0.0  ;;  %39673 = vmatprep.subr.mxu0 %v48463_v25  ;;  %v46320_v31 = vpack.c.bf16 %v19928_v34, %v19927_v57  ;;  %v46400_v18 = vld [vmem:[#allocation2 + $0x160] sm:$0x3]  ;;  %v46408_v27 = vpack.c.bf16 %v19949_v52, %v19948_v21 }
 0x464   : > { %v19863_v39 = vmax.f32 %v19831_v20, 0.0  ;;  %v46242_v51 = vld [vmem:[#allocation2 + $0x118] sm:$0x3]  ;;  %v46422_v20 = vld [vmem:[#allocation2 + $0x190] sm:$0x3] }
 0x465   : > { %19897 = vst.msk [vmem:[#allocation2 + $0x171] sm:$0xff] %vm330_vm10, %v19864_v6  ;;  %v19933_v22 = vld [vmem:[#allocation2 + $0x108] sm:$0xff]  ;;  %v19934_v36 = vld [vmem:[#allocation2 + $0x110] sm:$0xff]  ;;  %v46451_v6 = vpop.f32.mrb[102].mxu0 }
 0x466   : > { %19896 = vst.msk [vmem:[#allocation2 + $0x169] sm:$0xff] %vm330_vm10, %v19863_v39  ;;  %39674 = vmatpush3.msk.msra.mxu0 %vm601_vm2, %v46222_v5  ;;  %v46229_v16 = vpack.c.bf16 %v19934_v36, %v19933_v22  ;;  %v39641_v56 = vpop.f32.mrb[103].mxu0 }
 0x467   : > { %39676 = vmatmul.mubr.msk.f32.vlgmr.msra.gmra.mrb[110].mxu0 %vm19961_vm13, %v48520_v35  ;;  %41876 = vmatprep.subr.bf16.mxu0 %v42754_v9  ;;  %v46832_v56 = vld [vmem:[%s48102_s3 + $0x10] sm:$0xff] }
 0x468   : > { %41878 = vmatpush3.bf16.msra.mxu0 %v46227_v43  ;;  %41896 = vmatpush3.bf16.msra.mxu1 %v46229_v16  ;;  %v46272_v8 = vld [vmem:[#allocation2 + $0x148] sm:$0x3] }
 0x469   : > { %39682 = vmatprep.subr.mxu0 %v48463_v25  ;;  %39736 = vmatprep.subr.mxu1 %v48463_v25  ;;  %v19939_v55 = vld [vmem:[#allocation2 + $0x138] sm:$0xff]  ;;  %v19940_v47 = vld [vmem:[#allocation2 + $0x140] sm:$0xff] }
 0x46a   : > { %39684 = vmatprep.mubr.msk.f32.mxu0 %vm42755_vm12, %v48463_v25  ;;  %v46255_v28 = vpack.c.bf16 %v19940_v47, %v19939_v55 }
 0x46c   : > { %39683 = vmatpush3.msk.msra.mxu0 %vm601_vm2, %v46238_v13  ;;  %39737 = vmatpush3.msk.msra.mxu1 %vm601_vm2, %v46242_v51  ;;  %v46298_v15 = vld [vmem:[#allocation2 + $0x178] sm:$0x3] }
 0x46d   : > { %39685 = vmatmul.mubr.msk.f32.vlgmr.msra.gmra.mrb[112].mxu0 %vm19961_vm13, %v48520_v35  ;;  %41879 = vmatprep.subr.bf16.mxu0 %v42754_v9  ;;  %v19945_v63 = vld [vmem:[#allocation2 + $0x168] sm:$0xff]  ;;  %v19946_v49 = vld [vmem:[#allocation2 + $0x170] sm:$0xff] }
 0x46e   : > { %41900 = vmatprep.subr.bf16.mxu1 %v42754_v9  ;;  %41881 = vmatpush3.bf16.msra.mxu0 %v46248_v37  ;;  %v46280_v42 = vpack.c.bf16 %v19946_v49, %v19945_v63 }
 0x46f   : > { %39739 = vmatmul.mubr.msk.f32.vlgmr.msra.gmra.mrb[130].mxu1 %vm19961_vm13, %v48520_v35  ;;  %39691 = vmatprep.subr.mxu0 %v48463_v25 }
 0x470   : > { %41902 = vmatpush3.bf16.msra.mxu1 %v46255_v28  ;;  %39693 = vmatprep.mubr.msk.f32.mxu0 %vm42755_vm12, %v48463_v25 }
 0x471   : > { %39754 = vmatprep.subr.mxu1 %v48463_v25  ;;  %39756 = vmatprep.mubr.msk.f32.mxu1 %vm42755_vm12, %v48463_v25 }
 0x472   : > { %39692 = vmatpush3.msk.msra.mxu0 %vm601_vm2, %v46264_v50 }
 0x473   : > { %39694 = vmatmul.mubr.msk.f32.vlgmr.msra.gmra.mrb[114].mxu0 %vm19961_vm13, %v48520_v35  ;;  %41882 = vmatprep.subr.bf16.mxu0 %v42754_v9 }
 0x474   : > { %39755 = vmatpush3.msk.msra.mxu1 %vm601_vm2, %v46272_v8  ;;  %41884 = vmatpush3.bf16.msra.mxu0 %v46270_v24 }
 0x475   : > { %41906 = vmatprep.subr.bf16.mxu1 %v42754_v9  ;;  %39757 = vmatmul.mubr.msk.f32.vlgmr.msra.gmra.mrb[132].mxu1 %vm19961_vm13, %v48520_v35 }
 0x476   : > { %41908 = vmatpush3.bf16.msra.mxu1 %v46280_v42  ;;  %39700 = vmatprep.subr.mxu0 %v48463_v25 }
 0x477   : > { %39772 = vmatprep.subr.mxu1 %v48463_v25  ;;  %39702 = vmatprep.mubr.msk.f32.mxu0 %vm42755_vm12, %v48463_v25 }
 0x478   : > { %39701 = vmatpush3.msk.msra.mxu0 %vm601_vm2, %v46288_v62  ;;  %39774 = vmatprep.mubr.msk.f32.mxu1 %vm42755_vm12, %v48463_v25 }
 0x479   : > { %39703 = vmatmul.mubr.msk.f32.vlgmr.msra.gmra.mrb[116].mxu0 %vm19961_vm13, %v48520_v35  ;;  %41885 = vmatprep.subr.bf16.mxu0 %v42754_v9 }
 0x47a   : > { %39773 = vmatpush3.msk.msra.mxu1 %vm601_vm2, %v46298_v15  ;;  %41887 = vmatpush3.bf16.msra.mxu0 %v46296_v23 }
 0x47b   : > { %41912 = vmatprep.subr.bf16.mxu1 %v42754_v9  ;;  %39775 = vmatmul.mubr.msk.f32.vlgmr.msra.gmra.mrb[134].mxu1 %vm19961_vm13, %v48520_v35 }
 0x47c   : > { %41914 = vmatpush3.bf16.msra.mxu1 %v46090_v11  ;;  %39709 = vmatprep.subr.mxu0 %v48463_v25 }
 0x47d   : > { %39790 = vmatprep.subr.mxu1 %v48463_v25  ;;  %39711 = vmatprep.mubr.msk.f32.mxu0 %vm42755_vm12, %v48463_v25 }
 0x47e   : > { %39710 = vmatpush3.msk.msra.mxu0 %vm601_vm2, %v46312_v59  ;;  %39792 = vmatprep.mubr.msk.f32.mxu1 %vm42755_vm12, %v48463_v25 }
 0x47f   : > { %39712 = vmatmul.mubr.msk.f32.vlgmr.msra.gmra.mrb[118].mxu0 %vm19961_vm13, %v48520_v35  ;;  %41888 = vmatprep.subr.bf16.mxu0 %v42754_v9 }
 0x480   : > { %39791 = vmatpush3.msk.msra.mxu1 %vm601_vm2, %v46096_v17  ;;  %41890 = vmatpush3.bf16.msra.mxu0 %v46320_v31 }
 0x481   : > { %41918 = vmatprep.subr.bf16.mxu1 %v42754_v9  ;;  %39793 = vmatmul.mubr.msk.f32.vlgmr.msra.gmra.mrb[136].mxu1 %vm19961_vm13, %v48521_v32 }
 0x482   : > { %41920 = vmatpush3.bf16.msra.mxu1 %v46170_v46  ;;  %39718 = vmatprep.subr.mxu0 %v48463_v25 }
 0x483   : > { %39808 = vmatprep.subr.mxu1 %v48463_v25  ;;  %39720 = vmatprep.mubr.msk.f32.mxu0 %vm42755_vm12, %v48463_v25 }
 0x484   : > { %39719 = vmatpush3.msk.msra.mxu0 %vm601_vm2, %v46334_v54  ;;  %39810 = vmatprep.mubr.msk.f32.mxu1 %vm42755_vm12, %v48463_v25 }
 0x485   : > { %39721 = vmatmul.mubr.msk.f32.vlgmr.msra.gmra.mrb[120].mxu0 %vm19961_vm13, %v48520_v35  ;;  %41891 = vmatprep.subr.bf16.mxu0 %v42754_v9 }
 0x486   : > { %39809 = vmatpush3.msk.msra.mxu1 %vm601_vm2, %v46185_v38  ;;  %41893 = vmatpush3.bf16.msra.mxu0 %v46342_v60 }
 0x487   : > { %41924 = vmatprep.subr.bf16.mxu1 %v42754_v9  ;;  %39811 = vmatmul.mubr.msk.f32.vlgmr.msra.gmra.mrb[138].mxu1 %vm19961_vm13, %v48521_v32 }
 0x488   : > { %41926 = vmatpush3.bf16.msra.mxu1 %v46208_v40  ;;  %39727 = vmatprep.subr.mxu0 %v48463_v25 }
 0x489   : > { %39826 = vmatprep.subr.mxu1 %v48463_v25  ;;  %39729 = vmatprep.mubr.msk.f32.mxu0 %vm42755_vm12, %v48463_v25 }
 0x48a   : > { %39728 = vmatpush3.msk.msra.mxu0 %vm601_vm2, %v46356_v10  ;;  %39828 = vmatprep.mubr.msk.f32.mxu1 %vm42755_vm12, %v48463_v25 }
 0x48b   : > { %39730 = vmatmul.mubr.msk.f32.vlgmr.msra.gmra.mrb[122].mxu0 %vm19961_vm13, %v48520_v35  ;;  %41897 = vmatprep.subr.bf16.mxu0 %v42754_v9 }
 0x48c   : > { %39827 = vmatpush3.msk.msra.mxu1 %vm601_vm2, %v46222_v5  ;;  %41899 = vmatpush3.bf16.msra.mxu0 %v46364_v19 }
 0x48d   : > { %41930 = vmatprep.subr.bf16.mxu1 %v42754_v9  ;;  %39829 = vmatmul.mubr.msk.f32.vlgmr.msra.gmra.mrb[140].mxu1 %vm19961_vm13, %v48521_v32 }
 0x48e   : > { %41932 = vmatpush3.bf16.msra.mxu1 %v46248_v37  ;;  %39745 = vmatprep.subr.mxu0 %v48463_v25 }
 0x48f   : > { %39844 = vmatprep.subr.mxu1 %v48463_v25  ;;  %39747 = vmatprep.mubr.msk.f32.mxu0 %vm42755_vm12, %v48463_v25 }
 0x490   : > { %39746 = vmatpush3.msk.msra.mxu0 %vm601_vm2, %v46378_v48  ;;  %39846 = vmatprep.mubr.msk.f32.mxu1 %vm42755_vm12, %v48463_v25 }
 0x491   : > { %39748 = vmatmul.mubr.msk.f32.vlgmr.msra.gmra.mrb[124].mxu0 %vm19961_vm13, %v48520_v35  ;;  %41903 = vmatprep.subr.bf16.mxu0 %v42754_v9 }
 0x492   : > { %39845 = vmatpush3.msk.msra.mxu1 %vm601_vm2, %v46264_v50  ;;  %41905 = vmatpush3.bf16.msra.mxu0 %v46386_v12 }
 0x493   : > { %41936 = vmatprep.subr.bf16.mxu1 %v42754_v9  ;;  %39847 = vmatmul.mubr.msk.f32.vlgmr.msra.gmra.mrb[142].mxu1 %vm19961_vm13, %v48521_v32 }
 0x494   : > { %41938 = vmatpush3.bf16.msra.mxu1 %v46296_v23  ;;  %39763 = vmatprep.subr.mxu0 %v48463_v25 }
 0x495   : > { %39862 = vmatprep.subr.mxu1 %v48463_v25  ;;  %39765 = vmatprep.mubr.msk.f32.mxu0 %vm42755_vm12, %v48463_v25 }
 0x496   : > { %39764 = vmatpush3.msk.msra.mxu0 %vm601_vm2, %v46400_v18  ;;  %39864 = vmatprep.mubr.msk.f32.mxu1 %vm42755_vm12, %v48463_v25 }
 0x497   : > { %39766 = vmatmul.mubr.msk.f32.vlgmr.msra.gmra.mrb[126].mxu0 %vm19961_vm13, %v48520_v35  ;;  %41909 = vmatprep.subr.bf16.mxu0 %v42754_v9 }
 0x498   : > { %39863 = vmatpush3.msk.msra.mxu1 %vm601_vm2, %v46312_v59  ;;  %41911 = vmatpush3.bf16.msra.mxu0 %v46408_v27 }
 0x499   : > { %41942 = vmatprep.subr.bf16.mxu1 %v42754_v9  ;;  %39865 = vmatmul.mubr.msk.f32.vlgmr.msra.gmra.mrb[144].mxu1 %vm19961_vm13, %v48521_v32 }
 0x49a   : > { %41944 = vmatpush3.bf16.msra.mxu1 %v46342_v60  ;;  %39781 = vmatprep.subr.mxu0 %v48463_v25 }
 0x49b   : > { %39880 = vmatprep.subr.mxu1 %v48463_v25  ;;  %39783 = vmatprep.mubr.msk.f32.mxu0 %vm42755_vm12, %v48463_v25 }
 0x49c   : > { %39782 = vmatpush3.msk.msra.mxu0 %vm601_vm2, %v46422_v20  ;;  %39882 = vmatprep.mubr.msk.f32.mxu1 %vm42755_vm12, %v48463_v25 }
 0x49d   : > { %39784 = vmatmul.mubr.msk.f32.vlgmr.msra.gmra.mrb[128].mxu0 %vm19961_vm13, %v48520_v35  ;;  %41915 = vmatprep.subr.bf16.mxu0 %v42754_v9 }
 0x49e   : > { %39881 = vmatpush3.msk.msra.mxu1 %vm601_vm2, %v46356_v10  ;;  %41917 = vmatpush3.bf16.msra.mxu0 %v46158_v45 }
 0x49f   : > { %41948 = vmatprep.subr.bf16.mxu1 %v42754_v9  ;;  %39883 = vmatmul.mubr.msk.f32.vlgmr.msra.gmra.mrb[146].mxu1 %vm19961_vm13, %v48521_v32 }
 0x4a0   : > { %41950 = vmatpush3.bf16.msra.mxu1 %v46364_v19  ;;  %39799 = vmatprep.subr.mxu0 %v48463_v25 }
 0x4a1   : > { %39898 = vmatprep.subr.mxu1 %v48463_v25  ;;  %39801 = vmatprep.mubr.msk.f32.mxu0 %vm42755_vm12, %v48463_v25 }
 0x4a2   : > { %39800 = vmatpush3.msk.msra.mxu0 %vm601_vm2, %v46166_v14  ;;  %39900 = vmatprep.mubr.msk.f32.mxu1 %vm42755_vm12, %v48463_v25 }
 0x4a3   : > { %39802 = vmatmul.mubr.msk.f32.vlgmr.msra.gmra.mrb[130].mxu0 %vm19961_vm13, %v48521_v32  ;;  %41921 = vmatprep.subr.bf16.mxu0 %v42754_v9 }
 0x4a4   : > { %39899 = vmatpush3.msk.msra.mxu1 %vm601_vm2, %v46378_v48  ;;  %41923 = vmatpush3.bf16.msra.mxu0 %v46191_v44 }
 0x4a5   : > { %39901 = vmatmul.mubr.msk.f32.vlgmr.msra.gmra.mrb[148].mxu1 %vm19961_vm13, %v48521_v32  ;;  %41954 = vmatprep.subr.bf16.mxu1 %v42754_v9 }
 0x4a6   : > { %41956 = vmatpush3.bf16.msra.mxu1 %v46386_v12  ;;  %39817 = vmatprep.subr.mxu0 %v48463_v25 }
 0x4a7   : > { %39916 = vmatprep.subr.mxu1 %v48463_v25  ;;  %39819 = vmatprep.mubr.msk.f32.mxu0 %vm42755_vm12, %v48463_v25 }
 0x4a8   : > { %39818 = vmatpush3.msk.msra.mxu0 %vm601_vm2, %v46204_v33  ;;  %39918 = vmatprep.mubr.msk.f32.mxu1 %vm42755_vm12, %v48463_v25 }
 0x4a9   : > { %39820 = vmatmul.mubr.msk.f32.vlgmr.msra.gmra.mrb[132].mxu0 %vm19961_vm13, %v48521_v32  ;;  %41927 = vmatprep.subr.bf16.mxu0 %v42754_v9 }
 0x4aa   : > { %39917 = vmatpush3.msk.msra.mxu1 %vm601_vm2, %v46400_v18  ;;  %41929 = vmatpush3.bf16.msra.mxu0 %v46227_v43 }
 0x4ab   : > { %39919 = vmatmul.mubr.msk.f32.vlgmr.msra.gmra.mrb[150].mxu1 %vm19961_vm13, %v48521_v32  ;;  %41960 = vmatprep.subr.bf16.mxu1 %v42754_v9 }
 0x4ac   : > { %41962 = vmatpush3.bf16.msra.mxu1 %v46408_v27  ;;  %39835 = vmatprep.subr.mxu0 %v48463_v25 }
 0x4ad   : > { %39934 = vmatprep.subr.mxu1 %v48463_v25  ;;  %39837 = vmatprep.mubr.msk.f32.mxu0 %vm42755_vm12, %v48463_v25 }
 0x4ae   : > { %39836 = vmatpush3.msk.msra.mxu0 %vm601_vm2, %v46238_v13  ;;  %39936 = vmatprep.mubr.msk.f32.mxu1 %vm42755_vm12, %v48463_v25 }
 0x4af   : > { %39838 = vmatmul.mubr.msk.f32.vlgmr.msra.gmra.mrb[134].mxu0 %vm19961_vm13, %v48521_v32  ;;  %41933 = vmatprep.subr.bf16.mxu0 %v42754_v9 }
 0x4b0   : > { %39935 = vmatpush3.msk.msra.mxu1 %vm601_vm2, %v46422_v20  ;;  %41935 = vmatpush3.bf16.msra.mxu0 %v46270_v24 }
 0x4b1   : > { %41966 = vmatprep.subr.bf16.mxu1 %v42754_v9  ;;  %39937 = vmatmul.mubr.msk.f32.vlgmr.msra.gmra.mrb[152].mxu1 %vm19961_vm13, %v48521_v32 }
 0x4b2   : > { %41968 = vmatpush3.bf16.msra.mxu1 %v46158_v45  ;;  %39853 = vmatprep.subr.mxu0 %v48463_v25  ;;  %v48522_v45 = vld [vmem:[#allocation46_spill] sm:$0xff] }
 0x4b3   : > { %39952 = vmatprep.subr.mxu1 %v48463_v25  ;;  %39855 = vmatprep.mubr.msk.f32.mxu0 %vm42755_vm12, %v48463_v25 }
 0x4b4   : > { %39854 = vmatpush3.msk.msra.mxu0 %vm601_vm2, %v46288_v62  ;;  %39954 = vmatprep.mubr.msk.f32.mxu1 %vm42755_vm12, %v48463_v25 }
 0x4b5   : > { %39856 = vmatmul.mubr.msk.f32.vlgmr.msra.gmra.mrb[136].mxu0 %vm19961_vm13, %v48521_v32  ;;  %41939 = vmatprep.subr.bf16.mxu0 %v42754_v9 }
 0x4b6   : > { %39953 = vmatpush3.msk.msra.mxu1 %vm601_vm2, %v46166_v14  ;;  %41941 = vmatpush3.bf16.msra.mxu0 %v46320_v31 }
 0x4b7   : > { %41972 = vmatprep.subr.bf16.mxu1 %v42754_v9  ;;  %39955 = vmatmul.mubr.msk.f32.vlgmr.msra.gmra.mrb[154].mxu1 %vm19961_vm13, %v48522_v45 }
 0x4b8   : > { %41974 = vmatpush3.bf16.msra.mxu1 %v46191_v44  ;;  %39871 = vmatprep.subr.mxu0 %v48463_v25 }
 0x4b9   : > { %39970 = vmatprep.subr.mxu1 %v48463_v25  ;;  %39873 = vmatprep.mubr.msk.f32.mxu0 %vm42755_vm12, %v48463_v25 }
 0x4ba   : > { %39872 = vmatpush3.msk.msra.mxu0 %vm601_vm2, %v46334_v54  ;;  %39972 = vmatprep.mubr.msk.f32.mxu1 %vm42755_vm12, %v48463_v25 }
 0x4bb   : > { %39874 = vmatmul.mubr.msk.f32.vlgmr.msra.gmra.mrb[138].mxu0 %vm19961_vm13, %v48521_v32  ;;  %41945 = vmatprep.subr.bf16.mxu0 %v42754_v9 }
 0x4bc   : > { %39971 = vmatpush3.msk.msra.mxu1 %vm601_vm2, %v46204_v33  ;;  %41947 = vmatpush3.bf16.msra.mxu0 %v46229_v16 }
 0x4bd   : > { %41978 = vmatprep.subr.bf16.mxu1 %v42754_v9  ;;  %39973 = vmatmul.mubr.msk.f32.vlgmr.msra.gmra.mrb[156].mxu1 %vm19961_vm13, %v48522_v45 }
 0x4be   : > { %41980 = vmatpush3.bf16.msra.mxu1 %v46227_v43  ;;  %39889 = vmatprep.subr.mxu0 %v48463_v25 }
 0x4bf   : > { %39988 = vmatprep.subr.mxu1 %v48463_v25  ;;  %39891 = vmatprep.mubr.msk.f32.mxu0 %vm42755_vm12, %v48463_v25 }
 0x4c0   : > { %39890 = vmatpush3.msk.msra.mxu0 %vm601_vm2, %v46242_v51  ;;  %39990 = vmatprep.mubr.msk.f32.mxu1 %vm42755_vm12, %v48463_v25 }
 0x4c1   : > { %39892 = vmatmul.mubr.msk.f32.vlgmr.msra.gmra.mrb[140].mxu0 %vm19961_vm13, %v48521_v32  ;;  %41951 = vmatprep.subr.bf16.mxu0 %v42754_v9 }
 0x4c2   : > { %39989 = vmatpush3.msk.msra.mxu1 %vm601_vm2, %v46238_v13  ;;  %41953 = vmatpush3.bf16.msra.mxu0 %v46255_v28 }
 0x4c3   : > { %41984 = vmatprep.subr.bf16.mxu1 %v42754_v9  ;;  %39991 = vmatmul.mubr.msk.f32.vlgmr.msra.gmra.mrb[158].mxu1 %vm19961_vm13, %v48522_v45 }
 0x4c4   : > { %41986 = vmatpush3.bf16.msra.mxu1 %v46270_v24  ;;  %39907 = vmatprep.subr.mxu0 %v48463_v25 }
 0x4c5   : > { %40006 = vmatprep.subr.mxu1 %v48463_v25  ;;  %39909 = vmatprep.mubr.msk.f32.mxu0 %vm42755_vm12, %v48463_v25 }
 0x4c6   : > { %39908 = vmatpush3.msk.msra.mxu0 %vm601_vm2, %v46272_v8  ;;  %40008 = vmatprep.mubr.msk.f32.mxu1 %vm42755_vm12, %v48463_v25 }
 0x4c7   : > { %39910 = vmatmul.mubr.msk.f32.vlgmr.msra.gmra.mrb[142].mxu0 %vm19961_vm13, %v48521_v32  ;;  %41957 = vmatprep.subr.bf16.mxu0 %v42754_v9 }
 0x4c8   : > { %40007 = vmatpush3.msk.msra.mxu1 %vm601_vm2, %v46288_v62  ;;  %41959 = vmatpush3.bf16.msra.mxu0 %v46280_v42 }
 0x4c9   : > { %41990 = vmatprep.subr.bf16.mxu1 %v42754_v9  ;;  %40009 = vmatmul.mubr.msk.f32.vlgmr.msra.gmra.mrb[160].mxu1 %vm19961_vm13, %v48522_v45 }
 0x4ca   : > { %41992 = vmatpush3.bf16.msra.mxu1 %v46320_v31  ;;  %39925 = vmatprep.subr.mxu0 %v48463_v25 }
 0x4cb   : > { %40024 = vmatprep.subr.mxu1 %v48463_v25  ;;  %39927 = vmatprep.mubr.msk.f32.mxu0 %vm42755_vm12, %v48463_v25 }
 0x4cc   : > { %39926 = vmatpush3.msk.msra.mxu0 %vm601_vm2, %v46298_v15  ;;  %40026 = vmatprep.mubr.msk.f32.mxu1 %vm42755_vm12, %v48463_v25 }
 0x4cd   : > { %39928 = vmatmul.mubr.msk.f32.vlgmr.msra.gmra.mrb[144].mxu0 %vm19961_vm13, %v48521_v32  ;;  %41963 = vmatprep.subr.bf16.mxu0 %v42754_v9 }
 0x4ce   : > { %40025 = vmatpush3.msk.msra.mxu1 %vm601_vm2, %v46334_v54  ;;  %41965 = vmatpush3.bf16.msra.mxu0 %v46090_v11  ;;  %v46658_v11 = vld [vmem:[%s48102_s3 + $0x8] sm:$0xff] }
 0x4cf   : > { %41996 = vmatprep.subr.bf16.mxu1 %v42754_v9  ;;  %40027 = vmatmul.mubr.msk.f32.vlgmr.msra.gmra.mrb[162].mxu1 %vm19961_vm13, %v48522_v45 }
 0x4d0   : > { %41998 = vmatpush3.bf16.msra.mxu1 %v46229_v16  ;;  %39943 = vmatprep.subr.mxu0 %v48463_v25 }
 0x4d1   : > { %40042 = vmatprep.subr.mxu1 %v48463_v25  ;;  %39945 = vmatprep.mubr.msk.f32.mxu0 %vm42755_vm12, %v48463_v25 }
 0x4d2   : > { %39944 = vmatpush3.msk.msra.mxu0 %vm601_vm2, %v46096_v17  ;;  %40044 = vmatprep.mubr.msk.f32.mxu1 %vm42755_vm12, %v48463_v25 }
 0x4d3   : > { %39946 = vmatmul.mubr.msk.f32.vlgmr.msra.gmra.mrb[146].mxu0 %vm19961_vm13, %v48522_v45  ;;  %41969 = vmatprep.subr.bf16.mxu0 %v42754_v9 }
 0x4d4   : > { %40043 = vmatpush3.msk.msra.mxu1 %vm601_vm2, %v46242_v51  ;;  %41971 = vmatpush3.bf16.msra.mxu0 %v46170_v46 }
 0x4d5   : > { %42002 = vmatprep.subr.bf16.mxu1 %v42754_v9  ;;  %40045 = vmatmul.mubr.msk.f32.vlgmr.msra.gmra.mrb[164].mxu1 %vm19961_vm13, %v48522_v45 }
 0x4d6   : > { %42004 = vmatpush3.bf16.msra.mxu1 %v46255_v28  ;;  %39961 = vmatprep.subr.mxu0 %v48463_v25 }
 0x4d7   : > { %40060 = vmatprep.subr.mxu1 %v48463_v25  ;;  %39963 = vmatprep.mubr.msk.f32.mxu0 %vm42755_vm12, %v48463_v25 }
 0x4d8   : > { %39962 = vmatpush3.msk.msra.mxu0 %vm601_vm2, %v46185_v38  ;;  %40062 = vmatprep.mubr.msk.f32.mxu1 %vm42755_vm12, %v48463_v25 }
 0x4d9   : > { %39964 = vmatmul.mubr.msk.f32.vlgmr.msra.gmra.mrb[148].mxu0 %vm19961_vm13, %v48522_v45  ;;  %41975 = vmatprep.subr.bf16.mxu0 %v42754_v9 }
 0x4da   : > { %40061 = vmatpush3.msk.msra.mxu1 %vm601_vm2, %v46272_v8  ;;  %41977 = vmatpush3.bf16.msra.mxu0 %v46208_v40 }
 0x4db   : > { %42008 = vmatprep.subr.bf16.mxu1 %v42754_v9  ;;  %40063 = vmatmul.mubr.msk.f32.vlgmr.msra.gmra.mrb[166].mxu1 %vm19961_vm13, %v48522_v45 }
 0x4dc   : > { %42010 = vmatpush3.bf16.msra.mxu1 %v46280_v42  ;;  %39979 = vmatprep.subr.mxu0 %v48463_v25 }
 0x4dd   : > { %40078 = vmatprep.subr.mxu1 %v48463_v25  ;;  %39981 = vmatprep.mubr.msk.f32.mxu0 %vm42755_vm12, %v48463_v25 }
 0x4de   : > { %39980 = vmatpush3.msk.msra.mxu0 %vm601_vm2, %v46222_v5  ;;  %40080 = vmatprep.mubr.msk.f32.mxu1 %vm42755_vm12, %v48463_v25 }
 0x4df   : > { %39982 = vmatmul.mubr.msk.f32.vlgmr.msra.gmra.mrb[150].mxu0 %vm19961_vm13, %v48522_v45  ;;  %41981 = vmatprep.subr.bf16.mxu0 %v42754_v9 }
 0x4e0   : > { %40079 = vmatpush3.msk.msra.mxu1 %vm601_vm2, %v46298_v15  ;;  %41983 = vmatpush3.bf16.msra.mxu0 %v46248_v37 }
 0x4e1   : > { %39997 = vmatprep.subr.mxu0 %v48463_v25  ;;  %39999 = vmatprep.mubr.msk.f32.mxu0 %vm42755_vm12, %v48463_v25 }
 0x4e2   : > { %40081 = vmatmul.mubr.msk.f32.vlgmr.msra.gmra.mrb[168].mxu1 %vm19961_vm13, %v48522_v45  ;;  %40092 = vmatprep.subr.mxu1 %v48463_v25 }
 0x4e3   : > { %40094 = vmatprep.mubr.msk.f32.mxu1 %vm42755_vm12, %v48463_v25  ;;  %40093 = vmatpush3.msra.mxu1 %v46658_v11 }
 0x4e4   : > { %39998 = vmatpush3.msk.msra.mxu0 %vm601_vm2, %v46264_v50  ;;  %40102 = vmatprep.subr.mxu1 %v48463_v25 }
 0x4e5   : > { %40000 = vmatmul.mubr.msk.f32.vlgmr.msra.gmra.mrb[152].mxu0 %vm19961_vm13, %v48522_v45  ;;  %41987 = vmatprep.subr.bf16.mxu0 %v42754_v9 }
 0x4e6   : > { %41989 = vmatpush3.bf16.msra.mxu0 %v46296_v23  ;;  %40017 = vmatprep.mubr.msk.f32.mxu0 %vm42755_vm12, %v48463_v25 }
 0x4e7   : > { %40015 = vmatprep.subr.mxu0 %v48463_v25 }
 0x4ea   : > { %40016 = vmatpush3.msk.msra.mxu0 %vm601_vm2, %v46312_v59 }
 0x4eb   : > { %40018 = vmatmul.mubr.msk.f32.vlgmr.msra.gmra.mrb[154].mxu0 %vm19961_vm13, %v48522_v45  ;;  %41993 = vmatprep.subr.bf16.mxu0 %v42754_v9 }
 0x4ec   : > { %41995 = vmatpush3.bf16.msra.mxu0 %v46342_v60  ;;  %40035 = vmatprep.mubr.msk.f32.mxu0 %vm42755_vm12, %v48463_v25 }
 0x4ed   : > { %40033 = vmatprep.subr.mxu0 %v48463_v25 }
 0x4f0   : > { %40034 = vmatpush3.msk.msra.mxu0 %vm601_vm2, %v46356_v10 }
 0x4f1   : > { %40036 = vmatmul.mubr.msk.f32.vlgmr.msra.gmra.mrb[156].mxu0 %vm19961_vm13, %v48522_v45  ;;  %41999 = vmatprep.subr.bf16.mxu0 %v42754_v9 }
 0x4f2   : > { %42001 = vmatpush3.bf16.msra.mxu0 %v46364_v19  ;;  %40053 = vmatprep.mubr.msk.f32.mxu0 %vm42755_vm12, %v48463_v25  ;;  %v19951_v19 = vld [vmem:[%s48102_s3] sm:$0xff] }
 0x4f3   : > { %40051 = vmatprep.subr.mxu0 %v48463_v25 }
 0x4f6   : > { %40052 = vmatpush3.msk.msra.mxu0 %vm601_vm2, %v46378_v48 }
 0x4f7   : > { %40054 = vmatmul.mubr.msk.f32.vlgmr.msra.gmra.mrb[158].mxu0 %vm19961_vm13, %v48522_v45  ;;  %42005 = vmatprep.subr.bf16.mxu0 %v42754_v9 }
 0x4f8   : > { %42007 = vmatpush3.bf16.msra.mxu0 %v46386_v12  ;;  %40071 = vmatprep.mubr.msk.f32.mxu0 %vm42755_vm12, %v48463_v25 }
 0x4f9   : > { %40069 = vmatprep.subr.mxu0 %v48463_v25 }
 0x4fc   : > { %40070 = vmatpush3.msk.msra.mxu0 %vm601_vm2, %v46400_v18 }
 0x4fd   : > { %40072 = vmatmul.mubr.msk.f32.vlgmr.msra.gmra.mrb[160].mxu0 %vm19961_vm13, %v48522_v45  ;;  %42011 = vmatprep.subr.bf16.mxu0 %v42754_v9 }
 0x4fe   : > { %42013 = vmatpush3.bf16.msra.mxu0 %v46408_v27  ;;  %40089 = vmatprep.mubr.msk.f32.mxu0 %vm42755_vm12, %v48463_v25 }
 0x4ff   : > { %40087 = vmatprep.subr.mxu0 %v48463_v25 }
 0x502   : > { %40088 = vmatpush3.msk.msra.mxu0 %vm601_vm2, %v46422_v20  ;;  %vm33474_vm2 = vcmask 261120  }
 0x503   : > { %40090 = vmatmul.mubr.msk.f32.vlgmr.msra.gmra.mrb[162].mxu0 %vm19961_vm13, %v48522_v45  ;;  %40097 = vmatprep.subr.mxu0 %v48463_v25 }
 0x504   : > { %40098 = vmatpush3.msra.mxu0 %v46658_v11  ;;  %40099 = vmatprep.mubr.msk.f32.mxu0 %vm42755_vm12, %v48463_v25 }
 0x505   : > { %40107 = vmatprep.subr.mxu0 %v48463_v25 }
 0x528   : > { %v46705_v17 = vpop.f32.mrb[104].mxu0 }
 0x529   : > { %v39650_v14 = vpop.f32.mrb[105].mxu0 }
 0x52e   : > { %v46707_v46 = vpop.f32.mrb[106].mxu0 }
 0x52f   : > { %v39659_v38 = vpop.f32.mrb[107].mxu0 }
 0x534   : > { %v46709_v44 = vpop.f32.mrb[108].mxu0 }
 0x535   : > { %v39668_v33 = vpop.f32.mrb[109].mxu0 }
 0x53a   : > { %v46711_v40 = vpop.f32.mrb[110].mxu0 }
 0x53b   : > { %v39677_v30 = vpop.f32.mrb[111].mxu0 }
 0x540   : > { %v46713_v39 = vpop.f32.mrb[112].mxu0 }
 0x541   : > { %v39686_v5 = vpop.f32.mrb[113].mxu0 }
 0x542   : > { %v46715_v22 = vpop.f32.mrb[130].mxu1 }
 0x543   : > { %v39740_v36 = vpop.f32.mrb[131].mxu1 }
 0x546   : > { %v46717_v43 = vpop.f32.mrb[114].mxu0 }
 0x547   : > { %v39695_v16 = vpop.f32.mrb[115].mxu0 }
 0x548   : > { %v46719_v2 = vpop.f32.mrb[132].mxu1 }
 0x549   : > { %v39758_v29 = vpop.f32.mrb[133].mxu1 }
 0x54c   : > { %v46721_v13 = vpop.f32.mrb[116].mxu0 }
 0x54d   : > { %v39704_v51 = vpop.f32.mrb[117].mxu0 }
 0x54e   : > { %v46723_v55 = vpop.f32.mrb[134].mxu1 }
 0x54f   : > { %v39776_v47 = vpop.f32.mrb[135].mxu1 }
 0x552   : > { %v46725_v37 = vpop.f32.mrb[118].mxu0 }
 0x553   : > { %v39713_v28 = vpop.f32.mrb[119].mxu0 }
 0x554   : > { %v21273_v58 = vpop.f32.mrb[136].mxu1 }
 0x555   : > { %v39794_v26 = vpop.f32.mrb[137].mxu1  ;;  %40095 = vmatmul.mubr.msk.f32.vlgmr.msra.gmra.mrb[170].mxu1 %vm330_vm10, %v21273_v58 }
 0x556   : > { %40103 = vmatpush3.msra.mxu1 %v46658_v11  ;;  %40104 = vmatprep.mubr.msk.f32.mxu1 %vm42755_vm12, %v48463_v25 }
 0x557   : > { %40112 = vmatprep.subr.mxu1 %v48463_v25 }
 0x558   : > { %v46732_v50 = vpop.f32.mrb[120].mxu0 }
 0x559   : > { %v39722_v63 = vpop.f32.mrb[121].mxu0 }
 0x55a   : > { %v46734_v49 = vpop.f32.mrb[138].mxu1 }
 0x55b   : > { %v39812_v24 = vpop.f32.mrb[139].mxu1  ;;  %40100 = vmatmul.mubr.msk.f32.vlgmr.msra.gmra.mrb[164].mxu0 %vm330_vm10, %v46734_v49 }
 0x55c   : > { %40108 = vmatpush3.msra.mxu0 %v46658_v11  ;;  %40109 = vmatprep.mubr.msk.f32.mxu0 %vm42755_vm12, %v48463_v25 }
 0x55d   : > { %40117 = vmatprep.subr.mxu0 %v48463_v25 }
 0x55e   : > { %v46742_v8 = vpop.f32.mrb[122].mxu0 }
 0x55f   : > { %v39731_v42 = vpop.f32.mrb[123].mxu0 }
 0x560   : > { %v46744_v7 = vpop.f32.mrb[140].mxu1 }
 0x561   : > { %v39830_v4 = vpop.f32.mrb[141].mxu1  ;;  %40105 = vmatmul.mubr.msk.f32.vlgmr.msra.gmra.mrb[172].mxu1 %vm330_vm10, %v46744_v7 }
 0x562   : > { %40113 = vmatpush3.msra.mxu1 %v46658_v11  ;;  %40114 = vmatprep.mubr.msk.f32.mxu1 %vm42755_vm12, %v48463_v25 }
 0x563   : > { %40122 = vmatprep.subr.mxu1 %v48463_v25 }
 0x564   : > { %v46752_v62 = vpop.f32.mrb[124].mxu0 }
 0x565   : > { %v39749_v23 = vpop.f32.mrb[125].mxu0 }
 0x566   : > { %v46754_v15 = vpop.f32.mrb[142].mxu1 }
 0x567   : > { %v39848_v57 = vpop.f32.mrb[143].mxu1  ;;  %40110 = vmatmul.mubr.msk.f32.vlgmr.msra.gmra.mrb[166].mxu0 %vm330_vm10, %v46754_v15 }
 0x568   : > { %40118 = vmatpush3.msra.mxu0 %v46658_v11  ;;  %40119 = vmatprep.mubr.msk.f32.mxu0 %vm42755_vm12, %v48463_v25 }
 0x569   : > { %40127 = vmatprep.subr.mxu0 %v48463_v25 }
 0x56a   : > { %v46762_v34 = vpop.f32.mrb[126].mxu0 }
 0x56b   : > { %v39767_v59 = vpop.f32.mrb[127].mxu0 }
 0x56c   : > { %v46764_v31 = vpop.f32.mrb[144].mxu1 }
 0x56d   : > { %v39866_v0 = vpop.f32.mrb[145].mxu1  ;;  %40115 = vmatmul.mubr.msk.f32.vlgmr.msra.gmra.mrb[174].mxu1 %vm330_vm10, %v46764_v31 }
 0x56e   : > { %40123 = vmatpush3.msra.mxu1 %v46658_v11  ;;  %40124 = vmatprep.mubr.msk.f32.mxu1 %vm42755_vm12, %v48463_v25 }
 0x56f   : > { %40132 = vmatprep.subr.mxu1 %v48463_v25 }
 0x570   : > { %v46772_v3 = vpop.f32.mrb[128].mxu0 }
 0x571   : > { %v39785_v54 = vpop.f32.mrb[129].mxu0 }
 0x572   : > { %v46774_v60 = vpop.f32.mrb[146].mxu1 }
 0x573   : > { %v39884_v61 = vpop.f32.mrb[147].mxu1  ;;  %40120 = vmatmul.mubr.msk.f32.vlgmr.msra.gmra.mrb[168].mxu0 %vm330_vm10, %v46774_v60 }
 0x574   : > { %40128 = vmatpush3.msra.mxu0 %v46658_v11  ;;  %40129 = vmatprep.mubr.msk.f32.mxu0 %vm42755_vm12, %v48463_v25 }
 0x575   : > { %40137 = vmatprep.subr.mxu0 %v48463_v25 }
 0x576   : > { %v46782_v41 = vpop.f32.mrb[130].mxu0 }
 0x577   : > { %v39803_v10 = vpop.f32.mrb[131].mxu0 }
 0x578   : > { %v46787_v53 = vpop.f32.mrb[148].mxu1 }
 0x579   : > { %40125 = vmatmul.mubr.msk.f32.vlgmr.msra.gmra.mrb[176].mxu1 %vm330_vm10, %v46787_v53  ;;  %v39902_v1 = vpop.f32.mrb[149].mxu1 }
 0x57a   : > { %40133 = vmatpush3.msra.mxu1 %v19951_v19  ;;  %40134 = vmatprep.mubr.msk.f32.mxu1 %vm42755_vm12, %v48463_v25 }
 0x57b   : > { %40142 = vmatprep.subr.mxu1 %v48463_v25 }
 0x57c   : > { %v46794_v48 = vpop.f32.mrb[132].mxu0 }
 0x57d   : > { %40135 = vmatmul.mubr.msk.f32.vlgmr.msra.gmra.mrb[178].mxu1 %vm330_vm10, %v46451_v6  ;;  %v39821_v12 = vpop.f32.mrb[133].mxu0 }
 0x57e   : > { %v46798_v21 = vpop.f32.mrb[150].mxu1  ;;  %40143 = vmatpush3.msra.mxu1 %v19951_v19  ;;  %40144 = vmatprep.mubr.msk.f32.mxu1 %vm42755_vm12, %v48463_v25 }
 0x57f   : > { %40130 = vmatmul.mubr.msk.f32.vlgmr.msra.gmra.mrb[170].mxu0 %vm330_vm10, %v46798_v21  ;;  %40152 = vmatprep.subr.mxu1 %v48463_v25  ;;  %v39920_v52 = vpop.f32.mrb[151].mxu1 }
 0x580   : > { %40138 = vmatpush3.msra.mxu0 %v19951_v19  ;;  %40139 = vmatprep.mubr.msk.f32.mxu0 %vm42755_vm12, %v48463_v25 }
 0x581   : > { %40145 = vmatmul.mubr.msk.f32.vlgmr.msra.gmra.mrb[180].mxu1 %vm330_vm10, %v46711_v40  ;;  %40147 = vmatprep.subr.mxu0 %v48463_v25 }
 0x582   : > { %v46810_v18 = vpop.f32.mrb[134].mxu0  ;;  %40153 = vmatpush3.msra.mxu1 %v19951_v19  ;;  %40154 = vmatprep.mubr.msk.f32.mxu1 %vm42755_vm12, %v48463_v25 }
 0x583   : > { %40140 = vmatmul.mubr.msk.f32.vlgmr.msra.gmra.mrb[172].mxu0 %vm330_vm10, %v46707_v46  ;;  %v39839_v27 = vpop.f32.mrb[135].mxu0  ;;  %40162 = vmatprep.subr.mxu1 %v48463_v25 }
 0x584   : > { %40148 = vmatpush3.msra.mxu0 %v19951_v19  ;;  %40149 = vmatprep.mubr.msk.f32.mxu0 %vm42755_vm12, %v48463_v25  ;;  %v46819_v20 = vpop.f32.mrb[152].mxu1 }
 0x585   : > { %40155 = vmatmul.mubr.msk.f32.vlgmr.msra.gmra.mrb[182].mxu1 %vm330_vm10, %v46725_v37  ;;  %40157 = vmatprep.subr.mxu0 %v48463_v25  ;;  %v39938_v6 = vpop.f32.mrb[153].mxu1 }
 0x586   : > { %40163 = vmatpush3.msra.mxu1 %v19951_v19  ;;  %40164 = vmatprep.mubr.msk.f32.mxu1 %vm42755_vm12, %v48463_v25 }
 0x587   : > { %40150 = vmatmul.mubr.msk.f32.vlgmr.msra.gmra.mrb[174].mxu0 %vm330_vm10, %v46717_v43  ;;  %40172 = vmatprep.subr.mxu1 %v48463_v25 }
 0x588   : > { %v46834_v11 = vpop.f32.mrb[136].mxu0  ;;  %40158 = vmatpush3.msra.mxu0 %v19951_v19  ;;  %40159 = vmatprep.mubr.msk.f32.mxu0 %vm42755_vm12, %v48463_v25 }
 0x589   : > { %40165 = vmatmul.mubr.msk.f32.vlgmr.msra.gmra.mrb[184].mxu1 %vm330_vm10, %v46752_v62  ;;  %v39857_v14 = vpop.f32.mrb[137].mxu0  ;;  %40167 = vmatprep.subr.mxu0 %v48463_v25 }
 0x58a   : > { %40173 = vmatpush3.msra.mxu1 %v46832_v56  ;;  %40174 = vmatprep.mubr.msk.f32.mxu1 %vm42755_vm12, %v48463_v25  ;;  %v46844_v38 = vpop.f32.mrb[154].mxu1 }
 0x58b   : > { %40160 = vmatmul.mubr.msk.f32.vlgmr.msra.gmra.mrb[176].mxu0 %vm330_vm10, %v46742_v8  ;;  %40182 = vmatprep.subr.mxu1 %v48463_v25  ;;  %v39956_v33 = vpop.f32.mrb[155].mxu1 }
 0x58c   : > { %40168 = vmatpush3.msra.mxu0 %v19951_v19  ;;  %40169 = vmatprep.mubr.msk.f32.mxu0 %vm42755_vm12, %v48463_v25 }
 0x58d   : > { %40177 = vmatprep.subr.mxu0 %v48463_v25 }
 0x58e   : > { %v46852_v30 = vpop.f32.mrb[138].mxu0 }
 0x58f   : > { %40170 = vmatmul.mubr.msk.f32.vlgmr.msra.gmra.mrb[178].mxu0 %vm330_vm10, %v46762_v34  ;;  %v39875_v5 = vpop.f32.mrb[139].mxu0 }
 0x590   : > { %40178 = vmatpush3.msra.mxu0 %v46832_v56  ;;  %40179 = vmatprep.mubr.msk.f32.mxu0 %vm42755_vm12, %v48463_v25  ;;  %v46859_v36 = vpop.f32.mrb[156].mxu1 }
 0x591   : > { %40187 = vmatprep.subr.mxu0 %v48463_v25  ;;  %v39974_v16 = vpop.f32.mrb[157].mxu1 }
 0x594   : > { %v46862_v29 = vpop.f32.mrb[140].mxu0 }
 0x595   : > { %v39893_v51 = vpop.f32.mrb[141].mxu0 }
 0x596   : > { %v46864_v47 = vpop.f32.mrb[158].mxu1 }
 0x597   : > { %v39992_v28 = vpop.f32.mrb[159].mxu1 }
 0x59a   : > { %v46866_v58 = vpop.f32.mrb[142].mxu0 }
 0x59b   : > { %v39911_v26 = vpop.f32.mrb[143].mxu0 }
 0x59c   : > { %v46868_v63 = vpop.f32.mrb[160].mxu1 }
 0x59d   : > { %v40010_v24 = vpop.f32.mrb[161].mxu1 }
 0x59e   : > { %v19954_v24 = vld [vmem:[%s48102_s3 + $0x18] sm:$0xff] }
 0x5a0   : > { %v46870_v42 = vpop.f32.mrb[144].mxu0 }
 0x5a1   : > { %v39929_v4 = vpop.f32.mrb[145].mxu0 }
 0x5a2   : > { %v46872_v23 = vpop.f32.mrb[162].mxu1 }
 0x5a3   : > { %v40028_v57 = vpop.f32.mrb[163].mxu1 }
 0x5a6   : > { %v22465_v59 = vpop.f32.mrb[146].mxu0 }
 0x5a7   : > { %v39947_v0 = vpop.f32.mrb[147].mxu0  ;;  %40175 = vmatmul.mubr.msk.f32.vlgmr.msra.gmra.mrb[186].mxu1 %vm330_vm10, %v22465_v59 }
 0x5a8   : > { %40183 = vmatpush3.msra.mxu1 %v46832_v56  ;;  %40184 = vmatprep.mubr.msk.f32.mxu1 %vm42755_vm12, %v48463_v25  ;;  %v46878_v54 = vpop.f32.mrb[164].mxu1 }
 0x5a9   : > { %40192 = vmatprep.subr.mxu1 %v48463_v25  ;;  %v40046_v61 = vpop.f32.mrb[165].mxu1 }
 0x5ac   : > { %v46881_v10 = vpop.f32.mrb[148].mxu0 }
 0x5ad   : > { %v39965_v19 = vpop.f32.mrb[149].mxu0  ;;  %40180 = vmatmul.mubr.msk.f32.vlgmr.msra.gmra.mrb[180].mxu0 %vm330_vm10, %v46881_v10 }
 0x5ae   : > { %40188 = vmatpush3.msra.mxu0 %v46832_v56  ;;  %40189 = vmatprep.mubr.msk.f32.mxu0 %vm42755_vm12, %v48463_v25  ;;  %v46888_v1 = vpop.f32.mrb[166].mxu1 }
 0x5af   : > { %40197 = vmatprep.subr.mxu0 %v48463_v25  ;;  %v40064_v12 = vpop.f32.mrb[167].mxu1 }
 0x5b2   : > { %v46891_v52 = vpop.f32.mrb[150].mxu0 }
 0x5b3   : > { %v39983_v27 = vpop.f32.mrb[151].mxu0  ;;  %40185 = vmatmul.mubr.msk.f32.vlgmr.msra.gmra.mrb[188].mxu1 %vm330_vm10, %v46891_v52 }
 0x5b4   : > { %40193 = vmatpush3.msra.mxu1 %v46832_v56  ;;  %40194 = vmatprep.mubr.msk.f32.mxu1 %vm42755_vm12, %v48463_v25 }
 0x5b5   : > { %40202 = vmatprep.subr.mxu1 %v48463_v25  ;;  %v46899_v6 = vpop.f32.mrb[168].mxu1 }
 0x5b6   : > { %v40082_v14 = vpop.f32.mrb[169].mxu1 }
 0x5b8   : > { %v46901_v33 = vpop.f32.mrb[152].mxu0 }
 0x5b9   : > { %v40001_v5 = vpop.f32.mrb[153].mxu0  ;;  %40190 = vmatmul.mubr.msk.f32.vlgmr.msra.gmra.mrb[182].mxu0 %vm330_vm10, %v46901_v33 }
 0x5ba   : > { %40198 = vmatpush3.msra.mxu0 %v46832_v56  ;;  %40199 = vmatprep.mubr.msk.f32.mxu0 %vm42755_vm12, %v48463_v25 }
 0x5bb   : > { %40207 = vmatprep.subr.mxu0 %v48463_v25 }
 0x5be   : > { %v46909_v16 = vpop.f32.mrb[154].mxu0 }
 0x5bf   : > { %v40019_v51 = vpop.f32.mrb[155].mxu0  ;;  %40195 = vmatmul.mubr.msk.f32.vlgmr.msra.gmra.mrb[190].mxu1 %vm330_vm10, %v46909_v16 }
 0x5c0   : > { %40203 = vmatpush3.msra.mxu1 %v46832_v56  ;;  %40204 = vmatprep.mubr.msk.f32.mxu1 %vm42755_vm12, %v48463_v25 }
 0x5c1   : > { %40212 = vmatprep.subr.mxu1 %v48463_v25 }
 0x5c4   : > { %v46917_v28 = vpop.f32.mrb[156].mxu0 }
 0x5c5   : > { %v40037_v26 = vpop.f32.mrb[157].mxu0  ;;  %40200 = vmatmul.mubr.msk.f32.vlgmr.msra.gmra.mrb[184].mxu0 %vm330_vm10, %v46917_v28 }
 0x5c6   : > { %40208 = vmatpush3.msra.mxu0 %v46832_v56  ;;  %40209 = vmatprep.mubr.msk.f32.mxu0 %vm42755_vm12, %v48463_v25  ;;  %v28869_v26 = vld [vmem:[#allocation3] sm:$0xff] }
 0x5c7   : > { %40217 = vmatprep.subr.mxu0 %v48463_v25 }
 0x5ca   : > { %v46928_v4 = vpop.f32.mrb[158].mxu0 }
 0x5cb   : > { %v40055_v57 = vpop.f32.mrb[159].mxu0  ;;  %40205 = vmatmul.mubr.msk.f32.vlgmr.msra.gmra.mrb[192].mxu1 %vm330_vm10, %v46928_v4 }
 0x5cc   : > { %40213 = vmatpush3.msra.mxu1 %v19954_v24  ;;  %40214 = vmatprep.mubr.msk.f32.mxu1 %vm42755_vm12, %v48463_v25 }
 0x5cd   : > { %40222 = vmatprep.subr.mxu1 %v48463_v25 }
 0x5cf   : > { %40215 = vmatmul.mubr.msk.f32.vlgmr.msra.gmra.mrb[194].mxu1 %vm330_vm10, %v46705_v17 }
 0x5d0   : > { %v46937_v56 = vpop.f32.mrb[160].mxu0  ;;  %40223 = vmatpush3.msra.mxu1 %v19954_v24  ;;  %40224 = vmatprep.mubr.msk.f32.mxu1 %vm42755_vm12, %v48463_v25 }
 0x5d1   : > { %v40073_v59 = vpop.f32.mrb[161].mxu0  ;;  %40210 = vmatmul.mubr.msk.f32.vlgmr.msra.gmra.mrb[186].mxu0 %vm330_vm10, %v46937_v56  ;;  %40232 = vmatprep.subr.mxu1 %v48463_v25 }
 0x5d2   : > { %40218 = vmatpush3.msra.mxu0 %v19954_v24  ;;  %40219 = vmatprep.mubr.msk.f32.mxu0 %vm42755_vm12, %v48463_v25 }
 0x5d3   : > { %40225 = vmatmul.mubr.msk.f32.vlgmr.msra.gmra.mrb[196].mxu1 %vm330_vm10, %v46713_v39  ;;  %40227 = vmatprep.subr.mxu0 %v48463_v25 }
 0x5d4   : > { %40233 = vmatpush3.msra.mxu1 %v19954_v24  ;;  %40234 = vmatprep.mubr.msk.f32.mxu1 %vm42755_vm12, %v48463_v25 }
 0x5d5   : > { %40220 = vmatmul.mubr.msk.f32.vlgmr.msra.gmra.mrb[188].mxu0 %vm330_vm10, %v46709_v44  ;;  %40242 = vmatprep.subr.mxu1 %v48463_v25  ;;  %v19955_v44 = vld [vmem:[%s48102_s3 + $0x20] sm:$0xff] }
 0x5d6   : > { %40228 = vmatpush3.msra.mxu0 %v19954_v24  ;;  %40229 = vmatprep.mubr.msk.f32.mxu0 %vm42755_vm12, %v48463_v25  ;;  %v46956_v17 = vpop.f32.mrb[162].mxu0 }
 0x5d7   : > { %40235 = vmatmul.mubr.msk.f32.vlgmr.msra.gmra.mrb[198].mxu1 %vm330_vm10, %v46732_v50  ;;  %40237 = vmatprep.subr.mxu0 %v48463_v25  ;;  %v40091_v39 = vpop.f32.mrb[163].mxu0 }
 0x5d8   : > { %40243 = vmatpush3.msra.mxu1 %v19954_v24  ;;  %40244 = vmatprep.mubr.msk.f32.mxu1 %vm42755_vm12, %v48463_v25 }
 0x5d9   : > { %40230 = vmatmul.mubr.msk.f32.vlgmr.msra.gmra.mrb[190].mxu0 %vm330_vm10, %v46721_v13  ;;  %40252 = vmatprep.subr.mxu1 %v48463_v25 }
 0x5da   : > { %40238 = vmatpush3.msra.mxu0 %v19954_v24  ;;  %40239 = vmatprep.mubr.msk.f32.mxu0 %vm42755_vm12, %v48463_v25 }
 0x5db   : > { %40245 = vmatmul.mubr.msk.f32.vlgmr.msra.gmra.mrb[200].mxu1 %vm330_vm10, %v46719_v2  ;;  %40247 = vmatprep.subr.mxu0 %v48463_v25  ;;  %v19957_v2 = vld [vmem:[%s48102_s3 + $0x30] sm:$0xff] }
 0x5dc   : > { %40253 = vmatpush3.msra.mxu1 %v19955_v44  ;;  %40254 = vmatprep.mubr.msk.f32.mxu1 %vm42755_vm12, %v48463_v25 }
 0x5dd   : > { %40240 = vmatmul.mubr.msk.f32.vlgmr.msra.gmra.mrb[192].mxu0 %vm330_vm10, %v46715_v22  ;;  %40262 = vmatprep.subr.mxu1 %v48463_v25  ;;  %v19956_v22 = vld [vmem:[%s48102_s3 + $0x28] sm:$0xff] }
 0x5de   : > { %40248 = vmatpush3.msra.mxu0 %v19954_v24  ;;  %40249 = vmatprep.mubr.msk.f32.mxu0 %vm42755_vm12, %v48463_v25  ;;  %v28870_v24 = vld [vmem:[#allocation3 + $0x8] sm:$0x3] }
 0x5df   : > { %40255 = vmatmul.mubr.msk.f32.vlgmr.msra.gmra.mrb[202].mxu1 %vm330_vm10, %v46782_v41  ;;  %40257 = vmatprep.subr.mxu0 %v48463_v25  ;;  %v47238_v57 = vpack.c.bf16 %v28870_v24, %v28869_v26 }
 0x5e0   : > { %40263 = vmatpush3.msra.mxu1 %v19955_v44  ;;  %40264 = vmatprep.mubr.msk.f32.mxu1 %vm42755_vm12, %v48463_v25 }
 0x5e1   : > { %40250 = vmatmul.mubr.msk.f32.vlgmr.msra.gmra.mrb[194].mxu0 %vm330_vm10, %v46723_v55  ;;  %40272 = vmatprep.subr.mxu1 %v48463_v25 }
 0x5e2   : > { %40258 = vmatpush3.msra.mxu0 %v19955_v44  ;;  %40259 = vmatprep.mubr.msk.f32.mxu0 %vm42755_vm12, %v48463_v25 }
 0x5e3   : > { %40265 = vmatmul.mubr.msk.f32.vlgmr.msra.gmra.mrb[204].mxu1 %vm330_vm10, %v46810_v18  ;;  %40267 = vmatprep.subr.mxu0 %v48463_v25 }
 0x5e4   : > { %40273 = vmatpush3.msra.mxu1 %v19955_v44  ;;  %40274 = vmatprep.mubr.msk.f32.mxu1 %vm42755_vm12, %v48463_v25 }
 0x5e5   : > { %40260 = vmatmul.mubr.msk.f32.vlgmr.msra.gmra.mrb[196].mxu0 %vm330_vm10, %v46794_v48  ;;  %40282 = vmatprep.subr.mxu1 %v48463_v25 }
 0x5e6   : > { %40268 = vmatpush3.msra.mxu0 %v19955_v44  ;;  %40269 = vmatprep.mubr.msk.f32.mxu0 %vm42755_vm12, %v48463_v25 }
 0x5e7   : > { %40275 = vmatmul.mubr.msk.f32.vlgmr.msra.gmra.mrb[206].mxu1 %vm330_vm10, %v46852_v30  ;;  %40277 = vmatprep.subr.mxu0 %v48463_v25 }
 0x5e8   : > { %40283 = vmatpush3.msra.mxu1 %v19955_v44  ;;  %40284 = vmatprep.mubr.msk.f32.mxu1 %vm42755_vm12, %v48463_v25 }
 0x5e9   : > { %40270 = vmatmul.mubr.msk.f32.vlgmr.msra.gmra.mrb[198].mxu0 %vm330_vm10, %v46834_v11  ;;  %40292 = vmatprep.subr.mxu1 %v48463_v25 }
 0x5ea   : > { %40278 = vmatpush3.msra.mxu0 %v19955_v44  ;;  %40279 = vmatprep.mubr.msk.f32.mxu0 %vm42755_vm12, %v48463_v25 }
 0x5eb   : > { %40285 = vmatmul.mubr.msk.f32.vlgmr.msra.gmra.mrb[208].mxu1 %vm330_vm10, %v46866_v58  ;;  %40287 = vmatprep.subr.mxu0 %v48463_v25 }
 0x5ec   : > { %40293 = vmatpush3.msra.mxu1 %v19956_v22  ;;  %40294 = vmatprep.mubr.msk.f32.mxu1 %vm42755_vm12, %v48463_v25 }
 0x5ed   : > { %40280 = vmatmul.mubr.msk.f32.vlgmr.msra.gmra.mrb[200].mxu0 %vm330_vm10, %v46862_v29  ;;  %40302 = vmatprep.subr.mxu1 %v48463_v25 }
 0x5ee   : > { %40288 = vmatpush3.msra.mxu0 %v19955_v44  ;;  %40289 = vmatprep.mubr.msk.f32.mxu0 %vm42755_vm12, %v48463_v25 }
 0x5ef   : > { %40295 = vmatmul.mubr.msk.f32.vlgmr.msra.gmra.mrb[210].mxu1 %vm330_vm10, %v46844_v38  ;;  %40297 = vmatprep.subr.mxu0 %v48463_v25 }
 0x5f0   : > { %40303 = vmatpush3.msra.mxu1 %v19956_v22  ;;  %40304 = vmatprep.mubr.msk.f32.mxu1 %vm42755_vm12, %v48463_v25 }
 0x5f1   : > { %40290 = vmatmul.mubr.msk.f32.vlgmr.msra.gmra.mrb[202].mxu0 %vm330_vm10, %v46870_v42  ;;  %40312 = vmatprep.subr.mxu1 %v48463_v25 }
 0x5f2   : > { %40298 = vmatpush3.msra.mxu0 %v19956_v22  ;;  %40299 = vmatprep.mubr.msk.f32.mxu0 %vm42755_vm12, %v48463_v25 }
 0x5f3   : > { %40305 = vmatmul.mubr.msk.f32.vlgmr.msra.gmra.mrb[212].mxu1 %vm330_vm10, %v46864_v47  ;;  %40307 = vmatprep.subr.mxu0 %v48463_v25 }
 0x5f4   : > { %40313 = vmatpush3.msra.mxu1 %v19956_v22  ;;  %40314 = vmatprep.mubr.msk.f32.mxu1 %vm42755_vm12, %v48463_v25 }
 0x5f5   : > { %40300 = vmatmul.mubr.msk.f32.vlgmr.msra.gmra.mrb[204].mxu0 %vm330_vm10, %v46859_v36  ;;  %40322 = vmatprep.subr.mxu1 %v48463_v25 }
 0x5f6   : > { %40308 = vmatpush3.msra.mxu0 %v19956_v22  ;;  %40309 = vmatprep.mubr.msk.f32.mxu0 %vm42755_vm12, %v48463_v25 }
 0x5f7   : > { %40315 = vmatmul.mubr.msk.f32.vlgmr.msra.gmra.mrb[214].mxu1 %vm330_vm10, %v46872_v23  ;;  %40317 = vmatprep.subr.mxu0 %v48463_v25 }
 0x5f8   : > { %40323 = vmatpush3.msra.mxu1 %v19956_v22  ;;  %40324 = vmatprep.mubr.msk.f32.mxu1 %vm42755_vm12, %v48463_v25 }
 0x5f9   : > { %40310 = vmatmul.mubr.msk.f32.vlgmr.msra.gmra.mrb[206].mxu0 %vm330_vm10, %v46868_v63  ;;  %40332 = vmatprep.subr.mxu1 %v48463_v25 }
 0x5fa   : > { %40318 = vmatpush3.msra.mxu0 %v19956_v22  ;;  %40319 = vmatprep.mubr.msk.f32.mxu0 %vm42755_vm12, %v48463_v25 }
 0x5fb   : > { %40325 = vmatmul.mubr.msk.f32.vlgmr.msra.gmra.mrb[216].mxu1 %vm330_vm10, %v46888_v1  ;;  %40327 = vmatprep.subr.mxu0 %v48463_v25 }
 0x5fc   : > { %40333 = vmatpush3.msra.mxu1 %v19957_v2  ;;  %40334 = vmatprep.mubr.msk.f32.mxu1 %vm42755_vm12, %v48463_v25 }
 0x5fd   : > { %40320 = vmatmul.mubr.msk.f32.vlgmr.msra.gmra.mrb[208].mxu0 %vm330_vm10, %v46878_v54  ;;  %40342 = vmatprep.subr.mxu1 %v48463_v25 }
 0x5fe   : > { %40328 = vmatpush3.msra.mxu0 %v19956_v22  ;;  %40329 = vmatprep.mubr.msk.f32.mxu0 %vm42755_vm12, %v48463_v25 }
 0x5ff   : > { %40335 = vmatmul.mubr.msk.f32.vlgmr.msra.gmra.mrb[218].mxu1 %vm330_vm10, %v46707_v46  ;;  %40337 = vmatprep.subr.mxu0 %v48463_v25  ;;  %v19958_v46 = vld [vmem:[%s48102_s3 + $0x38] sm:$0xff] }
 0x600   : > { %40343 = vmatpush3.msra.mxu1 %v19957_v2  ;;  %40344 = vmatprep.mubr.msk.f32.mxu1 %vm42755_vm12, %v48463_v25 }
 0x601   : > { %40330 = vmatmul.mubr.msk.f32.vlgmr.msra.gmra.mrb[210].mxu0 %vm330_vm10, %v46899_v6  ;;  %40352 = vmatprep.subr.mxu1 %v48463_v25 }
 0x602   : > { %40338 = vmatpush3.msra.mxu0 %v19957_v2  ;;  %40339 = vmatprep.mubr.msk.f32.mxu0 %vm42755_vm12, %v48463_v25 }
 0x603   : > { %40345 = vmatmul.mubr.msk.f32.vlgmr.msra.gmra.mrb[220].mxu1 %vm330_vm10, %v46717_v43  ;;  %40347 = vmatprep.subr.mxu0 %v48463_v25 }
 0x604   : > { %40353 = vmatpush3.msra.mxu1 %v19957_v2  ;;  %40354 = vmatprep.mubr.msk.f32.mxu1 %vm42755_vm12, %v48463_v25 }
 0x605   : > { %40340 = vmatmul.mubr.msk.f32.vlgmr.msra.gmra.mrb[212].mxu0 %vm330_vm10, %v46711_v40  ;;  %40362 = vmatprep.subr.mxu1 %v48463_v25  ;;  %v19959_v40 = vld [vmem:[%s48102_s3 + $0x40] sm:$0xff] }
 0x606   : > { %40348 = vmatpush3.msra.mxu0 %v19957_v2  ;;  %40349 = vmatprep.mubr.msk.f32.mxu0 %vm42755_vm12, %v48463_v25 }
 0x607   : > { %40355 = vmatmul.mubr.msk.f32.vlgmr.msra.gmra.mrb[222].mxu1 %vm330_vm10, %v46742_v8  ;;  %40357 = vmatprep.subr.mxu0 %v48463_v25 }
 0x608   : > { %40363 = vmatpush3.msra.mxu1 %v19957_v2  ;;  %40364 = vmatprep.mubr.msk.f32.mxu1 %vm42755_vm12, %v48463_v25 }
 0x609   : > { %40350 = vmatmul.mubr.msk.f32.vlgmr.msra.gmra.mrb[214].mxu0 %vm330_vm10, %v46725_v37  ;;  %40372 = vmatprep.subr.mxu1 %v48463_v25 }
 0x60a   : > { %40358 = vmatpush3.msra.mxu0 %v19957_v2  ;;  %40359 = vmatprep.mubr.msk.f32.mxu0 %vm42755_vm12, %v48463_v25 }
 0x60b   : > { %40365 = vmatmul.mubr.msk.f32.vlgmr.msra.gmra.mrb[224].mxu1 %vm330_vm10, %v46762_v34  ;;  %40367 = vmatprep.subr.mxu0 %v48463_v25 }
 0x60c   : > { %40373 = vmatpush3.msra.mxu1 %v19958_v46  ;;  %40374 = vmatprep.mubr.msk.f32.mxu1 %vm42755_vm12, %v48463_v25 }
 0x60d   : > { %40360 = vmatmul.mubr.msk.f32.vlgmr.msra.gmra.mrb[216].mxu0 %vm330_vm10, %v46752_v62  ;;  %40382 = vmatprep.subr.mxu1 %v48463_v25 }
 0x60e   : > { %40368 = vmatpush3.msra.mxu0 %v19957_v2  ;;  %40369 = vmatprep.mubr.msk.f32.mxu0 %vm42755_vm12, %v48463_v25 }
 0x60f   : > { %40375 = vmatmul.mubr.msk.f32.vlgmr.msra.gmra.mrb[226].mxu1 %vm330_vm10, %v46734_v49  ;;  %40377 = vmatprep.subr.mxu0 %v48463_v25 }
 0x610   : > { %40383 = vmatpush3.msra.mxu1 %v19958_v46  ;;  %40384 = vmatprep.mubr.msk.f32.mxu1 %vm42755_vm12, %v48463_v25 }
 0x611   : > { %40370 = vmatmul.mubr.msk.f32.vlgmr.msra.gmra.mrb[218].mxu0 %vm330_vm10, %v46772_v3  ;;  %40392 = vmatprep.subr.mxu1 %v48463_v25 }
 0x612   : > { %40378 = vmatpush3.msra.mxu0 %v19958_v46  ;;  %40379 = vmatprep.mubr.msk.f32.mxu0 %vm42755_vm12, %v48463_v25 }
 0x613   : > { %40385 = vmatmul.mubr.msk.f32.vlgmr.msra.gmra.mrb[228].mxu1 %vm330_vm10, %v46754_v15  ;;  %40387 = vmatprep.subr.mxu0 %v48463_v25 }
 0x614   : > { %40393 = vmatpush3.msra.mxu1 %v19958_v46  ;;  %40394 = vmatprep.mubr.msk.f32.mxu1 %vm42755_vm12, %v48463_v25 }
 0x615   : > { %40380 = vmatmul.mubr.msk.f32.vlgmr.msra.gmra.mrb[220].mxu0 %vm330_vm10, %v46744_v7  ;;  %40402 = vmatprep.subr.mxu1 %v48463_v25 }
 0x616   : > { %40388 = vmatpush3.msra.mxu0 %v19958_v46  ;;  %40389 = vmatprep.mubr.msk.f32.mxu0 %vm42755_vm12, %v48463_v25 }
 0x617   : > { %40395 = vmatmul.mubr.msk.f32.vlgmr.msra.gmra.mrb[230].mxu1 %vm330_vm10, %v46774_v60  ;;  %40397 = vmatprep.subr.mxu0 %v48463_v25 }
 0x618   : > { %40403 = vmatpush3.msra.mxu1 %v19958_v46  ;;  %40404 = vmatprep.mubr.msk.f32.mxu1 %vm42755_vm12, %v48463_v25 }
 0x619   : > { %40390 = vmatmul.mubr.msk.f32.vlgmr.msra.gmra.mrb[222].mxu0 %vm330_vm10, %v46764_v31  ;;  %40412 = vmatprep.subr.mxu1 %v48463_v25 }
 0x61a   : > { %40398 = vmatpush3.msra.mxu0 %v19958_v46  ;;  %40399 = vmatprep.mubr.msk.f32.mxu0 %vm42755_vm12, %v48463_v25 }
 0x61b   : > { %40405 = vmatmul.mubr.msk.f32.vlgmr.msra.gmra.mrb[232].mxu1 %vm330_vm10, %v46798_v21  ;;  %40407 = vmatprep.subr.mxu0 %v48463_v25 }
 0x61c   : > { %40413 = vmatpush3.msra.mxu1 %v19959_v40  ;;  %40414 = vmatprep.mubr.msk.f32.mxu1 %vm42755_vm12, %v48463_v25 }
 0x61d   : > { %40400 = vmatmul.mubr.msk.f32.vlgmr.msra.gmra.mrb[224].mxu0 %vm330_vm10, %v46787_v53  ;;  %40422 = vmatprep.subr.mxu1 %v48463_v25 }
 0x61e   : > { %40408 = vmatpush3.msra.mxu0 %v19958_v46  ;;  %40409 = vmatprep.mubr.msk.f32.mxu0 %vm42755_vm12, %v48463_v25 }
 0x61f   : > { %40415 = vmatmul.mubr.msk.f32.vlgmr.msra.gmra.mrb[234].mxu1 %vm330_vm10, %v46881_v10  ;;  %40417 = vmatprep.subr.mxu0 %v48463_v25 }
 0x620   : > { %40423 = vmatpush3.msra.mxu1 %v19959_v40  ;;  %40424 = vmatprep.mubr.msk.f32.mxu1 %vm42755_vm12, %v48463_v25 }
 0x621   : > { %40410 = vmatmul.mubr.msk.f32.vlgmr.msra.gmra.mrb[226].mxu0 %vm330_vm10, %v46819_v20  ;;  %40432 = vmatprep.subr.mxu1 %v48463_v25 }
 0x622   : > { %40418 = vmatpush3.msra.mxu0 %v19959_v40  ;;  %40419 = vmatprep.mubr.msk.f32.mxu0 %vm42755_vm12, %v48463_v25 }
 0x623   : > { %40425 = vmatmul.mubr.msk.f32.vlgmr.msra.gmra.mrb[236].mxu1 %vm330_vm10, %v46901_v33  ;;  %40427 = vmatprep.subr.mxu0 %v48463_v25 }
 0x624   : > { %40433 = vmatpush3.msra.mxu1 %v19959_v40  ;;  %40434 = vmatprep.mubr.msk.f32.mxu1 %vm42755_vm12, %v48463_v25 }
 0x625   : > { %40420 = vmatmul.mubr.msk.f32.vlgmr.msra.gmra.mrb[228].mxu0 %vm330_vm10, %v46891_v52  ;;  %40442 = vmatprep.subr.mxu1 %v48463_v25 }
 0x626   : > { %40428 = vmatpush3.msra.mxu0 %v19959_v40  ;;  %40429 = vmatprep.mubr.msk.f32.mxu0 %vm42755_vm12, %v48463_v25 }
 0x627   : > { %40435 = vmatmul.mubr.msk.f32.vlgmr.msra.gmra.mrb[238].mxu1 %vm330_vm10, %v46917_v28  ;;  %40437 = vmatprep.subr.mxu0 %v48463_v25 }
 0x628   : > { %40443 = vmatpush3.msra.mxu1 %v19959_v40  ;;  %40444 = vmatprep.mubr.msk.f32.mxu1 %vm42755_vm12, %v48463_v25  ;;  %v23658_v43 = vpop.f32.mrb[170].mxu1 }
 0x629   : > { %40430 = vmatmul.mubr.msk.f32.vlgmr.msra.gmra.mrb[230].mxu0 %vm330_vm10, %v46909_v16  ;;  %v40096_v13 = vpop.f32.mrb[171].mxu1  ;;  %42014 = vmatprep.subr.bf16.mxu1 %v42754_v9 }
 0x62a   : > { %40438 = vmatpush3.msra.mxu0 %v19959_v40  ;;  %40439 = vmatprep.mubr.msk.f32.mxu0 %vm42755_vm12, %v48463_v25 }
 0x62b   : > { %40445 = vmatmul.mubr.msk.f32.vlgmr.msra.gmra.mrb[240].mxu1 %vm330_vm10, %v46937_v56  ;;  %40447 = vmatprep.subr.mxu0 %v48463_v25 }
 0x62c   : > { %40456 = vmatprep.mubr.msk.f32.mxu1 %vm42755_vm12, %v48463_v25  ;;  %42017 = vmatpush3.bf16.msk.msra.mxu1 %vm47234_vm1, %v47238_v57 }
 0x62d   : > { %40440 = vmatmul.mubr.msk.f32.vlgmr.msra.gmra.mrb[232].mxu0 %vm330_vm10, %v46928_v4  ;;  %42022 = vmatprep.subr.bf16.mxu1 %v42754_v9  ;;  %v28890_v4 = vld [vmem:[%s48104_s5 + $0x18] sm:$0xff] }
 0x62e   : > { %40448 = vmatpush3.msra.mxu0 %v19959_v40  ;;  %40449 = vmatprep.mubr.msk.f32.mxu0 %vm42755_vm12, %v48463_v25  ;;  %v23731_v55 = vpop.f32.mrb[164].mxu0 }
 0x62f   : > { %v40101_v37 = vpop.f32.mrb[165].mxu0  ;;  %42018 = vmatprep.subr.bf16.mxu0 %v42754_v9  ;;  %40457 = vmatmul.mubr.msk.f32.vlgmr.msra.gmra.mrb[242].mxu1 %vm28906_vm3, %v48520_v35 }
 0x630   : > { %40470 = vmatprep.mubr.msk.f32.mxu1 %vm42755_vm12, %v48463_v25 }
 0x631   : > { %40450 = vmatmul.mubr.msk.f32.vlgmr.msra.gmra.mrb[234].mxu0 %vm330_vm10, %v46956_v17 }
 0x632   : > { %40463 = vmatprep.mubr.msk.f32.mxu0 %vm42755_vm12, %v48463_v25 }
 0x634   : > { %v23804_v50 = vpop.f32.mrb[172].mxu1 }
 0x635   : > { %v40106_v49 = vpop.f32.mrb[173].mxu1 }
 0x63a   : > { %v23877_v8 = vpop.f32.mrb[166].mxu0 }
 0x63b   : > { %v40111_v7 = vpop.f32.mrb[167].mxu0 }
 0x640   : > { %v23950_v62 = vpop.f32.mrb[174].mxu1 }
 0x641   : > { %v40116_v15 = vpop.f32.mrb[175].mxu1 }
 0x646   : > { %v24023_v34 = vpop.f32.mrb[168].mxu0 }
 0x647   : > { %v40121_v31 = vpop.f32.mrb[169].mxu0 }
 0x64c   : > { %v24096_v3 = vpop.f32.mrb[176].mxu1 }
 0x64d   : > { %v40126_v60 = vpop.f32.mrb[177].mxu1 }
 0x650   : > { %v24242_v41 = vpop.f32.mrb[178].mxu1 }
 0x651   : > { %v24243_v53 = vadd.f32 %v24242_v41, %v23658_v43  ;;  %v40136_v48 = vpop.f32.mrb[179].mxu1 }
 0x652   : > { %v24169_v21 = vpop.f32.mrb[170].mxu0 }
 0x653   : > { %v40131_v18 = vpop.f32.mrb[171].mxu0 }
 0x654   : > { %v24388_v20 = vpop.f32.mrb[180].mxu1 }
 0x655   : > { %v24389_v11 = vadd.f32 %v24388_v20, %v23804_v50  ;;  %v40146_v38 = vpop.f32.mrb[181].mxu1 }
 0x656   : > { %v24315_v30 = vpop.f32.mrb[172].mxu0 }
 0x657   : > { %v24316_v36 = vadd.f32 %v24315_v30, %v23731_v55  ;;  %v40141_v29 = vpop.f32.mrb[173].mxu0 }
 0x658   : > { %v24534_v47 = vpop.f32.mrb[182].mxu1 }
 0x659   : > { %v24535_v58 = vadd.f32 %v24534_v47, %v23950_v62  ;;  %v40156_v63 = vpop.f32.mrb[183].mxu1 }
 0x65a   : > { %v24461_v42 = vpop.f32.mrb[174].mxu0 }
 0x65b   : > { %v24462_v23 = vadd.f32 %v24461_v42, %v23877_v8  ;;  %v40151_v0 = vpop.f32.mrb[175].mxu0 }
 0x65c   : > { %v24680_v54 = vpop.f32.mrb[184].mxu1 }
 0x65d   : > { %v24681_v61 = vadd.f32 %v24680_v54, %v24096_v3  ;;  %v40166_v10 = vpop.f32.mrb[185].mxu1 }
 0x65e   : > { %v24607_v19 = vpop.f32.mrb[176].mxu0 }
 0x65f   : > { %v24608_v1 = vadd.f32 %v24607_v19, %v24023_v34  ;;  %v40161_v12 = vpop.f32.mrb[177].mxu0 }
 0x662   : > { %v24753_v52 = vpop.f32.mrb[178].mxu0 }
 0x663   : > { %v24754_v27 = vadd.f32 %v24753_v52, %v24169_v21  ;;  %v40171_v6 = vpop.f32.mrb[179].mxu0 }
 0x67a   : > { %v24826_v14 = vpop.f32.mrb[186].mxu1 }
 0x67b   : > { %v25341_v33 = vadd.f32 %v24826_v14, %v24243_v53  ;;  %v40176_v5 = vpop.f32.mrb[187].mxu1 }
 0x680   : > { %v24899_v16 = vpop.f32.mrb[180].mxu0 }
 0x681   : > { %v25342_v51 = vadd.f32 %v24899_v16, %v24316_v36  ;;  %v40181_v28 = vpop.f32.mrb[181].mxu0 }
 0x686   : > { %v24972_v56 = vpop.f32.mrb[188].mxu1 }
 0x687   : > { %v25343_v59 = vadd.f32 %v24972_v56, %v24389_v11  ;;  %v40186_v17 = vpop.f32.mrb[189].mxu1 }
 0x68c   : > { %v25045_v39 = vpop.f32.mrb[182].mxu0 }
 0x68d   : > { %v25344_v44 = vadd.f32 %v25045_v39, %v24462_v23  ;;  %v40191_v22 = vpop.f32.mrb[183].mxu0 }
 0x692   : > { %v25118_v2 = vpop.f32.mrb[190].mxu1 }
 0x693   : > { %v25345_v46 = vadd.f32 %v25118_v2, %v24535_v58  ;;  %v40196_v40 = vpop.f32.mrb[191].mxu1 }
 0x698   : > { %v25191_v43 = vpop.f32.mrb[184].mxu0 }
 0x699   : > { %v25346_v13 = vadd.f32 %v25191_v43, %v24608_v1  ;;  %v40201_v55 = vpop.f32.mrb[185].mxu0 }
 0x69e   : > { %v25264_v37 = vpop.f32.mrb[192].mxu1 }
 0x69f   : > { %v25347_v50 = vadd.f32 %v25264_v37, %v24681_v61  ;;  %v40206_v49 = vpop.f32.mrb[193].mxu1 }
 0x6a2   : > { %v25418_v8 = vpop.f32.mrb[194].mxu1 }
 0x6a3   : > { %v25933_v7 = vadd.f32 %v25418_v8, %v25341_v33  ;;  %v40216_v62 = vpop.f32.mrb[195].mxu1 }
 0x6a4   : > { %v25337_v15 = vpop.f32.mrb[186].mxu0 }
 0x6a5   : > { %v25348_v34 = vadd.f32 %v25337_v15, %v24754_v27  ;;  %v40211_v31 = vpop.f32.mrb[187].mxu0 }
 0x6a6   : > { %v25564_v3 = vpop.f32.mrb[196].mxu1 }
 0x6a7   : > { %v25935_v60 = vadd.f32 %v25564_v3, %v25343_v59  ;;  %v40226_v41 = vpop.f32.mrb[197].mxu1 }
 0x6a8   : > { %v25491_v53 = vpop.f32.mrb[188].mxu0 }
 0x6a9   : > { %v25934_v48 = vadd.f32 %v25491_v53, %v25342_v51  ;;  %v40221_v21 = vpop.f32.mrb[189].mxu0 }
 0x6aa   : > { %v25710_v18 = vpop.f32.mrb[198].mxu1 }
 0x6ab   : > { %v25937_v20 = vadd.f32 %v25710_v18, %v25345_v46  ;;  %v40236_v11 = vpop.f32.mrb[199].mxu1 }
 0x6ac   : > { %v25637_v38 = vpop.f32.mrb[190].mxu0 }
 0x6ad   : > { %v25936_v30 = vadd.f32 %v25637_v38, %v25344_v44  ;;  %v40231_v36 = vpop.f32.mrb[191].mxu0 }
 0x6ae   : > { %v25856_v29 = vpop.f32.mrb[200].mxu1 }
 0x6af   : > { %v25939_v47 = vadd.f32 %v25856_v29, %v25347_v50  ;;  %v40246_v58 = vpop.f32.mrb[201].mxu1 }
 0x6b0   : > { %v25783_v63 = vpop.f32.mrb[192].mxu0 }
 0x6b1   : > { %v25938_v42 = vadd.f32 %v25783_v63, %v25346_v13  ;;  %v40241_v23 = vpop.f32.mrb[193].mxu0 }
 0x6b2   : > { %v26010_v0 = vpop.f32.mrb[202].mxu1 }
 0x6b3   : > { %v26525_v54 = vadd.f32 %v26010_v0, %v25933_v7  ;;  %v40256_v61 = vpop.f32.mrb[203].mxu1 }
 0x6b4   : > { %v25929_v10 = vpop.f32.mrb[194].mxu0 }
 0x6b5   : > { %v25940_v19 = vadd.f32 %v25929_v10, %v25348_v34  ;;  %v40251_v1 = vpop.f32.mrb[195].mxu0 }
 0x6b6   : > { %v26156_v12 = vpop.f32.mrb[204].mxu1 }
 0x6b7   : > { %v26527_v52 = vadd.f32 %v26156_v12, %v25935_v60  ;;  %v40266_v27 = vpop.f32.mrb[205].mxu1 }
 0x6b8   : > { %v26083_v6 = vpop.f32.mrb[196].mxu0 }
 0x6b9   : > { %v26526_v14 = vadd.f32 %v26083_v6, %v25934_v48  ;;  %v40261_v33 = vpop.f32.mrb[197].mxu0 }
 0x6ba   : > { %v26302_v5 = vpop.f32.mrb[206].mxu1 }
 0x6bb   : > { %v26529_v16 = vadd.f32 %v26302_v5, %v25937_v20  ;;  %v40276_v51 = vpop.f32.mrb[207].mxu1 }
 0x6bc   : > { %v26229_v28 = vpop.f32.mrb[198].mxu0 }
 0x6bd   : > { %v26528_v26 = vadd.f32 %v26229_v28, %v25936_v30  ;;  %v40271_v24 = vpop.f32.mrb[199].mxu0 }
 0x6be   : > { %v26448_v56 = vpop.f32.mrb[208].mxu1 }
 0x6bf   : > { %v26531_v59 = vadd.f32 %v26448_v56, %v25939_v47  ;;  %v40286_v17 = vpop.f32.mrb[209].mxu1 }
 0x6c0   : > { %v26375_v39 = vpop.f32.mrb[200].mxu0 }
 0x6c1   : > { %v26530_v44 = vadd.f32 %v26375_v39, %v25938_v42  ;;  %v40281_v22 = vpop.f32.mrb[201].mxu0 }
 0x6c2   : > { %v26602_v2 = vpop.f32.mrb[210].mxu1 }
 0x6c3   : > { %v27117_v46 = vadd.f32 %v26602_v2, %v26525_v54  ;;  %v40296_v40 = vpop.f32.mrb[211].mxu1 }
 0x6c4   : > { %v26521_v43 = vpop.f32.mrb[202].mxu0 }
 0x6c5   : > { %v26532_v13 = vadd.f32 %v26521_v43, %v25940_v19  ;;  %v40291_v55 = vpop.f32.mrb[203].mxu0 }
 0x6c6   : > { %v26748_v37 = vpop.f32.mrb[212].mxu1 }
 0x6c7   : > { %v27119_v50 = vadd.f32 %v26748_v37, %v26527_v52  ;;  %v40306_v49 = vpop.f32.mrb[213].mxu1 }
 0x6c8   : > { %v26675_v8 = vpop.f32.mrb[204].mxu0 }
 0x6c9   : > { %v27118_v7 = vadd.f32 %v26675_v8, %v26526_v14  ;;  %v40301_v62 = vpop.f32.mrb[205].mxu0 }
 0x6ca   : > { %v26894_v15 = vpop.f32.mrb[214].mxu1 }
 0x6cb   : > { %v27121_v34 = vadd.f32 %v26894_v15, %v26529_v16  ;;  %v40316_v31 = vpop.f32.mrb[215].mxu1 }
 0x6cc   : > { %v26821_v3 = vpop.f32.mrb[206].mxu0 }
 0x6cd   : > { %v27120_v60 = vadd.f32 %v26821_v3, %v26528_v26  ;;  %v40311_v41 = vpop.f32.mrb[207].mxu0  ;;  %v35713_v3 = vld [vmem:[%s48103_s4] ss:$0 sm:$0xff] }
 0x6ce   : > { %v27040_v53 = vpop.f32.mrb[216].mxu1 }
 0x6cf   : > { %v27123_v48 = vadd.f32 %v27040_v53, %v26531_v59  ;;  %v40326_v21 = vpop.f32.mrb[217].mxu1 }
 0x6d0   : > { %v26967_v18 = vpop.f32.mrb[208].mxu0 }
 0x6d1   : > { %v27122_v20 = vadd.f32 %v26967_v18, %v26530_v44  ;;  %v40321_v11 = vpop.f32.mrb[209].mxu0 }
 0x6d2   : > { %v27191_v38 = vpop.f32.mrb[218].mxu1 }
 0x6d3   : > { %v27688_v30 = vadd.f32 %v27191_v38, %v27117_v46  ;;  %v40336_v36 = vpop.f32.mrb[219].mxu1 }
 0x6d4   : > { %v27113_v29 = vpop.f32.mrb[210].mxu0 }
 0x6d5   : > { %v27124_v47 = vadd.f32 %v27113_v29, %v26532_v13  ;;  %v40331_v58 = vpop.f32.mrb[211].mxu0 }
 0x6d6   : > { %v27331_v63 = vpop.f32.mrb[220].mxu1 }
 0x6d7   : > { %v27690_v42 = vadd.f32 %v27331_v63, %v27119_v50  ;;  %v40346_v23 = vpop.f32.mrb[221].mxu1 }
 0x6d8   : > { %v27261_v0 = vpop.f32.mrb[212].mxu0 }
 0x6d9   : > { %v27689_v54 = vadd.f32 %v27261_v0, %v27118_v7  ;;  %v40341_v61 = vpop.f32.mrb[213].mxu0 }
 0x6da   : > { %v27471_v10 = vpop.f32.mrb[222].mxu1 }
 0x6db   : > { %v27692_v19 = vadd.f32 %v27471_v10, %v27121_v34  ;;  %v40356_v1 = vpop.f32.mrb[223].mxu1 }
 0x6dc   : > { %v27401_v12 = vpop.f32.mrb[214].mxu0 }
 0x6dd   : > { %v27691_v52 = vadd.f32 %v27401_v12, %v27120_v60  ;;  %v40351_v27 = vpop.f32.mrb[215].mxu0 }
 0x6de   : > { %v27611_v6 = vpop.f32.mrb[224].mxu1 }
 0x6df   : > { %v27694_v14 = vadd.f32 %v27611_v6, %v27123_v48  ;;  %v40366_v33 = vpop.f32.mrb[225].mxu1 }
 0x6e0   : > { %v27541_v5 = vpop.f32.mrb[216].mxu0 }
 0x6e1   : > { %v27693_v16 = vadd.f32 %v27541_v5, %v27122_v20  ;;  %v40361_v51 = vpop.f32.mrb[217].mxu0 }
 0x6e2   : > { %v27762_v28 = vpop.f32.mrb[226].mxu1 }
 0x6e3   : > { %v28259_v26 = vadd.f32 %v27762_v28, %v27688_v30  ;;  %v40376_v24 = vpop.f32.mrb[227].mxu1 }
 0x6e4   : > { %v27684_v56 = vpop.f32.mrb[218].mxu0 }
 0x6e5   : > { %v27695_v59 = vadd.f32 %v27684_v56, %v27124_v47  ;;  %v40371_v17 = vpop.f32.mrb[219].mxu0 }
 0x6e6   : > { %v27902_v39 = vpop.f32.mrb[228].mxu1 }
 0x6e7   : > { %v28261_v44 = vadd.f32 %v27902_v39, %v27690_v42  ;;  %v40386_v22 = vpop.f32.mrb[229].mxu1 }
 0x6e8   : > { %v27832_v2 = vpop.f32.mrb[220].mxu0 }
 0x6e9   : > { %v28260_v46 = vadd.f32 %v27832_v2, %v27689_v54  ;;  %v40381_v40 = vpop.f32.mrb[221].mxu0 }
 0x6ea   : > { %v28042_v43 = vpop.f32.mrb[230].mxu1 }
 0x6eb   : > { %v28263_v13 = vadd.f32 %v28042_v43, %v27692_v19  ;;  %v40396_v55 = vpop.f32.mrb[231].mxu1 }
 0x6ec   : > { %v27972_v37 = vpop.f32.mrb[222].mxu0 }
 0x6ed   : > { %v28262_v50 = vadd.f32 %v27972_v37, %v27691_v52  ;;  %v40391_v49 = vpop.f32.mrb[223].mxu0 }
 0x6ee   : > { %v28182_v8 = vpop.f32.mrb[232].mxu1 }
 0x6ef   : > { %v28265_v7 = vadd.f32 %v28182_v8, %v27694_v14  ;;  %v40406_v62 = vpop.f32.mrb[233].mxu1 }
 0x6f0   : > { %v28112_v15 = vpop.f32.mrb[224].mxu0 }
 0x6f1   : > { %v28264_v34 = vadd.f32 %v28112_v15, %v27693_v16  ;;  %v40401_v31 = vpop.f32.mrb[225].mxu0 }
 0x6f2   : > { %v28333_v60 = vpop.f32.mrb[234].mxu1 }
 0x6f3   : > { %v28830_v41 = vadd.f32 %v28333_v60, %v28259_v26  ;;  %v40416_v53 = vpop.f32.mrb[235].mxu1 }
 0x6f4   : > { %v28255_v48 = vpop.f32.mrb[226].mxu0 }
 0x6f5   : > { %v28844_v21 = vadd.f32 %v35713_v3, %v28830_v41  ;;  %v28266_v18 = vadd.f32 %v28255_v48, %v27695_v59  ;;  %v40411_v20 = vpop.f32.mrb[227].mxu0 }
 0x6f6   : > { %v28473_v11 = vpop.f32.mrb[236].mxu1 }
 0x6f7   : > { %v28852_v38 = vmax.f32 %v28844_v21, 0.0  ;;  %v28832_v30 = vadd.f32 %v28473_v11, %v28261_v44  ;;  %v40426_v36 = vpop.f32.mrb[237].mxu1 }
 0x6f8   : > { %v28403_v29 = vpop.f32.mrb[228].mxu0 }
 0x6f9   : > { %28861 = vst.msk [vmem:[#allocation3 + $0x11] sm:$0xff] %vm386_vm14, %v28852_v38  ;;  %v28846_v47 = vadd.f32 %v35713_v3, %v28832_v30  ;;  %v28831_v58 = vadd.f32 %v28403_v29, %v28260_v46  ;;  %v40421_v63 = vpop.f32.mrb[229].mxu0 }
 0x6fa   : > { %v28613_v42 = vpop.f32.mrb[238].mxu1 }
 0x6fb   : > { %v28854_v23 = vmax.f32 %v28846_v47, 0.0  ;;  %v28845_v0 = vadd.f32 %v35713_v3, %v28831_v58  ;;  %v28834_v54 = vadd.f32 %v28613_v42, %v28263_v13  ;;  %v40436_v61 = vpop.f32.mrb[239].mxu1 }
 0x6fc   : > { %v28543_v10 = vpop.f32.mrb[230].mxu0 }
 0x6fd   : > { %28863 = vst.msk [vmem:[#allocation3 + $0x31] sm:$0xff] %vm386_vm14, %v28854_v23  ;;  %v28853_v19 = vmax.f32 %v28845_v0, 0.0  ;;  %v28848_v1 = vadd.f32 %v35713_v3, %v28834_v54  ;;  %v28833_v12 = vadd.f32 %v28543_v10, %v28262_v50  ;;  %v40431_v52 = vpop.f32.mrb[231].mxu0 }
 0x6fe   : > { %v28753_v27 = vpop.f32.mrb[240].mxu1 }
 0x6ff   : > { %28862 = vst.msk [vmem:[#allocation3 + $0x21] sm:$0xff] %vm386_vm14, %v28853_v19  ;;  %v28856_v6 = vmax.f32 %v28848_v1, 0.0  ;;  %v28847_v14 = vadd.f32 %v35713_v3, %v28833_v12  ;;  %v28836_v33 = vadd.f32 %v28753_v27, %v28265_v7  ;;  %v40446_v5 = vpop.f32.mrb[241].mxu1 }
 0x700   : > { %v28683_v16 = vpop.f32.mrb[232].mxu0  ;;  %v28871_v51 = vld [vmem:[#allocation3 + $0x10] sm:$0xff]  ;;  %v28872_v28 = vld [vmem:[#allocation3 + $0x18] sm:$0x3] }
 0x701   : > { %28865 = vst.msk [vmem:[#allocation3 + $0x51] sm:$0xff] %vm386_vm14, %v28856_v6  ;;  %v28855_v26 = vmax.f32 %v28847_v14, 0.0  ;;  %v28850_v24 = vadd.f32 %v35713_v3, %v28836_v33  ;;  %v28835_v56 = vadd.f32 %v28683_v16, %v28264_v34  ;;  %v40441_v59 = vpop.f32.mrb[233].mxu0  ;;  %v47255_v17 = vpack.c.bf16 %v28872_v28, %v28871_v51  ;;  %v28887_v33 = vld [vmem:[%s48104_s5] sm:$0xff]  ;;  %v28888_v5 = vld [vmem:[%s48104_s5 + $0x8] sm:$0xff] }
 0x703   : > { %28864 = vst.msk [vmem:[#allocation3 + $0x41] sm:$0xff] %vm386_vm14, %v28855_v26  ;;  %v28858_v39 = vmax.f32 %v28850_v24, 0.0  ;;  %v28849_v44 = vadd.f32 %v35713_v3, %v28835_v56  ;;  %42021 = vmatpush3.bf16.msk.msra.mxu0 %vm47234_vm1, %v47255_v17  ;;  %v42135_v26 = vpack.c.bf16 %v28888_v5, %v28887_v33  ;;  %v33473_v33 = vld [vmem:[%s48106_s7 + $0x18] sm:$0xff] }
 0x704   : > { %v28826_v22 = vpop.f32.mrb[234].mxu0  ;;  %42026 = vmatprep.subr.bf16.mxu0 %v42754_v9  ;;  %v28875_v2 = vld [vmem:[#allocation3 + $0x30] sm:$0xff]  ;;  %v28876_v46 = vld [vmem:[#allocation3 + $0x38] sm:$0x3] }
 0x705   : > { %28867 = vst.msk [vmem:[#allocation3 + $0x71] sm:$0xff] %vm386_vm14, %v28858_v39  ;;  %v28857_v40 = vmax.f32 %v28849_v44, 0.0  ;;  %v28837_v43 = vadd.f32 %v28826_v22, %v28266_v18  ;;  %v40451_v13 = vpop.f32.mrb[235].mxu0  ;;  %v47263_v55 = vpack.c.bf16 %v28876_v46, %v28875_v2  ;;  %v28891_v22 = vld [vmem:[%s48104_s5 + $0x20] sm:$0xff]  ;;  %v28892_v2 = vld [vmem:[%s48104_s5 + $0x28] sm:$0xff] }
 0x706   : > { %40464 = vmatmul.mubr.msk.f32.vlgmr.msra.gmra.mrb[236].mxu0 %vm28906_vm3, %v48520_v35  ;;  %v28873_v37 = vld [vmem:[#allocation3 + $0x20] sm:$0xff]  ;;  %v28874_v50 = vld [vmem:[#allocation3 + $0x28] sm:$0x3]  ;;  %v42147_v13 = vpack.c.bf16 %v28892_v2, %v28891_v22 }
 0x707   : > { %28866 = vst.msk [vmem:[#allocation3 + $0x61] sm:$0xff] %vm386_vm14, %v28857_v40  ;;  %v28851_v49 = vadd.f32 %v35713_v3, %v28837_v43  ;;  %42029 = vmatpush3.bf16.msk.msra.mxu0 %vm47234_vm1, %v47263_v55  ;;  %v47271_v8 = vpack.c.bf16 %v28874_v50, %v28873_v37  ;;  %40477 = vmatprep.mubr.msk.f32.mxu0 %vm42755_vm12, %v48463_v25 }
 0x708   : > { %42034 = vmatprep.subr.bf16.mxu0 %v42754_v9  ;;  %v28879_v7 = vld [vmem:[#allocation3 + $0x50] sm:$0xff]  ;;  %v28880_v62 = vld [vmem:[#allocation3 + $0x58] sm:$0x3] }
 0x709   : > { %v28859_v15 = vmax.f32 %v28851_v49, 0.0  ;;  %42025 = vmatpush3.bf16.msk.msra.mxu1 %vm47234_vm1, %v47271_v8  ;;  %v47279_v34 = vpack.c.bf16 %v28880_v62, %v28879_v7 }
 0x70a   : > { %40478 = vmatmul.mubr.msk.f32.vlgmr.msra.gmra.mrb[238].mxu0 %vm28906_vm3, %v48520_v35  ;;  %42030 = vmatprep.subr.bf16.mxu1 %v42754_v9  ;;  %v28877_v31 = vld [vmem:[#allocation3 + $0x40] sm:$0xff]  ;;  %v28878_v3 = vld [vmem:[#allocation3 + $0x48] sm:$0x3] }
 0x70b   : > { %28868 = vst.msk [vmem:[#allocation3 + $0x81] sm:$0xff] %vm386_vm14, %v28859_v15  ;;  %42037 = vmatpush3.bf16.msk.msra.mxu0 %vm47234_vm1, %v47279_v34  ;;  %v47288_v60 = vpack.c.bf16 %v28878_v3, %v28877_v31  ;;  %40491 = vmatprep.mubr.msk.f32.mxu0 %vm42755_vm12, %v48463_v25  ;;  %v28893_v31 = vld [vmem:[%s48104_s5 + $0x30] sm:$0xff]  ;;  %v28894_v3 = vld [vmem:[%s48104_s5 + $0x38] sm:$0xff] }
 0x70c   : > { %40471 = vmatmul.mubr.msk.f32.vlgmr.msra.gmra.mrb[244].mxu1 %vm28906_vm3, %v48520_v35  ;;  %42042 = vmatprep.subr.bf16.mxu0 %v42754_v9  ;;  %v28883_v41 = vld [vmem:[#allocation3 + $0x70] sm:$0xff]  ;;  %v28884_v53 = vld [vmem:[#allocation3 + $0x78] sm:$0x3] }
 0x70d   : > { %42033 = vmatpush3.bf16.msk.msra.mxu1 %vm47234_vm1, %v47288_v60  ;;  %40484 = vmatprep.mubr.msk.f32.mxu1 %vm42755_vm12, %v48463_v25  ;;  %v47300_v48 = vpack.c.bf16 %v28884_v53, %v28883_v41 }
 0x70e   : > { %40492 = vmatmul.mubr.msk.f32.vlgmr.msra.gmra.mrb[240].mxu0 %vm28906_vm3, %v48520_v35  ;;  %42038 = vmatprep.subr.bf16.mxu1 %v42754_v9  ;;  %v28881_v21 = vld [vmem:[#allocation3 + $0x60] sm:$0xff]  ;;  %v28882_v18 = vld [vmem:[#allocation3 + $0x68] sm:$0x3] }
 0x70f   : > { %42045 = vmatpush3.bf16.msk.msra.mxu0 %vm47234_vm1, %v47300_v48  ;;  %v47308_v20 = vpack.c.bf16 %v28882_v18, %v28881_v21  ;;  %40505 = vmatprep.mubr.msk.f32.mxu0 %vm42755_vm12, %v48463_v25 }
 0x710   : > { %40485 = vmatmul.mubr.msk.f32.vlgmr.msra.gmra.mrb[246].mxu1 %vm28906_vm3, %v48520_v35  ;;  %42050 = vmatprep.subr.bf16.mxu0 %v42754_v9 }
 0x711   : > { %42041 = vmatpush3.bf16.msk.msra.mxu1 %vm47234_vm1, %v47308_v20  ;;  %40498 = vmatprep.mubr.msk.f32.mxu1 %vm42755_vm12, %v48463_v25 }
 0x712   : > { %40506 = vmatmul.mubr.msk.f32.vlgmr.msra.gmra.mrb[242].mxu0 %vm28906_vm3, %v48520_v35  ;;  %42046 = vmatprep.subr.bf16.mxu1 %v42754_v9  ;;  %v28885_v11 = vld [vmem:[#allocation3 + $0x80] sm:$0xff]  ;;  %v28886_v38 = vld [vmem:[#allocation3 + $0x88] sm:$0x3] }
 0x713   : > { %42053 = vmatpush3.bf16.msk.msra.mxu0 %vm47234_vm1, %v47238_v57  ;;  %v47326_v30 = vpack.c.bf16 %v28886_v38, %v28885_v11  ;;  %40519 = vmatprep.mubr.msk.f32.mxu0 %vm42755_vm12, %v48463_v25 }
 0x714   : > { %40499 = vmatmul.mubr.msk.f32.vlgmr.msra.gmra.mrb[248].mxu1 %vm28906_vm3, %v48520_v35  ;;  %42058 = vmatprep.subr.bf16.mxu0 %v42754_v9 }
 0x715   : > { %42049 = vmatpush3.bf16.msk.msra.mxu1 %vm47234_vm1, %v47326_v30  ;;  %40512 = vmatprep.mubr.msk.f32.mxu1 %vm42755_vm12, %v48463_v25 }
 0x716   : > { %40520 = vmatmul.mubr.msk.f32.vlgmr.msra.gmra.mrb[244].mxu0 %vm28906_vm3, %v48521_v32  ;;  %42054 = vmatprep.subr.bf16.mxu1 %v42754_v9 }
 0x717   : > { %42061 = vmatpush3.bf16.msk.msra.mxu0 %vm47234_vm1, %v47271_v8  ;;  %40533 = vmatprep.mubr.msk.f32.mxu0 %vm42755_vm12, %v48463_v25 }
 0x718   : > { %40513 = vmatmul.mubr.msk.f32.vlgmr.msra.gmra.mrb[250].mxu1 %vm28906_vm3, %v48520_v35  ;;  %42066 = vmatprep.subr.bf16.mxu0 %v42754_v9  ;;  %v28978_v35 = vpop.f32.mrb[242].mxu1 }
 0x719   : > { %42057 = vmatpush3.bf16.msk.msra.mxu1 %vm47234_vm1, %v47255_v17  ;;  %40526 = vmatprep.mubr.msk.f32.mxu1 %vm42755_vm12, %v48463_v25 }
 0x71a   : > { %40534 = vmatmul.mubr.msk.f32.vlgmr.msra.gmra.mrb[246].mxu0 %vm28906_vm3, %v48521_v32  ;;  %42062 = vmatprep.subr.bf16.mxu1 %v42754_v9 }
 0x71b   : > { %42069 = vmatpush3.bf16.msk.msra.mxu0 %vm47234_vm1, %v47288_v60  ;;  %40547 = vmatprep.mubr.msk.f32.mxu0 %vm42755_vm12, %v48463_v25 }
 0x71c   : > { %40527 = vmatmul.mubr.msk.f32.vlgmr.msra.gmra.mrb[252].mxu1 %vm28906_vm3, %v48521_v32  ;;  %42074 = vmatprep.subr.bf16.mxu0 %v42754_v9 }
 0x71d   : > { %42065 = vmatpush3.bf16.msk.msra.mxu1 %vm47234_vm1, %v47263_v55  ;;  %40540 = vmatprep.mubr.msk.f32.mxu1 %vm42755_vm12, %v48463_v25 }
 0x71e   : > { %40548 = vmatmul.mubr.msk.f32.vlgmr.msra.gmra.mrb[248].mxu0 %vm28906_vm3, %v48521_v32  ;;  %42070 = vmatprep.subr.bf16.mxu1 %v42754_v9 }
 0x71f   : > { %42077 = vmatpush3.bf16.msk.msra.mxu0 %vm47234_vm1, %v47308_v20  ;;  %40561 = vmatprep.mubr.msk.f32.mxu0 %vm42755_vm12, %v48463_v25 }
 0x720   : > { %40541 = vmatmul.mubr.msk.f32.vlgmr.msra.gmra.mrb[254].mxu1 %vm28906_vm3, %v48521_v32  ;;  %42082 = vmatprep.subr.bf16.mxu0 %v42754_v9 }
 0x721   : > { %42073 = vmatpush3.bf16.msk.msra.mxu1 %vm47234_vm1, %v47279_v34  ;;  %40554 = vmatprep.mubr.msk.f32.mxu1 %vm42755_vm12, %v48463_v25 }
 0x722   : > { %40562 = vmatmul.mubr.msk.f32.vlgmr.msra.gmra.mrb[250].mxu0 %vm28906_vm3, %v48521_v32  ;;  %42078 = vmatprep.subr.bf16.mxu1 %v42754_v9 }
 0x723   : > { %42085 = vmatpush3.bf16.msk.msra.mxu0 %vm47234_vm1, %v47326_v30  ;;  %40575 = vmatprep.mubr.msk.f32.mxu0 %vm42755_vm12, %v48463_v25 }
 0x724   : > { %40555 = vmatmul.mubr.msk.f32.vlgmr.msra.gmra.mrb[0].mxu1 %vm28906_vm3, %v48521_v32  ;;  %42090 = vmatprep.subr.bf16.mxu0 %v42754_v9 }
 0x725   : > { %42081 = vmatpush3.bf16.msk.msra.mxu1 %vm47234_vm1, %v47300_v48  ;;  %40568 = vmatprep.mubr.msk.f32.mxu1 %vm42755_vm12, %v48463_v25 }
 0x726   : > { %40576 = vmatmul.mubr.msk.f32.vlgmr.msra.gmra.mrb[252].mxu0 %vm28906_vm3, %v48521_v32  ;;  %42086 = vmatprep.subr.bf16.mxu1 %v42754_v9 }
 0x727   : > { %42093 = vmatpush3.bf16.msk.msra.mxu0 %vm47234_vm1, %v47255_v17  ;;  %40589 = vmatprep.mubr.msk.f32.mxu0 %vm42755_vm12, %v48463_v25 }
 0x728   : > { %40569 = vmatmul.mubr.msk.f32.vlgmr.msra.gmra.mrb[2].mxu1 %vm28906_vm3, %v48521_v32  ;;  %42098 = vmatprep.subr.bf16.mxu0 %v42754_v9  ;;  %v40458_v32 = vpop.f32.mrb[243].mxu1 }
 0x729   : > { %42089 = vmatpush3.bf16.msk.msra.mxu1 %vm47234_vm1, %v47238_v57  ;;  %40582 = vmatprep.mubr.msk.f32.mxu1 %vm42755_vm12, %v48463_v25  ;;  %v28889_v57 = vld [vmem:[%s48104_s5 + $0x10] sm:$0xff] }
 0x72a   : > { %40590 = vmatmul.mubr.msk.f32.vlgmr.msra.gmra.mrb[254].mxu0 %vm28906_vm3, %v48522_v45  ;;  %42094 = vmatprep.subr.bf16.mxu1 %v42754_v9  ;;  %v42123_v36 = vpack.c.bf16 %v28890_v4, %v28889_v57 }
 0x72b   : > { %42101 = vmatpush3.bf16.msk.msra.mxu0 %vm47234_vm1, %v47263_v55  ;;  %40603 = vmatprep.mubr.msk.f32.mxu0 %vm42755_vm12, %v48463_v25 }
 0x72c   : > { %40583 = vmatmul.mubr.msk.f32.vlgmr.msra.gmra.mrb[4].mxu1 %vm28906_vm3, %v48522_v45  ;;  %42106 = vmatprep.subr.bf16.mxu0 %v42754_v9 }
 0x72d   : > { %42097 = vmatpush3.bf16.msk.msra.mxu1 %vm47234_vm1, %v47271_v8  ;;  %40596 = vmatprep.mubr.msk.f32.mxu1 %vm42755_vm12, %v48463_v25 }
 0x72e   : > { %40604 = vmatmul.mubr.msk.f32.vlgmr.msra.gmra.mrb[0].mxu0 %vm28906_vm3, %v48522_v45  ;;  %42102 = vmatprep.subr.bf16.mxu1 %v42754_v9 }
 0x72f   : > { %42109 = vmatpush3.bf16.msk.msra.mxu0 %vm47234_vm1, %v47279_v34  ;;  %40617 = vmatprep.mubr.msk.f32.mxu0 %vm42755_vm12, %v48463_v25 }
 0x730   : > { %40597 = vmatmul.mubr.msk.f32.vlgmr.msra.gmra.mrb[6].mxu1 %vm28906_vm3, %v48522_v45  ;;  %42114 = vmatprep.subr.bf16.mxu0 %v42754_v9 }
 0x731   : > { %42105 = vmatpush3.bf16.msk.msra.mxu1 %vm47234_vm1, %v47288_v60  ;;  %40610 = vmatprep.mubr.msk.f32.mxu1 %vm42755_vm12, %v48463_v25 }
 0x732   : > { %40618 = vmatmul.mubr.msk.f32.vlgmr.msra.gmra.mrb[2].mxu0 %vm28906_vm3, %v48522_v45  ;;  %42110 = vmatprep.subr.bf16.mxu1 %v42754_v9 }
 0x733   : > { %42117 = vmatpush3.bf16.msk.msra.mxu0 %vm47234_vm1, %v47300_v48  ;;  %40631 = vmatprep.mubr.msk.f32.mxu0 %vm42755_vm12, %v48463_v25  ;;  %v42159_v48 = vpack.c.bf16 %v28894_v3, %v28893_v31 }
 0x734   : > { %40611 = vmatmul.mubr.msk.f32.vlgmr.msra.gmra.mrb[8].mxu1 %vm28906_vm3, %v48522_v45  ;;  %42122 = vmatprep.subr.bf16.mxu0 %v42754_v9 }
 0x735   : > { %42113 = vmatpush3.bf16.msk.msra.mxu1 %vm47234_vm1, %v47308_v20  ;;  %40624 = vmatprep.mubr.msk.f32.mxu1 %vm42755_vm12, %v48463_v25 }
 0x736   : > { %42118 = vmatprep.subr.bf16.mxu1 %v42754_v9  ;;  %40632 = vmatmul.mubr.msk.f32.vlgmr.msra.gmra.mrb[4].mxu0 %vm28906_vm3, %v48522_v45 }
 0x737   : > { %40645 = vmatprep.mubr.msk.f32.mxu0 %vm42755_vm12, %v48463_v25  ;;  %42124 = vmatpush3.bf16.msra.mxu0 %v42123_v36 }
 0x738   : > { %40625 = vmatmul.mubr.msk.f32.vlgmr.msra.gmra.mrb[10].mxu1 %vm28906_vm3, %v48522_v45  ;;  %42128 = vmatprep.subr.bf16.mxu0 %v42754_v9 }
 0x739   : > { %42121 = vmatpush3.bf16.msk.msra.mxu1 %vm47234_vm1, %v47326_v30  ;;  %40638 = vmatprep.mubr.msk.f32.mxu1 %vm42755_vm12, %v48463_v25  ;;  %v28895_v30 = vld [vmem:[%s48104_s5 + $0x40] sm:$0xff] }
 0x73a   : > { %42125 = vmatprep.subr.bf16.mxu1 %v42754_v9 }
 0x73c   : > { %40639 = vmatmul.mubr.msk.f32.vlgmr.msra.gmra.mrb[12].mxu1 %vm28906_vm3, %v48522_v45 }
 0x73d   : > { %40652 = vmatprep.mubr.msk.f32.mxu1 %vm42755_vm12, %v48463_v25  ;;  %42127 = vmatpush3.bf16.msra.mxu1 %v42123_v36 }
 0x73e   : > { %42131 = vmatprep.subr.bf16.mxu1 %v42754_v9 }
 0x7d9   : > { %v47491_v45 = vpop.f32.mrb[236].mxu0 }
 0x7da   : > { %v40465_v29 = vpop.f32.mrb[237].mxu0 }
 0x7dd   : > { %v47493_v47 = vpop.f32.mrb[238].mxu0 }
 0x7de   : > { %v40479_v58 = vpop.f32.mrb[239].mxu0 }
 0x7df   : > { %v47495_v63 = vpop.f32.mrb[244].mxu1  ;;  %v28897_v58 = vld [vmem:[%s48104_s5 + $0x50] sm:$0xff] }
 0x7e0   : > { %v40472_v42 = vpop.f32.mrb[245].mxu1 }
 0x7e1   : > { %v47497_v23 = vpop.f32.mrb[240].mxu0 }
 0x7e2   : > { %v40493_v0 = vpop.f32.mrb[241].mxu0 }
 0x7e3   : > { %v47499_v54 = vpop.f32.mrb[246].mxu1  ;;  %v28900_v0 = vld [vmem:[%s48104_s5 + $0x68] sm:$0xff] }
 0x7e4   : > { %v40486_v61 = vpop.f32.mrb[247].mxu1 }
 0x7e5   : > { %v47501_v10 = vpop.f32.mrb[242].mxu0 }
 0x7e6   : > { %v40507_v19 = vpop.f32.mrb[243].mxu0 }
 0x7e7   : > { %v47503_v1 = vpop.f32.mrb[248].mxu1  ;;  %v28902_v19 = vld [vmem:[%s48104_s5 + $0x78] sm:$0xff] }
 0x7e8   : > { %v40500_v12 = vpop.f32.mrb[249].mxu1 }
 0x7e9   : > { %v29634_v52 = vpop.f32.mrb[244].mxu0 }
 0x7ea   : > { %v40521_v27 = vpop.f32.mrb[245].mxu0  ;;  %40646 = vmatmul.mubr.msk.f32.vlgmr.msra.gmra.mrb[6].mxu0 %vm386_vm14, %v29634_v52  ;;  %v28904_v52 = vld [vmem:[%s48104_s5 + $0x88] sm:$0xff] }
 0x7eb   : > { %v47506_v6 = vpop.f32.mrb[250].mxu1  ;;  %42130 = vmatpush3.bf16.msra.mxu0 %v42123_v36  ;;  %40659 = vmatprep.mubr.msk.f32.mxu0 %vm42755_vm12, %v48463_v25  ;;  %v33471_v27 = vld [vmem:[%s48106_s7 + $0x8] sm:$0xff] }
 0x7ec   : > { %v40514_v14 = vpop.f32.mrb[251].mxu1  ;;  %42134 = vmatprep.subr.bf16.mxu0 %v42754_v9 }
 0x7ed   : > { %v47517_v16 = vpop.f32.mrb[246].mxu0  ;;  %v33472_v14 = vld [vmem:[%s48106_s7 + $0x10] sm:$0xff] }
 0x7ee   : > { %v40535_v51 = vpop.f32.mrb[247].mxu0  ;;  %40653 = vmatmul.mubr.msk.f32.vlgmr.msra.gmra.mrb[14].mxu1 %vm386_vm14, %v47517_v16  ;;  %v42234_v5 = vpack.c.bf16 %v33473_v33, %v33472_v14 }
 0x7ef   : > { %v47521_v28 = vpop.f32.mrb[252].mxu1  ;;  %42133 = vmatpush3.bf16.msra.mxu1 %v42123_v36  ;;  %40666 = vmatprep.mubr.msk.f32.mxu1 %vm42755_vm12, %v48463_v25 }
 0x7f0   : > { %v40528_v24 = vpop.f32.mrb[253].mxu1  ;;  %42137 = vmatprep.subr.bf16.mxu1 %v42754_v9 }
 0x7f1   : > { %v47526_v56 = vpop.f32.mrb[248].mxu0 }
 0x7f2   : > { %40660 = vmatmul.mubr.msk.f32.vlgmr.msra.gmra.mrb[8].mxu0 %vm386_vm14, %v47526_v56  ;;  %v40549_v59 = vpop.f32.mrb[249].mxu0 }
 0x7f3   : > { %v47530_v17 = vpop.f32.mrb[254].mxu1  ;;  %42136 = vmatpush3.bf16.msra.mxu0 %v42135_v26  ;;  %40673 = vmatprep.mubr.msk.f32.mxu0 %vm42755_vm12, %v48463_v25 }
 0x7f4   : > { %v40542_v39 = vpop.f32.mrb[255].mxu1  ;;  %42140 = vmatprep.subr.bf16.mxu0 %v42754_v9 }
 0x7f5   : > { %v47535_v44 = vpop.f32.mrb[250].mxu0 }
 0x7f6   : > { %40667 = vmatmul.mubr.msk.f32.vlgmr.msra.gmra.mrb[16].mxu1 %vm386_vm14, %v47535_v44  ;;  %40674 = vmatmul.mubr.msk.f32.vlgmr.msra.gmra.mrb[10].mxu0 %vm386_vm14, %v28978_v35  ;;  %v40563_v46 = vpop.f32.mrb[251].mxu0  ;;  %v28896_v35 = vld [vmem:[%s48104_s5 + $0x48] sm:$0xff] }
 0x7f7   : > { %v47546_v40 = vpop.f32.mrb[0].mxu1  ;;  %42139 = vmatpush3.bf16.msra.mxu1 %v42135_v26  ;;  %42142 = vmatpush3.bf16.msra.mxu0 %v42135_v26  ;;  %v42171_v36 = vpack.c.bf16 %v28896_v35, %v28895_v30 }
 0x7f8   : > { %v40556_v43 = vpop.f32.mrb[1].mxu1  ;;  %40680 = vmatprep.mubr.msk.f32.mxu1 %vm42755_vm12, %v48463_v25  ;;  %40687 = vmatprep.mubr.msk.f32.mxu0 %vm42755_vm12, %v48463_v25 }
 0x7f9   : > { %42143 = vmatprep.subr.bf16.mxu1 %v42754_v9  ;;  %42146 = vmatprep.subr.bf16.mxu0 %v42754_v9  ;;  %v47554_v55 = vpop.f32.mrb[252].mxu0 }
 0x7fa   : > { %40681 = vmatmul.mubr.msk.f32.vlgmr.msra.gmra.mrb[18].mxu1 %vm386_vm14, %v47495_v63  ;;  %40688 = vmatmul.mubr.msk.f32.vlgmr.msra.gmra.mrb[12].mxu0 %vm386_vm14, %v47499_v54  ;;  %v40577_v37 = vpop.f32.mrb[253].mxu0 }
 0x7fb   : > { %v47560_v50 = vpop.f32.mrb[2].mxu1  ;;  %42145 = vmatpush3.bf16.msra.mxu1 %v42135_v26  ;;  %40694 = vmatprep.mubr.msk.f32.mxu1 %vm42755_vm12, %v48463_v25 }
 0x7fc   : > { %v40570_v49 = vpop.f32.mrb[3].mxu1  ;;  %42148 = vmatpush3.bf16.msra.mxu0 %v42147_v13  ;;  %40701 = vmatprep.mubr.msk.f32.mxu0 %vm42755_vm12, %v48463_v25 }
 0x7fd   : > { %42149 = vmatprep.subr.bf16.mxu1 %v42754_v9  ;;  %42152 = vmatprep.subr.bf16.mxu0 %v42754_v9  ;;  %v47568_v8 = vpop.f32.mrb[254].mxu0 }
 0x7fe   : > { %40695 = vmatmul.mubr.msk.f32.vlgmr.msra.gmra.mrb[20].mxu1 %vm386_vm14, %v47503_v1  ;;  %v40591_v7 = vpop.f32.mrb[255].mxu0 }
 0x7ff   : > { %v30266_v62 = vpop.f32.mrb[4].mxu1  ;;  %42151 = vmatpush3.bf16.msra.mxu1 %v42147_v13  ;;  %40708 = vmatprep.mubr.msk.f32.mxu1 %vm42755_vm12, %v48463_v25 }
 0x800   : > { %v40584_v15 = vpop.f32.mrb[5].mxu1  ;;  %40702 = vmatmul.mubr.msk.f32.vlgmr.msra.gmra.mrb[14].mxu0 %vm386_vm14, %v30266_v62  ;;  %42155 = vmatprep.subr.bf16.mxu1 %v42754_v9 }
 0x801   : > { %42154 = vmatpush3.bf16.msra.mxu0 %v42147_v13  ;;  %40715 = vmatprep.mubr.msk.f32.mxu0 %vm42755_vm12, %v48463_v25  ;;  %v47578_v34 = vpop.f32.mrb[0].mxu0 }
 0x802   : > { %42158 = vmatprep.subr.bf16.mxu0 %v42754_v9  ;;  %v40605_v60 = vpop.f32.mrb[1].mxu0 }
 0x803   : > { %v47587_v41 = vpop.f32.mrb[6].mxu1 }
 0x804   : > { %v40598_v53 = vpop.f32.mrb[7].mxu1  ;;  %40709 = vmatmul.mubr.msk.f32.vlgmr.msra.gmra.mrb[22].mxu1 %vm386_vm14, %v47587_v41 }
 0x805   : > { %42157 = vmatpush3.bf16.msra.mxu1 %v42147_v13  ;;  %40722 = vmatprep.mubr.msk.f32.mxu1 %vm42755_vm12, %v48463_v25  ;;  %v47593_v21 = vpop.f32.mrb[2].mxu0 }
 0x806   : > { %42161 = vmatprep.subr.bf16.mxu1 %v42754_v9  ;;  %v40619_v18 = vpop.f32.mrb[3].mxu0 }
 0x807   : > { %v47596_v20 = vpop.f32.mrb[8].mxu1 }
 0x808   : > { %v40612_v11 = vpop.f32.mrb[9].mxu1  ;;  %40716 = vmatmul.mubr.msk.f32.vlgmr.msra.gmra.mrb[16].mxu0 %vm386_vm14, %v47596_v20 }
 0x809   : > { %42160 = vmatpush3.bf16.msra.mxu0 %v42159_v48  ;;  %40729 = vmatprep.mubr.msk.f32.mxu0 %vm42755_vm12, %v48463_v25  ;;  %v47602_v38 = vpop.f32.mrb[4].mxu0 }
 0x80a   : > { %42164 = vmatprep.subr.bf16.mxu0 %v42754_v9  ;;  %v40633_v32 = vpop.f32.mrb[5].mxu0 }
 0x80b   : > { %v47611_v57 = vpop.f32.mrb[10].mxu1 }
 0x80c   : > { %40723 = vmatmul.mubr.msk.f32.vlgmr.msra.gmra.mrb[24].mxu1 %vm386_vm14, %v47611_v57  ;;  %40730 = vmatmul.mubr.msk.f32.vlgmr.msra.gmra.mrb[18].mxu0 %vm386_vm14, %v47491_v45  ;;  %v40626_v4 = vpop.f32.mrb[11].mxu1 }
 0x80d   : > { %42163 = vmatpush3.bf16.msra.mxu1 %v42159_v48  ;;  %42166 = vmatpush3.bf16.msra.mxu0 %v42159_v48 }
 0x80e   : > { %40736 = vmatprep.mubr.msk.f32.mxu1 %vm42755_vm12, %v48463_v25  ;;  %40743 = vmatprep.mubr.msk.f32.mxu0 %vm42755_vm12, %v48463_v25 }
 0x80f   : > { %42167 = vmatprep.subr.bf16.mxu1 %v42754_v9  ;;  %42170 = vmatprep.subr.bf16.mxu0 %v42754_v9  ;;  %v47623_v29 = vpop.f32.mrb[12].mxu1 }
 0x810   : > { %40737 = vmatmul.mubr.msk.f32.vlgmr.msra.gmra.mrb[26].mxu1 %vm386_vm14, %v47493_v47  ;;  %40744 = vmatmul.mubr.msk.f32.vlgmr.msra.gmra.mrb[20].mxu0 %vm386_vm14, %v47497_v23  ;;  %v40640_v45 = vpop.f32.mrb[13].mxu1  ;;  %v28898_v47 = vld [vmem:[%s48104_s5 + $0x58] sm:$0xff]  ;;  %v28899_v23 = vld [vmem:[%s48104_s5 + $0x60] sm:$0xff] }
 0x811   : > { %42169 = vmatpush3.bf16.msra.mxu1 %v42159_v48  ;;  %42172 = vmatpush3.bf16.msra.mxu0 %v42171_v36  ;;  %v42183_v42 = vpack.c.bf16 %v28898_v47, %v28897_v58  ;;  %v42195_v61 = vpack.c.bf16 %v28900_v0, %v28899_v23 }
 0x812   : > { %40750 = vmatprep.mubr.msk.f32.mxu1 %vm42755_vm12, %v48463_v25  ;;  %40757 = vmatprep.mubr.msk.f32.mxu0 %vm42755_vm12, %v48463_v25 }
 0x813   : > { %42173 = vmatprep.subr.bf16.mxu1 %v42754_v9  ;;  %42176 = vmatprep.subr.bf16.mxu0 %v42754_v9 }
 0x814   : > { %40751 = vmatmul.mubr.msk.f32.vlgmr.msra.gmra.mrb[28].mxu1 %vm386_vm14, %v47501_v10  ;;  %40758 = vmatmul.mubr.msk.f32.vlgmr.msra.gmra.mrb[22].mxu0 %vm386_vm14, %v47521_v28  ;;  %v28901_v10 = vld [vmem:[%s48104_s5 + $0x70] sm:$0xff] }
 0x815   : > { %42175 = vmatpush3.bf16.msra.mxu1 %v42171_v36  ;;  %42178 = vmatpush3.bf16.msra.mxu0 %v42171_v36  ;;  %v42207_v12 = vpack.c.bf16 %v28902_v19, %v28901_v10 }
 0x816   : > { %40764 = vmatprep.mubr.msk.f32.mxu1 %vm42755_vm12, %v48463_v25  ;;  %40771 = vmatprep.mubr.msk.f32.mxu0 %vm42755_vm12, %v48463_v25 }
 0x817   : > { %42179 = vmatprep.subr.bf16.mxu1 %v42754_v9  ;;  %42182 = vmatprep.subr.bf16.mxu0 %v42754_v9 }
 0x818   : > { %40765 = vmatmul.mubr.msk.f32.vlgmr.msra.gmra.mrb[30].mxu1 %vm386_vm14, %v47530_v17  ;;  %40772 = vmatmul.mubr.msk.f32.vlgmr.msra.gmra.mrb[24].mxu0 %vm386_vm14, %v47546_v40 }
 0x819   : > { %42181 = vmatpush3.bf16.msra.mxu1 %v42171_v36  ;;  %42184 = vmatpush3.bf16.msra.mxu0 %v42183_v42 }
 0x81a   : > { %40778 = vmatprep.mubr.msk.f32.mxu1 %vm42755_vm12, %v48463_v25  ;;  %40785 = vmatprep.mubr.msk.f32.mxu0 %vm42755_vm12, %v48463_v25 }
 0x81b   : > { %42185 = vmatprep.subr.bf16.mxu1 %v42754_v9  ;;  %42188 = vmatprep.subr.bf16.mxu0 %v42754_v9 }
 0x81c   : > { %40779 = vmatmul.mubr.msk.f32.vlgmr.msra.gmra.mrb[32].mxu1 %vm386_vm14, %v47560_v50  ;;  %40786 = vmatmul.mubr.msk.f32.vlgmr.msra.gmra.mrb[26].mxu0 %vm386_vm14, %v47568_v8 }
 0x81d   : > { %42187 = vmatpush3.bf16.msra.mxu1 %v42183_v42  ;;  %42190 = vmatpush3.bf16.msra.mxu0 %v42183_v42 }
 0x81e   : > { %40792 = vmatprep.mubr.msk.f32.mxu1 %vm42755_vm12, %v48463_v25  ;;  %40799 = vmatprep.mubr.msk.f32.mxu0 %vm42755_vm12, %v48463_v25 }
 0x81f   : > { %42191 = vmatprep.subr.bf16.mxu1 %v42754_v9  ;;  %42194 = vmatprep.subr.bf16.mxu0 %v42754_v9 }
 0x820   : > { %40793 = vmatmul.mubr.msk.f32.vlgmr.msra.gmra.mrb[34].mxu1 %vm386_vm14, %v47578_v34  ;;  %40800 = vmatmul.mubr.msk.f32.vlgmr.msra.gmra.mrb[28].mxu0 %vm386_vm14, %v47593_v21 }
 0x821   : > { %42193 = vmatpush3.bf16.msra.mxu1 %v42183_v42  ;;  %42196 = vmatpush3.bf16.msra.mxu0 %v42195_v61 }
 0x822   : > { %40806 = vmatprep.mubr.msk.f32.mxu1 %vm42755_vm12, %v48463_v25  ;;  %40813 = vmatprep.mubr.msk.f32.mxu0 %vm42755_vm12, %v48463_v25 }
 0x823   : > { %42197 = vmatprep.subr.bf16.mxu1 %v42754_v9  ;;  %42200 = vmatprep.subr.bf16.mxu0 %v42754_v9 }
 0x824   : > { %40807 = vmatmul.mubr.msk.f32.vlgmr.msra.gmra.mrb[36].mxu1 %vm386_vm14, %v47602_v38  ;;  %40814 = vmatmul.mubr.msk.f32.vlgmr.msra.gmra.mrb[30].mxu0 %vm386_vm14, %v47495_v63  ;;  %v28903_v63 = vld [vmem:[%s48104_s5 + $0x80] sm:$0xff] }
 0x825   : > { %42199 = vmatpush3.bf16.msra.mxu1 %v42195_v61  ;;  %42202 = vmatpush3.bf16.msra.mxu0 %v42195_v61 }
 0x826   : > { %40820 = vmatprep.mubr.msk.f32.mxu1 %vm42755_vm12, %v48463_v25  ;;  %40827 = vmatprep.mubr.msk.f32.mxu0 %vm42755_vm12, %v48463_v25 }
 0x827   : > { %42203 = vmatprep.subr.bf16.mxu1 %v42754_v9  ;;  %42206 = vmatprep.subr.bf16.mxu0 %v42754_v9 }
 0x828   : > { %40821 = vmatmul.mubr.msk.f32.vlgmr.msra.gmra.mrb[38].mxu1 %vm386_vm14, %v47499_v54  ;;  %40828 = vmatmul.mubr.msk.f32.vlgmr.msra.gmra.mrb[32].mxu0 %vm386_vm14, %v47503_v1  ;;  %v42219_v54 = vpack.c.bf16 %v28904_v52, %v28903_v63  ;;  %v33470_v1 = vld [vmem:[%s48106_s7] sm:$0xff] }
 0x829   : > { %42205 = vmatpush3.bf16.msra.mxu1 %v42195_v61  ;;  %42208 = vmatpush3.bf16.msra.mxu0 %v42207_v12 }
 0x82a   : > { %40834 = vmatprep.mubr.msk.f32.mxu1 %vm42755_vm12, %v48463_v25  ;;  %40841 = vmatprep.mubr.msk.f32.mxu0 %vm42755_vm12, %v48463_v25 }
 0x82b   : > { %42209 = vmatprep.subr.bf16.mxu1 %v42754_v9  ;;  %42212 = vmatprep.subr.bf16.mxu0 %v42754_v9 }
 0x82c   : > { %40835 = vmatmul.mubr.msk.f32.vlgmr.msra.gmra.mrb[40].mxu1 %vm386_vm14, %v47506_v6  ;;  %40842 = vmatmul.mubr.msk.f32.vlgmr.msra.gmra.mrb[34].mxu0 %vm386_vm14, %v47517_v16  ;;  %v42231_v6 = vpack.c.bf16 %v33471_v27, %v33470_v1 }
 0x82d   : > { %42211 = vmatpush3.bf16.msra.mxu1 %v42207_v12  ;;  %42214 = vmatpush3.bf16.msra.mxu0 %v42207_v12 }
 0x82e   : > { %40848 = vmatprep.mubr.msk.f32.mxu1 %vm42755_vm12, %v48463_v25  ;;  %40855 = vmatprep.mubr.msk.f32.mxu0 %vm42755_vm12, %v48463_v25 }
 0x82f   : > { %42215 = vmatprep.subr.bf16.mxu1 %v42754_v9  ;;  %42218 = vmatprep.subr.bf16.mxu0 %v42754_v9 }
 0x830   : > { %40849 = vmatmul.mubr.msk.f32.vlgmr.msra.gmra.mrb[42].mxu1 %vm386_vm14, %v47526_v56  ;;  %40856 = vmatmul.mubr.msk.f32.vlgmr.msra.gmra.mrb[36].mxu0 %vm386_vm14, %v47535_v44 }
 0x831   : > { %42217 = vmatpush3.bf16.msra.mxu1 %v42207_v12  ;;  %42220 = vmatpush3.bf16.msra.mxu0 %v42219_v54 }
 0x832   : > { %40862 = vmatprep.mubr.msk.f32.mxu1 %vm42755_vm12, %v48463_v25  ;;  %40869 = vmatprep.mubr.msk.f32.mxu0 %vm42755_vm12, %v48463_v25 }
 0x833   : > { %42221 = vmatprep.subr.bf16.mxu1 %v42754_v9  ;;  %42224 = vmatprep.subr.bf16.mxu0 %v42754_v9 }
 0x834   : > { %40863 = vmatmul.mubr.msk.f32.vlgmr.msra.gmra.mrb[44].mxu1 %vm386_vm14, %v47554_v55  ;;  %40870 = vmatmul.mubr.msk.f32.vlgmr.msra.gmra.mrb[38].mxu0 %vm386_vm14, %v47587_v41 }
 0x835   : > { %42223 = vmatpush3.bf16.msra.mxu1 %v42219_v54  ;;  %42226 = vmatpush3.bf16.msra.mxu0 %v42219_v54 }
 0x836   : > { %40876 = vmatprep.mubr.msk.f32.mxu1 %vm42755_vm12, %v48463_v25  ;;  %40883 = vmatprep.mubr.msk.f32.mxu0 %vm42755_vm12, %v48463_v25 }
 0x837   : > { %42227 = vmatprep.subr.bf16.mxu1 %v42754_v9  ;;  %42230 = vmatprep.subr.bf16.mxu0 %v42754_v9 }
 0x838   : > { %40877 = vmatmul.mubr.msk.f32.vlgmr.msra.gmra.mrb[46].mxu1 %vm386_vm14, %v47596_v20  ;;  %40884 = vmatmul.mubr.msk.f32.vlgmr.msra.gmra.mrb[40].mxu0 %vm386_vm14, %v47611_v57 }
 0x839   : > { %42229 = vmatpush3.bf16.msra.mxu1 %v42219_v54  ;;  %40890 = vmatprep.mubr.msk.f32.mxu1 %vm42755_vm12, %v48463_v25 }
 0x83a   : > { %40901 = vmatprep.mubr.msk.f32.mxu0 %vm42755_vm12, %v48463_v25  ;;  %42232 = vmatpush3.bf16.msra.mxu0 %v42231_v6 }
 0x83b   : > { %42233 = vmatprep.subr.bf16.mxu0 %v42754_v9 }
 0x83c   : > { %40891 = vmatmul.mubr.msk.f32.vlgmr.msra.gmra.mrb[48].mxu1 %vm386_vm14, %v47623_v29 }
 0x83e   : > { %42235 = vmatpush3.bf16.msra.mxu0 %v42234_v5 }
 0x83f   : > { %42236 = vmatprep.subr.bf16.mxu0 %v42754_v9 }
 0x8bd   : > { %v30899_v16 = vpop.f32.mrb[6].mxu0 }
 0x8be   : > { %v40647_v51 = vpop.f32.mrb[7].mxu0 }
 0x8c1   : > { %v30972_v28 = vpop.f32.mrb[14].mxu1 }
 0x8c2   : > { %v40654_v26 = vpop.f32.mrb[15].mxu1 }
 0x8c5   : > { %v31045_v24 = vpop.f32.mrb[8].mxu0 }
 0x8c6   : > { %v40661_v56 = vpop.f32.mrb[9].mxu0 }
 0x8c9   : > { %v31191_v59 = vpop.f32.mrb[10].mxu0  ;;  %v31118_v17 = vpop.f32.mrb[16].mxu1 }
 0x8ca   : > { %v31192_v39 = vadd.f32 %v31191_v59, %v30899_v16  ;;  %v40675_v44 = vpop.f32.mrb[11].mxu0  ;;  %v40668_v22 = vpop.f32.mrb[17].mxu1 }
 0x8cd   : > { %v31264_v2 = vpop.f32.mrb[18].mxu1  ;;  %v31337_v46 = vpop.f32.mrb[12].mxu0 }
 0x8ce   : > { %v31265_v40 = vadd.f32 %v31264_v2, %v30972_v28  ;;  %v31338_v43 = vadd.f32 %v31337_v46, %v31045_v24  ;;  %v40682_v13 = vpop.f32.mrb[19].mxu1  ;;  %v40689_v55 = vpop.f32.mrb[13].mxu0 }
 0x8d1   : > { %v31410_v37 = vpop.f32.mrb[20].mxu1 }
 0x8d2   : > { %v31411_v50 = vadd.f32 %v31410_v37, %v31118_v17  ;;  %v40696_v49 = vpop.f32.mrb[21].mxu1 }
 0x8d3   : > { %v31483_v8 = vpop.f32.mrb[14].mxu0 }
 0x8d4   : > { %v31706_v7 = vadd.f32 %v31483_v8, %v31192_v39  ;;  %v40703_v62 = vpop.f32.mrb[15].mxu0 }
 0x8d7   : > { %v31556_v15 = vpop.f32.mrb[22].mxu1 }
 0x8d8   : > { %v31707_v34 = vadd.f32 %v31556_v15, %v31265_v40  ;;  %v40710_v31 = vpop.f32.mrb[23].mxu1 }
 0x8db   : > { %v31629_v3 = vpop.f32.mrb[16].mxu0 }
 0x8dc   : > { %v31708_v60 = vadd.f32 %v31629_v3, %v31338_v43  ;;  %v40717_v41 = vpop.f32.mrb[17].mxu0 }
 0x8dd   : > { %v35807_v41 = vld [vmem:[%s48106_s7 + $0x28] sm:$0xff] }
 0x8df   : > { %v31702_v53 = vpop.f32.mrb[24].mxu1  ;;  %v31779_v48 = vpop.f32.mrb[18].mxu0 }
 0x8e0   : > { %v31709_v21 = vadd.f32 %v31702_v53, %v31411_v50  ;;  %v32002_v18 = vadd.f32 %v31779_v48, %v31706_v7  ;;  %v40731_v20 = vpop.f32.mrb[19].mxu0  ;;  %v40724_v11 = vpop.f32.mrb[25].mxu1  ;;  %v47782_v48 = vld [vmem:[%s48105_s6] ss:$0 sm:$0xff] }
 0x8e3   : > { %v31852_v38 = vpop.f32.mrb[26].mxu1  ;;  %v31925_v30 = vpop.f32.mrb[20].mxu0 }
 0x8e4   : > { %v32003_v35 = vadd.f32 %v31852_v38, %v31707_v34  ;;  %v32004_v32 = vadd.f32 %v31925_v30, %v31708_v60  ;;  %v40738_v57 = vpop.f32.mrb[27].mxu1  ;;  %v40745_v4 = vpop.f32.mrb[21].mxu0  ;;  %v35806_v60 = vld [vmem:[%s48106_s7 + $0x20] sm:$0xff] }
 0x8e5   : > { %v42237_v30 = vpack.c.bf16 %v35807_v41, %v35806_v60  ;;  %v35809_v57 = vld [vmem:[%s48106_s7 + $0x38] sm:$0xff] }
 0x8e7   : > { %v31998_v36 = vpop.f32.mrb[28].mxu1  ;;  %v32075_v29 = vpop.f32.mrb[22].mxu0 }
 0x8e8   : > { %v32005_v45 = vadd.f32 %v31998_v36, %v31709_v21  ;;  %v32298_v58 = vadd.f32 %v32075_v29, %v32002_v18  ;;  %v40752_v47 = vpop.f32.mrb[29].mxu1  ;;  %v40759_v42 = vpop.f32.mrb[23].mxu0 }
 0x8eb   : > { %v32148_v23 = vpop.f32.mrb[30].mxu1  ;;  %v32221_v0 = vpop.f32.mrb[24].mxu0 }
 0x8ec   : > { %v32299_v61 = vadd.f32 %v32148_v23, %v32003_v35  ;;  %v32300_v10 = vadd.f32 %v32221_v0, %v32004_v32  ;;  %v40766_v19 = vpop.f32.mrb[31].mxu1  ;;  %v40773_v12 = vpop.f32.mrb[25].mxu0  ;;  %v35808_v32 = vld [vmem:[%s48106_s7 + $0x30] sm:$0xff]  ;;  %v35811_v23 = vld [vmem:[%s48106_s7 + $0x40] sm:$0xff]  ;;  %v35812_v0 = vld [vmem:[%s48106_s7 + $0x48] sm:$0xff] }
 0x8ed   : > { %v42240_v42 = vpack.c.bf16 %v35809_v57, %v35808_v32  ;;  %v35846_v57 = vld [vmem:[%s48106_s7 + $0x120] sm:$0xff] }
 0x8ef   : > { %v32294_v63 = vpop.f32.mrb[32].mxu1  ;;  %v32371_v52 = vpop.f32.mrb[26].mxu0 }
 0x8f0   : > { %v32301_v54 = vadd.f32 %v32294_v63, %v32005_v45  ;;  %v32594_v1 = vadd.f32 %v32371_v52, %v32298_v58  ;;  %v40780_v27 = vpop.f32.mrb[33].mxu1  ;;  %v40787_v6 = vpop.f32.mrb[27].mxu0  ;;  %v42243_v63 = vpack.c.bf16 %v35812_v0, %v35811_v23 }
 0x8f1   : > { %v35814_v27 = vld [vmem:[%s48106_s7 + $0x58] sm:$0xff] }
 0x8f3   : > { %v32444_v14 = vpop.f32.mrb[34].mxu1  ;;  %v32517_v33 = vpop.f32.mrb[28].mxu0 }
 0x8f4   : > { %v32595_v5 = vadd.f32 %v32444_v14, %v32299_v61  ;;  %v32596_v16 = vadd.f32 %v32517_v33, %v32300_v10  ;;  %v40794_v51 = vpop.f32.mrb[35].mxu1  ;;  %v40801_v28 = vpop.f32.mrb[29].mxu0  ;;  %v35816_v14 = vld [vmem:[%s48106_s7 + $0x60] sm:$0xff]  ;;  %v35817_v33 = vld [vmem:[%s48106_s7 + $0x68] sm:$0xff] }
 0x8f5   : > { %v35818_v51 = vld [vmem:[%s48106_s7 + $0x70] sm:$0xff]  ;;  %v35819_v28 = vld [vmem:[%s48106_s7 + $0x78] sm:$0xff] }
 0x8f7   : > { %v32590_v26 = vpop.f32.mrb[36].mxu1  ;;  %v32664_v24 = vpop.f32.mrb[30].mxu0 }
 0x8f8   : > { %v32597_v56 = vadd.f32 %v32590_v26, %v32301_v54  ;;  %v32881_v59 = vadd.f32 %v32664_v24, %v32594_v1  ;;  %v40815_v17 = vpop.f32.mrb[31].mxu0  ;;  %v40808_v39 = vpop.f32.mrb[37].mxu1  ;;  %v35813_v1 = vld [vmem:[%s48106_s7 + $0x50] sm:$0xff]  ;;  %v42252_v26 = vpack.c.bf16 %v35819_v28, %v35818_v51  ;;  %v35821_v24 = vld [vmem:[%s48106_s7 + $0x80] sm:$0xff] }
 0x8f9   : > { %v42246_v6 = vpack.c.bf16 %v35814_v27, %v35813_v1  ;;  %v35823_v39 = vld [vmem:[%s48106_s7 + $0x90] sm:$0xff] }
 0x8fb   : > { %v32734_v44 = vpop.f32.mrb[38].mxu1  ;;  %v32804_v22 = vpop.f32.mrb[32].mxu0 }
 0x8fc   : > { %v32882_v2 = vadd.f32 %v32734_v44, %v32595_v5  ;;  %v32883_v46 = vadd.f32 %v32804_v22, %v32596_v16  ;;  %v40822_v40 = vpop.f32.mrb[39].mxu1  ;;  %v40829_v43 = vpop.f32.mrb[33].mxu0  ;;  %v42249_v5 = vpack.c.bf16 %v35817_v33, %v35816_v14  ;;  %v35824_v44 = vld [vmem:[%s48106_s7 + $0x98] sm:$0xff] }
 0x8fd   : > { %v42258_v22 = vpack.c.bf16 %v35824_v44, %v35823_v39  ;;  %v35859_v14 = vld [vmem:[%s48106_s7 + $0x178] sm:$0xff]  ;;  %v35868_v39 = vld [vmem:[%s48106_s7 + $0x1b0] sm:$0xff] }
 0x8fe   : > { %v35869_v44 = vld [vmem:[%s48106_s7 + $0x1b8] sm:$0xff] }
 0x8ff   : > { %v32877_v13 = vpop.f32.mrb[40].mxu1  ;;  %v32951_v55 = vpop.f32.mrb[34].mxu0 }
 0x900   : > { %v32884_v37 = vadd.f32 %v32877_v13, %v32597_v56  ;;  %v33168_v50 = vadd.f32 %v32951_v55, %v32881_v59  ;;  %v40836_v49 = vpop.f32.mrb[41].mxu1  ;;  %v40843_v8 = vpop.f32.mrb[35].mxu0  ;;  %v35822_v56 = vld [vmem:[%s48106_s7 + $0x88] sm:$0xff]  ;;  %v35828_v13 = vld [vmem:[%s48106_s7 + $0xb0] sm:$0xff]  ;;  %v35829_v55 = vld [vmem:[%s48106_s7 + $0xb8] sm:$0xff] }
 0x901   : > { %v42255_v59 = vpack.c.bf16 %v35822_v56, %v35821_v24  ;;  %v35832_v49 = vld [vmem:[%s48106_s7 + $0xc8] sm:$0xff]  ;;  %v35864_v24 = vld [vmem:[%s48106_s7 + $0x198] sm:$0xff] }
 0x903   : > { %v33021_v7 = vpop.f32.mrb[42].mxu1  ;;  %v33091_v62 = vpop.f32.mrb[36].mxu0 }
 0x904   : > { %v33169_v15 = vadd.f32 %v33021_v7, %v32882_v2  ;;  %v33170_v34 = vadd.f32 %v33091_v62, %v32883_v46  ;;  %v40850_v31 = vpop.f32.mrb[43].mxu1  ;;  %v40857_v3 = vpop.f32.mrb[37].mxu0  ;;  %v35826_v2 = vld [vmem:[%s48106_s7 + $0xa0] sm:$0xff]  ;;  %v35827_v46 = vld [vmem:[%s48106_s7 + $0xa8] sm:$0xff]  ;;  %v35833_v62 = vld [vmem:[%s48106_s7 + $0xd0] sm:$0xff] }
 0x905   : > { %v42261_v40 = vpack.c.bf16 %v35827_v46, %v35826_v2  ;;  %v35836_v31 = vld [vmem:[%s48106_s7 + $0xe0] sm:$0xff]  ;;  %v35837_v3 = vld [vmem:[%s48106_s7 + $0xe8] sm:$0xff] }
 0x906   : > { %v42273_v60 = vpack.c.bf16 %v35837_v3, %v35836_v31  ;;  %v35871_v2 = vld [vmem:[%s48106_s7 + $0x1c0] sm:$0xff]  ;;  %v35872_v46 = vld [vmem:[%s48106_s7 + $0x1c8] sm:$0xff] }
 0x907   : > { %v33164_v53 = vpop.f32.mrb[44].mxu1  ;;  %v33238_v21 = vpop.f32.mrb[38].mxu0  ;;  %v33469_v3 = vld [vmem:[%s48107_s8] sm:$0x1] }
 0x908   : > { %v33171_v18 = vadd.f32 %v33164_v53, %v32884_v37  ;;  %v33455_v20 = vadd.f32 %v33238_v21, %v33168_v50  ;;  %v40864_v11 = vpop.f32.mrb[45].mxu1  ;;  %v40871_v38 = vpop.f32.mrb[39].mxu0  ;;  %v42264_v37 = vpack.c.bf16 %v35829_v55, %v35828_v13  ;;  %v35831_v50 = vld [vmem:[%s48106_s7 + $0xc0] sm:$0xff]  ;;  %v35838_v53 = vld [vmem:[%s48106_s7 + $0xf0] sm:$0xff]  ;;  %v35874_v55 = vld [vmem:[%s48106_s7 + $0x1d8] sm:$0xff] }
 0x909   : > { %v42267_v8 = vpack.c.bf16 %v35832_v49, %v35831_v50  ;;  %v35873_v13 = vld [vmem:[%s48106_s7 + $0x1d0] sm:$0xff]  ;;  %v35876_v50 = vld [vmem:[%s48106_s7 + $0x1e0] sm:$0xff]  ;;  %v35877_v49 = vld [vmem:[%s48106_s7 + $0x1e8] sm:$0xff] }
 0x90a   : > { %v33465_v35 = vadd.f32 %v47782_v48, %v33455_v20  ;;  %v35842_v20 = vld [vmem:[%s48106_s7 + $0x108] sm:$0xff] }
 0x90b   : > { %v33308_v4 = vpop.f32.mrb[46].mxu1  ;;  %v33378_v36 = vpop.f32.mrb[40].mxu0 }
 0x90c   : > { %v33456_v29 = vadd.f32 %v33308_v4, %v33169_v15  ;;  %v40878_v45 = vpop.f32.mrb[47].mxu1  ;;  %v40885_v58 = vpop.f32.mrb[41].mxu0  ;;  %40902 = vmatmul.mubr.msk.f32.vlgmr.msra.gmra.mrb[42].mxu0 %vm33474_vm2, %v33465_v35  ;;  %v33457_v47 = vadd.f32 %v33378_v36, %v33170_v34  ;;  %v33554_v52 = vrot.slane %v33465_v35, 1  ;;  %v33633_v16 = vrot.slane %v33465_v35, 2  ;;  %v35834_v15 = vld [vmem:[%s48106_s7 + $0xd8] sm:$0xff]  ;;  %v35847_v4 = vld [vmem:[%s48106_s7 + $0x128] sm:$0xff] }
 0x90d   : > { %42238 = vmatpush3.bf16.msra.mxu0 %v42237_v30  ;;  %40912 = vmatprep.mubr.msk.f32.mxu0 %vm42755_vm12, %v48463_v25  ;;  %v33712_v17 = vrot.slane %v33465_v35, 3  ;;  %v42270_v34 = vpack.c.bf16 %v35834_v15, %v35833_v62  ;;  %v35843_v30 = vld [vmem:[%s48106_s7 + $0x110] sm:$0xff]  ;;  %v35844_v35 = vld [vmem:[%s48106_s7 + $0x118] sm:$0xff]  ;;  %v42285_v36 = vpack.c.bf16 %v35847_v4, %v35846_v57 }
 0x90e   : > { %42239 = vmatprep.subr.bf16.mxu0 %v42754_v9  ;;  %v47802_v61 = vadd.f32 %v47782_v48, %v33457_v47  ;;  %v33466_v43 = vadd.f32 %v47782_v48, %v33456_v29  ;;  %v42282_v32 = vpack.c.bf16 %v35844_v35, %v35843_v30  ;;  %v35848_v29 = vld [vmem:[%s48106_s7 + $0x130] sm:$0xff]  ;;  %v35849_v45 = vld [vmem:[%s48106_s7 + $0x138] sm:$0xff]  ;;  %v35851_v47 = vld [vmem:[%s48106_s7 + $0x140] sm:$0xff] }
 0x90f   : > { %v33451_v10 = vpop.f32.mrb[48].mxu1  ;;  %v42288_v58 = vpack.c.bf16 %v35849_v45, %v35848_v29  ;;  %v35878_v62 = vld [vmem:[%s48106_s7 + $0x1f0] sm:$0xff]  ;;  %v35879_v15 = vld [vmem:[%s48106_s7 + $0x1f8] sm:$0xff] }
 0x910   : > { %v33458_v19 = vadd.f32 %v33451_v10, %v33171_v18  ;;  %v40892_v12 = vpop.f32.mrb[49].mxu1  ;;  %v33870_v7 = vrot.slane %v33466_v43, 1  ;;  %v33949_v41 = vrot.slane %v33466_v43, 2  ;;  %v35841_v18 = vld [vmem:[%s48106_s7 + $0x100] sm:$0xff]  ;;  %v34028_v38 = vrot.slane %v33466_v43, 3  ;;  %v35853_v10 = vld [vmem:[%s48106_s7 + $0x150] sm:$0xff] }
 0x911   : > { %42241 = vmatpush3.bf16.msra.mxu0 %v42240_v42  ;;  %v42279_v11 = vpack.c.bf16 %v35842_v20, %v35841_v18  ;;  %v35852_v42 = vld [vmem:[%s48106_s7 + $0x148] sm:$0xff]  ;;  %v34186_v0 = vrot.slane %v47802_v61, 1  ;;  %v34265_v27 = vrot.slane %v47802_v61, 2  ;;  %v34344_v28 = vrot.slane %v47802_v61, 3 }
 0x912   : > { %v47805_v54 = vadd.f32 %v47782_v48, %v33458_v19  ;;  %42242 = vmatprep.subr.bf16.mxu0 %v42754_v9  ;;  %v35839_v48 = vld [vmem:[%s48106_s7 + $0xf8] sm:$0xff]  ;;  %v42291_v23 = vpack.c.bf16 %v35852_v42, %v35851_v47 }
 0x913   : > { %v42276_v21 = vpack.c.bf16 %v35839_v48, %v35838_v53  ;;  %v35854_v19 = vld [vmem:[%s48106_s7 + $0x158] sm:$0xff] }
 0x914   : > { %40913 = vmatmul.mubr.msk.f32.vlgmr.msra.gmra.mrb[42].mxu0 %vm33474_vm2, %v33554_v52  ;;  %v42294_v12 = vpack.c.bf16 %v35854_v19, %v35853_v10  ;;  %v35857_v52 = vld [vmem:[%s48106_s7 + $0x168] sm:$0xff]  ;;  %v34660_v31 = vrot.slane %v47805_v54, 3 }
 0x915   : > { %42244 = vmatpush3.bf16.msra.mxu0 %v42243_v63  ;;  %40923 = vmatprep.mubr.msk.f32.mxu0 %vm42755_vm12, %v48463_v25  ;;  %v35856_v63 = vld [vmem:[%s48106_s7 + $0x160] sm:$0xff] }
 0x916   : > { %42245 = vmatprep.subr.bf16.mxu0 %v42754_v9  ;;  %v42297_v1 = vpack.c.bf16 %v35857_v52, %v35856_v63 }
 0x919   : > { %42247 = vmatpush3.bf16.msra.mxu0 %v42246_v6  ;;  %v35858_v6 = vld [vmem:[%s48106_s7 + $0x170] sm:$0xff] }
 0x91a   : > { %42248 = vmatprep.subr.bf16.mxu0 %v42754_v9  ;;  %v42300_v33 = vpack.c.bf16 %v35859_v14, %v35858_v6 }
 0x91c   : > { %40924 = vmatmul.mubr.msk.f32.vlgmr.msra.gmra.mrb[42].mxu0 %vm33474_vm2, %v33633_v16  ;;  %v35862_v16 = vld [vmem:[%s48106_s7 + $0x188] sm:$0xff] }
 0x91d   : > { %42250 = vmatpush3.bf16.msra.mxu0 %v42249_v5  ;;  %40934 = vmatprep.mubr.msk.f32.mxu0 %vm42755_vm12, %v48463_v25  ;;  %v35861_v5 = vld [vmem:[%s48106_s7 + $0x180] sm:$0xff] }
 0x91e   : > { %42251 = vmatprep.subr.bf16.mxu0 %v42754_v9  ;;  %v42303_v51 = vpack.c.bf16 %v35862_v16, %v35861_v5 }
 0x921   : > { %42253 = vmatpush3.bf16.msra.mxu0 %v42252_v26  ;;  %v35863_v26 = vld [vmem:[%s48106_s7 + $0x190] sm:$0xff] }
 0x922   : > { %42254 = vmatprep.subr.bf16.mxu0 %v42754_v9  ;;  %v42306_v56 = vpack.c.bf16 %v35864_v24, %v35863_v26 }
 0x924   : > { %40935 = vmatmul.mubr.msk.f32.vlgmr.msra.gmra.mrb[42].mxu0 %vm33474_vm2, %v33712_v17 }
 0x925   : > { %42256 = vmatpush3.bf16.msra.mxu0 %v42255_v59  ;;  %40945 = vmatprep.mubr.msk.f32.mxu0 %vm42755_vm12, %v48463_v25  ;;  %v35867_v59 = vld [vmem:[%s48106_s7 + $0x1a8] sm:$0xff] }
 0x926   : > { %42257 = vmatprep.subr.bf16.mxu0 %v42754_v9 }
 0x929   : > { %42259 = vmatpush3.bf16.msra.mxu0 %v42258_v22  ;;  %v42312_v22 = vpack.c.bf16 %v35869_v44, %v35868_v39 }
 0x92a   : > { %42260 = vmatprep.subr.bf16.mxu0 %v42754_v9 }
 0x92c   : > { %40946 = vmatmul.mubr.msk.f32.vlgmr.msra.gmra.mrb[42].mxu0 %vm33474_vm2, %v33466_v43  ;;  %v34502_v43 = vrot.slane %v47805_v54, 1 }
 0x92d   : > { %42262 = vmatpush3.bf16.msra.mxu0 %v42261_v40  ;;  %40956 = vmatprep.mubr.msk.f32.mxu0 %vm42755_vm12, %v48463_v25  ;;  %v42315_v40 = vpack.c.bf16 %v35872_v46, %v35871_v2 }
 0x92e   : > { %42263 = vmatprep.subr.bf16.mxu0 %v42754_v9 }
 0x931   : > { %42265 = vmatpush3.bf16.msra.mxu0 %v42264_v37  ;;  %v42318_v37 = vpack.c.bf16 %v35874_v55, %v35873_v13 }
 0x932   : > { %42266 = vmatprep.subr.bf16.mxu0 %v42754_v9 }
 0x934   : > { %40957 = vmatmul.mubr.msk.f32.vlgmr.msra.gmra.mrb[42].mxu0 %vm33474_vm2, %v33870_v7  ;;  %v34581_v7 = vrot.slane %v47805_v54, 2 }
 0x935   : > { %42268 = vmatpush3.bf16.msra.mxu0 %v42267_v8  ;;  %40967 = vmatprep.mubr.msk.f32.mxu0 %vm42755_vm12, %v48463_v25  ;;  %v42321_v8 = vpack.c.bf16 %v35877_v49, %v35876_v50 }
 0x936   : > { %42269 = vmatprep.subr.bf16.mxu0 %v42754_v9 }
 0x939   : > { %42271 = vmatpush3.bf16.msra.mxu0 %v42270_v34  ;;  %v42324_v34 = vpack.c.bf16 %v35879_v15, %v35878_v62 }
 0x93a   : > { %42272 = vmatprep.subr.bf16.mxu0 %v42754_v9 }
 0x93c   : > { %40968 = vmatmul.mubr.msk.f32.vlgmr.msra.gmra.mrb[42].mxu0 %vm33474_vm2, %v33949_v41 }
 0x93d   : > { %42274 = vmatpush3.bf16.msra.mxu0 %v42273_v60  ;;  %40978 = vmatprep.mubr.msk.f32.mxu0 %vm42755_vm12, %v48463_v25 }
 0x93e   : > { %42275 = vmatprep.subr.bf16.mxu0 %v42754_v9 }
 0x941   : > { %42277 = vmatpush3.bf16.msra.mxu0 %v42276_v21 }
 0x942   : > { %42278 = vmatprep.subr.bf16.mxu0 %v42754_v9 }
 0x944   : > { %40979 = vmatmul.mubr.msk.f32.vlgmr.msra.gmra.mrb[42].mxu0 %vm33474_vm2, %v34028_v38 }
 0x945   : > { %42280 = vmatpush3.bf16.msra.mxu0 %v42279_v11  ;;  %40989 = vmatprep.mubr.msk.f32.mxu0 %vm42755_vm12, %v48463_v25 }
 0x946   : > { %42281 = vmatprep.subr.bf16.mxu0 %v42754_v9 }
 0x949   : > { %42283 = vmatpush3.bf16.msra.mxu0 %v42282_v32 }
 0x94a   : > { %42284 = vmatprep.subr.bf16.mxu0 %v42754_v9 }
 0x94c   : > { %40990 = vmatmul.mubr.msk.f32.vlgmr.msra.gmra.mrb[42].mxu0 %vm33474_vm2, %v47802_v61  ;;  %v35866_v61 = vld [vmem:[%s48106_s7 + $0x1a0] sm:$0xff] }
 0x94d   : > { %42286 = vmatpush3.bf16.msra.mxu0 %v42285_v36  ;;  %41000 = vmatprep.mubr.msk.f32.mxu0 %vm42755_vm12, %v48463_v25  ;;  %v42309_v17 = vpack.c.bf16 %v35867_v59, %v35866_v61 }
 0x94e   : > { %42287 = vmatprep.subr.bf16.mxu0 %v42754_v9 }
 0x951   : > { %42289 = vmatpush3.bf16.msra.mxu0 %v42288_v58 }
 0x952   : > { %42290 = vmatprep.subr.bf16.mxu0 %v42754_v9 }
 0x954   : > { %41001 = vmatmul.mubr.msk.f32.vlgmr.msra.gmra.mrb[42].mxu0 %vm33474_vm2, %v34186_v0 }
 0x955   : > { %42292 = vmatpush3.bf16.msra.mxu0 %v42291_v23  ;;  %41011 = vmatprep.mubr.msk.f32.mxu0 %vm42755_vm12, %v48463_v25 }
 0x956   : > { %42293 = vmatprep.subr.bf16.mxu0 %v42754_v9 }
 0x959   : > { %42295 = vmatpush3.bf16.msra.mxu0 %v42294_v12 }
 0x95a   : > { %42296 = vmatprep.subr.bf16.mxu0 %v42754_v9 }
 0x95c   : > { %41012 = vmatmul.mubr.msk.f32.vlgmr.msra.gmra.mrb[42].mxu0 %vm33474_vm2, %v34265_v27 }
 0x95d   : > { %42298 = vmatpush3.bf16.msra.mxu0 %v42297_v1  ;;  %41022 = vmatprep.mubr.msk.f32.mxu0 %vm42755_vm12, %v48463_v25 }
 0x95e   : > { %42299 = vmatprep.subr.bf16.mxu0 %v42754_v9 }
 0x961   : > { %42301 = vmatpush3.bf16.msra.mxu0 %v42300_v33 }
 0x962   : > { %42302 = vmatprep.subr.bf16.mxu0 %v42754_v9 }
 0x964   : > { %41023 = vmatmul.mubr.msk.f32.vlgmr.msra.gmra.mrb[42].mxu0 %vm33474_vm2, %v34344_v28 }
 0x965   : > { %42304 = vmatpush3.bf16.msra.mxu0 %v42303_v51  ;;  %41033 = vmatprep.mubr.msk.f32.mxu0 %vm42755_vm12, %v48463_v25 }
 0x966   : > { %42305 = vmatprep.subr.bf16.mxu0 %v42754_v9 }
 0x969   : > { %42307 = vmatpush3.bf16.msra.mxu0 %v42306_v56 }
 0x96a   : > { %42308 = vmatprep.subr.bf16.mxu0 %v42754_v9 }
 0x96c   : > { %41034 = vmatmul.mubr.msk.f32.vlgmr.msra.gmra.mrb[42].mxu0 %vm33474_vm2, %v47805_v54 }
 0x96d   : > { %42310 = vmatpush3.bf16.msra.mxu0 %v42309_v17  ;;  %41044 = vmatprep.mubr.msk.f32.mxu0 %vm42755_vm12, %v48463_v25 }
 0x96e   : > { %42311 = vmatprep.subr.bf16.mxu0 %v42754_v9 }
 0x971   : > { %42313 = vmatpush3.bf16.msra.mxu0 %v42312_v22 }
 0x972   : > { %42314 = vmatprep.subr.bf16.mxu0 %v42754_v9 }
 0x974   : > { %41045 = vmatmul.mubr.msk.f32.vlgmr.msra.gmra.mrb[42].mxu0 %vm33474_vm2, %v34502_v43 }
 0x975   : > { %42316 = vmatpush3.bf16.msra.mxu0 %v42315_v40  ;;  %41055 = vmatprep.mubr.msk.f32.mxu0 %vm42755_vm12, %v48463_v25 }
 0x976   : > { %42317 = vmatprep.subr.bf16.mxu0 %v42754_v9 }
 0x979   : > { %42319 = vmatpush3.bf16.msra.mxu0 %v42318_v37 }
 0x97a   : > { %42320 = vmatprep.subr.bf16.mxu0 %v42754_v9 }
 0x97c   : > { %41056 = vmatmul.mubr.msk.f32.vlgmr.msra.gmra.mrb[42].mxu0 %vm33474_vm2, %v34581_v7 }
 0x97d   : > { %42322 = vmatpush3.bf16.msra.mxu0 %v42321_v8  ;;  %41066 = vmatprep.mubr.msk.f32.mxu0 %vm42755_vm12, %v48463_v25 }
 0x97e   : > { %42323 = vmatprep.subr.bf16.mxu0 %v42754_v9 }
 0x981   : > { %42325 = vmatpush3.bf16.msra.mxu0 %v42324_v34 }
 0x984   : > { %41067 = vmatmul.mubr.msk.f32.vlgmr.msra.gmra.mrb[42].mxu0 %vm33474_vm2, %v34660_v31 }
 0xa57   : > { %v34729_v60 = vpop.f32.mrb[42].mxu0 }
 0xa58   : > { %v42328_v41 = vadd.f32 %v34729_v60, %v33469_v3  ;;  %v41068_v25 = vpop.f32.mrb[43].mxu0 }
 0xa5a   : > { %34735 = vst.msk [vmem:[%s324_s17] sm:$0x1] %vm34734_vm4, %v42328_v41 }
 0xa5b   : > { %42702 = shalt.err (!%p42699_p3)
}
 0xa5c   : > { %s42703_s28 = scalar_lea.hbm %s48057_s24, 16  ;;  %s42707_s17 = scalar_lea.hbm %s48108_s9, 32 }
 0xa5d   : > { %p42704_p4 = scmp.ne.s32.totalorder %s48057_s24, %s42703_s28  ;;  %p42708_p9 = scmp.lt.u32.totalorder %s48057_s24, %s48108_s9 }
 0xa5e   : > { %p42709_p10 = scmp.lt.u32.totalorder %s42707_s17, %s42703_s28  ;;  %p42711_p12 = scmp.lt.u32.totalorder %s42703_s28, %s48057_s24 }
 0xa5f   : > { %p42705_p7 = pnand %p42704_p4, %p42846_p5 }
 0xa60   : > { %p42710_p11 = por %p42709_p10, %p42708_p9 }
 0xa61   : > { %p42706_p8 = pneg %p42705_p7 }
 0xa62   : > { %p42712_p13 = por %p42711_p12, %p42710_p11 }
 0xa64   : > { %p42713_p0 = pnand %p42712_p13, %p42706_p8 }
 0xa66   : > { %42716 = shalt.err (!%p42713_p0)
}
 0xa67   : > { %42614 = dma.vmem_to_hbm [thread:$0]  (%p42846_p5), %s48059_s21, 16, %s48057_s24, %s34737_s25  }
 0xa68 PF: > { %p42620_p1 = scmp.ge.s32.totalorder %s42751_s12, 2  ;;  %s34761_s26 = sand.u32 1, %s42739_s30  }
 0xa69   : > { %s34762_s13 = scalar_lea.sflag [#allocation5], %s34761_s26 }
 0xa6a   : > { %p42617_p2 = pnand %p42620_p1, %p42850_p6 }
 0xa6c   : > { %42734 = dma.done.wait (!%p42617_p2), %s34762_s13, 16  }
 0xa6d   : > { %42736 = vsyncadd (!%p42617_p2), %s34762_s13, 4294967280  ;;  %p19_p3 = scmp.ge.s32.totalorder %s42833_s15, 4   ;;  %s48525_s30 = smov %s42743_s10 }
 0xa6e   : > { %s48526_s10 = smov %s42747_s11  ;;  %s48527_s11 = smov %s42844_s18 }
 0xa6f   : > { %s48528_s12 = smov %s42833_s15  ;;  %21 = sbr.rel (!%p19_p3) target bundleno = 3 (0x3), region = 108 }
 0xa76   :  { %34766 = vsyncpa [#allocation5], 1 }
 0xa77   :  { %34768 = vsyncpa [#allocation5 + $0x1], 1 }

</bundles_post_ra>
